<compile_context>
chip_gen: v7x
topology: tpu7x:2x2x1
jax: 0.10.0
libtpu: 0.0.40
codegen_flags: <defaults>
</compile_context>

<pallas_src>
import functools
from math import sqrt, log2

import jax
import jax.numpy as jnp
from jax.experimental import pallas as pl
from jax.experimental.pallas import tpu as pltpu

CP = 128                    # lane width: every activation / cout padded to 128
ACT_DTYPE = jnp.bfloat16    # activation / weight dtype fed to the MXU


def round_up(n, m):
    return ((n + m - 1) // m) * m


def pick_chunk(n_rows):
    # row-chunk (second-minor block dim); multiple of 16 for bf16 sublane pack
    if n_rows >= 512:
        return 256
    return round_up(n_rows, 16)


# ------------------------------ Pallas kernel -------------------------------

def _fused_mm_kernel(*refs, act, has_res, rms_scale, has_lfq, has_post):
    """out = post(lfq(res_add(silu(rmsnorm(x @ w + b)))))  (all parts optional).

    x_ref : (R, K)  bf16  packed im2col patches (kh*kw*cin in K)
    w_ref : (K, N)  bf16  packed conv weight
    b_ref : (1, N)  f32   bias (added in epilogue; acc stays in vregs)
    """
    it = iter(refs)
    x_ref = next(it)
    w_ref = next(it)
    b_ref = next(it)
    res_ref = next(it) if has_res else None
    g_ref = next(it) if rms_scale is not None else None
    if has_lfq:
        lfq_wi = next(it); lfq_bi = next(it); lfq_wo = next(it); lfq_bo = next(it)
    if has_post:
        pw_ref = next(it); pb_ref = next(it)
    o_ref = next(it)

    # single MXU matmul, f32 accumulation held in vregs (no scratch ping-pong)
    y = jnp.dot(x_ref[...], w_ref[...], preferred_element_type=jnp.float32)
    y = y + b_ref[...]

    if rms_scale is not None:
        # ChanRMSNorm: F.normalize(x, dim=C) * sqrt(C) * (gamma + 1); rsqrt -> EUP
        ssq = jnp.sum(y * y, axis=-1, keepdims=True)
        y = y * jax.lax.rsqrt(ssq + 1e-24) * (rms_scale * (g_ref[...] + 1.0))
    if act == "silu":
        y = y * jax.nn.sigmoid(y)
    if has_res:
        y = y + res_ref[...].astype(jnp.float32)
    if has_lfq:
        # LFQ(codebook_size=2): project_in -> sign(+/-1) -> project_out
        z = jnp.sum(y * lfq_wi[...], axis=-1, keepdims=True) + lfq_bi[...]
        code = jnp.where(z > 0.0, 1.0, -1.0)
        y = code * lfq_wo[...] + lfq_bo[...]
    if has_post:
        # fused follow-up 1x1 conv + SiLU (Upsample conv / discr to_logits[0])
        y = jnp.dot(y.astype(ACT_DTYPE), pw_ref[...],
                    preferred_element_type=jnp.float32) + pb_ref[...]
        y = y * jax.nn.sigmoid(y)
    o_ref[...] = y.astype(o_ref.dtype)


def fused_matmul(x, w, b, *, chunk, act=None, residual=None, gamma=None,
                 rms_scale=None, lfq=None, post=None):
    """x:(B,Lp,Kp) bf16, w:(Kp,N) bf16, b:(1,N) f32 -> (B,Lp,N) bf16."""
    B, Lp, Kp = x.shape
    N = w.shape[-1]
    nr = Lp // chunk
    has_res = residual is not None
    has_lfq = lfq is not None
    has_post = post is not None

    inputs = [x, w, b]
    in_specs = [
        pl.BlockSpec((None, chunk, Kp), lambda bi, ri: (bi, ri, 0)),
        pl.BlockSpec((Kp, N), lambda bi, ri: (0, 0)),
        pl.BlockSpec((1, N), lambda bi, ri: (0, 0)),
    ]
    if has_res:
        inputs.append(residual)
        in_specs.append(pl.BlockSpec((None, chunk, N), lambda bi, ri: (bi, ri, 0)))
    if gamma is not None:
        inputs.append(gamma)
        in_specs.append(pl.BlockSpec((1, N), lambda bi, ri: (0, 0)))
    if has_lfq:
        inputs += [lfq["w_in"], lfq["b_in"], lfq["w_out"], lfq["b_out"]]
        in_specs += [pl.BlockSpec((1, N), lambda bi, ri: (0, 0)),
                     pl.BlockSpec((1, 1), lambda bi, ri: (0, 0)),
                     pl.BlockSpec((1, N), lambda bi, ri: (0, 0)),
                     pl.BlockSpec((1, N), lambda bi, ri: (0, 0))]
    if has_post:
        inputs += [post["w"], post["b"]]
        in_specs += [pl.BlockSpec((N, N), lambda bi, ri: (0, 0)),
                     pl.BlockSpec((1, N), lambda bi, ri: (0, 0))]

    kernel = functools.partial(_fused_mm_kernel, act=act, has_res=has_res,
                               rms_scale=rms_scale, has_lfq=has_lfq,
                               has_post=has_post)

    flops = 2 * B * Lp * Kp * N + (2 * B * Lp * N * N if has_post else 0)
    trans = B * Lp * N if (act == "silu" or has_post) else 0
    bytes_accessed = (2 * B * Lp * Kp + 2 * Kp * N + 4 * N + 2 * B * Lp * N
                      + (2 * B * Lp * N if has_res else 0))
    cost = pl.CostEstimate(flops=flops, transcendentals=trans,
                           bytes_accessed=bytes_accessed)

    return pl.pallas_call(
        kernel,
        out_shape=jax.ShapeDtypeStruct((B, Lp, N), ACT_DTYPE),
        grid=(B, nr),
        in_specs=in_specs,
        out_specs=pl.BlockSpec((None, chunk, N), lambda bi, ri: (bi, ri, 0)),
        compiler_params=pltpu.CompilerParams(
            dimension_semantics=("parallel", "parallel")),
        cost_estimate=cost,
    )(*inputs)


# ------------------------------ jnp glue ops --------------------------------

def pad_last(x, n=CP):
    p = n - x.shape[-1]
    if p == 0:
        return x
    return jnp.pad(x, [(0, 0)] * (x.ndim - 1) + [(0, p)])


def extract_patches(x, kh, kw, *, stride=1, pad=0):
    """im2col at the REAL channel count: (B,H,W,C) -> (B,oh,ow,kh*kw*C)."""
    if pad:
        x = jnp.pad(x, ((0, 0), (pad, pad), (pad, pad), (0, 0)))
    _, Hp, Wp, _ = x.shape
    oh = (Hp - kh) // stride + 1
    ow = (Wp - kw) // stride + 1
    taps = []
    for di in range(kh):
        for dj in range(kw):
            taps.append(x[:, di:di + (oh - 1) * stride + 1:stride,
                            dj:dj + (ow - 1) * stride + 1:stride, :])
    return jnp.concatenate(taps, axis=-1), oh, ow


def space_to_depth(x, c):
    # Rearrange 'b c (h s1) (w s2) -> b (c s1 s2) h w' in NHWC, real channels
    B, H, W, _ = x.shape
    xr = x[..., :c].reshape(B, H // 2, 2, W // 2, 2, c)
    xr = jnp.transpose(xr, (0, 1, 3, 5, 2, 4))
    return xr.reshape(B, H // 2, W // 2, c * 4)


def pixel_shuffle(x, c4):
    # nn.PixelShuffle(2) in NHWC (input channel index = c*4 + s1*2 + s2)
    B, H, W, _ = x.shape
    c = c4 // 4
    xr = x[..., :c4].reshape(B, H, W, c, 2, 2)
    xr = jnp.transpose(xr, (0, 1, 4, 2, 5, 3))
    return xr.reshape(B, H * 2, W * 2, c)


def conv_layer(x, p, *, pad=0, stride=1, act=None, residual=None, gamma=None,
               rms_dim=None, lfq=None, post=None):
    """Conv2d (+ fused epilogue) via one packed-K Pallas matmul per call."""
    B = x.shape[0]
    xr = x[..., :p["cin"]]                         # drop lane padding (real cin)
    patches, oh, ow = extract_patches(xr, p["kh"], p["kw"], stride=stride, pad=pad)
    L = oh * ow
    K = patches.shape[-1]
    Kp = p["w"].shape[0]
    R = pick_chunk(L)
    Lp = round_up(L, R)
    pf = patches.reshape(B, L, K).astype(ACT_DTYPE)
    pf = jnp.pad(pf, ((0, 0), (0, Lp - L), (0, Kp - K)))

    res = None
    if residual is not None:
        res = pad_last(residual.astype(ACT_DTYPE)).reshape(B, L, CP)
        if Lp > L:
            res = jnp.pad(res, ((0, 0), (0, Lp - L), (0, 0)))

    rms_scale = float(rms_dim) ** 0.5 if gamma is not None else None
    out = fused_matmul(pf, p["w"], p["b"], chunk=R, act=act, residual=res,
                       gamma=gamma, rms_scale=rms_scale, lfq=lfq, post=post)
    return out[:, :L, :].reshape(B, oh, ow, CP)


# ---------------------------- parameter init --------------------------------

def _pack_w(w):
    """(kh,kw,cin,cout) f32 -> (round_up(kh*kw*cin,128), 128) bf16, taps in K."""
    kh, kw, cin, cout = w.shape
    K = kh * kw * cin
    Kp = round_up(K, 128)
    out = jnp.zeros((Kp, CP), jnp.float32).at[:K, :cout].set(w.reshape(K, cout))
    return out.astype(ACT_DTYPE)


def _pad_vec(v, n=CP):
    return jnp.zeros((1, n), jnp.float32).at[0, :v.shape[-1]].set(
        v.astype(jnp.float32).reshape(-1))


def conv_params(key, cin, cout, k):
    k1, k2 = jax.random.split(key)
    bound = 1.0 / sqrt(cin * k * k)
    w = jax.random.uniform(k1, (k, k, cin, cout), jnp.float32, -bound, bound)
    b = jax.random.uniform(k2, (cout,), jnp.float32, -bound, bound)
    return {"w": _pack_w(w), "b": _pad_vec(b), "kh": k, "kw": k, "cin": cin}


def resnet_params(key, d):
    k1, k2 = jax.random.split(key)
    return {"b1": conv_params(k1, d, d, 3), "b2": conv_params(k2, d, d, 3)}


def upconv_params(key, cin, dim_out):
    # Upsample.init_conv_: kaiming base (dim_out,cin,1,1) repeated 4x on cout, zero bias
    bound = sqrt(6.0 / cin)
    base = jax.random.uniform(key, (1, 1, cin, dim_out), jnp.float32, -bound, bound)
    w = jnp.repeat(base, 4, axis=-1)                 # channel order '(o 4)'
    b = jnp.zeros((dim_out * 4,), jnp.float32)
    return {"w": _pack_w(w), "b": _pad_vec(b), "kh": 1, "kw": 1, "cin": cin}


def lfq_params(key, d):
    k1, k2, k3, k4 = jax.random.split(key, 4)
    bi = 1.0 / sqrt(d)
    return {"w_in": _pad_vec(jax.random.uniform(k1, (d,), jnp.float32, -bi, bi)),
            "b_in": jax.random.uniform(k2, (1, 1), jnp.float32, -bi, bi),
            "w_out": _pad_vec(jax.random.uniform(k3, (d,), jnp.float32, -1.0, 1.0)),
            "b_out": _pad_vec(jax.random.uniform(k4, (d,), jnp.float32, -1.0, 1.0))}


# ------------------------------ BQVAE model ---------------------------------

def build_bqvae(key, *, dim=8, image_size=32, channels=3, depth=1,
                proj_in_kernel_size=7, entropy_loss_weight=0.1,
                gen_loss_weight=0.1):
    # static architecture bookkeeping (mirrors BQVAE.__init__)
    enc_dims, curr, fmap = [], dim, image_size
    for _ in range(depth):
        enc_dims.append(curr)
        curr *= 2
        fmap //= 2
    dec_dims, d = [], curr
    for _ in range(depth):
        dec_dims.append(d // 2)
        d //= 2
    discr_dims = (dim,) * int(log2(fmap) - 2)

    keys = iter(jax.random.split(key, 128))
    params = {"proj_in": conv_params(next(keys), channels, dim, proj_in_kernel_size)}
    enc, c = [], dim
    for _ in range(depth):
        enc.append({"res": resnet_params(next(keys), c),
                    "down": conv_params(next(keys), c * 4, c * 2, 1)})
        c *= 2
    params["enc"] = enc
    params["mid"] = resnet_params(next(keys), c)
    params["lfq"] = lfq_params(next(keys), c)
    dec = []
    for _ in range(depth):
        dec.append({"up": upconv_params(next(keys), c, c // 2),
                    "res": resnet_params(next(keys), c // 2)})
        c //= 2
    params["dec"] = dec
    params["proj_out"] = conv_params(next(keys), c, channels, 3)
    discr = {"conv_in": conv_params(next(keys), channels, discr_dims[0], 5),
             "downs": [],
             "l1": conv_params(next(keys), discr_dims[-1], discr_dims[-1], 1),
             "l2": conv_params(next(keys), discr_dims[-1], 1, 4)}
    for din, dout in zip(discr_dims[:-1], discr_dims[1:]):
        discr["downs"].append({"conv": conv_params(next(keys), din, dout, 4),
                               "gamma": jnp.zeros((1, CP), jnp.float32)})
    params["discr"] = discr

    def resnet(x, p, lfq=None, post=None):
        # Block: conv -> SiLU (-> dropout: eval no-op); residual added after block2
        h = conv_layer(x, p["b1"], pad=1, act="silu")
        return conv_layer(h, p["b2"], pad=1, act="silu", residual=x,
                          lfq=lfq, post=post)

    def discriminator(x, p):
        n_down = len(p["downs"])
        x = conv_layer(x, p["conv_in"], pad=2, act="silu",
                       post=p["l1"] if n_down == 0 else None)
        for i, (layer, dd) in enumerate(zip(p["downs"], discr_dims[1:])):
            # stride-2 4x4 conv + ChanRMSNorm + SiLU (+ fused to_logits 1x1 conv)
            x = conv_layer(x, layer["conv"], stride=2, pad=1, act="silu",
                           gamma=layer["gamma"], rms_dim=dd,
                           post=p["l1"] if i == n_down - 1 else None)
        return conv_layer(x, p["l2"])          # final 4x4 conv, no padding

    def forward(images_nchw):
        # NCHW in (PyTorch convention) -> NHWC, lane-padded bf16 internally
        images = jnp.transpose(images_nchw, (0, 2, 3, 1)).astype(jnp.float32)

        x = conv_layer(images.astype(ACT_DTYPE), params["proj_in"],
                       pad=proj_in_kernel_size // 2)
        for stage, c_in in zip(params["enc"], enc_dims):
            x = resnet(x, stage["res"])
            x = space_to_depth(x, c_in)                      # Downsample rearrange
            x = conv_layer(x, stage["down"])                 # 1x1 conv
        # mid block: LFQ quantizer and the first decoder Upsample conv (+SiLU)
        # are fused into its second conv's epilogue
        ups = [st["up"] for st in params["dec"]]
        x = resnet(x, params["mid"], lfq=params["lfq"],
                   post=ups[0] if depth >= 1 else None)
        for i, (stage, d_out) in enumerate(zip(params["dec"], dec_dims)):
            x = pixel_shuffle(x, d_out * 4)
            x = resnet(x, stage["res"],
                       post=ups[i + 1] if i + 1 < depth else None)
        recon = conv_layer(x, params["proj_out"], pad=1)

        recon_real = recon[..., :channels].astype(jnp.float32)
        recon_loss = jnp.mean((images - recon_real) ** 2)

        # TODO(synk): LFQ entropy aux loss is training-only; eval-mode LFQ returns 0.
        entropy_aux_loss = jnp.asarray(0.0, jnp.float32)

        logits = discriminator(recon, params["discr"])
        gen_loss = -jnp.mean(logits[..., :1].astype(jnp.float32))   # hinge_gen_loss

        total = (recon_loss
                 + entropy_aux_loss * entropy_loss_weight
                 + gen_loss * gen_loss_weight)
        return total, recon_real

    return params, forward


# ----------------------------------- main ------------------------------------

if __name__ == "__main__":
    key = jax.random.PRNGKey(0)
    pkey, xkey = jax.random.split(key)

    B, C, H = 2, 3, 32          # small shapes: batch=2, channels=3, image 32x32
    params, forward = build_bqvae(pkey, dim=8, image_size=H, channels=C, depth=1)
    images = jax.random.normal(xkey, (B, C, H, H), jnp.float32)   # NCHW input

    total_loss, recon = jax.jit(forward)(images)
    jax.block_until_ready((total_loss, recon))

    assert recon.shape == (B, H, H, C)          # NHWC recon (real channels)
    assert total_loss.shape == ()
    assert bool(jnp.isfinite(total_loss))
    print("KERNEL_OK")
</pallas_src>

<mosaic_0001>
module attributes {stable_mosaic.version = 11 : i64} {
  func.func @_fused_mm_kernel(%arg0: i32, %arg1: i32, %arg2: memref<1x256x256xbf16, #tpu.memory_space<vmem>>, %arg3: memref<256x128xbf16, #tpu.memory_space<vmem>>, %arg4: memref<1x128xf32, #tpu.memory_space<vmem>>, %arg5: memref<1x256x128xbf16, #tpu.memory_space<vmem>>) attributes {dimension_semantics = [#tpu.dimension_semantics<parallel>, #tpu.dimension_semantics<parallel>], iteration_bounds = array<i64: 2, 4>, scalar_prefetch = 0 : i64, scratch_operands = 0 : i64, tpu.core_type = #tpu.core_type<tc>, window_params = [{transform_indices = @transform_0, window_bounds = array<i64: 1, 256, 256>}, {pipeline_mode = #tpu.pipeline_mode<synchronous>, transform_indices = @transform_1, window_bounds = array<i64: 256, 128>}, {pipeline_mode = #tpu.pipeline_mode<synchronous>, transform_indices = @transform_2, window_bounds = array<i64: 1, 128>}, {transform_indices = @transform_3, window_bounds = array<i64: 1, 256, 128>}]} {
    %c0 = arith.constant 0 : index
    %c0_0 = arith.constant 0 : index
    %c0_1 = arith.constant 0 : index
    %0 = vector.load %arg2[%c0, %c0_0, %c0_1] : memref<1x256x256xbf16, #tpu.memory_space<vmem>>, vector<1x256x256xbf16>
    %1 = vector.shape_cast %0 : vector<1x256x256xbf16> to vector<256x256xbf16>
    %c0_2 = arith.constant 0 : index
    %c0_3 = arith.constant 0 : index
    %2 = vector.load %arg3[%c0_2, %c0_3] : memref<256x128xbf16, #tpu.memory_space<vmem>>, vector<256x128xbf16>
    %cst = arith.constant dense<0.000000e+00> : vector<256x128xf32>
    %3 = tpu.matmul %1, %2, %cst {dimension_numbers = #tpu.dot_dimension_numbers<[1], [0], [0], [1], [0, 0, 1, 1], [], []>} : vector<256x256xbf16>, vector<256x128xbf16>, vector<256x128xf32> -> vector<256x128xf32>
    %c0_4 = arith.constant 0 : index
    %c0_5 = arith.constant 0 : index
    %4 = vector.load %arg4[%c0_4, %c0_5] : memref<1x128xf32, #tpu.memory_space<vmem>>, vector<1x128xf32>
    %5 = vector.broadcast %4 : vector<1x128xf32> to vector<256x128xf32>
    %6 = arith.addf %3, %5 : vector<256x128xf32>
    %7 = arith.truncf %6 : vector<256x128xf32> to vector<256x128xbf16>
    %c0_6 = arith.constant 0 : index
    %c0_7 = arith.constant 0 : index
    %c0_8 = arith.constant 0 : index
    %8 = vector.load %arg5[%c0_6, %c0_7, %c0_8] : memref<1x256x128xbf16, #tpu.memory_space<vmem>>, vector<1x256x128xbf16>
    %9 = vector.shape_cast %8 : vector<1x256x128xbf16> to vector<256x128xbf16>
    %10 = vector.shape_cast %7 : vector<256x128xbf16> to vector<1x256x128xbf16>
    tpu.vector_store %arg5[%c0_6, %c0_7, %c0_8], %10 {strides = array<i32>} : memref<1x256x128xbf16, #tpu.memory_space<vmem>>, vector<1x256x128xbf16>,
    return
  }
  func.func @transform_0(%arg0: i32, %arg1: i32) -> (i32, i32, i32) {
    %c0_i32 = arith.constant 0 : i32
    %c0_i32_0 = arith.constant 0 : i32
    return %arg0, %arg1, %c0_i32 : i32, i32, i32
  }
  func.func @transform_1(%arg0: i32, %arg1: i32) -> (i32, i32) {
    %c0_i32 = arith.constant 0 : i32
    %c0_i32_0 = arith.constant 0 : i32
    %c0_i32_1 = arith.constant 0 : i32
    return %c0_i32, %c0_i32_0 : i32, i32
  }
  func.func @transform_2(%arg0: i32, %arg1: i32) -> (i32, i32) {
    %c0_i32 = arith.constant 0 : i32
    %c0_i32_0 = arith.constant 0 : i32
    %c0_i32_1 = arith.constant 0 : i32
    return %c0_i32, %c0_i32_0 : i32, i32
  }
  func.func @transform_3(%arg0: i32, %arg1: i32) -> (i32, i32, i32) {
    %c0_i32 = arith.constant 0 : i32
    %c0_i32_0 = arith.constant 0 : i32
    return %arg0, %arg1, %c0_i32 : i32, i32, i32
  }
}

module attributes {stable_mosaic.version = 11 : i64} {
  func.func @_fused_mm_kernel(%arg0: i32, %arg1: i32, %arg2: memref<1x256x128xbf16, #tpu.memory_space<vmem>>, %arg3: memref<128x128xbf16, #tpu.memory_space<vmem>>, %arg4: memref<1x128xf32, #tpu.memory_space<vmem>>, %arg5: memref<1x256x128xbf16, #tpu.memory_space<vmem>>) attributes {dimension_semantics = [#tpu.dimension_semantics<parallel>, #tpu.dimension_semantics<parallel>], iteration_bounds = array<i64: 2, 4>, scalar_prefetch = 0 : i64, scratch_operands = 0 : i64, tpu.core_type = #tpu.core_type<tc>, window_params = [{transform_indices = @transform_0, window_bounds = array<i64: 1, 256, 128>}, {pipeline_mode = #tpu.pipeline_mode<synchronous>, transform_indices = @transform_1, window_bounds = array<i64: 128, 128>}, {pipeline_mode = #tpu.pipeline_mode<synchronous>, transform_indices = @transform_2, window_bounds = array<i64: 1, 128>}, {transform_indices = @transform_3, window_bounds = array<i64: 1, 256, 128>}]} {
    %c0 = arith.constant 0 : index
    %c0_0 = arith.constant 0 : index
    %c0_1 = arith.constant 0 : index
    %0 = vector.load %arg2[%c0, %c0_0, %c0_1] : memref<1x256x128xbf16, #tpu.memory_space<vmem>>, vector<1x256x128xbf16>
    %1 = vector.shape_cast %0 : vector<1x256x128xbf16> to vector<256x128xbf16>
    %c0_2 = arith.constant 0 : index
    %c0_3 = arith.constant 0 : index
    %2 = vector.load %arg3[%c0_2, %c0_3] : memref<128x128xbf16, #tpu.memory_space<vmem>>, vector<128x128xbf16>
    %cst = arith.constant dense<0.000000e+00> : vector<256x128xf32>
    %3 = tpu.matmul %1, %2, %cst {dimension_numbers = #tpu.dot_dimension_numbers<[1], [0], [0], [1], [0, 0, 1, 1], [], []>} : vector<256x128xbf16>, vector<128x128xbf16>, vector<256x128xf32> -> vector<256x128xf32>
    %c0_4 = arith.constant 0 : index
    %c0_5 = arith.constant 0 : index
    %4 = vector.load %arg4[%c0_4, %c0_5] : memref<1x128xf32, #tpu.memory_space<vmem>>, vector<1x128xf32>
    %5 = vector.broadcast %4 : vector<1x128xf32> to vector<256x128xf32>
    %6 = arith.addf %3, %5 : vector<256x128xf32>
    %7 = arith.negf %6 : vector<256x128xf32>
    %8 = math.exp %7 : vector<256x128xf32>
    %cst_6 = arith.constant 1.000000e+00 : f32
    %9 = vector.broadcast %cst_6 : f32 to vector<256x128xf32>
    %10 = arith.addf %9, %8 : vector<256x128xf32>
    %11 = arith.divf %9, %10 : vector<256x128xf32>
    %12 = arith.mulf %6, %11 : vector<256x128xf32>
    %13 = arith.truncf %12 : vector<256x128xf32> to vector<256x128xbf16>
    %c0_7 = arith.constant 0 : index
    %c0_8 = arith.constant 0 : index
    %c0_9 = arith.constant 0 : index
    %14 = vector.load %arg5[%c0_7, %c0_8, %c0_9] : memref<1x256x128xbf16, #tpu.memory_space<vmem>>, vector<1x256x128xbf16>
    %15 = vector.shape_cast %14 : vector<1x256x128xbf16> to vector<256x128xbf16>
    %16 = vector.shape_cast %13 : vector<256x128xbf16> to vector<1x256x128xbf16>
    tpu.vector_store %arg5[%c0_7, %c0_8, %c0_9], %16 {strides = array<i32>} : memref<1x256x128xbf16, #tpu.memory_space<vmem>>, vector<1x256x128xbf16>,
    return
  }
  func.func @transform_0(%arg0: i32, %arg1: i32) -> (i32, i32, i32) {
    %c0_i32 = arith.constant 0 : i32
    %c0_i32_0 = arith.constant 0 : i32
    return %arg0, %arg1, %c0_i32 : i32, i32, i32
  }
  func.func @transform_1(%arg0: i32, %arg1: i32) -> (i32, i32) {
    %c0_i32 = arith.constant 0 : i32
    %c0_i32_0 = arith.constant 0 : i32
    %c0_i32_1 = arith.constant 0 : i32
    return %c0_i32, %c0_i32_0 : i32, i32
  }
  func.func @transform_2(%arg0: i32, %arg1: i32) -> (i32, i32) {
    %c0_i32 = arith.constant 0 : i32
    %c0_i32_0 = arith.constant 0 : i32
    %c0_i32_1 = arith.constant 0 : i32
    return %c0_i32, %c0_i32_0 : i32, i32
  }
  func.func @transform_3(%arg0: i32, %arg1: i32) -> (i32, i32, i32) {
    %c0_i32 = arith.constant 0 : i32
    %c0_i32_0 = arith.constant 0 : i32
    return %arg0, %arg1, %c0_i32 : i32, i32, i32
  }
}

module attributes {stable_mosaic.version = 11 : i64} {
  func.func @_fused_mm_kernel(%arg0: i32, %arg1: i32, %arg2: memref<1x256x128xbf16, #tpu.memory_space<vmem>>, %arg3: memref<128x128xbf16, #tpu.memory_space<vmem>>, %arg4: memref<1x128xf32, #tpu.memory_space<vmem>>, %arg5: memref<1x256x128xbf16, #tpu.memory_space<vmem>>, %arg6: memref<1x256x128xbf16, #tpu.memory_space<vmem>>) attributes {dimension_semantics = [#tpu.dimension_semantics<parallel>, #tpu.dimension_semantics<parallel>], iteration_bounds = array<i64: 2, 4>, scalar_prefetch = 0 : i64, scratch_operands = 0 : i64, tpu.core_type = #tpu.core_type<tc>, window_params = [{transform_indices = @transform_0, window_bounds = array<i64: 1, 256, 128>}, {pipeline_mode = #tpu.pipeline_mode<synchronous>, transform_indices = @transform_1, window_bounds = array<i64: 128, 128>}, {pipeline_mode = #tpu.pipeline_mode<synchronous>, transform_indices = @transform_2, window_bounds = array<i64: 1, 128>}, {transform_indices = @transform_3, window_bounds = array<i64: 1, 256, 128>}, {transform_indices = @transform_4, window_bounds = array<i64: 1, 256, 128>}]} {
    %c0 = arith.constant 0 : index
    %c0_0 = arith.constant 0 : index
    %c0_1 = arith.constant 0 : index
    %0 = vector.load %arg2[%c0, %c0_0, %c0_1] : memref<1x256x128xbf16, #tpu.memory_space<vmem>>, vector<1x256x128xbf16>
    %1 = vector.shape_cast %0 : vector<1x256x128xbf16> to vector<256x128xbf16>
    %c0_2 = arith.constant 0 : index
    %c0_3 = arith.constant 0 : index
    %2 = vector.load %arg3[%c0_2, %c0_3] : memref<128x128xbf16, #tpu.memory_space<vmem>>, vector<128x128xbf16>
    %cst = arith.constant dense<0.000000e+00> : vector<256x128xf32>
    %3 = tpu.matmul %1, %2, %cst {dimension_numbers = #tpu.dot_dimension_numbers<[1], [0], [0], [1], [0, 0, 1, 1], [], []>} : vector<256x128xbf16>, vector<128x128xbf16>, vector<256x128xf32> -> vector<256x128xf32>
    %c0_4 = arith.constant 0 : index
    %c0_5 = arith.constant 0 : index
    %4 = vector.load %arg4[%c0_4, %c0_5] : memref<1x128xf32, #tpu.memory_space<vmem>>, vector<1x128xf32>
    %5 = vector.broadcast %4 : vector<1x128xf32> to vector<256x128xf32>
    %6 = arith.addf %3, %5 : vector<256x128xf32>
    %7 = arith.negf %6 : vector<256x128xf32>
    %8 = math.exp %7 : vector<256x128xf32>
    %cst_6 = arith.constant 1.000000e+00 : f32
    %9 = vector.broadcast %cst_6 : f32 to vector<256x128xf32>
    %10 = arith.addf %9, %8 : vector<256x128xf32>
    %11 = arith.divf %9, %10 : vector<256x128xf32>
    %12 = arith.mulf %6, %11 : vector<256x128xf32>
    %c0_7 = arith.constant 0 : index
    %c0_8 = arith.constant 0 : index
    %c0_9 = arith.constant 0 : index
    %13 = vector.load %arg5[%c0_7, %c0_8, %c0_9] : memref<1x256x128xbf16, #tpu.memory_space<vmem>>, vector<1x256x128xbf16>
    %14 = vector.shape_cast %13 : vector<1x256x128xbf16> to vector<256x128xbf16>
    %15 = arith.extf %14 : vector<256x128xbf16> to vector<256x128xf32>
    %16 = arith.addf %12, %15 : vector<256x128xf32>
    %17 = arith.truncf %16 : vector<256x128xf32> to vector<256x128xbf16>
    %c0_10 = arith.constant 0 : index
    %c0_11 = arith.constant 0 : index
    %c0_12 = arith.constant 0 : index
    %18 = vector.load %arg6[%c0_10, %c0_11, %c0_12] : memref<1x256x128xbf16, #tpu.memory_space<vmem>>, vector<1x256x128xbf16>
    %19 = vector.shape_cast %18 : vector<1x256x128xbf16> to vector<256x128xbf16>
    %20 = vector.shape_cast %17 : vector<256x128xbf16> to vector<1x256x128xbf16>
    tpu.vector_store %arg6[%c0_10, %c0_11, %c0_12], %20 {strides = array<i32>} : memref<1x256x128xbf16, #tpu.memory_space<vmem>>, vector<1x256x128xbf16>,
    return
  }
  func.func @transform_0(%arg0: i32, %arg1: i32) -> (i32, i32, i32) {
    %c0_i32 = arith.constant 0 : i32
    %c0_i32_0 = arith.constant 0 : i32
    return %arg0, %arg1, %c0_i32 : i32, i32, i32
  }
  func.func @transform_1(%arg0: i32, %arg1: i32) -> (i32, i32) {
    %c0_i32 = arith.constant 0 : i32
    %c0_i32_0 = arith.constant 0 : i32
    %c0_i32_1 = arith.constant 0 : i32
    return %c0_i32, %c0_i32_0 : i32, i32
  }
  func.func @transform_2(%arg0: i32, %arg1: i32) -> (i32, i32) {
    %c0_i32 = arith.constant 0 : i32
    %c0_i32_0 = arith.constant 0 : i32
    %c0_i32_1 = arith.constant 0 : i32
    return %c0_i32, %c0_i32_0 : i32, i32
  }
  func.func @transform_3(%arg0: i32, %arg1: i32) -> (i32, i32, i32) {
    %c0_i32 = arith.constant 0 : i32
    %c0_i32_0 = arith.constant 0 : i32
    return %arg0, %arg1, %c0_i32 : i32, i32, i32
  }
  func.func @transform_4(%arg0: i32, %arg1: i32) -> (i32, i32, i32) {
    %c0_i32 = arith.constant 0 : i32
    %c0_i32_0 = arith.constant 0 : i32
    return %arg0, %arg1, %c0_i32 : i32, i32, i32
  }
}

module attributes {stable_mosaic.version = 11 : i64} {
  func.func @_fused_mm_kernel(%arg0: i32, %arg1: i32, %arg2: memref<1x256x128xbf16, #tpu.memory_space<vmem>>, %arg3: memref<128x128xbf16, #tpu.memory_space<vmem>>, %arg4: memref<1x128xf32, #tpu.memory_space<vmem>>, %arg5: memref<1x256x128xbf16, #tpu.memory_space<vmem>>) attributes {dimension_semantics = [#tpu.dimension_semantics<parallel>, #tpu.dimension_semantics<parallel>], iteration_bounds = array<i64: 2, 1>, scalar_prefetch = 0 : i64, scratch_operands = 0 : i64, tpu.core_type = #tpu.core_type<tc>, window_params = [{transform_indices = @transform_0, window_bounds = array<i64: 1, 256, 128>}, {pipeline_mode = #tpu.pipeline_mode<synchronous>, transform_indices = @transform_1, window_bounds = array<i64: 128, 128>}, {pipeline_mode = #tpu.pipeline_mode<synchronous>, transform_indices = @transform_2, window_bounds = array<i64: 1, 128>}, {transform_indices = @transform_3, window_bounds = array<i64: 1, 256, 128>}]} {
    %c0 = arith.constant 0 : index
    %c0_0 = arith.constant 0 : index
    %c0_1 = arith.constant 0 : index
    %0 = vector.load %arg2[%c0, %c0_0, %c0_1] : memref<1x256x128xbf16, #tpu.memory_space<vmem>>, vector<1x256x128xbf16>
    %1 = vector.shape_cast %0 : vector<1x256x128xbf16> to vector<256x128xbf16>
    %c0_2 = arith.constant 0 : index
    %c0_3 = arith.constant 0 : index
    %2 = vector.load %arg3[%c0_2, %c0_3] : memref<128x128xbf16, #tpu.memory_space<vmem>>, vector<128x128xbf16>
    %cst = arith.constant dense<0.000000e+00> : vector<256x128xf32>
    %3 = tpu.matmul %1, %2, %cst {dimension_numbers = #tpu.dot_dimension_numbers<[1], [0], [0], [1], [0, 0, 1, 1], [], []>} : vector<256x128xbf16>, vector<128x128xbf16>, vector<256x128xf32> -> vector<256x128xf32>
    %c0_4 = arith.constant 0 : index
    %c0_5 = arith.constant 0 : index
    %4 = vector.load %arg4[%c0_4, %c0_5] : memref<1x128xf32, #tpu.memory_space<vmem>>, vector<1x128xf32>
    %5 = vector.broadcast %4 : vector<1x128xf32> to vector<256x128xf32>
    %6 = arith.addf %3, %5 : vector<256x128xf32>
    %7 = arith.truncf %6 : vector<256x128xf32> to vector<256x128xbf16>
    %c0_6 = arith.constant 0 : index
    %c0_7 = arith.constant 0 : index
    %c0_8 = arith.constant 0 : index
    %8 = vector.load %arg5[%c0_6, %c0_7, %c0_8] : memref<1x256x128xbf16, #tpu.memory_space<vmem>>, vector<1x256x128xbf16>
    %9 = vector.shape_cast %8 : vector<1x256x128xbf16> to vector<256x128xbf16>
    %10 = vector.shape_cast %7 : vector<256x128xbf16> to vector<1x256x128xbf16>
    tpu.vector_store %arg5[%c0_6, %c0_7, %c0_8], %10 {strides = array<i32>} : memref<1x256x128xbf16, #tpu.memory_space<vmem>>, vector<1x256x128xbf16>,
    return
  }
  func.func @transform_0(%arg0: i32, %arg1: i32) -> (i32, i32, i32) {
    %c0_i32 = arith.constant 0 : i32
    %c0_i32_0 = arith.constant 0 : i32
    return %arg0, %arg1, %c0_i32 : i32, i32, i32
  }
  func.func @transform_1(%arg0: i32, %arg1: i32) -> (i32, i32) {
    %c0_i32 = arith.constant 0 : i32
    %c0_i32_0 = arith.constant 0 : i32
    %c0_i32_1 = arith.constant 0 : i32
    return %c0_i32, %c0_i32_0 : i32, i32
  }
  func.func @transform_2(%arg0: i32, %arg1: i32) -> (i32, i32) {
    %c0_i32 = arith.constant 0 : i32
    %c0_i32_0 = arith.constant 0 : i32
    %c0_i32_1 = arith.constant 0 : i32
    return %c0_i32, %c0_i32_0 : i32, i32
  }
  func.func @transform_3(%arg0: i32, %arg1: i32) -> (i32, i32, i32) {
    %c0_i32 = arith.constant 0 : i32
    %c0_i32_0 = arith.constant 0 : i32
    return %arg0, %arg1, %c0_i32 : i32, i32, i32
  }
}

module attributes {stable_mosaic.version = 11 : i64} {
  func.func @_fused_mm_kernel(%arg0: i32, %arg1: i32, %arg2: memref<1x256x256xbf16, #tpu.memory_space<vmem>>, %arg3: memref<256x128xbf16, #tpu.memory_space<vmem>>, %arg4: memref<1x128xf32, #tpu.memory_space<vmem>>, %arg5: memref<1x256x128xbf16, #tpu.memory_space<vmem>>) attributes {dimension_semantics = [#tpu.dimension_semantics<parallel>, #tpu.dimension_semantics<parallel>], iteration_bounds = array<i64: 2, 1>, scalar_prefetch = 0 : i64, scratch_operands = 0 : i64, tpu.core_type = #tpu.core_type<tc>, window_params = [{transform_indices = @transform_0, window_bounds = array<i64: 1, 256, 256>}, {pipeline_mode = #tpu.pipeline_mode<synchronous>, transform_indices = @transform_1, window_bounds = array<i64: 256, 128>}, {pipeline_mode = #tpu.pipeline_mode<synchronous>, transform_indices = @transform_2, window_bounds = array<i64: 1, 128>}, {transform_indices = @transform_3, window_bounds = array<i64: 1, 256, 128>}]} {
    %c0 = arith.constant 0 : index
    %c0_0 = arith.constant 0 : index
    %c0_1 = arith.constant 0 : index
    %0 = vector.load %arg2[%c0, %c0_0, %c0_1] : memref<1x256x256xbf16, #tpu.memory_space<vmem>>, vector<1x256x256xbf16>
    %1 = vector.shape_cast %0 : vector<1x256x256xbf16> to vector<256x256xbf16>
    %c0_2 = arith.constant 0 : index
    %c0_3 = arith.constant 0 : index
    %2 = vector.load %arg3[%c0_2, %c0_3] : memref<256x128xbf16, #tpu.memory_space<vmem>>, vector<256x128xbf16>
    %cst = arith.constant dense<0.000000e+00> : vector<256x128xf32>
    %3 = tpu.matmul %1, %2, %cst {dimension_numbers = #tpu.dot_dimension_numbers<[1], [0], [0], [1], [0, 0, 1, 1], [], []>} : vector<256x256xbf16>, vector<256x128xbf16>, vector<256x128xf32> -> vector<256x128xf32>
    %c0_4 = arith.constant 0 : index
    %c0_5 = arith.constant 0 : index
    %4 = vector.load %arg4[%c0_4, %c0_5] : memref<1x128xf32, #tpu.memory_space<vmem>>, vector<1x128xf32>
    %5 = vector.broadcast %4 : vector<1x128xf32> to vector<256x128xf32>
    %6 = arith.addf %3, %5 : vector<256x128xf32>
    %7 = arith.negf %6 : vector<256x128xf32>
    %8 = math.exp %7 : vector<256x128xf32>
    %cst_6 = arith.constant 1.000000e+00 : f32
    %9 = vector.broadcast %cst_6 : f32 to vector<256x128xf32>
    %10 = arith.addf %9, %8 : vector<256x128xf32>
    %11 = arith.divf %9, %10 : vector<256x128xf32>
    %12 = arith.mulf %6, %11 : vector<256x128xf32>
    %13 = arith.truncf %12 : vector<256x128xf32> to vector<256x128xbf16>
    %c0_7 = arith.constant 0 : index
    %c0_8 = arith.constant 0 : index
    %c0_9 = arith.constant 0 : index
    %14 = vector.load %arg5[%c0_7, %c0_8, %c0_9] : memref<1x256x128xbf16, #tpu.memory_space<vmem>>, vector<1x256x128xbf16>
    %15 = vector.shape_cast %14 : vector<1x256x128xbf16> to vector<256x128xbf16>
    %16 = vector.shape_cast %13 : vector<256x128xbf16> to vector<1x256x128xbf16>
    tpu.vector_store %arg5[%c0_7, %c0_8, %c0_9], %16 {strides = array<i32>} : memref<1x256x128xbf16, #tpu.memory_space<vmem>>, vector<1x256x128xbf16>,
    return
  }
  func.func @transform_0(%arg0: i32, %arg1: i32) -> (i32, i32, i32) {
    %c0_i32 = arith.constant 0 : i32
    %c0_i32_0 = arith.constant 0 : i32
    return %arg0, %arg1, %c0_i32 : i32, i32, i32
  }
  func.func @transform_1(%arg0: i32, %arg1: i32) -> (i32, i32) {
    %c0_i32 = arith.constant 0 : i32
    %c0_i32_0 = arith.constant 0 : i32
    %c0_i32_1 = arith.constant 0 : i32
    return %c0_i32, %c0_i32_0 : i32, i32
  }
  func.func @transform_2(%arg0: i32, %arg1: i32) -> (i32, i32) {
    %c0_i32 = arith.constant 0 : i32
    %c0_i32_0 = arith.constant 0 : i32
    %c0_i32_1 = arith.constant 0 : i32
    return %c0_i32, %c0_i32_0 : i32, i32
  }
  func.func @transform_3(%arg0: i32, %arg1: i32) -> (i32, i32, i32) {
    %c0_i32 = arith.constant 0 : i32
    %c0_i32_0 = arith.constant 0 : i32
    return %arg0, %arg1, %c0_i32 : i32, i32, i32
  }
}

module attributes {stable_mosaic.version = 11 : i64} {
  func.func @_fused_mm_kernel(%arg0: i32, %arg1: i32, %arg2: memref<1x256x256xbf16, #tpu.memory_space<vmem>>, %arg3: memref<256x128xbf16, #tpu.memory_space<vmem>>, %arg4: memref<1x128xf32, #tpu.memory_space<vmem>>, %arg5: memref<1x256x128xbf16, #tpu.memory_space<vmem>>, %arg6: memref<1x128xf32, #tpu.memory_space<vmem>>, %arg7: memref<1x1xf32, #tpu.memory_space<vmem>>, %arg8: memref<1x128xf32, #tpu.memory_space<vmem>>, %arg9: memref<1x128xf32, #tpu.memory_space<vmem>>, %arg10: memref<128x128xbf16, #tpu.memory_space<vmem>>, %arg11: memref<1x128xf32, #tpu.memory_space<vmem>>, %arg12: memref<1x256x128xbf16, #tpu.memory_space<vmem>>) attributes {dimension_semantics = [#tpu.dimension_semantics<parallel>, #tpu.dimension_semantics<parallel>], iteration_bounds = array<i64: 2, 1>, scalar_prefetch = 0 : i64, scratch_operands = 0 : i64, tpu.core_type = #tpu.core_type<tc>, window_params = [{transform_indices = @transform_0, window_bounds = array<i64: 1, 256, 256>}, {pipeline_mode = #tpu.pipeline_mode<synchronous>, transform_indices = @transform_1, window_bounds = array<i64: 256, 128>}, {pipeline_mode = #tpu.pipeline_mode<synchronous>, transform_indices = @transform_2, window_bounds = array<i64: 1, 128>}, {transform_indices = @transform_3, window_bounds = array<i64: 1, 256, 128>}, {pipeline_mode = #tpu.pipeline_mode<synchronous>, transform_indices = @transform_4, window_bounds = array<i64: 1, 128>}, {pipeline_mode = #tpu.pipeline_mode<synchronous>, transform_indices = @transform_5, window_bounds = array<i64: 1, 1>}, {pipeline_mode = #tpu.pipeline_mode<synchronous>, transform_indices = @transform_6, window_bounds = array<i64: 1, 128>}, {pipeline_mode = #tpu.pipeline_mode<synchronous>, transform_indices = @transform_7, window_bounds = array<i64: 1, 128>}, {pipeline_mode = #tpu.pipeline_mode<synchronous>, transform_indices = @transform_8, window_bounds = array<i64: 128, 128>}, {pipeline_mode = #tpu.pipeline_mode<synchronous>, transform_indices = @transform_9, window_bounds = array<i64: 1, 128>}, {transform_indices = @transform_10, window_bounds = array<i64: 1, 256, 128>}]} {
    %c0 = arith.constant 0 : index
    %c0_0 = arith.constant 0 : index
    %c0_1 = arith.constant 0 : index
    %0 = vector.load %arg2[%c0, %c0_0, %c0_1] : memref<1x256x256xbf16, #tpu.memory_space<vmem>>, vector<1x256x256xbf16>
    %1 = vector.shape_cast %0 : vector<1x256x256xbf16> to vector<256x256xbf16>
    %c0_2 = arith.constant 0 : index
    %c0_3 = arith.constant 0 : index
    %2 = vector.load %arg3[%c0_2, %c0_3] : memref<256x128xbf16, #tpu.memory_space<vmem>>, vector<256x128xbf16>
    %cst = arith.constant dense<0.000000e+00> : vector<256x128xf32>
    %3 = tpu.matmul %1, %2, %cst {dimension_numbers = #tpu.dot_dimension_numbers<[1], [0], [0], [1], [0, 0, 1, 1], [], []>} : vector<256x256xbf16>, vector<256x128xbf16>, vector<256x128xf32> -> vector<256x128xf32>
    %c0_4 = arith.constant 0 : index
    %c0_5 = arith.constant 0 : index
    %4 = vector.load %arg4[%c0_4, %c0_5] : memref<1x128xf32, #tpu.memory_space<vmem>>, vector<1x128xf32>
    %5 = vector.broadcast %4 : vector<1x128xf32> to vector<256x128xf32>
    %6 = arith.addf %3, %5 : vector<256x128xf32>
    %7 = arith.negf %6 : vector<256x128xf32>
    %8 = math.exp %7 : vector<256x128xf32>
    %cst_6 = arith.constant 1.000000e+00 : f32
    %9 = vector.broadcast %cst_6 : f32 to vector<256x128xf32>
    %10 = arith.addf %9, %8 : vector<256x128xf32>
    %11 = arith.divf %9, %10 : vector<256x128xf32>
    %12 = arith.mulf %6, %11 : vector<256x128xf32>
    %c0_7 = arith.constant 0 : index
    %c0_8 = arith.constant 0 : index
    %c0_9 = arith.constant 0 : index
    %13 = vector.load %arg5[%c0_7, %c0_8, %c0_9] : memref<1x256x128xbf16, #tpu.memory_space<vmem>>, vector<1x256x128xbf16>
    %14 = vector.shape_cast %13 : vector<1x256x128xbf16> to vector<256x128xbf16>
    %15 = arith.extf %14 : vector<256x128xbf16> to vector<256x128xf32>
    %16 = arith.addf %12, %15 : vector<256x128xf32>
    %c0_10 = arith.constant 0 : index
    %c0_11 = arith.constant 0 : index
    %17 = vector.load %arg6[%c0_10, %c0_11] : memref<1x128xf32, #tpu.memory_space<vmem>>, vector<1x128xf32>
    %18 = vector.broadcast %17 : vector<1x128xf32> to vector<256x128xf32>
    %19 = arith.mulf %16, %18 : vector<256x128xf32>
    %cst_12 = arith.constant dense<0.000000e+00> : vector<256xf32>
    %20 = vector.multi_reduction <add>, %19, %cst_12 [1] : vector<256x128xf32> to vector<256xf32>
    %21 = vector.shape_cast %20 : vector<256xf32> to vector<256x1xf32>
    %c0_13 = arith.constant 0 : index
    %c0_14 = arith.constant 0 : index
    %22 = vector.load %arg7[%c0_13, %c0_14] : memref<1x1xf32, #tpu.memory_space<vmem>>, vector<1x1xf32>
    %23 = vector.broadcast %22 : vector<1x1xf32> to vector<256x1xf32>
    %24 = arith.addf %21, %23 : vector<256x1xf32>
    %cst_15 = arith.constant 0.000000e+00 : f32
    %25 = vector.broadcast %cst_15 : f32 to vector<256x1xf32>
    %26 = arith.cmpf ogt, %24, %25 : vector<256x1xf32>
    %cst_16 = arith.constant 1.000000e+00 : f32
    %cst_17 = arith.constant -1.000000e+00 : f32
    %27 = vector.broadcast %cst_16 : f32 to vector<256x1xf32>
    %28 = vector.broadcast %cst_17 : f32 to vector<256x1xf32>
    %29 = arith.select %26, %27, %28 : vector<256x1xi1>, vector<256x1xf32>
    %c0_18 = arith.constant 0 : index
    %c0_19 = arith.constant 0 : index
    %30 = vector.load %arg8[%c0_18, %c0_19] : memref<1x128xf32, #tpu.memory_space<vmem>>, vector<1x128xf32>
    %31 = vector.broadcast %29 : vector<256x1xf32> to vector<256x128xf32>
    %32 = vector.broadcast %30 : vector<1x128xf32> to vector<256x128xf32>
    %33 = arith.mulf %31, %32 : vector<256x128xf32>
    %c0_20 = arith.constant 0 : index
    %c0_21 = arith.constant 0 : index
    %34 = vector.load %arg9[%c0_20, %c0_21] : memref<1x128xf32, #tpu.memory_space<vmem>>, vector<1x128xf32>
    %35 = vector.broadcast %34 : vector<1x128xf32> to vector<256x128xf32>
    %36 = arith.addf %33, %35 : vector<256x128xf32>
    %37 = arith.truncf %36 : vector<256x128xf32> to vector<256x128xbf16>
    %c0_22 = arith.constant 0 : index
    %c0_23 = arith.constant 0 : index
    %38 = vector.load %arg10[%c0_22, %c0_23] : memref<128x128xbf16, #tpu.memory_space<vmem>>, vector<128x128xbf16>
    %cst_24 = arith.constant dense<0.000000e+00> : vector<256x128xf32>
    %39 = tpu.matmul %37, %38, %cst_24 {dimension_numbers = #tpu.dot_dimension_numbers<[1], [0], [0], [1], [0, 0, 1, 1], [], []>} : vector<256x128xbf16>, vector<128x128xbf16>, vector<256x128xf32> -> vector<256x128xf32>
    %c0_25 = arith.constant 0 : index
    %c0_26 = arith.constant 0 : index
    %40 = vector.load %arg11[%c0_25, %c0_26] : memref<1x128xf32, #tpu.memory_space<vmem>>, vector<1x128xf32>
    %41 = vector.broadcast %40 : vector<1x128xf32> to vector<256x128xf32>
    %42 = arith.addf %39, %41 : vector<256x128xf32>
    %43 = arith.negf %42 : vector<256x128xf32>
    %44 = math.exp %43 : vector<256x128xf32>
    %cst_27 = arith.constant 1.000000e+00 : f32
    %45 = vector.broadcast %cst_27 : f32 to vector<256x128xf32>
    %46 = arith.addf %45, %44 : vector<256x128xf32>
    %47 = arith.divf %45, %46 : vector<256x128xf32>
    %48 = arith.mulf %42, %47 : vector<256x128xf32>
    %49 = arith.truncf %48 : vector<256x128xf32> to vector<256x128xbf16>
    %c0_28 = arith.constant 0 : index
    %c0_29 = arith.constant 0 : index
    %c0_30 = arith.constant 0 : index
    %50 = vector.load %arg12[%c0_28, %c0_29, %c0_30] : memref<1x256x128xbf16, #tpu.memory_space<vmem>>, vector<1x256x128xbf16>
    %51 = vector.shape_cast %50 : vector<1x256x128xbf16> to vector<256x128xbf16>
    %52 = vector.shape_cast %49 : vector<256x128xbf16> to vector<1x256x128xbf16>
    tpu.vector_store %arg12[%c0_28, %c0_29, %c0_30], %52 {strides = array<i32>} : memref<1x256x128xbf16, #tpu.memory_space<vmem>>, vector<1x256x128xbf16>,
    return
  }
  func.func @transform_0(%arg0: i32, %arg1: i32) -> (i32, i32, i32) {
    %c0_i32 = arith.constant 0 : i32
    %c0_i32_0 = arith.constant 0 : i32
    return %arg0, %arg1, %c0_i32 : i32, i32, i32
  }
  func.func @transform_1(%arg0: i32, %arg1: i32) -> (i32, i32) {
    %c0_i32 = arith.constant 0 : i32
    %c0_i32_0 = arith.constant 0 : i32
    %c0_i32_1 = arith.constant 0 : i32
    return %c0_i32, %c0_i32_0 : i32, i32
  }
  func.func @transform_2(%arg0: i32, %arg1: i32) -> (i32, i32) {
    %c0_i32 = arith.constant 0 : i32
    %c0_i32_0 = arith.constant 0 : i32
    %c0_i32_1 = arith.constant 0 : i32
    return %c0_i32, %c0_i32_0 : i32, i32
  }
  func.func @transform_3(%arg0: i32, %arg1: i32) -> (i32, i32, i32) {
    %c0_i32 = arith.constant 0 : i32
    %c0_i32_0 = arith.constant 0 : i32
    return %arg0, %arg1, %c0_i32 : i32, i32, i32
  }
  func.func @transform_4(%arg0: i32, %arg1: i32) -> (i32, i32) {
    %c0_i32 = arith.constant 0 : i32
    %c0_i32_0 = arith.constant 0 : i32
    %c0_i32_1 = arith.constant 0 : i32
    return %c0_i32, %c0_i32_0 : i32, i32
  }
  func.func @transform_5(%arg0: i32, %arg1: i32) -> (i32, i32) {
    %c0_i32 = arith.constant 0 : i32
    %c0_i32_0 = arith.constant 0 : i32
    %c0_i32_1 = arith.constant 0 : i32
    return %c0_i32, %c0_i32_0 : i32, i32
  }
  func.func @transform_6(%arg0: i32, %arg1: i32) -> (i32, i32) {
    %c0_i32 = arith.constant 0 : i32
    %c0_i32_0 = arith.constant 0 : i32
    %c0_i32_1 = arith.constant 0 : i32
    return %c0_i32, %c0_i32_0 : i32, i32
  }
  func.func @transform_7(%arg0: i32, %arg1: i32) -> (i32, i32) {
    %c0_i32 = arith.constant 0 : i32
    %c0_i32_0 = arith.constant 0 : i32
    %c0_i32_1 = arith.constant 0 : i32
    return %c0_i32, %c0_i32_0 : i32, i32
  }
  func.func @transform_8(%arg0: i32, %arg1: i32) -> (i32, i32) {
    %c0_i32 = arith.constant 0 : i32
    %c0_i32_0 = arith.constant 0 : i32
    %c0_i32_1 = arith.constant 0 : i32
    return %c0_i32, %c0_i32_0 : i32, i32
  }
  func.func @transform_9(%arg0: i32, %arg1: i32) -> (i32, i32) {
    %c0_i32 = arith.constant 0 : i32
    %c0_i32_0 = arith.constant 0 : i32
    %c0_i32_1 = arith.constant 0 : i32
    return %c0_i32, %c0_i32_0 : i32, i32
  }
  func.func @transform_10(%arg0: i32, %arg1: i32) -> (i32, i32, i32) {
    %c0_i32 = arith.constant 0 : i32
    %c0_i32_0 = arith.constant 0 : i32
    return %arg0, %arg1, %c0_i32 : i32, i32, i32
  }
}

module attributes {stable_mosaic.version = 11 : i64} {
  func.func @_fused_mm_kernel(%arg0: i32, %arg1: i32, %arg2: memref<1x256x128xbf16, #tpu.memory_space<vmem>>, %arg3: memref<128x128xbf16, #tpu.memory_space<vmem>>, %arg4: memref<1x128xf32, #tpu.memory_space<vmem>>, %arg5: memref<1x256x128xbf16, #tpu.memory_space<vmem>>) attributes {dimension_semantics = [#tpu.dimension_semantics<parallel>, #tpu.dimension_semantics<parallel>], iteration_bounds = array<i64: 2, 4>, scalar_prefetch = 0 : i64, scratch_operands = 0 : i64, tpu.core_type = #tpu.core_type<tc>, window_params = [{transform_indices = @transform_0, window_bounds = array<i64: 1, 256, 128>}, {pipeline_mode = #tpu.pipeline_mode<synchronous>, transform_indices = @transform_1, window_bounds = array<i64: 128, 128>}, {pipeline_mode = #tpu.pipeline_mode<synchronous>, transform_indices = @transform_2, window_bounds = array<i64: 1, 128>}, {transform_indices = @transform_3, window_bounds = array<i64: 1, 256, 128>}]} {
    %c0 = arith.constant 0 : index
    %c0_0 = arith.constant 0 : index
    %c0_1 = arith.constant 0 : index
    %0 = vector.load %arg2[%c0, %c0_0, %c0_1] : memref<1x256x128xbf16, #tpu.memory_space<vmem>>, vector<1x256x128xbf16>
    %1 = vector.shape_cast %0 : vector<1x256x128xbf16> to vector<256x128xbf16>
    %c0_2 = arith.constant 0 : index
    %c0_3 = arith.constant 0 : index
    %2 = vector.load %arg3[%c0_2, %c0_3] : memref<128x128xbf16, #tpu.memory_space<vmem>>, vector<128x128xbf16>
    %cst = arith.constant dense<0.000000e+00> : vector<256x128xf32>
    %3 = tpu.matmul %1, %2, %cst {dimension_numbers = #tpu.dot_dimension_numbers<[1], [0], [0], [1], [0, 0, 1, 1], [], []>} : vector<256x128xbf16>, vector<128x128xbf16>, vector<256x128xf32> -> vector<256x128xf32>
    %c0_4 = arith.constant 0 : index
    %c0_5 = arith.constant 0 : index
    %4 = vector.load %arg4[%c0_4, %c0_5] : memref<1x128xf32, #tpu.memory_space<vmem>>, vector<1x128xf32>
    %5 = vector.broadcast %4 : vector<1x128xf32> to vector<256x128xf32>
    %6 = arith.addf %3, %5 : vector<256x128xf32>
    %7 = arith.truncf %6 : vector<256x128xf32> to vector<256x128xbf16>
    %c0_6 = arith.constant 0 : index
    %c0_7 = arith.constant 0 : index
    %c0_8 = arith.constant 0 : index
    %8 = vector.load %arg5[%c0_6, %c0_7, %c0_8] : memref<1x256x128xbf16, #tpu.memory_space<vmem>>, vector<1x256x128xbf16>
    %9 = vector.shape_cast %8 : vector<1x256x128xbf16> to vector<256x128xbf16>
    %10 = vector.shape_cast %7 : vector<256x128xbf16> to vector<1x256x128xbf16>
    tpu.vector_store %arg5[%c0_6, %c0_7, %c0_8], %10 {strides = array<i32>} : memref<1x256x128xbf16, #tpu.memory_space<vmem>>, vector<1x256x128xbf16>,
    return
  }
  func.func @transform_0(%arg0: i32, %arg1: i32) -> (i32, i32, i32) {
    %c0_i32 = arith.constant 0 : i32
    %c0_i32_0 = arith.constant 0 : i32
    return %arg0, %arg1, %c0_i32 : i32, i32, i32
  }
  func.func @transform_1(%arg0: i32, %arg1: i32) -> (i32, i32) {
    %c0_i32 = arith.constant 0 : i32
    %c0_i32_0 = arith.constant 0 : i32
    %c0_i32_1 = arith.constant 0 : i32
    return %c0_i32, %c0_i32_0 : i32, i32
  }
  func.func @transform_2(%arg0: i32, %arg1: i32) -> (i32, i32) {
    %c0_i32 = arith.constant 0 : i32
    %c0_i32_0 = arith.constant 0 : i32
    %c0_i32_1 = arith.constant 0 : i32
    return %c0_i32, %c0_i32_0 : i32, i32
  }
  func.func @transform_3(%arg0: i32, %arg1: i32) -> (i32, i32, i32) {
    %c0_i32 = arith.constant 0 : i32
    %c0_i32_0 = arith.constant 0 : i32
    return %arg0, %arg1, %c0_i32 : i32, i32, i32
  }
}

module attributes {stable_mosaic.version = 11 : i64} {
  func.func @_fused_mm_kernel(%arg0: i32, %arg1: i32, %arg2: memref<1x256x128xbf16, #tpu.memory_space<vmem>>, %arg3: memref<128x128xbf16, #tpu.memory_space<vmem>>, %arg4: memref<1x128xf32, #tpu.memory_space<vmem>>, %arg5: memref<1x128xf32, #tpu.memory_space<vmem>>, %arg6: memref<128x128xbf16, #tpu.memory_space<vmem>>, %arg7: memref<1x128xf32, #tpu.memory_space<vmem>>, %arg8: memref<1x256x128xbf16, #tpu.memory_space<vmem>>) attributes {dimension_semantics = [#tpu.dimension_semantics<parallel>, #tpu.dimension_semantics<parallel>], iteration_bounds = array<i64: 2, 1>, scalar_prefetch = 0 : i64, scratch_operands = 0 : i64, tpu.core_type = #tpu.core_type<tc>, window_params = [{transform_indices = @transform_0, window_bounds = array<i64: 1, 256, 128>}, {pipeline_mode = #tpu.pipeline_mode<synchronous>, transform_indices = @transform_1, window_bounds = array<i64: 128, 128>}, {pipeline_mode = #tpu.pipeline_mode<synchronous>, transform_indices = @transform_2, window_bounds = array<i64: 1, 128>}, {pipeline_mode = #tpu.pipeline_mode<synchronous>, transform_indices = @transform_3, window_bounds = array<i64: 1, 128>}, {pipeline_mode = #tpu.pipeline_mode<synchronous>, transform_indices = @transform_4, window_bounds = array<i64: 128, 128>}, {pipeline_mode = #tpu.pipeline_mode<synchronous>, transform_indices = @transform_5, window_bounds = array<i64: 1, 128>}, {transform_indices = @transform_6, window_bounds = array<i64: 1, 256, 128>}]} {
    %c0 = arith.constant 0 : index
    %c0_0 = arith.constant 0 : index
    %c0_1 = arith.constant 0 : index
    %0 = vector.load %arg2[%c0, %c0_0, %c0_1] : memref<1x256x128xbf16, #tpu.memory_space<vmem>>, vector<1x256x128xbf16>
    %1 = vector.shape_cast %0 : vector<1x256x128xbf16> to vector<256x128xbf16>
    %c0_2 = arith.constant 0 : index
    %c0_3 = arith.constant 0 : index
    %2 = vector.load %arg3[%c0_2, %c0_3] : memref<128x128xbf16, #tpu.memory_space<vmem>>, vector<128x128xbf16>
    %cst = arith.constant dense<0.000000e+00> : vector<256x128xf32>
    %3 = tpu.matmul %1, %2, %cst {dimension_numbers = #tpu.dot_dimension_numbers<[1], [0], [0], [1], [0, 0, 1, 1], [], []>} : vector<256x128xbf16>, vector<128x128xbf16>, vector<256x128xf32> -> vector<256x128xf32>
    %c0_4 = arith.constant 0 : index
    %c0_5 = arith.constant 0 : index
    %4 = vector.load %arg4[%c0_4, %c0_5] : memref<1x128xf32, #tpu.memory_space<vmem>>, vector<1x128xf32>
    %5 = vector.broadcast %4 : vector<1x128xf32> to vector<256x128xf32>
    %6 = arith.addf %3, %5 : vector<256x128xf32>
    %7 = arith.mulf %6, %6 : vector<256x128xf32>
    %cst_6 = arith.constant dense<0.000000e+00> : vector<256xf32>
    %8 = vector.multi_reduction <add>, %7, %cst_6 [1] : vector<256x128xf32> to vector<256xf32>
    %9 = vector.shape_cast %8 : vector<256xf32> to vector<256x1xf32>
    %cst_7 = arith.constant 1.000000e-24 : f32
    %10 = vector.broadcast %cst_7 : f32 to vector<256x1xf32>
    %11 = arith.addf %9, %10 : vector<256x1xf32>
    %12 = math.rsqrt %11 : vector<256x1xf32>
    %13 = vector.broadcast %12 : vector<256x1xf32> to vector<256x128xf32>
    %14 = arith.mulf %6, %13 : vector<256x128xf32>
    %c0_8 = arith.constant 0 : index
    %c0_9 = arith.constant 0 : index
    %15 = vector.load %arg5[%c0_8, %c0_9] : memref<1x128xf32, #tpu.memory_space<vmem>>, vector<1x128xf32>
    %cst_10 = arith.constant 1.000000e+00 : f32
    %16 = vector.broadcast %cst_10 : f32 to vector<1x128xf32>
    %17 = arith.addf %15, %16 : vector<1x128xf32>
    %cst_11 = arith.constant 2.82842708 : f32
    %18 = vector.broadcast %cst_11 : f32 to vector<1x128xf32>
    %19 = arith.mulf %18, %17 : vector<1x128xf32>
    %20 = vector.broadcast %19 : vector<1x128xf32> to vector<256x128xf32>
    %21 = arith.mulf %14, %20 : vector<256x128xf32>
    %22 = arith.negf %21 : vector<256x128xf32>
    %23 = math.exp %22 : vector<256x128xf32>
    %cst_12 = arith.constant 1.000000e+00 : f32
    %24 = vector.broadcast %cst_12 : f32 to vector<256x128xf32>
    %25 = arith.addf %24, %23 : vector<256x128xf32>
    %26 = arith.divf %24, %25 : vector<256x128xf32>
    %27 = arith.mulf %21, %26 : vector<256x128xf32>
    %28 = arith.truncf %27 : vector<256x128xf32> to vector<256x128xbf16>
    %c0_13 = arith.constant 0 : index
    %c0_14 = arith.constant 0 : index
    %29 = vector.load %arg6[%c0_13, %c0_14] : memref<128x128xbf16, #tpu.memory_space<vmem>>, vector<128x128xbf16>
    %cst_15 = arith.constant dense<0.000000e+00> : vector<256x128xf32>
    %30 = tpu.matmul %28, %29, %cst_15 {dimension_numbers = #tpu.dot_dimension_numbers<[1], [0], [0], [1], [0, 0, 1, 1], [], []>} : vector<256x128xbf16>, vector<128x128xbf16>, vector<256x128xf32> -> vector<256x128xf32>
    %c0_16 = arith.constant 0 : index
    %c0_17 = arith.constant 0 : index
    %31 = vector.load %arg7[%c0_16, %c0_17] : memref<1x128xf32, #tpu.memory_space<vmem>>, vector<1x128xf32>
    %32 = vector.broadcast %31 : vector<1x128xf32> to vector<256x128xf32>
    %33 = arith.addf %30, %32 : vector<256x128xf32>
    %34 = arith.negf %33 : vector<256x128xf32>
    %35 = math.exp %34 : vector<256x128xf32>
    %cst_18 = arith.constant 1.000000e+00 : f32
    %36 = vector.broadcast %cst_18 : f32 to vector<256x128xf32>
    %37 = arith.addf %36, %35 : vector<256x128xf32>
    %38 = arith.divf %36, %37 : vector<256x128xf32>
    %39 = arith.mulf %33, %38 : vector<256x128xf32>
    %40 = arith.truncf %39 : vector<256x128xf32> to vector<256x128xbf16>
    %c0_19 = arith.constant 0 : index
    %c0_20 = arith.constant 0 : index
    %c0_21 = arith.constant 0 : index
    %41 = vector.load %arg8[%c0_19, %c0_20, %c0_21] : memref<1x256x128xbf16, #tpu.memory_space<vmem>>, vector<1x256x128xbf16>
    %42 = vector.shape_cast %41 : vector<1x256x128xbf16> to vector<256x128xbf16>
    %43 = vector.shape_cast %40 : vector<256x128xbf16> to vector<1x256x128xbf16>
    tpu.vector_store %arg8[%c0_19, %c0_20, %c0_21], %43 {strides = array<i32>} : memref<1x256x128xbf16, #tpu.memory_space<vmem>>, vector<1x256x128xbf16>,
    return
  }
  func.func @transform_0(%arg0: i32, %arg1: i32) -> (i32, i32, i32) {
    %c0_i32 = arith.constant 0 : i32
    %c0_i32_0 = arith.constant 0 : i32
    return %arg0, %arg1, %c0_i32 : i32, i32, i32
  }
  func.func @transform_1(%arg0: i32, %arg1: i32) -> (i32, i32) {
    %c0_i32 = arith.constant 0 : i32
    %c0_i32_0 = arith.constant 0 : i32
    %c0_i32_1 = arith.constant 0 : i32
    return %c0_i32, %c0_i32_0 : i32, i32
  }
  func.func @transform_2(%arg0: i32, %arg1: i32) -> (i32, i32) {
    %c0_i32 = arith.constant 0 : i32
    %c0_i32_0 = arith.constant 0 : i32
    %c0_i32_1 = arith.constant 0 : i32
    return %c0_i32, %c0_i32_0 : i32, i32
  }
  func.func @transform_3(%arg0: i32, %arg1: i32) -> (i32, i32) {
    %c0_i32 = arith.constant 0 : i32
    %c0_i32_0 = arith.constant 0 : i32
    %c0_i32_1 = arith.constant 0 : i32
    return %c0_i32, %c0_i32_0 : i32, i32
  }
  func.func @transform_4(%arg0: i32, %arg1: i32) -> (i32, i32) {
    %c0_i32 = arith.constant 0 : i32
    %c0_i32_0 = arith.constant 0 : i32
    %c0_i32_1 = arith.constant 0 : i32
    return %c0_i32, %c0_i32_0 : i32, i32
  }
  func.func @transform_5(%arg0: i32, %arg1: i32) -> (i32, i32) {
    %c0_i32 = arith.constant 0 : i32
    %c0_i32_0 = arith.constant 0 : i32
    %c0_i32_1 = arith.constant 0 : i32
    return %c0_i32, %c0_i32_0 : i32, i32
  }
  func.func @transform_6(%arg0: i32, %arg1: i32) -> (i32, i32, i32) {
    %c0_i32 = arith.constant 0 : i32
    %c0_i32_0 = arith.constant 0 : i32
    return %arg0, %arg1, %c0_i32 : i32, i32, i32
  }
}

module attributes {stable_mosaic.version = 11 : i64} {
  func.func @_fused_mm_kernel(%arg0: i32, %arg1: i32, %arg2: memref<1x176x128xbf16, #tpu.memory_space<vmem>>, %arg3: memref<128x128xbf16, #tpu.memory_space<vmem>>, %arg4: memref<1x128xf32, #tpu.memory_space<vmem>>, %arg5: memref<1x176x128xbf16, #tpu.memory_space<vmem>>) attributes {dimension_semantics = [#tpu.dimension_semantics<parallel>, #tpu.dimension_semantics<parallel>], iteration_bounds = array<i64: 2, 1>, scalar_prefetch = 0 : i64, scratch_operands = 0 : i64, tpu.core_type = #tpu.core_type<tc>, window_params = [{transform_indices = @transform_0, window_bounds = array<i64: 1, 176, 128>}, {pipeline_mode = #tpu.pipeline_mode<synchronous>, transform_indices = @transform_1, window_bounds = array<i64: 128, 128>}, {pipeline_mode = #tpu.pipeline_mode<synchronous>, transform_indices = @transform_2, window_bounds = array<i64: 1, 128>}, {transform_indices = @transform_3, window_bounds = array<i64: 1, 176, 128>}]} {
    %c0 = arith.constant 0 : index
    %c0_0 = arith.constant 0 : index
    %c0_1 = arith.constant 0 : index
    %0 = vector.load %arg2[%c0, %c0_0, %c0_1] : memref<1x176x128xbf16, #tpu.memory_space<vmem>>, vector<1x176x128xbf16>
    %1 = vector.shape_cast %0 : vector<1x176x128xbf16> to vector<176x128xbf16>
    %c0_2 = arith.constant 0 : index
    %c0_3 = arith.constant 0 : index
    %2 = vector.load %arg3[%c0_2, %c0_3] : memref<128x128xbf16, #tpu.memory_space<vmem>>, vector<128x128xbf16>
    %cst = arith.constant dense<0.000000e+00> : vector<176x128xf32>
    %3 = tpu.matmul %1, %2, %cst {dimension_numbers = #tpu.dot_dimension_numbers<[1], [0], [0], [1], [0, 0, 1, 1], [], []>} : vector<176x128xbf16>, vector<128x128xbf16>, vector<176x128xf32> -> vector<176x128xf32>
    %c0_4 = arith.constant 0 : index
    %c0_5 = arith.constant 0 : index
    %4 = vector.load %arg4[%c0_4, %c0_5] : memref<1x128xf32, #tpu.memory_space<vmem>>, vector<1x128xf32>
    %5 = vector.broadcast %4 : vector<1x128xf32> to vector<176x128xf32>
    %6 = arith.addf %3, %5 : vector<176x128xf32>
    %7 = arith.truncf %6 : vector<176x128xf32> to vector<176x128xbf16>
    %c0_6 = arith.constant 0 : index
    %c0_7 = arith.constant 0 : index
    %c0_8 = arith.constant 0 : index
    %8 = vector.load %arg5[%c0_6, %c0_7, %c0_8] : memref<1x176x128xbf16, #tpu.memory_space<vmem>>, vector<1x176x128xbf16>
    %9 = vector.shape_cast %8 : vector<1x176x128xbf16> to vector<176x128xbf16>
    %10 = vector.shape_cast %7 : vector<176x128xbf16> to vector<1x176x128xbf16>
    tpu.vector_store %arg5[%c0_6, %c0_7, %c0_8], %10 {strides = array<i32>} : memref<1x176x128xbf16, #tpu.memory_space<vmem>>, vector<1x176x128xbf16>,
    return
  }
  func.func @transform_0(%arg0: i32, %arg1: i32) -> (i32, i32, i32) {
    %c0_i32 = arith.constant 0 : i32
    %c0_i32_0 = arith.constant 0 : i32
    return %arg0, %arg1, %c0_i32 : i32, i32, i32
  }
  func.func @transform_1(%arg0: i32, %arg1: i32) -> (i32, i32) {
    %c0_i32 = arith.constant 0 : i32
    %c0_i32_0 = arith.constant 0 : i32
    %c0_i32_1 = arith.constant 0 : i32
    return %c0_i32, %c0_i32_0 : i32, i32
  }
  func.func @transform_2(%arg0: i32, %arg1: i32) -> (i32, i32) {
    %c0_i32 = arith.constant 0 : i32
    %c0_i32_0 = arith.constant 0 : i32
    %c0_i32_1 = arith.constant 0 : i32
    return %c0_i32, %c0_i32_0 : i32, i32
  }
  func.func @transform_3(%arg0: i32, %arg1: i32) -> (i32, i32, i32) {
    %c0_i32 = arith.constant 0 : i32
    %c0_i32_0 = arith.constant 0 : i32
    return %arg0, %arg1, %c0_i32 : i32, i32, i32
  }
}

</mosaic_0001>

<bundles_post_ra>
// kernel: forward.12
= control target key start
LH: loop header
LB: loop body
LE: loop exit
PB: predicated region body
PF: predicated region fallthrough
CT: control target
= control target key end

     0   :  { %s1469_s12 = smov 0   ;;  %s1471_s13 = smov 0   ;;  %s1668_s0 = inlined_call_operand.vmem [shape: bf16[2,1024,256], index: 0, kind: input, shape index: {}]   ;;  %s1669_s1 = inlined_call_operand.vmem [shape: bf16[256,128], index: 1, kind: input, shape index: {}]   ;;  %s1670_s2 = inlined_call_operand.vmem [shape: f32[1,128], index: 2, kind: input, shape index: {}]   ;;  %s1671_s3 = inlined_call_operand.vmem [shape: bf16[2,1024,128], index: 3, kind: output, shape index: {}]  }
   0x1   :  { %s1473_s14 = smov 0   ;;  %s1475_s15 = smov 0  }
   0x2   :  { %s1477_s16 = smov 0  }
   0x3 LB: > { %s22_s17 = sadd.s32 1, %s1439_s14  ;;  %s25_s18 = sadd.s32 1, %s1443_s15  ;;  %s1447_s16 = sphi %s1477_s16, %s13_s16   ;;  %s1443_s15 = sphi %s1475_s15, %s1675_s15   ;;  %s1439_s14 = sphi %s1473_s14, %s1674_s14   ;;  %s1435_s13 = sphi %s1471_s13, %s1673_s13   ;;  %s1431_s12 = sphi %s1469_s12, %s1672_s12  }
   0x4   : > { %p23_p0 = scmp.ge.s32.totalorder %s22_s17, 4  ;;  %p959_p1 = scmp.ge.s32.totalorder %s1447_s16, 1 }
   0x5   : > { %p159_p2 = scmp.lt.s32.totalorder %s1447_s16, 9 }
   0x6   : > { %s1677_s17 = smov (%p23_p0, %s22_s17), 0  ;;  %s1679_s18 = smov (!%p23_p0, %s25_s18), %s1443_s15 }
   0x7   : > { %p160_p3 = pnand %p959_p1, %p159_p2  ;;  %p27_p4 = scmp.ge.s32.totalorder %s1679_s18, 2 }
   0x8   : > { %v1345_v0 = vld [vmem:[%s1669_s1 + $0x40] sm:$0xff] (!%p160_p3)   ;;  %s960_s21 = sshll.u32 (!%p160_p3), %s1431_s12, 5  ;;  %p193_p5 = scmp.lt.s32.totalorder (!%p160_p3), %s1435_s13, 1  ;;  %v1347_v2 = vld [vmem:[%s1669_s1 + $0x48] sm:$0xff] (!%p160_p3)   ;;  %v1349_v4 = vld [vmem:[%s1669_s1 + $0x50] sm:$0xff] (!%p160_p3)  }
   0x9   : > { %s1681_s18 = smov (%p27_p4, %s1679_s18), 0  ;;  %163 = sbr.rel (%p160_p3) target bundleno = 320 (0x140), region = 32 }
   0xa   : > { %v1346_v1 = vld [vmem:[%s1669_s1] sm:$0xff] (!%p160_p3)   ;;  %1177 = vmatprep.subr.bf16.mxu0 (!%p160_p3), %v1345_v0  ;;  %1289 = vmatprep.subr.bf16.mxu1 (!%p160_p3), %v1345_v0  ;;  %p195_p6 = scmp.lt.s32.totalorder (!%p160_p3), %s960_s21, 127  ;;  %v1348_v3 = vld [vmem:[%s1669_s1 + $0x8] sm:$0xff] (!%p160_p3)   ;;  %v1350_v5 = vld [vmem:[%s1669_s1 + $0x10] sm:$0xff] (!%p160_p3)  }
   0xb   : > { %1178 = vmatpush3.bf16.msra.mxu0 (!%p160_p3), %v1346_v1  ;;  %1297 = vmatpush3.bf16.msra.mxu1 (!%p160_p3), %v1346_v1  ;;  %v1351_v6 = vld [vmem:[%s1669_s1 + $0x58] sm:$0xff] (!%p160_p3)   ;;  %v1353_v8 = vld [vmem:[%s1669_s1 + $0x60] sm:$0xff] (!%p160_p3)   ;;  %v1355_v10 = vld [vmem:[%s1669_s1 + $0x68] sm:$0xff] (!%p160_p3)  }
   0xc   : > { %1179 = vmatprep.subr.bf16.mxu0 (!%p160_p3), %v1347_v2  ;;  %1290 = vmatprep.subr.bf16.mxu1 (!%p160_p3), %v1347_v2  ;;  %v1352_v7 = vld [vmem:[%s1669_s1 + $0x18] sm:$0xff] (!%p160_p3)   ;;  %v1354_v9 = vld [vmem:[%s1669_s1 + $0x20] sm:$0xff] (!%p160_p3)   ;;  %v1356_v13 = vld [vmem:[%s1669_s1 + $0x28] sm:$0xff] (!%p160_p3)  }
   0xd   : > { %v1357_v14 = vld [vmem:[%s1669_s1 + $0x70] sm:$0xff] (!%p160_p3)   ;;  %v1359_v16 = vld [vmem:[%s1669_s1 + $0x78] sm:$0xff] (!%p160_p3)   ;;  %v1598_v56 = vld [vmem:[%s1670_s2] ss:$0 sm:$0xff] (!%p160_p3) }
   0xe   : > { %v1358_v15 = vld [vmem:[%s1669_s1 + $0x30] sm:$0xff] (!%p160_p3)   ;;  %v1360_v17 = vld [vmem:[%s1669_s1 + $0x38] sm:$0xff] (!%p160_p3)  }
   0xf   : > { %1180 = vmatpush3.bf16.msra.mxu0 (!%p160_p3), %v1348_v3  ;;  %1298 = vmatpush3.bf16.msra.mxu1 (!%p160_p3), %v1348_v3 }
  0x10   : > { %s1683_s13 = smov (!%p193_p5, %s1435_s13), 1  ;;  %s1685_s21 = smov (!%p195_p6, %s960_s21), 127  ;;  %1181 = vmatprep.subr.bf16.mxu0 %v1349_v4  ;;  %1291 = vmatprep.subr.bf16.mxu1 %v1349_v4 }
  0x11   : > { %s962_s30 = sshll.u32 %s1683_s13, 8  ;;  %s961_s4 = sshll.u32 %s1685_s21, 1 }
  0x12   : > { %s199_s9 = sadd.s32 %s962_s30, %s961_s4 }
  0x13   : > { %1182 = vmatpush3.bf16.msra.mxu0 %v1350_v5  ;;  %1299 = vmatpush3.bf16.msra.mxu1 %v1350_v5  ;;  %s963_s12 = sshll.u32 %s199_s9, 2 }
  0x14   : > { %1183 = vmatprep.subr.bf16.mxu0 %v1351_v6  ;;  %1292 = vmatprep.subr.bf16.mxu1 %v1351_v6  ;;  %s1538_s24 = scalar_lea.vmem %s1668_s0, %s963_s12  ;;  %s965_s12 = sshll.u32 %s1683_s13, 7 }
  0x15   : > { %v1363_v11 = vld [vmem:[%s1538_s24 + $0x4] ss:$8 sps:$4 sm:$0xff]   ;;  %v1361_v18 = vld [vmem:[%s1538_s24] ss:$8 sps:$4 sm:$0xff]   ;;  %v1367_v20 = vld [vmem:[%s1538_s24 + $0x14] ss:$8 sps:$4 sm:$0xff]   ;;  %s209_s19 = sadd.s32 %s965_s12, %s1685_s21 }
  0x16   : > { %v1366_v12 = vld [vmem:[%s1538_s24 + $0x84] ss:$8 sps:$4 sm:$0xff]   ;;  %573 = vmatprep.mubr.bf16.mxu0 %v1363_v11  ;;  %v1364_v19 = vld [vmem:[%s1538_s24 + $0x80] ss:$8 sps:$4 sm:$0xff]   ;;  %v1369_v21 = vld [vmem:[%s1538_s24 + $0x94] ss:$8 sps:$4 sm:$0xff]  }
  0x17   : > { %1184 = vmatpush3.bf16.msra.mxu0 %v1352_v7  ;;  %1300 = vmatpush3.bf16.msra.mxu1 %v1352_v7  ;;  %v1371_v22 = vld [vmem:[%s1538_s24 + $0x10] ss:$8 sps:$4 sm:$0xff]   ;;  %v1373_v24 = vld [vmem:[%s1538_s24 + $0x24] ss:$8 sps:$4 sm:$0xff]   ;;  %v1377_v26 = vld [vmem:[%s1538_s24 + $0x20] ss:$8 sps:$4 sm:$0xff]  }
  0x18   : > { %1185 = vmatprep.subr.bf16.mxu0 %v1353_v8  ;;  %1293 = vmatprep.subr.bf16.mxu1 %v1353_v8  ;;  %v1372_v23 = vld [vmem:[%s1538_s24 + $0x90] ss:$8 sps:$4 sm:$0xff]   ;;  %v1375_v25 = vld [vmem:[%s1538_s24 + $0xa4] ss:$8 sps:$4 sm:$0xff]   ;;  %v1378_v27 = vld [vmem:[%s1538_s24 + $0xa0] ss:$8 sps:$4 sm:$0xff]  }
  0x19   : > { %637 = vmatprep.mubr.bf16.mxu1 %v1366_v12  ;;  %v1379_v28 = vld [vmem:[%s1538_s24 + $0x34] ss:$8 sps:$4 sm:$0xff]   ;;  %v1383_v30 = vld [vmem:[%s1538_s24 + $0x30] ss:$8 sps:$4 sm:$0xff]   ;;  %v1385_v32 = vld [vmem:[%s1538_s24 + $0x44] ss:$8 sps:$4 sm:$0xff]  }
  0x1a   : > { %v1381_v29 = vld [vmem:[%s1538_s24 + $0xb4] ss:$8 sps:$4 sm:$0xff]   ;;  %v1384_v31 = vld [vmem:[%s1538_s24 + $0xb0] ss:$8 sps:$4 sm:$0xff]   ;;  %v1387_v33 = vld [vmem:[%s1538_s24 + $0xc4] ss:$8 sps:$4 sm:$0xff]  }
  0x1b   : > { %1186 = vmatpush3.bf16.msra.mxu0 %v1354_v9  ;;  %1301 = vmatpush3.bf16.msra.mxu1 %v1354_v9  ;;  %v1389_v34 = vld [vmem:[%s1538_s24 + $0x40] ss:$8 sps:$4 sm:$0xff]   ;;  %v1391_v36 = vld [vmem:[%s1538_s24 + $0x54] ss:$8 sps:$4 sm:$0xff]   ;;  %v1395_v38 = vld [vmem:[%s1538_s24 + $0x50] ss:$8 sps:$4 sm:$0xff]  }
  0x1c   : > { %1187 = vmatprep.subr.bf16.mxu0 %v1355_v10  ;;  %1294 = vmatprep.subr.bf16.mxu1 %v1355_v10  ;;  %v1390_v35 = vld [vmem:[%s1538_s24 + $0xc0] ss:$8 sps:$4 sm:$0xff]   ;;  %v1393_v37 = vld [vmem:[%s1538_s24 + $0xd4] ss:$8 sps:$4 sm:$0xff]   ;;  %v1396_v39 = vld [vmem:[%s1538_s24 + $0xd0] ss:$8 sps:$4 sm:$0xff]  }
  0x1d   : > { %v1397_v40 = vld [vmem:[%s1538_s24 + $0x64] ss:$8 sps:$4 sm:$0xff]   ;;  %v1401_v42 = vld [vmem:[%s1538_s24 + $0x60] ss:$8 sps:$4 sm:$0xff]   ;;  %v1403_v44 = vld [vmem:[%s1538_s24 + $0x74] ss:$8 sps:$4 sm:$0xff]  }
  0x1e   : > { %v1399_v41 = vld [vmem:[%s1538_s24 + $0xe4] ss:$8 sps:$4 sm:$0xff]   ;;  %v1402_v43 = vld [vmem:[%s1538_s24 + $0xe0] ss:$8 sps:$4 sm:$0xff]   ;;  %v1405_v45 = vld [vmem:[%s1538_s24 + $0xf4] ss:$8 sps:$4 sm:$0xff]  }
  0x1f   : > { %1188 = vmatpush3.bf16.msra.mxu0 %v1356_v13  ;;  %1302 = vmatpush3.bf16.msra.mxu1 %v1356_v13  ;;  %v1407_v46 = vld [vmem:[%s1538_s24 + $0x70] ss:$8 sps:$4 sm:$0xff]   ;;  %s966_s23 = sshll.u32 %s209_s19, 2 }
  0x20   : > { %1189 = vmatprep.subr.bf16.mxu0 %v1357_v14  ;;  %1295 = vmatprep.subr.bf16.mxu1 %v1357_v14  ;;  %v1408_v47 = vld [vmem:[%s1538_s24 + $0xf0] ss:$8 sps:$4 sm:$0xff]   ;;  %s1607_s24 = scalar_lea.vmem %s1671_s3, %s966_s23 }
  0x23   : > { %1190 = vmatpush3.bf16.msra.mxu0 %v1358_v15  ;;  %1303 = vmatpush3.bf16.msra.mxu1 %v1358_v15 }
  0x24   : > { %1191 = vmatprep.subr.bf16.mxu0 %v1359_v16  ;;  %1296 = vmatprep.subr.bf16.mxu1 %v1359_v16 }
  0x27   : > { %1192 = vmatpush3.bf16.msra.mxu0 %v1360_v17  ;;  %1304 = vmatpush3.bf16.msra.mxu1 %v1360_v17 }
  0x2a   : > { %574 = vmatmul.mubr.bf16.vlgmr.msra.gmra.mrb[0].mxu0 %v1361_v18  ;;  %638 = vmatmul.mubr.bf16.vlgmr.msra.gmra.mrb[0].mxu1 %v1364_v19 }
  0x2b   : > { %581 = vmatprep.mubr.bf16.mxu0 %v1367_v20  ;;  %645 = vmatprep.mubr.bf16.mxu1 %v1369_v21 }
  0x32   : > { %582 = vmatmul.mubr.bf16.gmra.mrb[4].mxu0 %v1371_v22  ;;  %646 = vmatmul.mubr.bf16.gmra.mrb[4].mxu1 %v1372_v23 }
  0x33   : > { %589 = vmatprep.mubr.bf16.mxu0 %v1373_v24  ;;  %653 = vmatprep.mubr.bf16.mxu1 %v1375_v25 }
  0x3a   : > { %590 = vmatmul.mubr.bf16.gmra.mrb[8].mxu0 %v1377_v26  ;;  %654 = vmatmul.mubr.bf16.gmra.mrb[8].mxu1 %v1378_v27 }
  0x3b   : > { %597 = vmatprep.mubr.bf16.mxu0 %v1379_v28  ;;  %661 = vmatprep.mubr.bf16.mxu1 %v1381_v29 }
  0x42   : > { %598 = vmatmul.mubr.bf16.gmra.mrb[12].mxu0 %v1383_v30  ;;  %662 = vmatmul.mubr.bf16.gmra.mrb[12].mxu1 %v1384_v31 }
  0x43   : > { %605 = vmatprep.mubr.bf16.mxu0 %v1385_v32  ;;  %669 = vmatprep.mubr.bf16.mxu1 %v1387_v33 }
  0x4a   : > { %606 = vmatmul.mubr.bf16.gmra.mrb[16].mxu0 %v1389_v34  ;;  %670 = vmatmul.mubr.bf16.gmra.mrb[16].mxu1 %v1390_v35 }
  0x4b   : > { %613 = vmatprep.mubr.bf16.mxu0 %v1391_v36  ;;  %677 = vmatprep.mubr.bf16.mxu1 %v1393_v37 }
  0x52   : > { %614 = vmatmul.mubr.bf16.gmra.mrb[20].mxu0 %v1395_v38  ;;  %678 = vmatmul.mubr.bf16.gmra.mrb[20].mxu1 %v1396_v39 }
  0x53   : > { %621 = vmatprep.mubr.bf16.mxu0 %v1397_v40  ;;  %685 = vmatprep.mubr.bf16.mxu1 %v1399_v41 }
  0x5a   : > { %622 = vmatmul.mubr.bf16.gmra.mrb[24].mxu0 %v1401_v42  ;;  %686 = vmatmul.mubr.bf16.gmra.mrb[24].mxu1 %v1402_v43 }
  0x5b   : > { %629 = vmatprep.mubr.bf16.mxu0 %v1403_v44  ;;  %693 = vmatprep.mubr.bf16.mxu1 %v1405_v45 }
  0x62   : > { %630 = vmatmul.mubr.bf16.gmra.mrb[28].mxu0 %v1407_v46  ;;  %694 = vmatmul.mubr.bf16.gmra.mrb[28].mxu1 %v1408_v47 }
  0xfd   : > { %v1193_v48 = vpop.f32.mrb[0].mxu0  ;;  %v1241_v49 = vpop.f32.mrb[0].mxu1 }
  0xfe   : > { %v1194_v50 = vpop.f32.mrb[1].mxu0  ;;  %v1242_v51 = vpop.f32.mrb[1].mxu1 }
  0xff   : > { %v1195_v52 = vadd.f32 %v1194_v50, %v1193_v48  ;;  %v1243_v53 = vadd.f32 %v1242_v51, %v1241_v49  ;;  %v1196_v54 = vpop.f32.mrb[2].mxu0  ;;  %v1244_v55 = vpop.f32.mrb[2].mxu1 }
 0x100   : > { %v1197_v57 = vpop.f32.mrb[3].mxu0  ;;  %v1245_v58 = vpop.f32.mrb[3].mxu1 }
 0x101   : > { %v1198_v59 = vadd.f32 %v1197_v57, %v1196_v54  ;;  %v1246_v60 = vadd.f32 %v1245_v58, %v1244_v55  ;;  %v576_v61 = vadd.f32 %v1195_v52, %v1598_v56  ;;  %v640_v62 = vadd.f32 %v1243_v53, %v1598_v56 }
 0x103   : > { %v579_v63 = vadd.f32 %v1198_v59, %v1598_v56  ;;  %v643_v0 = vadd.f32 %v1246_v60, %v1598_v56 }
 0x105   : > { %v1085_v1 = vpack.c.bf16 %v579_v63, %v576_v61  ;;  %v1125_v2 = vpack.c.bf16 %v643_v0, %v640_v62  ;;  %v1199_v3 = vpop.f32.mrb[4].mxu0  ;;  %v1247_v4 = vpop.f32.mrb[4].mxu1 }
 0x106   : > { %v1200_v5 = vpop.f32.mrb[5].mxu0  ;;  %v1248_v6 = vpop.f32.mrb[5].mxu1 }
 0x107   : > { %1086 = vst [vmem:[%s1607_s24] sm:$0xff] %v1085_v1   ;;  %1169 = vst [vmem:[%s1607_s24 + $0x40] sm:$0xff] %v1125_v2   ;;  %v1201_v7 = vadd.f32 %v1200_v5, %v1199_v3  ;;  %v1249_v8 = vadd.f32 %v1248_v6, %v1247_v4  ;;  %v1202_v9 = vpop.f32.mrb[6].mxu0  ;;  %v1250_v10 = vpop.f32.mrb[6].mxu1 }
 0x108   : > { %v1203_v11 = vpop.f32.mrb[7].mxu0  ;;  %v1251_v12 = vpop.f32.mrb[7].mxu1 }
 0x109   : > { %v1204_v13 = vadd.f32 %v1203_v11, %v1202_v9  ;;  %v1252_v14 = vadd.f32 %v1251_v12, %v1250_v10  ;;  %v584_v15 = vadd.f32 %v1201_v7, %v1598_v56  ;;  %v648_v16 = vadd.f32 %v1249_v8, %v1598_v56 }
 0x10b   : > { %v587_v17 = vadd.f32 %v1204_v13, %v1598_v56  ;;  %v651_v18 = vadd.f32 %v1252_v14, %v1598_v56 }
 0x10d   : > { %v1090_v19 = vpack.c.bf16 %v587_v17, %v584_v15  ;;  %v1130_v20 = vpack.c.bf16 %v651_v18, %v648_v16  ;;  %v1205_v21 = vpop.f32.mrb[8].mxu0  ;;  %v1253_v22 = vpop.f32.mrb[8].mxu1 }
 0x10e   : > { %v1206_v23 = vpop.f32.mrb[9].mxu0  ;;  %v1254_v24 = vpop.f32.mrb[9].mxu1 }
 0x10f   : > { %1162 = vst [vmem:[%s1607_s24 + $0x8] sm:$0xff] %v1090_v19   ;;  %1170 = vst [vmem:[%s1607_s24 + $0x48] sm:$0xff] %v1130_v20   ;;  %v1207_v25 = vadd.f32 %v1206_v23, %v1205_v21  ;;  %v1255_v26 = vadd.f32 %v1254_v24, %v1253_v22  ;;  %v1208_v27 = vpop.f32.mrb[10].mxu0  ;;  %v1256_v28 = vpop.f32.mrb[10].mxu1 }
 0x110   : > { %v1209_v29 = vpop.f32.mrb[11].mxu0  ;;  %v1257_v30 = vpop.f32.mrb[11].mxu1 }
 0x111   : > { %v1210_v31 = vadd.f32 %v1209_v29, %v1208_v27  ;;  %v1258_v32 = vadd.f32 %v1257_v30, %v1256_v28  ;;  %v592_v33 = vadd.f32 %v1207_v25, %v1598_v56  ;;  %v656_v34 = vadd.f32 %v1255_v26, %v1598_v56 }
 0x113   : > { %v595_v35 = vadd.f32 %v1210_v31, %v1598_v56  ;;  %v659_v36 = vadd.f32 %v1258_v32, %v1598_v56 }
 0x115   : > { %v1095_v37 = vpack.c.bf16 %v595_v35, %v592_v33  ;;  %v1135_v38 = vpack.c.bf16 %v659_v36, %v656_v34  ;;  %v1211_v39 = vpop.f32.mrb[12].mxu0  ;;  %v1259_v40 = vpop.f32.mrb[12].mxu1 }
 0x116   : > { %v1212_v41 = vpop.f32.mrb[13].mxu0  ;;  %v1260_v42 = vpop.f32.mrb[13].mxu1 }
 0x117   : > { %1163 = vst [vmem:[%s1607_s24 + $0x10] sm:$0xff] %v1095_v37   ;;  %1171 = vst [vmem:[%s1607_s24 + $0x50] sm:$0xff] %v1135_v38   ;;  %v1213_v43 = vadd.f32 %v1212_v41, %v1211_v39  ;;  %v1261_v44 = vadd.f32 %v1260_v42, %v1259_v40  ;;  %v1214_v45 = vpop.f32.mrb[14].mxu0  ;;  %v1262_v46 = vpop.f32.mrb[14].mxu1 }
 0x118   : > { %v1215_v47 = vpop.f32.mrb[15].mxu0  ;;  %v1263_v48 = vpop.f32.mrb[15].mxu1 }
 0x119   : > { %v1216_v49 = vadd.f32 %v1215_v47, %v1214_v45  ;;  %v1264_v50 = vadd.f32 %v1263_v48, %v1262_v46  ;;  %v600_v51 = vadd.f32 %v1213_v43, %v1598_v56  ;;  %v664_v52 = vadd.f32 %v1261_v44, %v1598_v56 }
 0x11b   : > { %v603_v53 = vadd.f32 %v1216_v49, %v1598_v56  ;;  %v667_v54 = vadd.f32 %v1264_v50, %v1598_v56 }
 0x11d   : > { %v1100_v55 = vpack.c.bf16 %v603_v53, %v600_v51  ;;  %v1140_v57 = vpack.c.bf16 %v667_v54, %v664_v52  ;;  %v1217_v58 = vpop.f32.mrb[16].mxu0  ;;  %v1265_v59 = vpop.f32.mrb[16].mxu1 }
 0x11e   : > { %v1218_v60 = vpop.f32.mrb[17].mxu0  ;;  %v1266_v61 = vpop.f32.mrb[17].mxu1 }
 0x11f   : > { %1164 = vst [vmem:[%s1607_s24 + $0x18] sm:$0xff] %v1100_v55   ;;  %1172 = vst [vmem:[%s1607_s24 + $0x58] sm:$0xff] %v1140_v57   ;;  %v1219_v62 = vadd.f32 %v1218_v60, %v1217_v58  ;;  %v1267_v63 = vadd.f32 %v1266_v61, %v1265_v59  ;;  %v1220_v0 = vpop.f32.mrb[18].mxu0  ;;  %v1268_v1 = vpop.f32.mrb[18].mxu1 }
 0x120   : > { %v1221_v2 = vpop.f32.mrb[19].mxu0  ;;  %v1269_v3 = vpop.f32.mrb[19].mxu1 }
 0x121   : > { %v1222_v4 = vadd.f32 %v1221_v2, %v1220_v0  ;;  %v1270_v5 = vadd.f32 %v1269_v3, %v1268_v1  ;;  %v608_v6 = vadd.f32 %v1219_v62, %v1598_v56  ;;  %v672_v7 = vadd.f32 %v1267_v63, %v1598_v56 }
 0x123   : > { %v611_v8 = vadd.f32 %v1222_v4, %v1598_v56  ;;  %v675_v9 = vadd.f32 %v1270_v5, %v1598_v56 }
 0x125   : > { %v1105_v10 = vpack.c.bf16 %v611_v8, %v608_v6  ;;  %v1145_v11 = vpack.c.bf16 %v675_v9, %v672_v7  ;;  %v1223_v12 = vpop.f32.mrb[20].mxu0  ;;  %v1271_v13 = vpop.f32.mrb[20].mxu1 }
 0x126   : > { %v1224_v14 = vpop.f32.mrb[21].mxu0  ;;  %v1272_v15 = vpop.f32.mrb[21].mxu1 }
 0x127   : > { %1165 = vst [vmem:[%s1607_s24 + $0x20] sm:$0xff] %v1105_v10   ;;  %1173 = vst [vmem:[%s1607_s24 + $0x60] sm:$0xff] %v1145_v11   ;;  %v1225_v16 = vadd.f32 %v1224_v14, %v1223_v12  ;;  %v1273_v17 = vadd.f32 %v1272_v15, %v1271_v13  ;;  %v1226_v18 = vpop.f32.mrb[22].mxu0  ;;  %v1274_v19 = vpop.f32.mrb[22].mxu1 }
 0x128   : > { %v1227_v20 = vpop.f32.mrb[23].mxu0  ;;  %v1275_v21 = vpop.f32.mrb[23].mxu1 }
 0x129   : > { %v1228_v22 = vadd.f32 %v1227_v20, %v1226_v18  ;;  %v1276_v23 = vadd.f32 %v1275_v21, %v1274_v19  ;;  %v616_v24 = vadd.f32 %v1225_v16, %v1598_v56  ;;  %v680_v25 = vadd.f32 %v1273_v17, %v1598_v56 }
 0x12b   : > { %v619_v26 = vadd.f32 %v1228_v22, %v1598_v56  ;;  %v683_v27 = vadd.f32 %v1276_v23, %v1598_v56 }
 0x12d   : > { %v1110_v28 = vpack.c.bf16 %v619_v26, %v616_v24  ;;  %v1150_v29 = vpack.c.bf16 %v683_v27, %v680_v25  ;;  %v1229_v30 = vpop.f32.mrb[24].mxu0  ;;  %v1277_v31 = vpop.f32.mrb[24].mxu1 }
 0x12e   : > { %v1230_v32 = vpop.f32.mrb[25].mxu0  ;;  %v1278_v33 = vpop.f32.mrb[25].mxu1 }
 0x12f   : > { %1166 = vst [vmem:[%s1607_s24 + $0x28] sm:$0xff] %v1110_v28   ;;  %1174 = vst [vmem:[%s1607_s24 + $0x68] sm:$0xff] %v1150_v29   ;;  %v1231_v34 = vadd.f32 %v1230_v32, %v1229_v30  ;;  %v1279_v35 = vadd.f32 %v1278_v33, %v1277_v31  ;;  %v1232_v36 = vpop.f32.mrb[26].mxu0  ;;  %v1280_v37 = vpop.f32.mrb[26].mxu1 }
 0x130   : > { %v1233_v38 = vpop.f32.mrb[27].mxu0  ;;  %v1281_v39 = vpop.f32.mrb[27].mxu1 }
 0x131   : > { %v1234_v40 = vadd.f32 %v1233_v38, %v1232_v36  ;;  %v1282_v41 = vadd.f32 %v1281_v39, %v1280_v37  ;;  %v624_v42 = vadd.f32 %v1231_v34, %v1598_v56  ;;  %v688_v43 = vadd.f32 %v1279_v35, %v1598_v56 }
 0x133   : > { %v627_v44 = vadd.f32 %v1234_v40, %v1598_v56  ;;  %v691_v45 = vadd.f32 %v1282_v41, %v1598_v56 }
 0x135   : > { %v1115_v46 = vpack.c.bf16 %v627_v44, %v624_v42  ;;  %v1155_v47 = vpack.c.bf16 %v691_v45, %v688_v43  ;;  %v1235_v48 = vpop.f32.mrb[28].mxu0  ;;  %v1283_v49 = vpop.f32.mrb[28].mxu1 }
 0x136   : > { %v1236_v50 = vpop.f32.mrb[29].mxu0  ;;  %v1284_v51 = vpop.f32.mrb[29].mxu1 }
 0x137   : > { %1167 = vst [vmem:[%s1607_s24 + $0x30] sm:$0xff] %v1115_v46   ;;  %1175 = vst [vmem:[%s1607_s24 + $0x70] sm:$0xff] %v1155_v47   ;;  %v1237_v52 = vadd.f32 %v1236_v50, %v1235_v48  ;;  %v1285_v53 = vadd.f32 %v1284_v51, %v1283_v49  ;;  %v1238_v54 = vpop.f32.mrb[30].mxu0  ;;  %v1286_v55 = vpop.f32.mrb[30].mxu1 }
 0x138   : > { %v1239_v57 = vpop.f32.mrb[31].mxu0  ;;  %v1287_v58 = vpop.f32.mrb[31].mxu1 }
 0x139   : > { %v1240_v59 = vadd.f32 %v1239_v57, %v1238_v54  ;;  %v1288_v60 = vadd.f32 %v1287_v58, %v1286_v55  ;;  %v632_v61 = vadd.f32 %v1237_v52, %v1598_v56  ;;  %v696_v62 = vadd.f32 %v1285_v53, %v1598_v56 }
 0x13b   : > { %v635_v63 = vadd.f32 %v1240_v59, %v1598_v56  ;;  %v699_v0 = vadd.f32 %v1288_v60, %v1598_v56 }
 0x13d   : > { %v1120_v1 = vpack.c.bf16 %v635_v63, %v632_v61  ;;  %v1160_v2 = vpack.c.bf16 %v699_v0, %v696_v62 }
 0x13f   : > { %1168 = vst [vmem:[%s1607_s24 + $0x38] sm:$0xff] %v1120_v1   ;;  %1176 = vst [vmem:[%s1607_s24 + $0x78] sm:$0xff] %v1160_v2  }
 0x140 PF: > { %s13_s16 = sadd.s32 1, %s1447_s16   ;;  %s1672_s12 = smov %s1439_s14 }
 0x141   : > { %p10_p7 = scmp.ge.s32.totalorder %s13_s16, 10   ;;  %s1673_s13 = smov %s1443_s15 }
 0x142   : > { %s1674_s14 = smov %s1677_s17  ;;  %s1675_s15 = smov %s1681_s18 }
 0x143   :  { %12 = sbr.rel (!%p10_p7) target bundleno = 3 (0x3), region = 62 }

// kernel: forward.13
= control target key start
LH: loop header
LB: loop body
LE: loop exit
PB: predicated region body
PF: predicated region fallthrough
CT: control target
= control target key end

     0   :  { %s1614_s12 = smov 0   ;;  %s1616_s13 = smov 0   ;;  %s1927_s0 = inlined_call_operand.vmem [shape: bf16[2,1024,128], index: 0, kind: input, shape index: {}]   ;;  %s1928_s1 = inlined_call_operand.vmem [shape: bf16[128,128], index: 1, kind: input, shape index: {}]   ;;  %s1929_s2 = inlined_call_operand.vmem [shape: f32[1,128], index: 2, kind: input, shape index: {}]   ;;  %s1930_s3 = inlined_call_operand.vmem [shape: bf16[2,1024,128], index: 3, kind: output, shape index: {}]  }
   0x1   :  { %s1618_s14 = smov 0   ;;  %s1620_s15 = smov 0  }
   0x2   :  { %s1622_s16 = smov 0  }
   0x3 LB: > { %s22_s17 = sadd.s32 1, %s1584_s14  ;;  %s25_s18 = sadd.s32 1, %s1588_s15  ;;  %s1592_s16 = sphi %s1622_s16, %s13_s16   ;;  %s1588_s15 = sphi %s1620_s15, %s1934_s15   ;;  %s1584_s14 = sphi %s1618_s14, %s1933_s14   ;;  %s1580_s13 = sphi %s1616_s13, %s1932_s13   ;;  %s1576_s12 = sphi %s1614_s12, %s1931_s12  }
   0x4   : > { %p23_p0 = scmp.ge.s32.totalorder %s22_s17, 4  ;;  %p1049_p1 = scmp.ge.s32.totalorder %s1592_s16, 1 }
   0x5   : > { %p158_p2 = scmp.lt.s32.totalorder %s1592_s16, 9 }
   0x6   : > { %s1936_s17 = smov (%p23_p0, %s22_s17), 0  ;;  %s1938_s18 = smov (!%p23_p0, %s25_s18), %s1588_s15 }
   0x7   : > { %p159_p3 = pnand %p1049_p1, %p158_p2  ;;  %p27_p4 = scmp.ge.s32.totalorder %s1938_s18, 2 }
   0x8   : > { %v1402_v0 = vld [vmem:[%s1928_s1] sm:$0xff] (!%p159_p3)   ;;  %s1050_s21 = sshll.u32 (!%p159_p3), %s1576_s12, 5  ;;  %v1403_v1 = vld [vmem:[%s1928_s1 + $0x8] sm:$0xff] (!%p159_p3)   ;;  %p191_p5 = scmp.lt.s32.totalorder (!%p159_p3), %s1580_s13, 1  ;;  %v1404_v2 = vld [vmem:[%s1928_s1 + $0x10] sm:$0xff] (!%p159_p3)  }
   0x9   : > { %s1940_s18 = smov (%p27_p4, %s1938_s18), 0  ;;  %162 = sbr.rel (%p159_p3) target bundleno = 344 (0x158), region = 32 }
   0xa   : > { %1298 = vmatprep.subr.bf16.mxu0 (!%p159_p3), %v1402_v0  ;;  %1346 = vmatprep.subr.bf16.mxu1 (!%p159_p3), %v1402_v0  ;;  %p193_p6 = scmp.lt.s32.totalorder (!%p159_p3), %s1050_s21, 127  ;;  %v1405_v3 = vld [vmem:[%s1928_s1 + $0x18] sm:$0xff] (!%p159_p3)   ;;  %v1406_v6 = vld [vmem:[%s1928_s1 + $0x20] sm:$0xff] (!%p159_p3)   ;;  %v1407_v7 = vld [vmem:[%s1928_s1 + $0x28] sm:$0xff] (!%p159_p3)  }
   0xb   : > { %1299 = vmatpush3.bf16.msra.mxu0 (!%p159_p3), %v1402_v0  ;;  %1354 = vmatpush3.bf16.msra.mxu1 (!%p159_p3), %v1402_v0  ;;  %v1408_v8 = vld [vmem:[%s1928_s1 + $0x30] sm:$0xff] (!%p159_p3)   ;;  %v1409_v9 = vld [vmem:[%s1928_s1 + $0x38] sm:$0xff] (!%p159_p3)   ;;  %v1700_v24 = vld [vmem:[%s1929_s2] ss:$0 sm:$0xff] (!%p159_p3) }
   0xc   : > { %1300 = vmatprep.subr.bf16.mxu0 (!%p159_p3), %v1403_v1  ;;  %1347 = vmatprep.subr.bf16.mxu1 (!%p159_p3), %v1403_v1 }
   0xf   : > { %1301 = vmatpush3.bf16.msra.mxu0 (!%p159_p3), %v1403_v1  ;;  %1355 = vmatpush3.bf16.msra.mxu1 (!%p159_p3), %v1403_v1 }
  0x10   : > { %s1942_s13 = smov (!%p191_p5, %s1580_s13), 1  ;;  %s1944_s21 = smov (!%p193_p6, %s1050_s21), 127  ;;  %1302 = vmatprep.subr.bf16.mxu0 %v1404_v2  ;;  %1348 = vmatprep.subr.bf16.mxu1 %v1404_v2 }
  0x11   : > { %s1051_s26 = sshll.u32 %s1942_s13, 7 }
  0x12   : > { %s1656_s27 = sadd.s32 %s1051_s26, %s1944_s21 }
  0x13   : > { %s1052_s28 = sshll.u32 %s1656_s27, 2  ;;  %1303 = vmatpush3.bf16.msra.mxu0 %v1404_v2  ;;  %1356 = vmatpush3.bf16.msra.mxu1 %v1404_v2 }
  0x14   : > { %s1667_s6 = scalar_lea.vmem %s1927_s0, %s1052_s28  ;;  %1304 = vmatprep.subr.bf16.mxu0 %v1405_v3  ;;  %1349 = vmatprep.subr.bf16.mxu1 %v1405_v3  ;;  %s1820_s24 = scalar_lea.vmem %s1930_s3, %s1052_s28 }
  0x15   : > { %v1410_v4 = vld [vmem:[%s1667_s6] sm:$0xff]   ;;  %v1412_v10 = vld [vmem:[%s1667_s6 + $0x8] sm:$0xff]   ;;  %v1414_v12 = vld [vmem:[%s1667_s6 + $0x10] sm:$0xff]  }
  0x16   : > { %v1411_v5 = vld [vmem:[%s1667_s6 + $0x40] sm:$0xff]   ;;  %1314 = vmatprep.mubr.bf16.mxu0 %v1410_v4  ;;  %v1413_v11 = vld [vmem:[%s1667_s6 + $0x48] sm:$0xff]   ;;  %v1415_v13 = vld [vmem:[%s1667_s6 + $0x50] sm:$0xff]  }
  0x17   : > { %1330 = vmatprep.mubr.bf16.mxu1 %v1411_v5  ;;  %1305 = vmatpush3.bf16.msra.mxu0 %v1405_v3  ;;  %v1416_v14 = vld [vmem:[%s1667_s6 + $0x18] sm:$0xff]   ;;  %v1418_v16 = vld [vmem:[%s1667_s6 + $0x20] sm:$0xff]   ;;  %v1420_v18 = vld [vmem:[%s1667_s6 + $0x28] sm:$0xff]  }
  0x18   : > { %1357 = vmatpush3.bf16.msra.mxu1 %v1405_v3  ;;  %1306 = vmatprep.subr.bf16.mxu0 %v1406_v6  ;;  %v1417_v15 = vld [vmem:[%s1667_s6 + $0x58] sm:$0xff]   ;;  %v1419_v17 = vld [vmem:[%s1667_s6 + $0x60] sm:$0xff]   ;;  %v1421_v19 = vld [vmem:[%s1667_s6 + $0x68] sm:$0xff]  }
  0x19   : > { %1350 = vmatprep.subr.bf16.mxu1 %v1406_v6  ;;  %v1422_v20 = vld [vmem:[%s1667_s6 + $0x30] sm:$0xff]   ;;  %v1424_v22 = vld [vmem:[%s1667_s6 + $0x38] sm:$0xff]  }
  0x1a   : > { %v1423_v21 = vld [vmem:[%s1667_s6 + $0x70] sm:$0xff]   ;;  %v1425_v23 = vld [vmem:[%s1667_s6 + $0x78] sm:$0xff]  }
  0x1b   : > { %1307 = vmatpush3.bf16.msra.mxu0 %v1406_v6 }
  0x1c   : > { %1358 = vmatpush3.bf16.msra.mxu1 %v1406_v6  ;;  %1308 = vmatprep.subr.bf16.mxu0 %v1407_v7 }
  0x1d   : > { %1351 = vmatprep.subr.bf16.mxu1 %v1407_v7 }
  0x1f   : > { %1309 = vmatpush3.bf16.msra.mxu0 %v1407_v7 }
  0x20   : > { %1359 = vmatpush3.bf16.msra.mxu1 %v1407_v7  ;;  %1310 = vmatprep.subr.bf16.mxu0 %v1408_v8 }
  0x21   : > { %1352 = vmatprep.subr.bf16.mxu1 %v1408_v8 }
  0x23   : > { %1311 = vmatpush3.bf16.msra.mxu0 %v1408_v8 }
  0x24   : > { %1360 = vmatpush3.bf16.msra.mxu1 %v1408_v8  ;;  %1312 = vmatprep.subr.bf16.mxu0 %v1409_v9 }
  0x25   : > { %1353 = vmatprep.subr.bf16.mxu1 %v1409_v9 }
  0x27   : > { %1313 = vmatpush3.bf16.msra.mxu0 %v1409_v9 }
  0x28   : > { %1361 = vmatpush3.bf16.msra.mxu1 %v1409_v9 }
  0x2a   : > { %1315 = vmatmul.mubr.bf16.vlgmr.msra.gmra.mrb[0].mxu0 %v1412_v10 }
  0x2b   : > { %1331 = vmatmul.mubr.bf16.vlgmr.msra.gmra.mrb[0].mxu1 %v1413_v11  ;;  %1318 = vmatprep.mubr.bf16.mxu0 %v1414_v12 }
  0x2c   : > { %1334 = vmatprep.mubr.bf16.mxu1 %v1415_v13 }
  0x32   : > { %1319 = vmatmul.mubr.bf16.gmra.mrb[4].mxu0 %v1416_v14 }
  0x33   : > { %1335 = vmatmul.mubr.bf16.gmra.mrb[4].mxu1 %v1417_v15  ;;  %1322 = vmatprep.mubr.bf16.mxu0 %v1418_v16 }
  0x34   : > { %1338 = vmatprep.mubr.bf16.mxu1 %v1419_v17 }
  0x3a   : > { %1323 = vmatmul.mubr.bf16.gmra.mrb[8].mxu0 %v1420_v18 }
  0x3b   : > { %1339 = vmatmul.mubr.bf16.gmra.mrb[8].mxu1 %v1421_v19  ;;  %1326 = vmatprep.mubr.bf16.mxu0 %v1422_v20 }
  0x3c   : > { %1342 = vmatprep.mubr.bf16.mxu1 %v1423_v21 }
  0x42   : > { %1327 = vmatmul.mubr.bf16.gmra.mrb[12].mxu0 %v1424_v22 }
  0x43   : > { %1343 = vmatmul.mubr.bf16.gmra.mrb[12].mxu1 %v1425_v23 }
  0xfd   : > { %v1316_v25 = vpop.f32.mrb[0].mxu0 }
  0xfe   : > { %v1332_v26 = vpop.f32.mrb[0].mxu1  ;;  %v1703_v27 = vadd.f32 %v1316_v25, %v1700_v24  ;;  %v444_v29 = vpop.f32.mrb[1].mxu0 }
  0xff   : > { %v1706_v28 = vadd.f32 %v1332_v26, %v1700_v24  ;;  %v508_v30 = vpop.f32.mrb[1].mxu1  ;;  %v1709_v31 = vadd.f32 %v1700_v24, %v444_v29  ;;  %v1317_v33 = vpop.f32.mrb[2].mxu0 }
 0x100   : > { %v1712_v32 = vadd.f32 %v1700_v24, %v508_v30  ;;  %v1333_v34 = vpop.f32.mrb[2].mxu1  ;;  %v1083_v35 = vmul.f32 -1.442695, %v1703_v27  ;;  %v1717_v37 = vadd.f32 %v1317_v33, %v1700_v24  ;;  %v447_v39 = vpop.f32.mrb[3].mxu0 }
 0x101   : > { %v1099_v36 = vmul.f32 -1.442695, %v1706_v28  ;;  %v1720_v38 = vadd.f32 %v1333_v34, %v1700_v24  ;;  %v511_v40 = vpop.f32.mrb[3].mxu1  ;;  %v1081_v41 = vmul.f32 -1.442695, %v1709_v31  ;;  %v1725_v43 = vadd.f32 %v1700_v24, %v447_v39 }
 0x102   : > { %v1097_v42 = vmul.f32 -1.442695, %v1712_v32  ;;  %v1728_v44 = vadd.f32 %v1700_v24, %v511_v40  ;;  %1426 = vpow2.f32 %v1083_v35  ;;  %v1084_v45 = vmul.f32 -1.442695, %v1717_v37 }
 0x103   : > { %1428 = vpow2.f32 %v1099_v36  ;;  %v1100_v46 = vmul.f32 -1.442695, %v1720_v38  ;;  %v1082_v47 = vmul.f32 -1.442695, %v1725_v43 }
 0x104   : > { %1430 = vpow2.f32 %v1081_v41  ;;  %v1098_v48 = vmul.f32 -1.442695, %v1728_v44 }
 0x105   : > { %1432 = vpow2.f32 %v1097_v42  ;;  %v1320_v49 = vpop.f32.mrb[4].mxu0 }
 0x106   : > { %v1336_v50 = vpop.f32.mrb[4].mxu1  ;;  %1434 = vpow2.f32 %v1084_v45  ;;  %v1735_v51 = vadd.f32 %v1320_v49, %v1700_v24  ;;  %v460_v53 = vpop.f32.mrb[5].mxu0 }
 0x107   : > { %v1738_v52 = vadd.f32 %v1336_v50, %v1700_v24  ;;  %v524_v54 = vpop.f32.mrb[5].mxu1  ;;  %1436 = vpow2.f32 %v1100_v46  ;;  %v1741_v55 = vadd.f32 %v1700_v24, %v460_v53  ;;  %v1321_v57 = vpop.f32.mrb[6].mxu0 }
 0x108   : > { %v1744_v56 = vadd.f32 %v1700_v24, %v524_v54  ;;  %v1337_v58 = vpop.f32.mrb[6].mxu1  ;;  %1438 = vpow2.f32 %v1082_v47  ;;  %v1087_v59 = vmul.f32 -1.442695, %v1735_v51  ;;  %v1749_v61 = vadd.f32 %v1321_v57, %v1700_v24  ;;  %v463_v62 = vpop.f32.mrb[7].mxu0 }
 0x109   : > { %v1103_v60 = vmul.f32 -1.442695, %v1738_v52  ;;  %v527_v63 = vpop.f32.mrb[7].mxu1  ;;  %1440 = vpow2.f32 %v1098_v48  ;;  %v1085_v0 = vmul.f32 -1.442695, %v1741_v55  ;;  %v1755_v21 = vadd.f32 %v1337_v58, %v1700_v24 }
 0x10a   : > { %v1101_v1 = vmul.f32 -1.442695, %v1744_v56  ;;  %1442 = vpow2.f32 %v1087_v59  ;;  %v1088_v2 = vmul.f32 -1.442695, %v1749_v61  ;;  %v1758_v26 = vadd.f32 %v1700_v24, %v463_v62 }
 0x10b   : > { %1444 = vpow2.f32 %v1103_v60  ;;  %v1104_v39 = vmul.f32 -1.442695, %v1755_v21  ;;  %v1762_v40 = vadd.f32 %v1700_v24, %v527_v63 }
 0x10c   : > { %v1427_v3 = vpop.eup %1426  ;;  %1446 = vpow2.f32 %v1085_v0  ;;  %v1086_v46 = vmul.f32 -1.442695, %v1758_v26 }
 0x10d   : > { %v1429_v4 = vpop.eup %1428  ;;  %v669_v5 = vadd.f32 1.0, %v1427_v3  ;;  %1448 = vpow2.f32 %v1101_v1  ;;  %v1324_v6 = vpop.f32.mrb[8].mxu0 }
 0x10e   : > { %v1340_v7 = vpop.f32.mrb[8].mxu1  ;;  %v1431_v8 = vpop.eup %1430  ;;  %v685_v9 = vadd.f32 1.0, %v1429_v4  ;;  %1450 = vpow2.f32 %v1088_v2  ;;  %v1766_v47 = vadd.f32 %v1324_v6, %v1700_v24 }
 0x10f   : > { %v476_v10 = vpop.f32.mrb[9].mxu0  ;;  %v540_v11 = vpop.f32.mrb[9].mxu1  ;;  %1452 = vrcp.f32 %v669_v5  ;;  %v667_v13 = vadd.f32 1.0, %v1431_v8  ;;  %v1771_v54 = vadd.f32 %v1340_v7, %v1700_v24 }
 0x110   : > { %v1433_v12 = vpop.eup %1432  ;;  %v1325_v14 = vpop.f32.mrb[10].mxu0  ;;  %1454 = vrcp.f32 %v685_v9  ;;  %v1774_v57 = vadd.f32 %v1700_v24, %v476_v10  ;;  %v1781_v63 = vadd.f32 %v1700_v24, %v540_v11  ;;  %v1102_v9 = vmul.f32 -1.442695, %v1762_v40 }
 0x111   : > { %v1341_v15 = vpop.f32.mrb[10].mxu1  ;;  %v1435_v16 = vpop.eup %1434  ;;  %v683_v17 = vadd.f32 1.0, %v1433_v12  ;;  %1456 = vrcp.f32 %v667_v13  ;;  %v1784_v0 = vadd.f32 %v1325_v14, %v1700_v24  ;;  %v1091_v11 = vmul.f32 -1.442695, %v1766_v47 }
 0x112   : > { %v479_v18 = vpop.f32.mrb[11].mxu0  ;;  %v1437_v19 = vpop.eup %1436  ;;  %v670_v20 = vadd.f32 1.0, %v1435_v16  ;;  %v1791_v5 = vadd.f32 %v1341_v15, %v1700_v24  ;;  %v1107_v12 = vmul.f32 -1.442695, %v1771_v54  ;;  %v1089_v14 = vmul.f32 -1.442695, %v1774_v57 }
 0x113   : > { %v543_v22 = vpop.f32.mrb[11].mxu1  ;;  %v1439_v23 = vpop.eup %1438  ;;  %1458 = vrcp.f32 %v683_v17  ;;  %v686_v25 = vadd.f32 1.0, %v1437_v19  ;;  %v1794_v6 = vadd.f32 %v1700_v24, %v479_v18  ;;  %v1105_v15 = vmul.f32 -1.442695, %v1781_v63 }
 0x114   : > { %v1441_v29 = vpop.eup %1440  ;;  %1460 = vrcp.f32 %v670_v20  ;;  %v668_v30 = vadd.f32 1.0, %v1439_v23  ;;  %v1804_v16 = vadd.f32 %v1700_v24, %v543_v22  ;;  %v1092_v18 = vmul.f32 -1.442695, %v1784_v0 }
 0x115   : > { %v1443_v33 = vpop.eup %1442  ;;  %1462 = vrcp.f32 %v686_v25  ;;  %v684_v34 = vadd.f32 1.0, %v1441_v29  ;;  %v1328_v41 = vpop.f32.mrb[12].mxu0  ;;  %v1108_v19 = vmul.f32 -1.442695, %v1791_v5  ;;  %v1090_v20 = vmul.f32 -1.442695, %v1794_v6 }
 0x116   : > { %v1445_v35 = vpop.eup %1444  ;;  %1464 = vrcp.f32 %v668_v30  ;;  %v673_v36 = vadd.f32 1.0, %v1443_v33  ;;  %v1344_v48 = vpop.f32.mrb[12].mxu1  ;;  %v1812_v30 = vadd.f32 %v1328_v41, %v1700_v24 }
 0x117   : > { %v1447_v42 = vpop.eup %1446  ;;  %1466 = vrcp.f32 %v684_v34  ;;  %v689_v45 = vadd.f32 1.0, %v1445_v35  ;;  %v1768_v49 = vpop.f32.mrb[13].mxu0 }
 0x118   : > { %v1449_v50 = vpop.eup %1448  ;;  %1468 = vrcp.f32 %v673_v36  ;;  %v671_v53 = vadd.f32 1.0, %v1447_v42  ;;  %v1776_v58 = vpop.f32.mrb[13].mxu1 }
 0x119   : > { %v1778_v59 = vpop.f32.mrb[14].mxu0  ;;  %v1451_v60 = vpop.eup %1450  ;;  %1470 = vrcp.f32 %v689_v45  ;;  %v687_v62 = vadd.f32 1.0, %v1449_v50  ;;  %v1095_v50 = vmul.f32 -1.442695, %v1812_v30 }
 0x11a   : > { %v1786_v1 = vpop.f32.mrb[14].mxu1  ;;  %v1788_v2 = vpop.f32.mrb[15].mxu0  ;;  %1472 = vrcp.f32 %v671_v53  ;;  %v674_v4 = vadd.f32 1.0, %v1451_v60 }
 0x11b   : > { %v1453_v3 = vpop.eup %1452  ;;  %v1796_v7 = vpop.f32.mrb[15].mxu1  ;;  %1474 = vrcp.f32 %v687_v62 }
 0x11c   : > { %v1455_v8 = vpop.eup %1454  ;;  %1476 = vrcp.f32 %v674_v4  ;;  %v765_v25 = vmul.f32 %v1453_v3, %v1703_v27  ;;  %v1824_v27 = vadd.f32 %v1344_v48, %v1700_v24 }
 0x11d   : > { %v1457_v10 = vpop.eup %1456  ;;  %1478 = vpow2.f32 %v1104_v39  ;;  %v781_v22 = vmul.f32 %v1455_v8, %v1706_v28 }
 0x11e   : > { %v1459_v13 = vpop.eup %1458  ;;  %1480 = vpow2.f32 %v1086_v46  ;;  %v763_v35 = vmul.f32 %v1457_v10, %v1709_v31  ;;  %v1106_v31 = vmul.f32 -1.442695, %v1804_v16 }
 0x11f   : > { %v1461_v17 = vpop.eup %1460  ;;  %1482 = vpow2.f32 %v1102_v9  ;;  %v779_v41 = vmul.f32 %v1459_v13, %v1712_v32 }
 0x120   : > { %v1463_v23 = vpop.eup %1462  ;;  %v766_v29 = vmul.f32 %v1461_v17, %v1717_v37  ;;  %1484 = vpow2.f32 %v1091_v11 }
 0x121   : > { %v1465_v33 = vpop.eup %1464  ;;  %v782_v34 = vmul.f32 %v1463_v23, %v1720_v38  ;;  %1486 = vpow2.f32 %v1107_v12 }
 0x122   : > { %v1467_v37 = vpop.eup %1466  ;;  %v1187_v36 = vpack.c.bf16 %v766_v29, %v765_v25  ;;  %v764_v28 = vmul.f32 %v1465_v33, %v1725_v43  ;;  %1488 = vpow2.f32 %v1089_v14  ;;  %v1848_v29 = vadd.f32 %v1700_v24, %v1768_v49 }
 0x123   : > { %v1469_v39 = vpop.eup %1468  ;;  %v1227_v42 = vpack.c.bf16 %v782_v34, %v781_v22  ;;  %v780_v45 = vmul.f32 %v1467_v37, %v1728_v44  ;;  %1490 = vpow2.f32 %v1105_v15  ;;  %v1111_v44 = vmul.f32 -1.442695, %v1824_v27 }
 0x124   : > { %v1830_v38 = vpop.eup %1470  ;;  %1259 = vst [vmem:[%s1820_s24 + $0x8] sm:$0xff] %v1187_v36   ;;  %v1182_v46 = vpack.c.bf16 %v764_v28, %v763_v35  ;;  %1492 = vpow2.f32 %v1092_v18  ;;  %v769_v62 = vmul.f32 %v1469_v39, %v1735_v51  ;;  %v1852_v34 = vadd.f32 %v1700_v24, %v1776_v58 }
 0x125   : > { %v1834_v48 = vpop.eup %1472  ;;  %1267 = vst [vmem:[%s1820_s24 + $0x48] sm:$0xff] %v1227_v42   ;;  %v1222_v43 = vpack.c.bf16 %v780_v45, %v779_v41  ;;  %1494 = vpow2.f32 %v1108_v19  ;;  %v1856_v36 = vadd.f32 %v1778_v59, %v1700_v24  ;;  %v1860_v49 = vadd.f32 %v1786_v1, %v1700_v24 }
 0x126   : > { %v1838_v32 = vpop.eup %1474  ;;  %1183 = vst [vmem:[%s1820_s24] sm:$0xff] %v1182_v46   ;;  %1496 = vpow2.f32 %v1090_v20  ;;  %v1864_v41 = vadd.f32 %v1700_v24, %v1788_v2  ;;  %v1093_v42 = vmul.f32 -1.442695, %v1848_v29  ;;  %v1109_v59 = vmul.f32 -1.442695, %v1852_v34 }
 0x127   : > { %v1477_v53 = vpop.eup %1476  ;;  %1266 = vst [vmem:[%s1820_s24 + $0x40] sm:$0xff] %v1222_v43   ;;  %1498 = vpow2.f32 %v1106_v31  ;;  %v1870_v46 = vadd.f32 %v1700_v24, %v1796_v7  ;;  %v785_v1 = vmul.f32 %v1830_v38, %v1738_v52  ;;  %v1096_v2 = vmul.f32 -1.442695, %v1856_v36 }
 0x128   : > { %v1479_v60 = vpop.eup %1478  ;;  %v770_v3 = vmul.f32 %v1477_v53, %v1749_v61  ;;  %1500 = vpow2.f32 %v1095_v50  ;;  %v1094_v24 = vmul.f32 -1.442695, %v1864_v41  ;;  %v783_v52 = vmul.f32 %v1838_v32, %v1744_v56 }
 0x129   : > { %v1481_v4 = vpop.eup %1480  ;;  %v690_v8 = vadd.f32 1.0, %v1479_v60  ;;  %1502 = vpow2.f32 %v1111_v44  ;;  %v767_v44 = vmul.f32 %v1834_v48, %v1741_v55  ;;  %v1112_v60 = vmul.f32 -1.442695, %v1860_v49 }
 0x12a   : > { %v1483_v9 = vpop.eup %1482  ;;  %v1197_v10 = vpack.c.bf16 %v770_v3, %v769_v62  ;;  %v672_v11 = vadd.f32 1.0, %v1481_v4  ;;  %v1110_v55 = vmul.f32 -1.442695, %v1870_v46 }
 0x12b   : > { %v1485_v12 = vpop.eup %1484  ;;  %1504 = vrcp.f32 %v690_v8  ;;  %v688_v13 = vadd.f32 1.0, %v1483_v9 }
 0x12c   : > { %v1487_v14 = vpop.eup %1486  ;;  %1261 = vst [vmem:[%s1820_s24 + $0x18] sm:$0xff] %v1197_v10   ;;  %1506 = vrcp.f32 %v672_v11  ;;  %v677_v15 = vadd.f32 1.0, %v1485_v12 }
 0x12d   : > { %v1489_v17 = vpop.eup %1488  ;;  %1508 = vrcp.f32 %v688_v13  ;;  %v693_v51 = vadd.f32 1.0, %v1487_v14 }
 0x12e   : > { %v1491_v18 = vpop.eup %1490  ;;  %1510 = vrcp.f32 %v677_v15  ;;  %v675_v61 = vadd.f32 1.0, %v1489_v17 }
 0x12f   : > { %v1493_v19 = vpop.eup %1492  ;;  %1512 = vrcp.f32 %v693_v51  ;;  %v691_v20 = vadd.f32 1.0, %v1491_v18 }
 0x130   : > { %v1495_v23 = vpop.eup %1494  ;;  %1514 = vrcp.f32 %v675_v61  ;;  %v678_v25 = vadd.f32 1.0, %v1493_v19 }
 0x131   : > { %v1497_v33 = vpop.eup %1496  ;;  %1516 = vrcp.f32 %v691_v20  ;;  %v694_v22 = vadd.f32 1.0, %v1495_v23 }
 0x132   : > { %v1499_v37 = vpop.eup %1498  ;;  %1518 = vrcp.f32 %v678_v25  ;;  %v676_v35 = vadd.f32 1.0, %v1497_v33 }
 0x133   : > { %v1501_v28 = vpop.eup %1500  ;;  %1520 = vrcp.f32 %v694_v22  ;;  %v692_v39 = vadd.f32 1.0, %v1499_v37 }
 0x134   : > { %v1503_v58 = vpop.eup %1502  ;;  %1522 = vrcp.f32 %v676_v35  ;;  %v681_v17 = vadd.f32 1.0, %v1501_v28 }
 0x135   : > { %v1505_v45 = vpop.eup %1504  ;;  %1524 = vrcp.f32 %v692_v39  ;;  %v697_v18 = vadd.f32 1.0, %v1503_v58 }
 0x136   : > { %v1507_v31 = vpop.eup %1506  ;;  %v786_v43 = vmul.f32 %v1505_v45, %v1755_v21  ;;  %1526 = vpow2.f32 %v1093_v42 }
 0x137   : > { %v1509_v50 = vpop.eup %1508  ;;  %v768_v53 = vmul.f32 %v1507_v31, %v1758_v26  ;;  %1528 = vpow2.f32 %v1109_v59 }
 0x138   : > { %v1511_v7 = vpop.eup %1510  ;;  %v1237_v21 = vpack.c.bf16 %v786_v43, %v785_v1  ;;  %v784_v38 = vmul.f32 %v1509_v50, %v1762_v40  ;;  %1530 = vpow2.f32 %v1096_v2 }
 0x139   : > { %v1513_v62 = vpop.eup %1512  ;;  %v1192_v3 = vpack.c.bf16 %v768_v53, %v767_v44  ;;  %1532 = vpow2.f32 %v1112_v60  ;;  %v773_v40 = vmul.f32 %v1511_v7, %v1766_v47 }
 0x13a   : > { %v1515_v26 = vpop.eup %1514  ;;  %1269 = vst [vmem:[%s1820_s24 + $0x58] sm:$0xff] %v1237_v21   ;;  %v1232_v48 = vpack.c.bf16 %v784_v38, %v783_v52  ;;  %1534 = vpow2.f32 %v1094_v24  ;;  %v789_v10 = vmul.f32 %v1513_v62, %v1771_v54 }
 0x13b   : > { %v1517_v4 = vpop.eup %1516  ;;  %1260 = vst [vmem:[%s1820_s24 + $0x10] sm:$0xff] %v1192_v3   ;;  %1536 = vpow2.f32 %v1110_v55  ;;  %v771_v13 = vmul.f32 %v1515_v26, %v1774_v57 }
 0x13c   : > { %v1519_v8 = vpop.eup %1518  ;;  %1268 = vst [vmem:[%s1820_s24 + $0x50] sm:$0xff] %v1232_v48   ;;  %v787_v47 = vmul.f32 %v1517_v4, %v1781_v63  ;;  %1538 = vrcp.f32 %v681_v17 }
 0x13d   : > { %v1521_v56 = vpop.eup %1520  ;;  %v774_v32 = vmul.f32 %v1519_v8, %v1784_v0  ;;  %1540 = vrcp.f32 %v697_v18 }
 0x13e   : > { %v1523_v9 = vpop.eup %1522  ;;  %v790_v11 = vmul.f32 %v1521_v56, %v1791_v5 }
 0x13f   : > { %v1525_v12 = vpop.eup %1524  ;;  %v1207_v14 = vpack.c.bf16 %v774_v32, %v773_v40  ;;  %v772_v15 = vmul.f32 %v1523_v9, %v1794_v6 }
 0x140   : > { %v1247_v51 = vpack.c.bf16 %v790_v11, %v789_v10  ;;  %v788_v0 = vmul.f32 %v1525_v12, %v1804_v16  ;;  %v1527_v54 = vpop.eup %1526 }
 0x141   : > { %1263 = vst [vmem:[%s1820_s24 + $0x28] sm:$0xff] %v1207_v14   ;;  %v1202_v61 = vpack.c.bf16 %v772_v15, %v771_v13  ;;  %v1529_v19 = vpop.eup %1528  ;;  %v679_v57 = vadd.f32 1.0, %v1527_v54 }
 0x142   : > { %1271 = vst [vmem:[%s1820_s24 + $0x68] sm:$0xff] %v1247_v51   ;;  %v1242_v5 = vpack.c.bf16 %v788_v0, %v787_v47  ;;  %v1531_v20 = vpop.eup %1530  ;;  %v695_v6 = vadd.f32 1.0, %v1529_v19 }
 0x143   : > { %1262 = vst [vmem:[%s1820_s24 + $0x20] sm:$0xff] %v1202_v61   ;;  %v1533_v23 = vpop.eup %1532  ;;  %1542 = vrcp.f32 %v679_v57  ;;  %v682_v63 = vadd.f32 1.0, %v1531_v20 }
 0x144   : > { %1270 = vst [vmem:[%s1820_s24 + $0x60] sm:$0xff] %v1242_v5   ;;  %v1535_v25 = vpop.eup %1534  ;;  %1544 = vrcp.f32 %v695_v6  ;;  %v698_v16 = vadd.f32 1.0, %v1533_v23 }
 0x145   : > { %v1537_v33 = vpop.eup %1536  ;;  %1546 = vrcp.f32 %v682_v63  ;;  %v680_v22 = vadd.f32 1.0, %v1535_v25 }
 0x146   : > { %1548 = vrcp.f32 %v698_v16  ;;  %v696_v37 = vadd.f32 1.0, %v1537_v33  ;;  %v1539_v35 = vpop.eup %1538 }
 0x147   : > { %1550 = vrcp.f32 %v680_v22  ;;  %v1541_v28 = vpop.eup %1540  ;;  %v777_v59 = vmul.f32 %v1539_v35, %v1812_v30 }
 0x148   : > { %1552 = vrcp.f32 %v696_v37  ;;  %v793_v43 = vmul.f32 %v1541_v28, %v1824_v27 }
 0x14d   : > { %v1543_v39 = vpop.eup %1542 }
 0x14e   : > { %v1545_v58 = vpop.eup %1544  ;;  %v775_v44 = vmul.f32 %v1543_v39, %v1848_v29 }
 0x14f   : > { %v1547_v42 = vpop.eup %1546  ;;  %v791_v24 = vmul.f32 %v1545_v58, %v1852_v34 }
 0x150   : > { %v1549_v45 = vpop.eup %1548  ;;  %v778_v31 = vmul.f32 %v1547_v42, %v1856_v36 }
 0x151   : > { %v1551_v1 = vpop.eup %1550  ;;  %v794_v2 = vmul.f32 %v1549_v45, %v1860_v49 }
 0x152   : > { %v1553_v50 = vpop.eup %1552  ;;  %v1217_v53 = vpack.c.bf16 %v778_v31, %v777_v59  ;;  %v776_v60 = vmul.f32 %v1551_v1, %v1864_v41 }
 0x153   : > { %v1257_v7 = vpack.c.bf16 %v794_v2, %v793_v43  ;;  %v792_v30 = vmul.f32 %v1553_v50, %v1870_v46 }
 0x154   : > { %1265 = vst [vmem:[%s1820_s24 + $0x38] sm:$0xff] %v1217_v53   ;;  %v1212_v52 = vpack.c.bf16 %v776_v60, %v775_v44 }
 0x155   : > { %1273 = vst [vmem:[%s1820_s24 + $0x78] sm:$0xff] %v1257_v7   ;;  %v1252_v36 = vpack.c.bf16 %v792_v30, %v791_v24 }
 0x156   : > { %1264 = vst [vmem:[%s1820_s24 + $0x30] sm:$0xff] %v1212_v52  }
 0x157   : > { %1272 = vst [vmem:[%s1820_s24 + $0x70] sm:$0xff] %v1252_v36  }
 0x158 PF: > { %s13_s16 = sadd.s32 1, %s1592_s16   ;;  %s1931_s12 = smov %s1584_s14 }
 0x159   : > { %p10_p7 = scmp.ge.s32.totalorder %s13_s16, 10   ;;  %s1932_s13 = smov %s1588_s15 }
 0x15a   : > { %s1933_s14 = smov %s1936_s17  ;;  %s1934_s15 = smov %s1940_s18 }
 0x15b   :  { %12 = sbr.rel (!%p10_p7) target bundleno = 3 (0x3), region = 62 }

// kernel: forward.14
= control target key start
LH: loop header
LB: loop body
LE: loop exit
PB: predicated region body
PF: predicated region fallthrough
CT: control target
= control target key end

     0   :  { %s1878_s15 = smov 0   ;;  %s1880_s16 = smov 0   ;;  %s2280_s0 = inlined_call_operand.vmem [shape: bf16[2,1024,128], index: 0, kind: input, shape index: {}]   ;;  %s2281_s1 = inlined_call_operand.vmem [shape: bf16[128,128], index: 1, kind: input, shape index: {}]   ;;  %s2282_s2 = inlined_call_operand.vmem [shape: f32[1,128], index: 2, kind: input, shape index: {}]   ;;  %s2283_s3 = inlined_call_operand.vmem [shape: bf16[2,1024,128], index: 3, kind: input, shape index: {}]   ;;  %s2284_s4 = inlined_call_operand.vmem [shape: bf16[2,1024,128], index: 4, kind: output, shape index: {}]  }
   0x1   :  { %s1882_s17 = smov 0   ;;  %s1884_s18 = smov 0  }
   0x2   :  { %s1886_s19 = smov 0  }
   0x3 LB: > { %s23_s20 = sadd.s32 1, %s1843_s17  ;;  %s26_s21 = sadd.s32 1, %s1847_s18  ;;  %s1851_s19 = sphi %s1886_s19, %s14_s19   ;;  %s1847_s18 = sphi %s1884_s18, %s2294_s18   ;;  %s1843_s17 = sphi %s1882_s17, %s2293_s17   ;;  %s1839_s16 = sphi %s1880_s16, %s2292_s16   ;;  %s1835_s15 = sphi %s1878_s15, %s2291_s15  }
   0x4   : > { %p24_p0 = scmp.ge.s32.totalorder %s23_s20, 4  ;;  %p1226_p1 = scmp.ge.s32.totalorder %s1851_s19, 1 }
   0x5   : > { %p200_p2 = scmp.lt.s32.totalorder %s1851_s19, 9 }
   0x6   : > { %s2296_s20 = smov (%p24_p0, %s23_s20), 0  ;;  %s2298_s21 = smov (!%p24_p0, %s26_s21), %s1847_s18 }
   0x7   : > { %p201_p3 = pnand %p1226_p1, %p200_p2  ;;  %p28_p4 = scmp.ge.s32.totalorder %s2298_s21, 2 }
   0x8   : > { %v1661_v0 = vld [vmem:[%s2281_s1] sm:$0xff] (!%p201_p3)   ;;  %s1227_s24 = sshll.u32 (!%p201_p3), %s1835_s15, 5  ;;  %v1662_v1 = vld [vmem:[%s2281_s1 + $0x8] sm:$0xff] (!%p201_p3)   ;;  %p244_p5 = scmp.lt.s32.totalorder (!%p201_p3), %s1839_s16, 1  ;;  %v1663_v2 = vld [vmem:[%s2281_s1 + $0x10] sm:$0xff] (!%p201_p3)  }
   0x9   : > { %s2300_s21 = smov (%p28_p4, %s2298_s21), 0  ;;  %204 = sbr.rel (%p201_p3) target bundleno = 346 (0x15a), region = 36 }
   0xa   : > { %1557 = vmatprep.subr.bf16.mxu0 (!%p201_p3), %v1661_v0  ;;  %1605 = vmatprep.subr.bf16.mxu1 (!%p201_p3), %v1661_v0  ;;  %p246_p6 = scmp.lt.s32.totalorder (!%p201_p3), %s1227_s24, 127  ;;  %v1664_v3 = vld [vmem:[%s2281_s1 + $0x18] sm:$0xff] (!%p201_p3)   ;;  %v1665_v6 = vld [vmem:[%s2281_s1 + $0x20] sm:$0xff] (!%p201_p3)   ;;  %v1666_v7 = vld [vmem:[%s2281_s1 + $0x28] sm:$0xff] (!%p201_p3)  }
   0xb   : > { %1558 = vmatpush3.bf16.msra.mxu0 (!%p201_p3), %v1661_v0  ;;  %1613 = vmatpush3.bf16.msra.mxu1 (!%p201_p3), %v1661_v0  ;;  %v1667_v8 = vld [vmem:[%s2281_s1 + $0x30] sm:$0xff] (!%p201_p3)   ;;  %v1668_v9 = vld [vmem:[%s2281_s1 + $0x38] sm:$0xff] (!%p201_p3)   ;;  %v1962_v24 = vld [vmem:[%s2282_s2] ss:$0 sm:$0xff] (!%p201_p3) }
   0xc   : > { %1559 = vmatprep.subr.bf16.mxu0 (!%p201_p3), %v1662_v1  ;;  %1606 = vmatprep.subr.bf16.mxu1 (!%p201_p3), %v1662_v1 }
   0xf   : > { %1560 = vmatpush3.bf16.msra.mxu0 (!%p201_p3), %v1662_v1  ;;  %1614 = vmatpush3.bf16.msra.mxu1 (!%p201_p3), %v1662_v1 }
  0x10   : > { %s2302_s16 = smov (!%p244_p5, %s1839_s16), 1  ;;  %s2304_s24 = smov (!%p246_p6, %s1227_s24), 127  ;;  %1561 = vmatprep.subr.bf16.mxu0 %v1663_v2  ;;  %1607 = vmatprep.subr.bf16.mxu1 %v1663_v2 }
  0x11   : > { %s1228_s29 = sshll.u32 %s2302_s16, 7 }
  0x12   : > { %s249_s30 = sadd.s32 %s1228_s29, %s2304_s24 }
  0x13   : > { %s1920_s5 = sshll.u32 %s249_s30, 2  ;;  %1562 = vmatpush3.bf16.msra.mxu0 %v1663_v2  ;;  %1615 = vmatpush3.bf16.msra.mxu1 %v1663_v2 }
  0x14   : > { %s1929_s10 = scalar_lea.vmem %s2280_s0, %s1920_s5  ;;  %1563 = vmatprep.subr.bf16.mxu0 %v1664_v3  ;;  %1608 = vmatprep.subr.bf16.mxu1 %v1664_v3  ;;  %s2012_s28 = scalar_lea.vmem %s2283_s3, %s1920_s5 }
  0x15   : > { %v1669_v4 = vld [vmem:[%s1929_s10] sm:$0xff]   ;;  %v1671_v10 = vld [vmem:[%s1929_s10 + $0x8] sm:$0xff]   ;;  %v1673_v12 = vld [vmem:[%s1929_s10 + $0x10] sm:$0xff]   ;;  %s2127_s6 = scalar_lea.vmem %s2284_s4, %s1920_s5 }
  0x16   : > { %v1670_v5 = vld [vmem:[%s1929_s10 + $0x40] sm:$0xff]   ;;  %1573 = vmatprep.mubr.bf16.mxu0 %v1669_v4  ;;  %v1672_v11 = vld [vmem:[%s1929_s10 + $0x48] sm:$0xff]   ;;  %v1674_v13 = vld [vmem:[%s1929_s10 + $0x50] sm:$0xff]  }
  0x17   : > { %1589 = vmatprep.mubr.bf16.mxu1 %v1670_v5  ;;  %1564 = vmatpush3.bf16.msra.mxu0 %v1664_v3  ;;  %v1675_v14 = vld [vmem:[%s1929_s10 + $0x18] sm:$0xff]   ;;  %v1677_v16 = vld [vmem:[%s1929_s10 + $0x20] sm:$0xff]   ;;  %v1679_v18 = vld [vmem:[%s1929_s10 + $0x28] sm:$0xff]  }
  0x18   : > { %1616 = vmatpush3.bf16.msra.mxu1 %v1664_v3  ;;  %1565 = vmatprep.subr.bf16.mxu0 %v1665_v6  ;;  %v1676_v15 = vld [vmem:[%s1929_s10 + $0x58] sm:$0xff]   ;;  %v1678_v17 = vld [vmem:[%s1929_s10 + $0x60] sm:$0xff]   ;;  %v1680_v19 = vld [vmem:[%s1929_s10 + $0x68] sm:$0xff]  }
  0x19   : > { %1609 = vmatprep.subr.bf16.mxu1 %v1665_v6  ;;  %v1681_v20 = vld [vmem:[%s1929_s10 + $0x30] sm:$0xff]   ;;  %v1683_v22 = vld [vmem:[%s1929_s10 + $0x38] sm:$0xff]   ;;  %v2023_v3 = vld [vmem:[%s2012_s28 + $0x8] sm:$0xff]  }
  0x1a   : > { %v1682_v21 = vld [vmem:[%s1929_s10 + $0x70] sm:$0xff]   ;;  %v1684_v23 = vld [vmem:[%s1929_s10 + $0x78] sm:$0xff]   ;;  %v2026_v5 = vld [vmem:[%s2012_s28 + $0x48] sm:$0xff]  }
  0x1b   : > { %1566 = vmatpush3.bf16.msra.mxu0 %v1665_v6 }
  0x1c   : > { %1617 = vmatpush3.bf16.msra.mxu1 %v1665_v6  ;;  %1567 = vmatprep.subr.bf16.mxu0 %v1666_v7  ;;  %v2029_v6 = vld [vmem:[%s2012_s28] sm:$0xff]  }
  0x1d   : > { %1610 = vmatprep.subr.bf16.mxu1 %v1666_v7 }
  0x1f   : > { %1568 = vmatpush3.bf16.msra.mxu0 %v1666_v7 }
  0x20   : > { %1618 = vmatpush3.bf16.msra.mxu1 %v1666_v7  ;;  %1569 = vmatprep.subr.bf16.mxu0 %v1667_v8 }
  0x21   : > { %1611 = vmatprep.subr.bf16.mxu1 %v1667_v8 }
  0x23   : > { %1570 = vmatpush3.bf16.msra.mxu0 %v1667_v8 }
  0x24   : > { %1619 = vmatpush3.bf16.msra.mxu1 %v1667_v8  ;;  %1571 = vmatprep.subr.bf16.mxu0 %v1668_v9 }
  0x25   : > { %1612 = vmatprep.subr.bf16.mxu1 %v1668_v9 }
  0x27   : > { %1572 = vmatpush3.bf16.msra.mxu0 %v1668_v9 }
  0x28   : > { %1620 = vmatpush3.bf16.msra.mxu1 %v1668_v9  ;;  %v2032_v9 = vld [vmem:[%s2012_s28 + $0x40] sm:$0xff]  }
  0x2a   : > { %1574 = vmatmul.mubr.bf16.vlgmr.msra.gmra.mrb[0].mxu0 %v1671_v10 }
  0x2b   : > { %1590 = vmatmul.mubr.bf16.vlgmr.msra.gmra.mrb[0].mxu1 %v1672_v11  ;;  %1577 = vmatprep.mubr.bf16.mxu0 %v1673_v12 }
  0x2c   : > { %1593 = vmatprep.mubr.bf16.mxu1 %v1674_v13  ;;  %v1365_v13 = vunpack.c.l.bf16 %v2023_v3 }
  0x32   : > { %1578 = vmatmul.mubr.bf16.gmra.mrb[4].mxu0 %v1675_v14 }
  0x33   : > { %1594 = vmatmul.mubr.bf16.gmra.mrb[4].mxu1 %v1676_v15  ;;  %1581 = vmatprep.mubr.bf16.mxu0 %v1677_v16 }
  0x34   : > { %1597 = vmatprep.mubr.bf16.mxu1 %v1678_v17 }
  0x3a   : > { %1582 = vmatmul.mubr.bf16.gmra.mrb[8].mxu0 %v1679_v18  ;;  %v1397_v18 = vunpack.c.l.bf16 %v2026_v5 }
  0x3b   : > { %1598 = vmatmul.mubr.bf16.gmra.mrb[8].mxu1 %v1680_v19  ;;  %1585 = vmatprep.mubr.bf16.mxu0 %v1681_v20 }
  0x3c   : > { %1601 = vmatprep.mubr.bf16.mxu1 %v1682_v21 }
  0x42   : > { %1586 = vmatmul.mubr.bf16.gmra.mrb[12].mxu0 %v1683_v22 }
  0x43   : > { %1602 = vmatmul.mubr.bf16.gmra.mrb[12].mxu1 %v1684_v23 }
  0xfd   : > { %v1575_v25 = vpop.f32.mrb[0].mxu0 }
  0xfe   : > { %v1591_v26 = vpop.f32.mrb[0].mxu1  ;;  %v1965_v27 = vadd.f32 %v1575_v25, %v1962_v24  ;;  %v507_v29 = vpop.f32.mrb[1].mxu0 }
  0xff   : > { %v1968_v28 = vadd.f32 %v1591_v26, %v1962_v24  ;;  %v571_v30 = vpop.f32.mrb[1].mxu1  ;;  %v1971_v31 = vadd.f32 %v1962_v24, %v507_v29  ;;  %v1576_v33 = vpop.f32.mrb[2].mxu0  ;;  %v1366_v29 = vunpack.c.h.bf16 %v2023_v3 }
 0x100   : > { %v1974_v32 = vadd.f32 %v1962_v24, %v571_v30  ;;  %v1592_v34 = vpop.f32.mrb[2].mxu1  ;;  %v1263_v35 = vmul.f32 -1.442695, %v1965_v27  ;;  %v1979_v37 = vadd.f32 %v1576_v33, %v1962_v24  ;;  %v510_v39 = vpop.f32.mrb[3].mxu0  ;;  %v2040_v30 = vld [vmem:[%s2012_s28 + $0x18] sm:$0xff]  }
 0x101   : > { %v1279_v36 = vmul.f32 -1.442695, %v1968_v28  ;;  %v1982_v38 = vadd.f32 %v1592_v34, %v1962_v24  ;;  %v574_v40 = vpop.f32.mrb[3].mxu1  ;;  %v1261_v41 = vmul.f32 -1.442695, %v1971_v31  ;;  %v1987_v43 = vadd.f32 %v1962_v24, %v510_v39 }
 0x102   : > { %v1277_v42 = vmul.f32 -1.442695, %v1974_v32  ;;  %v1990_v44 = vadd.f32 %v1962_v24, %v574_v40  ;;  %1685 = vpow2.f32 %v1263_v35  ;;  %v1264_v45 = vmul.f32 -1.442695, %v1979_v37 }
 0x103   : > { %1687 = vpow2.f32 %v1279_v36  ;;  %v1280_v46 = vmul.f32 -1.442695, %v1982_v38  ;;  %v1262_v47 = vmul.f32 -1.442695, %v1987_v43 }
 0x104   : > { %1689 = vpow2.f32 %v1261_v41  ;;  %v1278_v48 = vmul.f32 -1.442695, %v1990_v44 }
 0x105   : > { %1691 = vpow2.f32 %v1277_v42  ;;  %v1579_v49 = vpop.f32.mrb[4].mxu0 }
 0x106   : > { %v1595_v50 = vpop.f32.mrb[4].mxu1  ;;  %1693 = vpow2.f32 %v1264_v45  ;;  %v1997_v51 = vadd.f32 %v1579_v49, %v1962_v24  ;;  %v523_v53 = vpop.f32.mrb[5].mxu0  ;;  %v1398_v45 = vunpack.c.h.bf16 %v2026_v5  ;;  %v2287_v5 = vunpack.c.l.bf16 %v2032_v9 }
 0x107   : > { %v2000_v52 = vadd.f32 %v1595_v50, %v1962_v24  ;;  %v587_v54 = vpop.f32.mrb[5].mxu1  ;;  %1695 = vpow2.f32 %v1280_v46  ;;  %v2003_v55 = vadd.f32 %v1962_v24, %v523_v53  ;;  %v1580_v57 = vpop.f32.mrb[6].mxu0 }
 0x108   : > { %v2006_v56 = vadd.f32 %v1962_v24, %v587_v54  ;;  %v1596_v58 = vpop.f32.mrb[6].mxu1  ;;  %1697 = vpow2.f32 %v1262_v47  ;;  %v1267_v59 = vmul.f32 -1.442695, %v1997_v51  ;;  %v2017_v61 = vadd.f32 %v1580_v57, %v1962_v24  ;;  %v526_v62 = vpop.f32.mrb[7].mxu0 }
 0x109   : > { %v1283_v60 = vmul.f32 -1.442695, %v2000_v52  ;;  %v590_v63 = vpop.f32.mrb[7].mxu1  ;;  %1699 = vpow2.f32 %v1278_v48  ;;  %v1265_v0 = vmul.f32 -1.442695, %v2003_v55  ;;  %v2043_v36 = vadd.f32 %v1596_v58, %v1962_v24 }
 0x10a   : > { %v1281_v1 = vmul.f32 -1.442695, %v2006_v56  ;;  %1701 = vpow2.f32 %v1267_v59  ;;  %v1268_v2 = vmul.f32 -1.442695, %v2017_v61  ;;  %v2046_v39 = vadd.f32 %v1962_v24, %v526_v62 }
 0x10b   : > { %1703 = vpow2.f32 %v1283_v60  ;;  %v2054_v58 = vadd.f32 %v1962_v24, %v590_v63  ;;  %v1284_v62 = vmul.f32 -1.442695, %v2043_v36 }
 0x10c   : > { %v1686_v4 = vpop.eup %1685  ;;  %1705 = vpow2.f32 %v1265_v0  ;;  %v1266_v0 = vmul.f32 -1.442695, %v2046_v39 }
 0x10d   : > { %v1688_v7 = vpop.eup %1687  ;;  %v732_v8 = vadd.f32 1.0, %v1686_v4  ;;  %1707 = vpow2.f32 %v1281_v1  ;;  %v1583_v10 = vpop.f32.mrb[8].mxu0 }
 0x10e   : > { %v1599_v11 = vpop.f32.mrb[8].mxu1  ;;  %v1690_v12 = vpop.eup %1689  ;;  %v748_v14 = vadd.f32 1.0, %v1688_v7  ;;  %1709 = vpow2.f32 %v1268_v2  ;;  %v2059_v7 = vadd.f32 %v1583_v10, %v1962_v24 }
 0x10f   : > { %v539_v15 = vpop.f32.mrb[9].mxu0  ;;  %v603_v16 = vpop.f32.mrb[9].mxu1  ;;  %1711 = vrcp.f32 %v732_v8  ;;  %v730_v19 = vadd.f32 1.0, %v1690_v12  ;;  %v2062_v8 = vadd.f32 %v1599_v11, %v1962_v24 }
 0x110   : > { %v1692_v17 = vpop.eup %1691  ;;  %v1584_v21 = vpop.f32.mrb[10].mxu0  ;;  %1713 = vrcp.f32 %v748_v14 }
 0x111   : > { %v1600_v22 = vpop.f32.mrb[10].mxu1  ;;  %v1694_v23 = vpop.eup %1693  ;;  %v746_v25 = vadd.f32 1.0, %v1692_v17  ;;  %1715 = vrcp.f32 %v730_v19  ;;  %v2067_v19 = vadd.f32 %v1962_v24, %v539_v15 }
 0x112   : > { %v542_v33 = vpop.f32.mrb[11].mxu0  ;;  %v1696_v34 = vpop.eup %1695  ;;  %v733_v35 = vadd.f32 1.0, %v1694_v23  ;;  %v2070_v23 = vadd.f32 %v1962_v24, %v603_v16 }
 0x113   : > { %v606_v40 = vpop.f32.mrb[11].mxu1  ;;  %v1698_v41 = vpop.eup %1697  ;;  %1717 = vrcp.f32 %v746_v25  ;;  %v749_v42 = vadd.f32 1.0, %v1696_v34 }
 0x114   : > { %v1700_v47 = vpop.eup %1699  ;;  %1719 = vrcp.f32 %v733_v35  ;;  %v731_v48 = vadd.f32 1.0, %v1698_v41  ;;  %v2077_v35 = vadd.f32 %v1584_v21, %v1962_v24  ;;  %v2080_v41 = vadd.f32 %v1600_v22, %v1962_v24 }
 0x115   : > { %v1702_v53 = vpop.eup %1701  ;;  %1721 = vrcp.f32 %v749_v42  ;;  %v747_v54 = vadd.f32 1.0, %v1700_v47  ;;  %v1587_v1 = vpop.f32.mrb[12].mxu0  ;;  %v1282_v22 = vmul.f32 -1.442695, %v2054_v58 }
 0x116   : > { %v1704_v59 = vpop.eup %1703  ;;  %1723 = vrcp.f32 %v731_v48  ;;  %v736_v60 = vadd.f32 1.0, %v1702_v53  ;;  %v1603_v12 = vpop.f32.mrb[12].mxu1  ;;  %v2087_v48 = vadd.f32 %v1962_v24, %v542_v33  ;;  %v2090_v53 = vadd.f32 %v1962_v24, %v606_v40 }
 0x117   : > { %v1706_v2 = vpop.eup %1705  ;;  %1725 = vrcp.f32 %v747_v54  ;;  %v752_v4 = vadd.f32 1.0, %v1704_v59  ;;  %v2064_v63 = vpop.f32.mrb[13].mxu0  ;;  %v1271_v59 = vmul.f32 -1.442695, %v2059_v7  ;;  %v1285_v33 = vmul.f32 -1.442695, %v2070_v23 }
 0x118   : > { %v1708_v14 = vpop.eup %1707  ;;  %1727 = vrcp.f32 %v736_v60  ;;  %v734_v17 = vadd.f32 1.0, %v1706_v2  ;;  %v2072_v25 = vpop.f32.mrb[13].mxu1  ;;  %v1287_v60 = vmul.f32 -1.442695, %v2062_v8  ;;  %v1286_v49 = vmul.f32 -1.442695, %v2090_v53 }
 0x119   : > { %v2074_v34 = vpop.f32.mrb[14].mxu0  ;;  %v1710_v10 = vpop.eup %1709  ;;  %1729 = vrcp.f32 %v752_v4  ;;  %v750_v11 = vadd.f32 1.0, %v1708_v14  ;;  %v1269_v4 = vmul.f32 -1.442695, %v2067_v19  ;;  %v2100_v14 = vadd.f32 %v1587_v1, %v1962_v24 }
 0x11a   : > { %v2082_v42 = vpop.f32.mrb[14].mxu1  ;;  %v2084_v15 = vpop.f32.mrb[15].mxu0  ;;  %1731 = vrcp.f32 %v734_v17  ;;  %v737_v16 = vadd.f32 1.0, %v1710_v10  ;;  %v1272_v10 = vmul.f32 -1.442695, %v2077_v35 }
 0x11b   : > { %v1712_v47 = vpop.eup %1711  ;;  %v2092_v54 = vpop.f32.mrb[15].mxu1  ;;  %1733 = vrcp.f32 %v750_v11  ;;  %v1288_v11 = vmul.f32 -1.442695, %v2080_v41 }
 0x11c   : > { %v1714_v21 = vpop.eup %1713  ;;  %1735 = vrcp.f32 %v737_v16  ;;  %v828_v17 = vmul.f32 %v1712_v47, %v1965_v27  ;;  %v1270_v16 = vmul.f32 -1.442695, %v2087_v48  ;;  %v2111_v27 = vadd.f32 %v1603_v12, %v1962_v24 }
 0x11d   : > { %v1716_v2 = vpop.eup %1715  ;;  %1737 = vpow2.f32 %v1284_v62  ;;  %v844_v50 = vmul.f32 %v1714_v21, %v1968_v28 }
 0x11e   : > { %v1718_v40 = vpop.eup %1717  ;;  %1739 = vpow2.f32 %v1266_v0  ;;  %v826_v1 = vmul.f32 %v1716_v2, %v1971_v31  ;;  %v1275_v0 = vmul.f32 -1.442695, %v2100_v14  ;;  %v924_v20 = vadd.f32 %v1365_v13, %v828_v17 }
 0x11f   : > { %v1720_v57 = vpop.eup %1719  ;;  %1741 = vpow2.f32 %v1282_v22  ;;  %v842_v47 = vmul.f32 %v1718_v40, %v1974_v32  ;;  %v940_v12 = vadd.f32 %v1397_v18, %v844_v50  ;;  %v2286_v18 = vunpack.c.h.bf16 %v2029_v6 }
 0x120   : > { %v1722_v26 = vpop.eup %1721  ;;  %v829_v46 = vmul.f32 %v1720_v57, %v1979_v37  ;;  %1743 = vpow2.f32 %v1271_v59 }
 0x121   : > { %v1724_v62 = vpop.eup %1723  ;;  %v845_v28 = vmul.f32 %v1722_v26, %v1982_v38  ;;  %1745 = vpow2.f32 %v1287_v60  ;;  %v1291_v60 = vmul.f32 -1.442695, %v2111_v27 }
 0x122   : > { %v1726_v21 = vpop.eup %1725  ;;  %v925_v31 = vadd.f32 %v1366_v29, %v829_v46  ;;  %v827_v37 = vmul.f32 %v1724_v62, %v1987_v43  ;;  %1747 = vpow2.f32 %v1269_v4  ;;  %v2285_v43 = vunpack.c.l.bf16 %v2029_v6 }
 0x123   : > { %v1728_v57 = vpop.eup %1727  ;;  %v941_v32 = vadd.f32 %v1398_v45, %v845_v28  ;;  %v843_v38 = vmul.f32 %v1726_v21, %v1990_v44  ;;  %1749 = vpow2.f32 %v1285_v33  ;;  %v938_v45 = vadd.f32 %v2287_v5, %v842_v47  ;;  %v2158_v28 = vld [vmem:[%s2012_s28 + $0x58] sm:$0xff]   ;;  %v2161_v21 = vld [vmem:[%s2012_s28 + $0x10] sm:$0xff]  }
 0x124   : > { %v2132_v3 = vpop.eup %1729  ;;  %v922_v13 = vadd.f32 %v2285_v43, %v826_v1  ;;  %v1431_v26 = vpack.c.bf16 %v925_v31, %v924_v20  ;;  %v923_v29 = vadd.f32 %v2286_v18, %v827_v37  ;;  %v2288_v44 = vunpack.c.h.bf16 %v2032_v9  ;;  %v2164_v31 = vld [vmem:[%s2012_s28 + $0x50] sm:$0xff]  }
 0x125   : > { %v2138_v46 = vpop.eup %1731  ;;  %v1471_v50 = vpack.c.bf16 %v941_v32, %v940_v12  ;;  %1751 = vpow2.f32 %v1272_v10  ;;  %v832_v6 = vmul.f32 %v1728_v57, %v1997_v51  ;;  %v2289_v10 = vunpack.c.l.bf16 %v2040_v30 }
 0x126   : > { %v939_v22 = vadd.f32 %v2288_v44, %v843_v38  ;;  %v2144_v59 = vpop.eup %1733  ;;  %1518 = vst [vmem:[%s2127_s6 + $0x8] sm:$0xff] %v1431_v26   ;;  %v1426_v20 = vpack.c.bf16 %v923_v29, %v922_v13  ;;  %1753 = vpow2.f32 %v1288_v11  ;;  %v2290_v1 = vunpack.c.h.bf16 %v2040_v30 }
 0x127   : > { %v1736_v2 = vpop.eup %1735  ;;  %1526 = vst [vmem:[%s2127_s6 + $0x48] sm:$0xff] %v1471_v50   ;;  %1755 = vpow2.f32 %v1270_v16  ;;  %v928_v11 = vadd.f32 %v2289_v10, %v832_v6  ;;  %v1405_v32 = vunpack.c.l.bf16 %v2158_v28  ;;  %v1369_v13 = vunpack.c.l.bf16 %v2161_v21 }
 0x128   : > { %v1466_v4 = vpack.c.bf16 %v939_v22, %v938_v45  ;;  %v1738_v33 = vpop.eup %1737  ;;  %1427 = vst [vmem:[%s2127_s6] sm:$0xff] %v1426_v20   ;;  %v833_v9 = vmul.f32 %v1736_v2, %v2017_v61  ;;  %1757 = vpow2.f32 %v1286_v49  ;;  %v1401_v26 = vunpack.c.l.bf16 %v2164_v31  ;;  %v2177_v20 = vld [vmem:[%s2012_s28 + $0x28] sm:$0xff]  }
 0x129   : > { %v1740_v40 = vpop.eup %1739  ;;  %v753_v17 = vadd.f32 1.0, %v1738_v33  ;;  %1759 = vpow2.f32 %v1275_v0  ;;  %v1406_v5 = vunpack.c.h.bf16 %v2158_v28  ;;  %v2173_v50 = vadd.f32 %v1962_v24, %v2064_v63 }
 0x12a   : > { %1525 = vst [vmem:[%s2127_s6 + $0x40] sm:$0xff] %v1466_v4   ;;  %v1742_v51 = vpop.eup %1741  ;;  %v929_v62 = vadd.f32 %v2290_v1, %v833_v9  ;;  %v735_v47 = vadd.f32 1.0, %v1740_v40  ;;  %1761 = vpow2.f32 %v1291_v60  ;;  %v1370_v22 = vunpack.c.h.bf16 %v2161_v21  ;;  %v2191_v40 = vld [vmem:[%s2012_s28 + $0x68] sm:$0xff]   ;;  %v2207_v1 = vld [vmem:[%s2012_s28 + $0x20] sm:$0xff]  }
 0x12b   : > { %v1744_v16 = vpop.eup %1743  ;;  %1763 = vrcp.f32 %v753_v17  ;;  %v751_v61 = vadd.f32 1.0, %v1742_v51  ;;  %v2181_v60 = vadd.f32 %v1962_v24, %v2072_v25  ;;  %v1402_v4 = vunpack.c.h.bf16 %v2164_v31 }
 0x12c   : > { %v1746_v49 = vpop.eup %1745  ;;  %v1441_v0 = vpack.c.bf16 %v929_v62, %v928_v11  ;;  %1765 = vrcp.f32 %v735_v47  ;;  %v740_v37 = vadd.f32 1.0, %v1744_v16  ;;  %v2186_v63 = vadd.f32 %v2074_v34, %v1962_v24 }
 0x12d   : > { %v1748_v57 = vpop.eup %1747  ;;  %1767 = vrcp.f32 %v751_v61  ;;  %v756_v30 = vadd.f32 1.0, %v1746_v49  ;;  %v2195_v51 = vadd.f32 %v2082_v42, %v1962_v24  ;;  %v2199_v25 = vadd.f32 %v1962_v24, %v2084_v15 }
 0x12e   : > { %v1750_v12 = vpop.eup %1749  ;;  %1520 = vst [vmem:[%s2127_s6 + $0x18] sm:$0xff] %v1441_v0   ;;  %1769 = vrcp.f32 %v740_v37  ;;  %v738_v38 = vadd.f32 1.0, %v1748_v57  ;;  %v848_v34 = vmul.f32 %v2132_v3, %v2000_v52  ;;  %v1381_v11 = vunpack.c.l.bf16 %v2177_v20 }
 0x12f   : > { %v1752_v43 = vpop.eup %1751  ;;  %1771 = vrcp.f32 %v756_v30  ;;  %v754_v18 = vadd.f32 1.0, %v1750_v12  ;;  %v1273_v62 = vmul.f32 -1.442695, %v2173_v50  ;;  %v830_v42 = vmul.f32 %v2138_v46, %v2003_v55 }
 0x130   : > { %v1754_v29 = vpop.eup %1753  ;;  %1773 = vrcp.f32 %v738_v38  ;;  %v741_v45 = vadd.f32 1.0, %v1752_v43  ;;  %v1289_v15 = vmul.f32 -1.442695, %v2181_v60  ;;  %v2215_v16 = vadd.f32 %v1962_v24, %v2092_v54 }
 0x131   : > { %v1756_v44 = vpop.eup %1755  ;;  %1775 = vrcp.f32 %v754_v18  ;;  %v757_v6 = vadd.f32 1.0, %v1754_v29  ;;  %v846_v52 = vmul.f32 %v2144_v59, %v2006_v56  ;;  %v1413_v61 = vunpack.c.l.bf16 %v2191_v40 }
 0x132   : > { %v1758_v2 = vpop.eup %1757  ;;  %1777 = vrcp.f32 %v741_v45  ;;  %v739_v33 = vadd.f32 1.0, %v1756_v44  ;;  %v1276_v49 = vmul.f32 -1.442695, %v2186_v63  ;;  %v1377_v46 = vunpack.c.l.bf16 %v2207_v1 }
 0x133   : > { %v2188_v9 = vpop.eup %1759  ;;  %1779 = vrcp.f32 %v757_v6  ;;  %v755_v17 = vadd.f32 1.0, %v1758_v2  ;;  %v1292_v31 = vmul.f32 -1.442695, %v2195_v51  ;;  %v1274_v24 = vmul.f32 -1.442695, %v2199_v25 }
 0x134   : > { %v2201_v10 = vpop.eup %1761  ;;  %1781 = vrcp.f32 %v739_v33  ;;  %v944_v0 = vadd.f32 %v1405_v32, %v848_v34  ;;  %v926_v59 = vadd.f32 %v1369_v13, %v830_v42  ;;  %v942_v12 = vadd.f32 %v1401_v26, %v846_v52 }
 0x135   : > { %v1764_v47 = vpop.eup %1763  ;;  %1783 = vrcp.f32 %v755_v17  ;;  %v1414_v26 = vunpack.c.h.bf16 %v2191_v40 }
 0x136   : > { %v1766_v28 = vpop.eup %1765  ;;  %v849_v3 = vmul.f32 %v1764_v47, %v2043_v36  ;;  %1785 = vpow2.f32 %v1273_v62 }
 0x137   : > { %v1768_v21 = vpop.eup %1767  ;;  %v831_v55 = vmul.f32 %v1766_v28, %v2046_v39  ;;  %1787 = vpow2.f32 %v1289_v15  ;;  %v1290_v39 = vmul.f32 -1.442695, %v2215_v16  ;;  %v760_v15 = vadd.f32 1.0, %v2201_v10 }
 0x138   : > { %v1770_v54 = vpop.eup %1769  ;;  %v945_v37 = vadd.f32 %v1406_v5, %v849_v3  ;;  %v847_v56 = vmul.f32 %v1768_v21, %v2054_v58  ;;  %1789 = vpow2.f32 %v1276_v49  ;;  %v1514_v5 = vld [vmem:[%s2012_s28 + $0x60] sm:$0xff]   ;;  %v1382_v58 = vunpack.c.h.bf16 %v2177_v20 }
 0x139   : > { %v1772_v36 = vpop.eup %1771  ;;  %v927_v57 = vadd.f32 %v1370_v22, %v831_v55  ;;  %v836_v29 = vmul.f32 %v1770_v54, %v2059_v7  ;;  %1791 = vpow2.f32 %v1292_v31  ;;  %v1378_v7 = vunpack.c.h.bf16 %v2207_v1 }
 0x13a   : > { %v1774_v30 = vpop.eup %1773  ;;  %v1481_v38 = vpack.c.bf16 %v945_v37, %v944_v0  ;;  %v943_v43 = vadd.f32 %v1402_v4, %v847_v56  ;;  %v852_v44 = vmul.f32 %v1772_v36, %v2062_v8  ;;  %1793 = vpow2.f32 %v1274_v24  ;;  %v1509_v36 = vld [vmem:[%s2012_s28 + $0x38] sm:$0xff]  }
 0x13b   : > { %v1776_v18 = vpop.eup %1775  ;;  %v1436_v32 = vpack.c.bf16 %v927_v57, %v926_v59  ;;  %v834_v6 = vmul.f32 %v1774_v30, %v2067_v19  ;;  %1795 = vpow2.f32 %v1290_v39  ;;  %v1409_v33 = vunpack.c.l.bf16 %v1514_v5  ;;  %v1517_v57 = vld [vmem:[%s2012_s28 + $0x78] sm:$0xff]   ;;  %v1508_v30 = vld [vmem:[%s2012_s28 + $0x30] sm:$0xff]  }
 0x13c   : > { %v1778_v13 = vpop.eup %1777  ;;  %1528 = vst [vmem:[%s2127_s6 + $0x58] sm:$0xff] %v1481_v38   ;;  %v1476_v45 = vpack.c.bf16 %v943_v43, %v942_v12  ;;  %v850_v20 = vmul.f32 %v1776_v18, %v2070_v23  ;;  %v1410_v8 = vunpack.c.h.bf16 %v1514_v5  ;;  %v932_v40 = vadd.f32 %v1381_v11, %v836_v29  ;;  %v1516_v18 = vld [vmem:[%s2012_s28 + $0x70] sm:$0xff]  }
 0x13d   : > { %v1780_v22 = vpop.eup %1779  ;;  %1519 = vst [vmem:[%s2127_s6 + $0x10] sm:$0xff] %v1436_v32   ;;  %v837_v2 = vmul.f32 %v1778_v13, %v2077_v35  ;;  %v744_v19 = vadd.f32 1.0, %v2188_v9  ;;  %v948_v35 = vadd.f32 %v1413_v61, %v852_v44  ;;  %v930_v23 = vadd.f32 %v1377_v46, %v834_v6 }
 0x13e   : > { %v1782_v4 = vpop.eup %1781  ;;  %1527 = vst [vmem:[%s2127_s6 + $0x50] sm:$0xff] %v1476_v45   ;;  %v853_v17 = vmul.f32 %v1780_v22, %v2080_v41  ;;  %v946_v3 = vadd.f32 %v1409_v33, %v850_v20  ;;  %v1389_v43 = vunpack.c.l.bf16 %v1509_v36  ;;  %v1390_v32 = vunpack.c.h.bf16 %v1509_v36 }
 0x13f   : > { %v1784_v34 = vpop.eup %1783  ;;  %v933_v62 = vadd.f32 %v1382_v58, %v837_v2  ;;  %v835_v47 = vmul.f32 %v1782_v4, %v2087_v48  ;;  %1797 = vrcp.f32 %v744_v19  ;;  %v1421_v58 = vunpack.c.l.bf16 %v1517_v57 }
 0x140   : > { %v949_v42 = vadd.f32 %v1414_v26, %v853_v17  ;;  %v851_v1 = vmul.f32 %v1784_v34, %v2090_v53  ;;  %v1786_v41 = vpop.eup %1785  ;;  %1799 = vrcp.f32 %v760_v15  ;;  %v1422_v13 = vunpack.c.h.bf16 %v1517_v57 }
 0x141   : > { %v1451_v28 = vpack.c.bf16 %v933_v62, %v932_v40  ;;  %v931_v52 = vadd.f32 %v1378_v7, %v835_v47  ;;  %v1788_v21 = vpop.eup %1787  ;;  %v742_v9 = vadd.f32 1.0, %v1786_v41  ;;  %v1385_v26 = vunpack.c.l.bf16 %v1508_v30 }
 0x142   : > { %v1491_v11 = vpack.c.bf16 %v949_v42, %v948_v35  ;;  %v947_v49 = vadd.f32 %v1410_v8, %v851_v1  ;;  %v1790_v61 = vpop.eup %1789  ;;  %v758_v53 = vadd.f32 1.0, %v1788_v21  ;;  %v1386_v6 = vunpack.c.h.bf16 %v1508_v30 }
 0x143   : > { %1522 = vst [vmem:[%s2127_s6 + $0x28] sm:$0xff] %v1451_v28   ;;  %v1446_v48 = vpack.c.bf16 %v931_v52, %v930_v23  ;;  %v1792_v10 = vpop.eup %1791  ;;  %1801 = vrcp.f32 %v742_v9  ;;  %v745_v46 = vadd.f32 1.0, %v1790_v61  ;;  %v1417_v4 = vunpack.c.l.bf16 %v1516_v18 }
 0x144   : > { %1530 = vst [vmem:[%s2127_s6 + $0x68] sm:$0xff] %v1491_v11   ;;  %v1486_v55 = vpack.c.bf16 %v947_v49, %v946_v3  ;;  %v1794_v31 = vpop.eup %1793  ;;  %1803 = vrcp.f32 %v758_v53  ;;  %v761_v24 = vadd.f32 1.0, %v1792_v10  ;;  %v1418_v20 = vunpack.c.h.bf16 %v1516_v18 }
 0x145   : > { %1521 = vst [vmem:[%s2127_s6 + $0x20] sm:$0xff] %v1446_v48   ;;  %v1796_v54 = vpop.eup %1795  ;;  %1805 = vrcp.f32 %v745_v46  ;;  %v743_v0 = vadd.f32 1.0, %v1794_v31 }
 0x146   : > { %1529 = vst [vmem:[%s2127_s6 + $0x60] sm:$0xff] %v1486_v55   ;;  %1807 = vrcp.f32 %v761_v24  ;;  %v759_v37 = vadd.f32 1.0, %v1796_v54 }
 0x147   : > { %1809 = vrcp.f32 %v743_v0 }
 0x148   : > { %1811 = vrcp.f32 %v759_v37 }
 0x149   : > { %v1798_v56 = vpop.eup %1797 }
 0x14a   : > { %v1800_v59 = vpop.eup %1799  ;;  %v840_v38 = vmul.f32 %v1798_v56, %v2100_v14 }
 0x14b   : > { %v856_v5 = vmul.f32 %v1800_v59, %v2111_v27 }
 0x14c   : > { %v936_v27 = vadd.f32 %v1389_v43, %v840_v38 }
 0x14d   : > { %v1802_v39 = vpop.eup %1801  ;;  %v952_v8 = vadd.f32 %v1421_v58, %v856_v5 }
 0x14e   : > { %v1804_v12 = vpop.eup %1803  ;;  %v838_v44 = vmul.f32 %v1802_v39, %v2173_v50 }
 0x14f   : > { %v1806_v29 = vpop.eup %1805  ;;  %v854_v7 = vmul.f32 %v1804_v12, %v2181_v60 }
 0x150   : > { %v1808_v45 = vpop.eup %1807  ;;  %v841_v22 = vmul.f32 %v1806_v29, %v2186_v63  ;;  %v934_v40 = vadd.f32 %v1385_v26, %v838_v44 }
 0x151   : > { %v1810_v2 = vpop.eup %1809  ;;  %v857_v14 = vmul.f32 %v1808_v45, %v2195_v51  ;;  %v950_v47 = vadd.f32 %v1417_v4, %v854_v7 }
 0x152   : > { %v1812_v33 = vpop.eup %1811  ;;  %v937_v17 = vadd.f32 %v1390_v32, %v841_v22  ;;  %v839_v50 = vmul.f32 %v1810_v2, %v2199_v25 }
 0x153   : > { %v953_v34 = vadd.f32 %v1422_v13, %v857_v14  ;;  %v855_v63 = vmul.f32 %v1812_v33, %v2215_v16 }
 0x154   : > { %v1461_v62 = vpack.c.bf16 %v937_v17, %v936_v27  ;;  %v935_v60 = vadd.f32 %v1386_v6, %v839_v50 }
 0x155   : > { %v1501_v19 = vpack.c.bf16 %v953_v34, %v952_v8  ;;  %v951_v35 = vadd.f32 %v1418_v20, %v855_v63 }
 0x156   : > { %1524 = vst [vmem:[%s2127_s6 + $0x38] sm:$0xff] %v1461_v62   ;;  %v1456_v51 = vpack.c.bf16 %v935_v60, %v934_v40 }
 0x157   : > { %1532 = vst [vmem:[%s2127_s6 + $0x78] sm:$0xff] %v1501_v19   ;;  %v1496_v42 = vpack.c.bf16 %v951_v35, %v950_v47 }
 0x158   : > { %1523 = vst [vmem:[%s2127_s6 + $0x30] sm:$0xff] %v1456_v51  }
 0x159   : > { %1531 = vst [vmem:[%s2127_s6 + $0x70] sm:$0xff] %v1496_v42  }
 0x15a PF: > { %s14_s19 = sadd.s32 1, %s1851_s19   ;;  %s2291_s15 = smov %s1843_s17 }
 0x15b   : > { %p11_p7 = scmp.ge.s32.totalorder %s14_s19, 10   ;;  %s2292_s16 = smov %s1847_s18 }
 0x15c   : > { %s2293_s17 = smov %s2296_s20  ;;  %s2294_s18 = smov %s2300_s21 }
 0x15d   :  { %13 = sbr.rel (!%p11_p7) target bundleno = 3 (0x3), region = 69 }

// kernel: forward.15
= control target key start
LH: loop header
LB: loop body
LE: loop exit
PB: predicated region body
PF: predicated region fallthrough
CT: control target
= control target key end

     0   :  { %s1195_s12 = smov 0   ;;  %s1197_s13 = smov 0   ;;  %s1332_s0 = inlined_call_operand.vmem [shape: bf16[2,256,128], index: 0, kind: input, shape index: {}]   ;;  %s1333_s1 = inlined_call_operand.vmem [shape: bf16[128,128], index: 1, kind: input, shape index: {}]   ;;  %s1334_s2 = inlined_call_operand.vmem [shape: f32[1,128], index: 2, kind: input, shape index: {}]   ;;  %s1335_s3 = inlined_call_operand.vmem [shape: bf16[2,256,128], index: 3, kind: output, shape index: {}]  }
   0x1   :  { %s1199_s14 = smov 0  }
   0x2 LB: > { %s25_s15 = sadd.s32 1, %s1169_s13  ;;  %p822_p0 = scmp.ge.s32.totalorder %s1173_s14, 1  ;;  %s1173_s14 = sphi %s1199_s14, %s13_s14   ;;  %s1169_s13 = sphi %s1197_s13, %s1337_s13   ;;  %s1165_s12 = sphi %s1195_s12, %s1336_s12  }
   0x3   : > { %p27_p1 = scmp.ge.s32.totalorder %s25_s15, 2  ;;  %p158_p2 = scmp.lt.s32.totalorder %s1173_s14, 3 }
   0x5   : > { %s1339_s15 = smov (%p27_p1, %s25_s15), 0  ;;  %p159_p3 = pnand %p822_p0, %p158_p2 }
   0x6   : > { %v1127_v0 = vld [vmem:[%s1333_s1] sm:$0xff] (!%p159_p3)   ;;  %p191_p4 = scmp.lt.s32.totalorder (!%p159_p3), %s1165_s12, 1  ;;  %v1128_v1 = vld [vmem:[%s1333_s1 + $0x8] sm:$0xff] (!%p159_p3)   ;;  %v1129_v2 = vld [vmem:[%s1333_s1 + $0x10] sm:$0xff] (!%p159_p3)  }
   0x7   : > { %162 = sbr.rel (%p159_p3) target bundleno = 283 (0x11b), region = 32  ;;  %1039 = vmatprep.subr.bf16.mxu0 (!%p159_p3), %v1127_v0  ;;  %1087 = vmatprep.subr.bf16.mxu1 (!%p159_p3), %v1127_v0  ;;  %v1130_v3 = vld [vmem:[%s1333_s1 + $0x18] sm:$0xff] (!%p159_p3)   ;;  %v1131_v6 = vld [vmem:[%s1333_s1 + $0x20] sm:$0xff] (!%p159_p3)   ;;  %v1132_v7 = vld [vmem:[%s1333_s1 + $0x28] sm:$0xff] (!%p159_p3)  }
   0x8   : > { %1040 = vmatpush3.bf16.msra.mxu0 (!%p159_p3), %v1127_v0  ;;  %1095 = vmatpush3.bf16.msra.mxu1 (!%p159_p3), %v1127_v0  ;;  %v1133_v8 = vld [vmem:[%s1333_s1 + $0x30] sm:$0xff] (!%p159_p3)   ;;  %v1134_v9 = vld [vmem:[%s1333_s1 + $0x38] sm:$0xff] (!%p159_p3)   ;;  %v1266_v25 = vld [vmem:[%s1334_s2] ss:$0 sm:$0xff] (!%p159_p3) }
   0x9   : > { %1041 = vmatprep.subr.bf16.mxu0 (!%p159_p3), %v1128_v1  ;;  %1088 = vmatprep.subr.bf16.mxu1 (!%p159_p3), %v1128_v1 }
   0xc   : > { %1042 = vmatpush3.bf16.msra.mxu0 (!%p159_p3), %v1128_v1  ;;  %1096 = vmatpush3.bf16.msra.mxu1 (!%p159_p3), %v1128_v1 }
   0xd   : > { %1043 = vmatprep.subr.bf16.mxu0 (!%p159_p3), %v1129_v2  ;;  %1089 = vmatprep.subr.bf16.mxu1 (!%p159_p3), %v1129_v2 }
   0xe   : > { %s1341_s12 = smov (!%p191_p4, %s1165_s12), 1 }
   0xf   : > { %s886_s22 = sshll.u32 %s1341_s12, 7 }
  0x10   : > { %s1230_s25 = scalar_lea.vmem %s1332_s0, %s886_s22  ;;  %1044 = vmatpush3.bf16.msra.mxu0 %v1129_v2  ;;  %1097 = vmatpush3.bf16.msra.mxu1 %v1129_v2  ;;  %s1279_s17 = scalar_lea.vmem %s1335_s3, %s886_s22 }
  0x11   : > { %v1135_v4 = vld [vmem:[%s1230_s25] sm:$0xff]   ;;  %1045 = vmatprep.subr.bf16.mxu0 %v1130_v3  ;;  %1090 = vmatprep.subr.bf16.mxu1 %v1130_v3  ;;  %v1137_v10 = vld [vmem:[%s1230_s25 + $0x8] sm:$0xff]   ;;  %v1139_v12 = vld [vmem:[%s1230_s25 + $0x10] sm:$0xff]  }
  0x12   : > { %v1136_v5 = vld [vmem:[%s1230_s25 + $0x40] sm:$0xff]   ;;  %1055 = vmatprep.mubr.bf16.mxu0 %v1135_v4  ;;  %v1138_v11 = vld [vmem:[%s1230_s25 + $0x48] sm:$0xff]   ;;  %v1140_v13 = vld [vmem:[%s1230_s25 + $0x50] sm:$0xff]  }
  0x13   : > { %1071 = vmatprep.mubr.bf16.mxu1 %v1136_v5  ;;  %v1141_v14 = vld [vmem:[%s1230_s25 + $0x18] sm:$0xff]   ;;  %v1143_v16 = vld [vmem:[%s1230_s25 + $0x20] sm:$0xff]   ;;  %v1145_v18 = vld [vmem:[%s1230_s25 + $0x28] sm:$0xff]  }
  0x14   : > { %1046 = vmatpush3.bf16.msra.mxu0 %v1130_v3  ;;  %1098 = vmatpush3.bf16.msra.mxu1 %v1130_v3  ;;  %v1142_v15 = vld [vmem:[%s1230_s25 + $0x58] sm:$0xff]   ;;  %v1144_v17 = vld [vmem:[%s1230_s25 + $0x60] sm:$0xff]   ;;  %v1146_v19 = vld [vmem:[%s1230_s25 + $0x68] sm:$0xff]  }
  0x15   : > { %1047 = vmatprep.subr.bf16.mxu0 %v1131_v6  ;;  %1091 = vmatprep.subr.bf16.mxu1 %v1131_v6  ;;  %v1147_v20 = vld [vmem:[%s1230_s25 + $0x30] sm:$0xff]   ;;  %v1149_v22 = vld [vmem:[%s1230_s25 + $0x38] sm:$0xff]  }
  0x16   : > { %v1148_v21 = vld [vmem:[%s1230_s25 + $0x70] sm:$0xff]   ;;  %v1150_v23 = vld [vmem:[%s1230_s25 + $0x78] sm:$0xff]  }
  0x18   : > { %1048 = vmatpush3.bf16.msra.mxu0 %v1131_v6  ;;  %1099 = vmatpush3.bf16.msra.mxu1 %v1131_v6 }
  0x19   : > { %1049 = vmatprep.subr.bf16.mxu0 %v1132_v7  ;;  %1092 = vmatprep.subr.bf16.mxu1 %v1132_v7 }
  0x1c   : > { %1050 = vmatpush3.bf16.msra.mxu0 %v1132_v7  ;;  %1100 = vmatpush3.bf16.msra.mxu1 %v1132_v7 }
  0x1d   : > { %1051 = vmatprep.subr.bf16.mxu0 %v1133_v8  ;;  %1093 = vmatprep.subr.bf16.mxu1 %v1133_v8 }
  0x20   : > { %1052 = vmatpush3.bf16.msra.mxu0 %v1133_v8  ;;  %1101 = vmatpush3.bf16.msra.mxu1 %v1133_v8 }
  0x21   : > { %1053 = vmatprep.subr.bf16.mxu0 %v1134_v9  ;;  %1094 = vmatprep.subr.bf16.mxu1 %v1134_v9 }
  0x24   : > { %1054 = vmatpush3.bf16.msra.mxu0 %v1134_v9  ;;  %1102 = vmatpush3.bf16.msra.mxu1 %v1134_v9 }
  0x27   : > { %1056 = vmatmul.mubr.bf16.vlgmr.msra.gmra.mrb[0].mxu0 %v1137_v10  ;;  %1072 = vmatmul.mubr.bf16.vlgmr.msra.gmra.mrb[0].mxu1 %v1138_v11 }
  0x28   : > { %1059 = vmatprep.mubr.bf16.mxu0 %v1139_v12  ;;  %1075 = vmatprep.mubr.bf16.mxu1 %v1140_v13 }
  0x2f   : > { %1060 = vmatmul.mubr.bf16.gmra.mrb[4].mxu0 %v1141_v14  ;;  %1076 = vmatmul.mubr.bf16.gmra.mrb[4].mxu1 %v1142_v15 }
  0x30   : > { %1063 = vmatprep.mubr.bf16.mxu0 %v1143_v16  ;;  %1079 = vmatprep.mubr.bf16.mxu1 %v1144_v17 }
  0x37   : > { %1064 = vmatmul.mubr.bf16.gmra.mrb[8].mxu0 %v1145_v18  ;;  %1080 = vmatmul.mubr.bf16.gmra.mrb[8].mxu1 %v1146_v19 }
  0x38   : > { %1067 = vmatprep.mubr.bf16.mxu0 %v1147_v20  ;;  %1083 = vmatprep.mubr.bf16.mxu1 %v1148_v21 }
  0x3f   : > { %1068 = vmatmul.mubr.bf16.gmra.mrb[12].mxu0 %v1149_v22  ;;  %1084 = vmatmul.mubr.bf16.gmra.mrb[12].mxu1 %v1150_v23 }
  0xfa   : > { %v1057_v24 = vpop.f32.mrb[0].mxu0  ;;  %v1073_v26 = vpop.f32.mrb[0].mxu1 }
  0xfb   : > { %v444_v27 = vpop.f32.mrb[1].mxu0  ;;  %v508_v28 = vpop.f32.mrb[1].mxu1  ;;  %v453_v31 = vadd.f32 %v1057_v24, %v1266_v25  ;;  %v517_v32 = vadd.f32 %v1073_v26, %v1266_v25 }
  0xfc   : > { %v1058_v29 = vpop.f32.mrb[2].mxu0  ;;  %v1074_v30 = vpop.f32.mrb[2].mxu1  ;;  %v445_v37 = vadd.f32 %v1266_v25, %v444_v27  ;;  %v509_v38 = vadd.f32 %v1266_v25, %v508_v28 }
  0xfd   : > { %v456_v33 = vadd.f32 %v1058_v29, %v1266_v25  ;;  %v520_v34 = vadd.f32 %v1074_v30, %v1266_v25  ;;  %v447_v35 = vpop.f32.mrb[3].mxu0  ;;  %v511_v36 = vpop.f32.mrb[3].mxu1 }
  0xfe   : > { %v448_v39 = vadd.f32 %v1266_v25, %v447_v35  ;;  %v512_v40 = vadd.f32 %v1266_v25, %v511_v36 }
  0xff   : > { %v928_v41 = vpack.c.bf16 %v456_v33, %v453_v31  ;;  %v968_v42 = vpack.c.bf16 %v520_v34, %v517_v32 }
 0x100   : > { %v923_v43 = vpack.c.bf16 %v448_v39, %v445_v37  ;;  %v963_v44 = vpack.c.bf16 %v512_v40, %v509_v38 }
 0x101   : > { %1000 = vst [vmem:[%s1279_s17 + $0x8] sm:$0xff] %v928_v41   ;;  %1008 = vst [vmem:[%s1279_s17 + $0x48] sm:$0xff] %v968_v42  }
 0x102   : > { %924 = vst [vmem:[%s1279_s17] sm:$0xff] %v923_v43   ;;  %1007 = vst [vmem:[%s1279_s17 + $0x40] sm:$0xff] %v963_v44   ;;  %v1061_v45 = vpop.f32.mrb[4].mxu0  ;;  %v1077_v46 = vpop.f32.mrb[4].mxu1 }
 0x103   : > { %v460_v47 = vpop.f32.mrb[5].mxu0  ;;  %v524_v48 = vpop.f32.mrb[5].mxu1  ;;  %v469_v51 = vadd.f32 %v1061_v45, %v1266_v25  ;;  %v533_v52 = vadd.f32 %v1077_v46, %v1266_v25 }
 0x104   : > { %v1062_v49 = vpop.f32.mrb[6].mxu0  ;;  %v1078_v50 = vpop.f32.mrb[6].mxu1  ;;  %v461_v57 = vadd.f32 %v1266_v25, %v460_v47  ;;  %v525_v58 = vadd.f32 %v1266_v25, %v524_v48 }
 0x105   : > { %v472_v53 = vadd.f32 %v1062_v49, %v1266_v25  ;;  %v536_v54 = vadd.f32 %v1078_v50, %v1266_v25  ;;  %v463_v55 = vpop.f32.mrb[7].mxu0  ;;  %v527_v56 = vpop.f32.mrb[7].mxu1 }
 0x106   : > { %v464_v59 = vadd.f32 %v1266_v25, %v463_v55  ;;  %v528_v60 = vadd.f32 %v1266_v25, %v527_v56 }
 0x107   : > { %v938_v61 = vpack.c.bf16 %v472_v53, %v469_v51  ;;  %v978_v62 = vpack.c.bf16 %v536_v54, %v533_v52 }
 0x108   : > { %v933_v63 = vpack.c.bf16 %v464_v59, %v461_v57  ;;  %v973_v0 = vpack.c.bf16 %v528_v60, %v525_v58 }
 0x109   : > { %1002 = vst [vmem:[%s1279_s17 + $0x18] sm:$0xff] %v938_v61   ;;  %1010 = vst [vmem:[%s1279_s17 + $0x58] sm:$0xff] %v978_v62  }
 0x10a   : > { %1001 = vst [vmem:[%s1279_s17 + $0x10] sm:$0xff] %v933_v63   ;;  %1009 = vst [vmem:[%s1279_s17 + $0x50] sm:$0xff] %v973_v0   ;;  %v1065_v1 = vpop.f32.mrb[8].mxu0  ;;  %v1081_v2 = vpop.f32.mrb[8].mxu1 }
 0x10b   : > { %v476_v3 = vpop.f32.mrb[9].mxu0  ;;  %v540_v4 = vpop.f32.mrb[9].mxu1  ;;  %v485_v7 = vadd.f32 %v1065_v1, %v1266_v25  ;;  %v549_v8 = vadd.f32 %v1081_v2, %v1266_v25 }
 0x10c   : > { %v1066_v5 = vpop.f32.mrb[10].mxu0  ;;  %v1082_v6 = vpop.f32.mrb[10].mxu1  ;;  %v477_v13 = vadd.f32 %v1266_v25, %v476_v3  ;;  %v541_v14 = vadd.f32 %v1266_v25, %v540_v4 }
 0x10d   : > { %v488_v9 = vadd.f32 %v1066_v5, %v1266_v25  ;;  %v552_v10 = vadd.f32 %v1082_v6, %v1266_v25  ;;  %v479_v11 = vpop.f32.mrb[11].mxu0  ;;  %v543_v12 = vpop.f32.mrb[11].mxu1 }
 0x10e   : > { %v480_v15 = vadd.f32 %v1266_v25, %v479_v11  ;;  %v544_v16 = vadd.f32 %v1266_v25, %v543_v12 }
 0x10f   : > { %v948_v17 = vpack.c.bf16 %v488_v9, %v485_v7  ;;  %v988_v18 = vpack.c.bf16 %v552_v10, %v549_v8 }
 0x110   : > { %v943_v19 = vpack.c.bf16 %v480_v15, %v477_v13  ;;  %v983_v20 = vpack.c.bf16 %v544_v16, %v541_v14 }
 0x111   : > { %1004 = vst [vmem:[%s1279_s17 + $0x28] sm:$0xff] %v948_v17   ;;  %1012 = vst [vmem:[%s1279_s17 + $0x68] sm:$0xff] %v988_v18  }
 0x112   : > { %1003 = vst [vmem:[%s1279_s17 + $0x20] sm:$0xff] %v943_v19   ;;  %1011 = vst [vmem:[%s1279_s17 + $0x60] sm:$0xff] %v983_v20   ;;  %v1069_v21 = vpop.f32.mrb[12].mxu0  ;;  %v1085_v22 = vpop.f32.mrb[12].mxu1 }
 0x113   : > { %v492_v23 = vpop.f32.mrb[13].mxu0  ;;  %v556_v24 = vpop.f32.mrb[13].mxu1  ;;  %v501_v28 = vadd.f32 %v1069_v21, %v1266_v25  ;;  %v565_v29 = vadd.f32 %v1085_v22, %v1266_v25 }
 0x114   : > { %v1070_v26 = vpop.f32.mrb[14].mxu0  ;;  %v1086_v27 = vpop.f32.mrb[14].mxu1  ;;  %v493_v34 = vadd.f32 %v1266_v25, %v492_v23  ;;  %v557_v35 = vadd.f32 %v1266_v25, %v556_v24 }
 0x115   : > { %v504_v30 = vadd.f32 %v1070_v26, %v1266_v25  ;;  %v568_v31 = vadd.f32 %v1086_v27, %v1266_v25  ;;  %v495_v32 = vpop.f32.mrb[15].mxu0  ;;  %v559_v33 = vpop.f32.mrb[15].mxu1 }
 0x116   : > { %v496_v36 = vadd.f32 %v1266_v25, %v495_v32  ;;  %v560_v37 = vadd.f32 %v1266_v25, %v559_v33 }
 0x117   : > { %v958_v38 = vpack.c.bf16 %v504_v30, %v501_v28  ;;  %v998_v39 = vpack.c.bf16 %v568_v31, %v565_v29 }
 0x118   : > { %v953_v40 = vpack.c.bf16 %v496_v36, %v493_v34  ;;  %v993_v41 = vpack.c.bf16 %v560_v37, %v557_v35 }
 0x119   : > { %1006 = vst [vmem:[%s1279_s17 + $0x38] sm:$0xff] %v958_v38   ;;  %1014 = vst [vmem:[%s1279_s17 + $0x78] sm:$0xff] %v998_v39  }
 0x11a   : > { %1005 = vst [vmem:[%s1279_s17 + $0x30] sm:$0xff] %v953_v40   ;;  %1013 = vst [vmem:[%s1279_s17 + $0x70] sm:$0xff] %v993_v41  }
 0x11b PF: > { %s13_s14 = sadd.s32 1, %s1173_s14   ;;  %s1336_s12 = smov %s1169_s13 }
 0x11c   : > { %p10_p5 = scmp.ge.s32.totalorder %s13_s14, 4   ;;  %s1337_s13 = smov %s1339_s15 }
 0x11e   :  { %12 = sbr.rel (!%p10_p5) target bundleno = 2 (0x2), region = 62 }

// kernel: forward.16
= control target key start
LH: loop header
LB: loop body
LE: loop exit
PB: predicated region body
PF: predicated region fallthrough
CT: control target
= control target key end

     0   :  { %s1817_s12 = smov 0   ;;  %s1819_s13 = smov 0   ;;  %s2119_s0 = inlined_call_operand.vmem [shape: bf16[2,256,256], index: 0, kind: input, shape index: {}]   ;;  %s2120_s1 = inlined_call_operand.vmem [shape: bf16[256,128], index: 1, kind: input, shape index: {}]   ;;  %s2121_s2 = inlined_call_operand.vmem [shape: f32[1,128], index: 2, kind: input, shape index: {}]   ;;  %s2122_s3 = inlined_call_operand.vmem [shape: bf16[2,256,128], index: 3, kind: output, shape index: {}]  }
   0x1   :  { %s1821_s14 = smov 0  }
   0x2 LB: > { %s25_s15 = sadd.s32 1, %s1791_s13  ;;  %p1180_p0 = scmp.ge.s32.totalorder %s1795_s14, 1  ;;  %s1795_s14 = sphi %s1821_s14, %s13_s14   ;;  %s1791_s13 = sphi %s1819_s13, %s2124_s13   ;;  %s1787_s12 = sphi %s1817_s12, %s2123_s12  }
   0x3   : > { %p27_p1 = scmp.ge.s32.totalorder %s25_s15, 2  ;;  %p159_p2 = scmp.lt.s32.totalorder %s1795_s14, 3 }
   0x5   : > { %s2126_s15 = smov (%p27_p1, %s25_s15), 0  ;;  %p160_p3 = pnand %p1180_p0, %p159_p2 }
   0x6   : > { %v1581_v0 = vld [vmem:[%s2120_s1 + $0x40] sm:$0xff] (!%p160_p3)   ;;  %v1583_v2 = vld [vmem:[%s2120_s1 + $0x48] sm:$0xff] (!%p160_p3)   ;;  %p193_p4 = scmp.lt.s32.totalorder (!%p160_p3), %s1787_s12, 1  ;;  %v1585_v4 = vld [vmem:[%s2120_s1 + $0x50] sm:$0xff] (!%p160_p3)  }
   0x7   : > { %163 = sbr.rel (%p160_p3) target bundleno = 352 (0x160), region = 32  ;;  %v1582_v1 = vld [vmem:[%s2120_s1] sm:$0xff] (!%p160_p3)   ;;  %1429 = vmatprep.subr.bf16.mxu0 (!%p160_p3), %v1581_v0  ;;  %1541 = vmatprep.subr.bf16.mxu1 (!%p160_p3), %v1581_v0  ;;  %v1584_v3 = vld [vmem:[%s2120_s1 + $0x8] sm:$0xff] (!%p160_p3)   ;;  %v1586_v5 = vld [vmem:[%s2120_s1 + $0x10] sm:$0xff] (!%p160_p3)  }
   0x8   : > { %1430 = vmatpush3.bf16.msra.mxu0 (!%p160_p3), %v1582_v1  ;;  %1549 = vmatpush3.bf16.msra.mxu1 (!%p160_p3), %v1582_v1  ;;  %v1587_v6 = vld [vmem:[%s2120_s1 + $0x58] sm:$0xff] (!%p160_p3)   ;;  %v1589_v8 = vld [vmem:[%s2120_s1 + $0x60] sm:$0xff] (!%p160_p3)   ;;  %v1591_v10 = vld [vmem:[%s2120_s1 + $0x68] sm:$0xff] (!%p160_p3)  }
   0x9   : > { %1431 = vmatprep.subr.bf16.mxu0 (!%p160_p3), %v1583_v2  ;;  %1542 = vmatprep.subr.bf16.mxu1 (!%p160_p3), %v1583_v2  ;;  %v1588_v7 = vld [vmem:[%s2120_s1 + $0x18] sm:$0xff] (!%p160_p3)   ;;  %v1590_v9 = vld [vmem:[%s2120_s1 + $0x20] sm:$0xff] (!%p160_p3)   ;;  %v1592_v13 = vld [vmem:[%s2120_s1 + $0x28] sm:$0xff] (!%p160_p3)  }
   0xa   : > { %v1593_v14 = vld [vmem:[%s2120_s1 + $0x70] sm:$0xff] (!%p160_p3)   ;;  %v1595_v16 = vld [vmem:[%s2120_s1 + $0x78] sm:$0xff] (!%p160_p3)   ;;  %v1926_v50 = vld [vmem:[%s2121_s2] ss:$0 sm:$0xff] (!%p160_p3) }
   0xb   : > { %v1594_v15 = vld [vmem:[%s2120_s1 + $0x30] sm:$0xff] (!%p160_p3)   ;;  %v1596_v17 = vld [vmem:[%s2120_s1 + $0x38] sm:$0xff] (!%p160_p3)  }
   0xc   : > { %1432 = vmatpush3.bf16.msra.mxu0 (!%p160_p3), %v1584_v3  ;;  %1550 = vmatpush3.bf16.msra.mxu1 (!%p160_p3), %v1584_v3 }
   0xd   : > { %1433 = vmatprep.subr.bf16.mxu0 (!%p160_p3), %v1585_v4  ;;  %1543 = vmatprep.subr.bf16.mxu1 (!%p160_p3), %v1585_v4 }
   0xe   : > { %s2128_s12 = smov (!%p193_p4, %s1787_s12), 1 }
   0xf   : > { %s1300_s5 = sshll.u32 %s2128_s12, 8  ;;  %s1301_s4 = sshll.u32 %s2128_s12, 7 }
  0x10   : > { %1434 = vmatpush3.bf16.msra.mxu0 %v1586_v5  ;;  %1551 = vmatpush3.bf16.msra.mxu1 %v1586_v5  ;;  %s1868_s10 = scalar_lea.vmem %s2119_s0, %s1300_s5  ;;  %s1999_s6 = scalar_lea.vmem %s2122_s3, %s1301_s4 }
  0x11   : > { %1435 = vmatprep.subr.bf16.mxu0 %v1587_v6  ;;  %1544 = vmatprep.subr.bf16.mxu1 %v1587_v6  ;;  %v1599_v11 = vld [vmem:[%s1868_s10 + $0x4] ss:$8 sps:$4 sm:$0xff]   ;;  %v1597_v18 = vld [vmem:[%s1868_s10] ss:$8 sps:$4 sm:$0xff]   ;;  %v1603_v20 = vld [vmem:[%s1868_s10 + $0x14] ss:$8 sps:$4 sm:$0xff]  }
  0x12   : > { %v1602_v12 = vld [vmem:[%s1868_s10 + $0x84] ss:$8 sps:$4 sm:$0xff]   ;;  %573 = vmatprep.mubr.bf16.mxu0 %v1599_v11  ;;  %v1600_v19 = vld [vmem:[%s1868_s10 + $0x80] ss:$8 sps:$4 sm:$0xff]   ;;  %v1605_v21 = vld [vmem:[%s1868_s10 + $0x94] ss:$8 sps:$4 sm:$0xff]  }
  0x13   : > { %637 = vmatprep.mubr.bf16.mxu1 %v1602_v12  ;;  %v1607_v22 = vld [vmem:[%s1868_s10 + $0x10] ss:$8 sps:$4 sm:$0xff]   ;;  %v1609_v24 = vld [vmem:[%s1868_s10 + $0x24] ss:$8 sps:$4 sm:$0xff]   ;;  %v1613_v26 = vld [vmem:[%s1868_s10 + $0x20] ss:$8 sps:$4 sm:$0xff]  }
  0x14   : > { %1436 = vmatpush3.bf16.msra.mxu0 %v1588_v7  ;;  %1552 = vmatpush3.bf16.msra.mxu1 %v1588_v7  ;;  %v1608_v23 = vld [vmem:[%s1868_s10 + $0x90] ss:$8 sps:$4 sm:$0xff]   ;;  %v1611_v25 = vld [vmem:[%s1868_s10 + $0xa4] ss:$8 sps:$4 sm:$0xff]   ;;  %v1614_v27 = vld [vmem:[%s1868_s10 + $0xa0] ss:$8 sps:$4 sm:$0xff]  }
  0x15   : > { %1437 = vmatprep.subr.bf16.mxu0 %v1589_v8  ;;  %1545 = vmatprep.subr.bf16.mxu1 %v1589_v8  ;;  %v1615_v28 = vld [vmem:[%s1868_s10 + $0x34] ss:$8 sps:$4 sm:$0xff]   ;;  %v1619_v30 = vld [vmem:[%s1868_s10 + $0x30] ss:$8 sps:$4 sm:$0xff]   ;;  %v1621_v32 = vld [vmem:[%s1868_s10 + $0x44] ss:$8 sps:$4 sm:$0xff]  }
  0x16   : > { %v1617_v29 = vld [vmem:[%s1868_s10 + $0xb4] ss:$8 sps:$4 sm:$0xff]   ;;  %v1620_v31 = vld [vmem:[%s1868_s10 + $0xb0] ss:$8 sps:$4 sm:$0xff]   ;;  %v1623_v33 = vld [vmem:[%s1868_s10 + $0xc4] ss:$8 sps:$4 sm:$0xff]  }
  0x17   : > { %v1625_v34 = vld [vmem:[%s1868_s10 + $0x40] ss:$8 sps:$4 sm:$0xff]   ;;  %v1627_v36 = vld [vmem:[%s1868_s10 + $0x54] ss:$8 sps:$4 sm:$0xff]   ;;  %v1631_v38 = vld [vmem:[%s1868_s10 + $0x50] ss:$8 sps:$4 sm:$0xff]  }
  0x18   : > { %1438 = vmatpush3.bf16.msra.mxu0 %v1590_v9  ;;  %1553 = vmatpush3.bf16.msra.mxu1 %v1590_v9  ;;  %v1626_v35 = vld [vmem:[%s1868_s10 + $0xc0] ss:$8 sps:$4 sm:$0xff]   ;;  %v1629_v37 = vld [vmem:[%s1868_s10 + $0xd4] ss:$8 sps:$4 sm:$0xff]   ;;  %v1632_v39 = vld [vmem:[%s1868_s10 + $0xd0] ss:$8 sps:$4 sm:$0xff]  }
  0x19   : > { %1439 = vmatprep.subr.bf16.mxu0 %v1591_v10  ;;  %1546 = vmatprep.subr.bf16.mxu1 %v1591_v10  ;;  %v1633_v40 = vld [vmem:[%s1868_s10 + $0x64] ss:$8 sps:$4 sm:$0xff]   ;;  %v1637_v42 = vld [vmem:[%s1868_s10 + $0x60] ss:$8 sps:$4 sm:$0xff]   ;;  %v1639_v44 = vld [vmem:[%s1868_s10 + $0x74] ss:$8 sps:$4 sm:$0xff]  }
  0x1a   : > { %v1635_v41 = vld [vmem:[%s1868_s10 + $0xe4] ss:$8 sps:$4 sm:$0xff]   ;;  %v1638_v43 = vld [vmem:[%s1868_s10 + $0xe0] ss:$8 sps:$4 sm:$0xff]   ;;  %v1641_v45 = vld [vmem:[%s1868_s10 + $0xf4] ss:$8 sps:$4 sm:$0xff]  }
  0x1b   : > { %v1643_v46 = vld [vmem:[%s1868_s10 + $0x70] ss:$8 sps:$4 sm:$0xff]  }
  0x1c   : > { %1440 = vmatpush3.bf16.msra.mxu0 %v1592_v13  ;;  %1554 = vmatpush3.bf16.msra.mxu1 %v1592_v13  ;;  %v1644_v47 = vld [vmem:[%s1868_s10 + $0xf0] ss:$8 sps:$4 sm:$0xff]  }
  0x1d   : > { %1441 = vmatprep.subr.bf16.mxu0 %v1593_v14  ;;  %1547 = vmatprep.subr.bf16.mxu1 %v1593_v14 }
  0x20   : > { %1442 = vmatpush3.bf16.msra.mxu0 %v1594_v15  ;;  %1555 = vmatpush3.bf16.msra.mxu1 %v1594_v15 }
  0x21   : > { %1443 = vmatprep.subr.bf16.mxu0 %v1595_v16  ;;  %1548 = vmatprep.subr.bf16.mxu1 %v1595_v16 }
  0x24   : > { %1444 = vmatpush3.bf16.msra.mxu0 %v1596_v17  ;;  %1556 = vmatpush3.bf16.msra.mxu1 %v1596_v17 }
  0x27   : > { %574 = vmatmul.mubr.bf16.vlgmr.msra.gmra.mrb[0].mxu0 %v1597_v18  ;;  %638 = vmatmul.mubr.bf16.vlgmr.msra.gmra.mrb[0].mxu1 %v1600_v19 }
  0x28   : > { %581 = vmatprep.mubr.bf16.mxu0 %v1603_v20  ;;  %645 = vmatprep.mubr.bf16.mxu1 %v1605_v21 }
  0x2f   : > { %582 = vmatmul.mubr.bf16.gmra.mrb[4].mxu0 %v1607_v22  ;;  %646 = vmatmul.mubr.bf16.gmra.mrb[4].mxu1 %v1608_v23 }
  0x30   : > { %589 = vmatprep.mubr.bf16.mxu0 %v1609_v24  ;;  %653 = vmatprep.mubr.bf16.mxu1 %v1611_v25 }
  0x37   : > { %590 = vmatmul.mubr.bf16.gmra.mrb[8].mxu0 %v1613_v26  ;;  %654 = vmatmul.mubr.bf16.gmra.mrb[8].mxu1 %v1614_v27 }
  0x38   : > { %597 = vmatprep.mubr.bf16.mxu0 %v1615_v28  ;;  %661 = vmatprep.mubr.bf16.mxu1 %v1617_v29 }
  0x3f   : > { %598 = vmatmul.mubr.bf16.gmra.mrb[12].mxu0 %v1619_v30  ;;  %662 = vmatmul.mubr.bf16.gmra.mrb[12].mxu1 %v1620_v31 }
  0x40   : > { %605 = vmatprep.mubr.bf16.mxu0 %v1621_v32  ;;  %669 = vmatprep.mubr.bf16.mxu1 %v1623_v33 }
  0x47   : > { %606 = vmatmul.mubr.bf16.gmra.mrb[16].mxu0 %v1625_v34  ;;  %670 = vmatmul.mubr.bf16.gmra.mrb[16].mxu1 %v1626_v35 }
  0x48   : > { %613 = vmatprep.mubr.bf16.mxu0 %v1627_v36  ;;  %677 = vmatprep.mubr.bf16.mxu1 %v1629_v37 }
  0x4f   : > { %614 = vmatmul.mubr.bf16.gmra.mrb[20].mxu0 %v1631_v38  ;;  %678 = vmatmul.mubr.bf16.gmra.mrb[20].mxu1 %v1632_v39 }
  0x50   : > { %621 = vmatprep.mubr.bf16.mxu0 %v1633_v40  ;;  %685 = vmatprep.mubr.bf16.mxu1 %v1635_v41 }
  0x57   : > { %622 = vmatmul.mubr.bf16.gmra.mrb[24].mxu0 %v1637_v42  ;;  %686 = vmatmul.mubr.bf16.gmra.mrb[24].mxu1 %v1638_v43 }
  0x58   : > { %629 = vmatprep.mubr.bf16.mxu0 %v1639_v44  ;;  %693 = vmatprep.mubr.bf16.mxu1 %v1641_v45 }
  0x5f   : > { %630 = vmatmul.mubr.bf16.gmra.mrb[28].mxu0 %v1643_v46  ;;  %694 = vmatmul.mubr.bf16.gmra.mrb[28].mxu1 %v1644_v47 }
  0xfa   : > { %v1445_v48 = vpop.f32.mrb[0].mxu0  ;;  %v1493_v49 = vpop.f32.mrb[0].mxu1 }
  0xfb   : > { %v1446_v51 = vpop.f32.mrb[1].mxu0  ;;  %v1494_v52 = vpop.f32.mrb[1].mxu1 }
  0xfc   : > { %v1447_v53 = vadd.f32 %v1446_v51, %v1445_v48  ;;  %v1495_v54 = vadd.f32 %v1494_v52, %v1493_v49  ;;  %v1448_v55 = vpop.f32.mrb[2].mxu0  ;;  %v1496_v56 = vpop.f32.mrb[2].mxu1 }
  0xfd   : > { %v1449_v57 = vpop.f32.mrb[3].mxu0  ;;  %v1497_v58 = vpop.f32.mrb[3].mxu1 }
  0xfe   : > { %v1929_v59 = vadd.f32 %v1447_v53, %v1926_v50  ;;  %v1932_v60 = vadd.f32 %v1495_v54, %v1926_v50  ;;  %v1450_v61 = vadd.f32 %v1449_v57, %v1448_v55  ;;  %v1498_v62 = vadd.f32 %v1497_v58, %v1496_v56 }
 0x100   : > { %v1234_v63 = vmul.f32 -1.442695, %v1929_v59  ;;  %v1250_v0 = vmul.f32 -1.442695, %v1932_v60  ;;  %v1937_v1 = vadd.f32 %v1450_v61, %v1926_v50  ;;  %v1940_v2 = vadd.f32 %v1498_v62, %v1926_v50 }
 0x102   : > { %1645 = vpow2.f32 %v1234_v63  ;;  %v1235_v3 = vmul.f32 -1.442695, %v1937_v1  ;;  %v1251_v4 = vmul.f32 -1.442695, %v1940_v2  ;;  %v1451_v5 = vpop.f32.mrb[4].mxu0  ;;  %v1499_v6 = vpop.f32.mrb[4].mxu1 }
 0x103   : > { %1647 = vpow2.f32 %v1250_v0  ;;  %v1452_v7 = vpop.f32.mrb[5].mxu0  ;;  %v1500_v8 = vpop.f32.mrb[5].mxu1 }
 0x104   : > { %1649 = vpow2.f32 %v1235_v3  ;;  %v1453_v9 = vadd.f32 %v1452_v7, %v1451_v5  ;;  %v1501_v10 = vadd.f32 %v1500_v8, %v1499_v6  ;;  %v1454_v11 = vpop.f32.mrb[6].mxu0  ;;  %v1502_v12 = vpop.f32.mrb[6].mxu1 }
 0x105   : > { %1651 = vpow2.f32 %v1251_v4  ;;  %v1455_v13 = vpop.f32.mrb[7].mxu0  ;;  %v1503_v14 = vpop.f32.mrb[7].mxu1 }
 0x106   : > { %v1945_v15 = vadd.f32 %v1453_v9, %v1926_v50  ;;  %v1948_v16 = vadd.f32 %v1501_v10, %v1926_v50  ;;  %v1456_v17 = vadd.f32 %v1455_v13, %v1454_v11  ;;  %v1504_v18 = vadd.f32 %v1503_v14, %v1502_v12 }
 0x108   : > { %v1236_v19 = vmul.f32 -1.442695, %v1945_v15  ;;  %v1252_v20 = vmul.f32 -1.442695, %v1948_v16  ;;  %v1953_v21 = vadd.f32 %v1456_v17, %v1926_v50  ;;  %v1956_v22 = vadd.f32 %v1504_v18, %v1926_v50 }
 0x10a   : > { %1653 = vpow2.f32 %v1236_v19  ;;  %v1237_v23 = vmul.f32 -1.442695, %v1953_v21  ;;  %v1253_v24 = vmul.f32 -1.442695, %v1956_v22  ;;  %v1457_v25 = vpop.f32.mrb[8].mxu0  ;;  %v1505_v26 = vpop.f32.mrb[8].mxu1 }
 0x10b   : > { %1655 = vpow2.f32 %v1252_v20  ;;  %v1458_v27 = vpop.f32.mrb[9].mxu0  ;;  %v1506_v28 = vpop.f32.mrb[9].mxu1 }
 0x10c   : > { %v1646_v29 = vpop.eup %1645  ;;  %1657 = vpow2.f32 %v1237_v23  ;;  %v1459_v30 = vadd.f32 %v1458_v27, %v1457_v25  ;;  %v1507_v31 = vadd.f32 %v1506_v28, %v1505_v26  ;;  %v1460_v32 = vpop.f32.mrb[10].mxu0 }
 0x10d   : > { %v1508_v33 = vpop.f32.mrb[10].mxu1  ;;  %v1648_v34 = vpop.eup %1647  ;;  %v798_v35 = vadd.f32 1.0, %v1646_v29  ;;  %1659 = vpow2.f32 %v1253_v24 }
 0x10e   : > { %v1461_v36 = vpop.f32.mrb[11].mxu0  ;;  %v1509_v37 = vpop.f32.mrb[11].mxu1  ;;  %v814_v39 = vadd.f32 1.0, %v1648_v34  ;;  %v1961_v40 = vadd.f32 %v1459_v30, %v1926_v50  ;;  %v1964_v41 = vadd.f32 %v1507_v31, %v1926_v50 }
 0x10f   : > { %v1650_v38 = vpop.eup %1649  ;;  %v1462_v42 = vadd.f32 %v1461_v36, %v1460_v32  ;;  %1661 = vrcp.f32 %v798_v35  ;;  %v1510_v45 = vadd.f32 %v1509_v37, %v1508_v33 }
 0x110   : > { %v1652_v43 = vpop.eup %1651  ;;  %v799_v44 = vadd.f32 1.0, %v1650_v38  ;;  %1663 = vrcp.f32 %v814_v39  ;;  %v1238_v47 = vmul.f32 -1.442695, %v1961_v40  ;;  %v1254_v48 = vmul.f32 -1.442695, %v1964_v41 }
 0x111   : > { %v815_v46 = vadd.f32 1.0, %v1652_v43  ;;  %v1969_v49 = vadd.f32 %v1462_v42, %v1926_v50  ;;  %v1972_v51 = vadd.f32 %v1510_v45, %v1926_v50 }
 0x112   : > { %1665 = vrcp.f32 %v799_v44  ;;  %v1463_v52 = vpop.f32.mrb[12].mxu0  ;;  %v1511_v53 = vpop.f32.mrb[12].mxu1 }
 0x113   : > { %1667 = vrcp.f32 %v815_v46  ;;  %v1239_v54 = vmul.f32 -1.442695, %v1969_v49  ;;  %v1255_v55 = vmul.f32 -1.442695, %v1972_v51  ;;  %v1464_v56 = vpop.f32.mrb[13].mxu0  ;;  %v1512_v57 = vpop.f32.mrb[13].mxu1 }
 0x114   : > { %1669 = vpow2.f32 %v1238_v47  ;;  %v1654_v58 = vpop.eup %1653  ;;  %v1465_v61 = vadd.f32 %v1464_v56, %v1463_v52  ;;  %v1513_v62 = vadd.f32 %v1512_v57, %v1511_v53  ;;  %v1466_v63 = vpop.f32.mrb[14].mxu0 }
 0x115   : > { %1671 = vpow2.f32 %v1254_v48  ;;  %v1514_v0 = vpop.f32.mrb[14].mxu1  ;;  %v1656_v3 = vpop.eup %1655  ;;  %v800_v4 = vadd.f32 1.0, %v1654_v58 }
 0x116   : > { %1673 = vpow2.f32 %v1239_v54  ;;  %v1467_v5 = vpop.f32.mrb[15].mxu0  ;;  %v1515_v6 = vpop.f32.mrb[15].mxu1  ;;  %v816_v8 = vadd.f32 1.0, %v1656_v3  ;;  %v1977_v9 = vadd.f32 %v1465_v61, %v1926_v50  ;;  %v1980_v10 = vadd.f32 %v1513_v62, %v1926_v50 }
 0x117   : > { %v1658_v7 = vpop.eup %1657  ;;  %1675 = vpow2.f32 %v1255_v55  ;;  %v1468_v13 = vadd.f32 %v1467_v5, %v1466_v63  ;;  %v1516_v14 = vadd.f32 %v1515_v6, %v1514_v0 }
 0x118   : > { %v1660_v11 = vpop.eup %1659  ;;  %1677 = vrcp.f32 %v800_v4  ;;  %v801_v12 = vadd.f32 1.0, %v1658_v7  ;;  %v1240_v18 = vmul.f32 -1.442695, %v1977_v9  ;;  %v1256_v19 = vmul.f32 -1.442695, %v1980_v10 }
 0x119   : > { %1679 = vrcp.f32 %v816_v8  ;;  %v817_v17 = vadd.f32 1.0, %v1660_v11  ;;  %v1662_v20 = vpop.eup %1661  ;;  %v1985_v23 = vadd.f32 %v1468_v13, %v1926_v50  ;;  %v1988_v24 = vadd.f32 %v1516_v14, %v1926_v50 }
 0x11a   : > { %1681 = vrcp.f32 %v801_v12  ;;  %v1664_v25 = vpop.eup %1663  ;;  %v1469_v26 = vpop.f32.mrb[16].mxu0  ;;  %v894_v29 = vmul.f32 %v1662_v20, %v1929_v59 }
 0x11b   : > { %1683 = vrcp.f32 %v817_v17  ;;  %v1517_v27 = vpop.f32.mrb[16].mxu1  ;;  %v1241_v30 = vmul.f32 -1.442695, %v1985_v23  ;;  %v1257_v31 = vmul.f32 -1.442695, %v1988_v24  ;;  %v1470_v32 = vpop.f32.mrb[17].mxu0  ;;  %v910_v43 = vmul.f32 %v1664_v25, %v1932_v60 }
 0x11c   : > { %v1666_v28 = vpop.eup %1665  ;;  %1685 = vpow2.f32 %v1240_v18  ;;  %v1518_v33 = vpop.f32.mrb[17].mxu1  ;;  %v1471_v36 = vadd.f32 %v1470_v32, %v1469_v26 }
 0x11d   : > { %v1668_v34 = vpop.eup %1667  ;;  %v895_v35 = vmul.f32 %v1666_v28, %v1937_v1  ;;  %1687 = vpow2.f32 %v1256_v19  ;;  %v1519_v37 = vadd.f32 %v1518_v33, %v1517_v27  ;;  %v1472_v38 = vpop.f32.mrb[18].mxu0 }
 0x11e   : > { %v1520_v39 = vpop.f32.mrb[18].mxu1  ;;  %v1670_v42 = vpop.eup %1669  ;;  %v911_v59 = vmul.f32 %v1668_v34, %v1940_v2  ;;  %1689 = vpow2.f32 %v1241_v30  ;;  %v2003_v48 = vadd.f32 %v1471_v36, %v1926_v50 }
 0x11f   : > { %v1473_v44 = vpop.f32.mrb[19].mxu0  ;;  %v1521_v45 = vpop.f32.mrb[19].mxu1  ;;  %v1337_v46 = vpack.c.bf16 %v895_v35, %v894_v29  ;;  %v802_v47 = vadd.f32 1.0, %v1670_v42  ;;  %1691 = vpow2.f32 %v1257_v31  ;;  %v2006_v54 = vadd.f32 %v1519_v37, %v1926_v50 }
 0x120   : > { %v1672_v1 = vpop.eup %1671  ;;  %v1377_v52 = vpack.c.bf16 %v911_v59, %v910_v43  ;;  %v1474_v55 = vadd.f32 %v1473_v44, %v1472_v38  ;;  %v1242_v57 = vmul.f32 -1.442695, %v2003_v48  ;;  %v1522_v58 = vadd.f32 %v1521_v45, %v1520_v39 }
 0x121   : > { %v1674_v60 = vpop.eup %1673  ;;  %v818_v53 = vadd.f32 1.0, %v1672_v1  ;;  %1338 = vst [vmem:[%s1999_s6] sm:$0xff] %v1337_v46   ;;  %1693 = vrcp.f32 %v802_v47  ;;  %v1258_v63 = vmul.f32 -1.442695, %v2006_v54 }
 0x122   : > { %v1676_v56 = vpop.eup %1675  ;;  %v803_v2 = vadd.f32 1.0, %v1674_v60  ;;  %1421 = vst [vmem:[%s1999_s6 + $0x40] sm:$0xff] %v1377_v52   ;;  %v2013_v0 = vadd.f32 %v1474_v55, %v1926_v50  ;;  %v2016_v4 = vadd.f32 %v1522_v58, %v1926_v50  ;;  %v1475_v5 = vpop.f32.mrb[20].mxu0 }
 0x123   : > { %v1678_v61 = vpop.eup %1677  ;;  %1695 = vrcp.f32 %v818_v53  ;;  %v819_v62 = vadd.f32 1.0, %v1676_v56  ;;  %v1523_v6 = vpop.f32.mrb[20].mxu1 }
 0x124   : > { %v1680_v3 = vpop.eup %1679  ;;  %1697 = vrcp.f32 %v803_v2  ;;  %v896_v8 = vmul.f32 %v1678_v61, %v1945_v15  ;;  %v1243_v11 = vmul.f32 -1.442695, %v2013_v0  ;;  %v1476_v12 = vpop.f32.mrb[21].mxu0  ;;  %v1259_v18 = vmul.f32 -1.442695, %v2016_v4 }
 0x125   : > { %v1682_v7 = vpop.eup %1681  ;;  %1699 = vrcp.f32 %v819_v62  ;;  %v1524_v13 = vpop.f32.mrb[21].mxu1  ;;  %v1477_v19 = vadd.f32 %v1476_v12, %v1475_v5  ;;  %v912_v27 = vmul.f32 %v1680_v3, %v1948_v16 }
 0x126   : > { %v1684_v14 = vpop.eup %1683  ;;  %v897_v17 = vmul.f32 %v1682_v7, %v1953_v21  ;;  %1701 = vpow2.f32 %v1242_v57  ;;  %v1478_v20 = vpop.f32.mrb[22].mxu0  ;;  %v1525_v15 = vadd.f32 %v1524_v13, %v1523_v6 }
 0x127   : > { %v1526_v25 = vpop.f32.mrb[22].mxu1  ;;  %v1686_v26 = vpop.eup %1685  ;;  %v913_v28 = vmul.f32 %v1684_v14, %v1956_v22  ;;  %1703 = vpow2.f32 %v1258_v63  ;;  %v2025_v33 = vadd.f32 %v1477_v19, %v1926_v50 }
 0x128   : > { %v1479_v29 = vpop.f32.mrb[23].mxu0  ;;  %v1527_v30 = vpop.f32.mrb[23].mxu1  ;;  %v1342_v32 = vpack.c.bf16 %v897_v17, %v896_v8  ;;  %v804_v21 = vadd.f32 1.0, %v1686_v26  ;;  %1705 = vpow2.f32 %v1243_v11  ;;  %v2028_v16 = vadd.f32 %v1525_v15, %v1926_v50 }
 0x129   : > { %v1688_v31 = vpop.eup %1687  ;;  %v1382_v35 = vpack.c.bf16 %v913_v28, %v912_v27  ;;  %1707 = vpow2.f32 %v1259_v18  ;;  %v1244_v38 = vmul.f32 -1.442695, %v2025_v33  ;;  %v1480_v39 = vadd.f32 %v1479_v29, %v1478_v20 }
 0x12a   : > { %v1690_v34 = vpop.eup %1689  ;;  %v820_v36 = vadd.f32 1.0, %v1688_v31  ;;  %1414 = vst [vmem:[%s1999_s6 + $0x8] sm:$0xff] %v1342_v32   ;;  %1709 = vrcp.f32 %v804_v21  ;;  %v1260_v43 = vmul.f32 -1.442695, %v2028_v16  ;;  %v1528_v59 = vadd.f32 %v1527_v30, %v1526_v25  ;;  %v1481_v1 = vpop.f32.mrb[24].mxu0 }
 0x12b   : > { %v1692_v22 = vpop.eup %1691  ;;  %v805_v37 = vadd.f32 1.0, %v1690_v34  ;;  %1422 = vst [vmem:[%s1999_s6 + $0x48] sm:$0xff] %v1382_v35   ;;  %v2035_v45 = vadd.f32 %v1480_v39, %v1926_v50  ;;  %v1529_v46 = vpop.f32.mrb[24].mxu1 }
 0x12c   : > { %1711 = vrcp.f32 %v820_v36  ;;  %v821_v42 = vadd.f32 1.0, %v1692_v22  ;;  %v1694_v44 = vpop.eup %1693  ;;  %v2039_v52 = vadd.f32 %v1528_v59, %v1926_v50  ;;  %v1482_v53 = vpop.f32.mrb[25].mxu0 }
 0x12d   : > { %1713 = vrcp.f32 %v805_v37  ;;  %v1696_v47 = vpop.eup %1695  ;;  %v898_v60 = vmul.f32 %v1694_v44, %v1961_v40  ;;  %v1530_v55 = vpop.f32.mrb[25].mxu1  ;;  %v1245_v57 = vmul.f32 -1.442695, %v2035_v45  ;;  %v1483_v58 = vadd.f32 %v1482_v53, %v1481_v1 }
 0x12e   : > { %1715 = vrcp.f32 %v821_v42  ;;  %v1698_v56 = vpop.eup %1697  ;;  %v914_v2 = vmul.f32 %v1696_v47, %v1964_v41  ;;  %v1484_v61 = vpop.f32.mrb[26].mxu0  ;;  %v1261_v40 = vmul.f32 -1.442695, %v2039_v52  ;;  %v1531_v5 = vadd.f32 %v1530_v55, %v1529_v46 }
 0x12f   : > { %1717 = vpow2.f32 %v1244_v38  ;;  %v1532_v62 = vpop.f32.mrb[26].mxu1  ;;  %v1700_v63 = vpop.eup %1699  ;;  %v899_v3 = vmul.f32 %v1698_v56, %v1969_v49  ;;  %v2047_v41 = vadd.f32 %v1483_v58, %v1926_v50 }
 0x130   : > { %1719 = vpow2.f32 %v1260_v43  ;;  %v1485_v6 = vpop.f32.mrb[27].mxu0  ;;  %v1533_v7 = vpop.f32.mrb[27].mxu1  ;;  %v915_v11 = vmul.f32 %v1700_v63, %v1972_v51  ;;  %v2050_v49 = vadd.f32 %v1531_v5, %v1926_v50 }
 0x131   : > { %v1702_v8 = vpop.eup %1701  ;;  %1721 = vpow2.f32 %v1245_v57  ;;  %v1486_v12 = vadd.f32 %v1485_v6, %v1484_v61  ;;  %v1347_v14 = vpack.c.bf16 %v899_v3, %v898_v60  ;;  %v1246_v27 = vmul.f32 -1.442695, %v2047_v41 }
 0x132   : > { %v1704_v13 = vpop.eup %1703  ;;  %v806_v17 = vadd.f32 1.0, %v1702_v8  ;;  %1723 = vpow2.f32 %v1261_v40  ;;  %v1387_v19 = vpack.c.bf16 %v915_v11, %v914_v2  ;;  %v1534_v28 = vadd.f32 %v1533_v7, %v1532_v62  ;;  %v1487_v31 = vpop.f32.mrb[28].mxu0 }
 0x133   : > { %v1706_v18 = vpop.eup %1705  ;;  %v822_v20 = vadd.f32 1.0, %v1704_v13  ;;  %v2053_v25 = vadd.f32 %v1486_v12, %v1926_v50  ;;  %1415 = vst [vmem:[%s1999_s6 + $0x10] sm:$0xff] %v1347_v14   ;;  %v1262_v30 = vmul.f32 -1.442695, %v2050_v49  ;;  %v1535_v32 = vpop.f32.mrb[28].mxu1 }
 0x134   : > { %v1708_v51 = vpop.eup %1707  ;;  %1725 = vrcp.f32 %v806_v17  ;;  %v807_v26 = vadd.f32 1.0, %v1706_v18  ;;  %1423 = vst [vmem:[%s1999_s6 + $0x50] sm:$0xff] %v1387_v19   ;;  %v2061_v35 = vadd.f32 %v1534_v28, %v1926_v50  ;;  %v1488_v36 = vpop.f32.mrb[29].mxu0 }
 0x135   : > { %v1710_v15 = vpop.eup %1709  ;;  %1727 = vrcp.f32 %v822_v20  ;;  %v823_v29 = vadd.f32 1.0, %v1708_v51  ;;  %v1247_v34 = vmul.f32 -1.442695, %v2053_v25  ;;  %v1536_v22 = vpop.f32.mrb[29].mxu1  ;;  %v1489_v39 = vadd.f32 %v1488_v36, %v1487_v31 }
 0x136   : > { %v1712_v21 = vpop.eup %1711  ;;  %1729 = vrcp.f32 %v807_v26  ;;  %v900_v38 = vmul.f32 %v1710_v15, %v1977_v9  ;;  %v1537_v42 = vadd.f32 %v1536_v22, %v1535_v32  ;;  %v1490_v43 = vpop.f32.mrb[30].mxu0  ;;  %v1263_v47 = vmul.f32 -1.442695, %v2061_v35 }
 0x137   : > { %v1714_v37 = vpop.eup %1713  ;;  %1731 = vrcp.f32 %v823_v29  ;;  %v1538_v59 = vpop.f32.mrb[30].mxu1  ;;  %v916_v1 = vmul.f32 %v1712_v21, %v1980_v10  ;;  %v2069_v9 = vadd.f32 %v1489_v39, %v1926_v50 }
 0x138   : > { %v1716_v44 = vpop.eup %1715  ;;  %v901_v46 = vmul.f32 %v1714_v37, %v1985_v23  ;;  %1733 = vpow2.f32 %v1246_v27  ;;  %v1491_v60 = vpop.f32.mrb[31].mxu0  ;;  %v2072_v2 = vadd.f32 %v1537_v42, %v1926_v50 }
 0x139   : > { %v1539_v53 = vpop.f32.mrb[31].mxu1  ;;  %v1718_v55 = vpop.eup %1717  ;;  %v917_v56 = vmul.f32 %v1716_v44, %v1988_v24  ;;  %1735 = vpow2.f32 %v1262_v30  ;;  %v1492_v58 = vadd.f32 %v1491_v60, %v1490_v43  ;;  %v1248_v40 = vmul.f32 -1.442695, %v2069_v9 }
 0x13a   : > { %v1720_v10 = vpop.eup %1719  ;;  %v1352_v57 = vpack.c.bf16 %v901_v46, %v900_v38  ;;  %v808_v23 = vadd.f32 1.0, %v1718_v55  ;;  %1737 = vpow2.f32 %v1247_v34  ;;  %v1264_v7 = vmul.f32 -1.442695, %v2072_v2 }
 0x13b   : > { %v1722_v61 = vpop.eup %1721  ;;  %v1392_v62 = vpack.c.bf16 %v917_v56, %v916_v1  ;;  %v824_v63 = vadd.f32 1.0, %v1720_v10  ;;  %1739 = vpow2.f32 %v1263_v47  ;;  %v2077_v5 = vadd.f32 %v1492_v58, %v1926_v50 }
 0x13c   : > { %v1724_v3 = vpop.eup %1723  ;;  %1416 = vst [vmem:[%s1999_s6 + $0x18] sm:$0xff] %v1352_v57   ;;  %1741 = vrcp.f32 %v808_v23  ;;  %v809_v24 = vadd.f32 1.0, %v1722_v61  ;;  %v1540_v8 = vadd.f32 %v1539_v53, %v1538_v59 }
 0x13d   : > { %1424 = vst [vmem:[%s1999_s6 + $0x58] sm:$0xff] %v1392_v62   ;;  %1743 = vrcp.f32 %v824_v63  ;;  %v825_v6 = vadd.f32 1.0, %v1724_v3  ;;  %v1249_v12 = vmul.f32 -1.442695, %v2077_v5 }
 0x13e   : > { %v1726_v11 = vpop.eup %1725  ;;  %1745 = vrcp.f32 %v809_v24  ;;  %v2083_v14 = vadd.f32 %v1540_v8, %v1926_v50 }
 0x13f   : > { %v1728_v13 = vpop.eup %1727  ;;  %1747 = vrcp.f32 %v825_v6  ;;  %v902_v19 = vmul.f32 %v1726_v11, %v2003_v48 }
 0x140   : > { %v1730_v17 = vpop.eup %1729  ;;  %1749 = vpow2.f32 %v1248_v40  ;;  %v1265_v51 = vmul.f32 -1.442695, %v2083_v14  ;;  %v918_v27 = vmul.f32 %v1728_v13, %v2006_v54 }
 0x141   : > { %v1732_v18 = vpop.eup %1731  ;;  %v903_v20 = vmul.f32 %v1730_v17, %v2013_v0  ;;  %1751 = vpow2.f32 %v1264_v7 }
 0x142   : > { %v1734_v26 = vpop.eup %1733  ;;  %v919_v28 = vmul.f32 %v1732_v18, %v2016_v4  ;;  %1753 = vpow2.f32 %v1249_v12 }
 0x143   : > { %v1736_v50 = vpop.eup %1735  ;;  %v1357_v15 = vpack.c.bf16 %v903_v20, %v902_v19  ;;  %v810_v29 = vadd.f32 1.0, %v1734_v26  ;;  %1755 = vpow2.f32 %v1265_v51 }
 0x144   : > { %v1738_v30 = vpop.eup %1737  ;;  %v1397_v31 = vpack.c.bf16 %v919_v28, %v918_v27  ;;  %v826_v48 = vadd.f32 1.0, %v1736_v50 }
 0x145   : > { %v1740_v32 = vpop.eup %1739  ;;  %1417 = vst [vmem:[%s1999_s6 + $0x20] sm:$0xff] %v1357_v15   ;;  %1757 = vrcp.f32 %v810_v29  ;;  %v811_v0 = vadd.f32 1.0, %v1738_v30 }
 0x146   : > { %v1742_v21 = vpop.eup %1741  ;;  %1425 = vst [vmem:[%s1999_s6 + $0x60] sm:$0xff] %v1397_v31   ;;  %1759 = vrcp.f32 %v826_v48  ;;  %v827_v34 = vadd.f32 1.0, %v1740_v32 }
 0x147   : > { %v1744_v36 = vpop.eup %1743  ;;  %1761 = vrcp.f32 %v811_v0  ;;  %v904_v22 = vmul.f32 %v1742_v21, %v2025_v33 }
 0x148   : > { %v1746_v54 = vpop.eup %1745  ;;  %1763 = vrcp.f32 %v827_v34  ;;  %v920_v39 = vmul.f32 %v1744_v36, %v2028_v16 }
 0x149   : > { %v1748_v4 = vpop.eup %1747  ;;  %v905_v37 = vmul.f32 %v1746_v54, %v2035_v45 }
 0x14a   : > { %v1750_v38 = vpop.eup %1749  ;;  %v921_v42 = vmul.f32 %v1748_v4, %v2039_v52 }
 0x14b   : > { %v1752_v43 = vpop.eup %1751  ;;  %v1362_v59 = vpack.c.bf16 %v905_v37, %v904_v22  ;;  %v812_v44 = vadd.f32 1.0, %v1750_v38 }
 0x14c   : > { %v1754_v1 = vpop.eup %1753  ;;  %v1402_v46 = vpack.c.bf16 %v921_v42, %v920_v39  ;;  %v828_v47 = vadd.f32 1.0, %v1752_v43 }
 0x14d   : > { %v1756_v60 = vpop.eup %1755  ;;  %1418 = vst [vmem:[%s1999_s6 + $0x28] sm:$0xff] %v1362_v59   ;;  %1765 = vrcp.f32 %v812_v44  ;;  %v813_v53 = vadd.f32 1.0, %v1754_v1 }
 0x14e   : > { %1426 = vst [vmem:[%s1999_s6 + $0x68] sm:$0xff] %v1402_v46   ;;  %1767 = vrcp.f32 %v828_v47  ;;  %v829_v33 = vadd.f32 1.0, %v1756_v60 }
 0x14f   : > { %v1758_v45 = vpop.eup %1757  ;;  %1769 = vrcp.f32 %v813_v53 }
 0x150   : > { %v1760_v16 = vpop.eup %1759  ;;  %1771 = vrcp.f32 %v829_v33  ;;  %v906_v56 = vmul.f32 %v1758_v45, %v2047_v41 }
 0x151   : > { %v1762_v52 = vpop.eup %1761  ;;  %v922_v57 = vmul.f32 %v1760_v16, %v2050_v49 }
 0x152   : > { %v1764_v55 = vpop.eup %1763  ;;  %v907_v10 = vmul.f32 %v1762_v52, %v2053_v25 }
 0x153   : > { %v923_v23 = vmul.f32 %v1764_v55, %v2061_v35 }
 0x154   : > { %v1367_v58 = vpack.c.bf16 %v907_v10, %v906_v56 }
 0x155   : > { %v1407_v61 = vpack.c.bf16 %v923_v23, %v922_v57 }
 0x156   : > { %1419 = vst [vmem:[%s1999_s6 + $0x30] sm:$0xff] %v1367_v58  }
 0x157   : > { %v1766_v62 = vpop.eup %1765  ;;  %1427 = vst [vmem:[%s1999_s6 + $0x70] sm:$0xff] %v1407_v61  }
 0x158   : > { %v1768_v63 = vpop.eup %1767  ;;  %v908_v40 = vmul.f32 %v1766_v62, %v2069_v9 }
 0x159   : > { %v1770_v3 = vpop.eup %1769  ;;  %v924_v25 = vmul.f32 %v1768_v63, %v2072_v2 }
 0x15a   : > { %v1772_v24 = vpop.eup %1771  ;;  %v909_v41 = vmul.f32 %v1770_v3, %v2077_v5 }
 0x15b   : > { %v925_v49 = vmul.f32 %v1772_v24, %v2083_v14 }
 0x15c   : > { %v1372_v6 = vpack.c.bf16 %v909_v41, %v908_v40 }
 0x15d   : > { %v1412_v7 = vpack.c.bf16 %v925_v49, %v924_v25 }
 0x15e   : > { %1420 = vst [vmem:[%s1999_s6 + $0x38] sm:$0xff] %v1372_v6  }
 0x15f   : > { %1428 = vst [vmem:[%s1999_s6 + $0x78] sm:$0xff] %v1412_v7  }
 0x160 PF: > { %s13_s14 = sadd.s32 1, %s1795_s14   ;;  %s2123_s12 = smov %s1791_s13 }
 0x161   : > { %p10_p5 = scmp.ge.s32.totalorder %s13_s14, 4   ;;  %s2124_s13 = smov %s2126_s15 }
 0x163   :  { %12 = sbr.rel (!%p10_p5) target bundleno = 2 (0x2), region = 62 }

// kernel: forward.17
= control target key start
LH: loop header
LB: loop body
LE: loop exit
PB: predicated region body
PF: predicated region fallthrough
CT: control target
= control target key end

     0   :  { %s3533_s15 = smov 0   ;;  %s3535_s16 = smov 0   ;;  %s4239_s0 = inlined_call_operand.vmem [shape: bf16[2,256,256], index: 0, kind: input, shape index: {}]   ;;  %s4240_s1 = inlined_call_operand.vmem [shape: bf16[256,128], index: 1, kind: input, shape index: {}]   ;;  %s4241_s2 = inlined_call_operand.vmem [shape: f32[1,128], index: 2, kind: input, shape index: {}]   ;;  %s4242_s3 = inlined_call_operand.vmem [shape: bf16[2,256,128], index: 3, kind: input, shape index: {}]   ;;  %s4243_s4 = inlined_call_operand.vmem [shape: f32[1,128], index: 4, kind: input, shape index: {}]   ;;  %s4244_s5 = inlined_call_operand.<no memory space> [shape: f32[1,1], index: 5, kind: input, shape index: {}]   ;;  %s4245_s6 = inlined_call_operand.vmem [shape: f32[1,128], index: 6, kind: input, shape index: {}]   ;;  %s4246_s7 = inlined_call_operand.vmem [shape: f32[1,128], index: 7, kind: input, shape index: {}]   ;;  %s4247_s8 = inlined_call_operand.vmem [shape: bf16[128,128], index: 8, kind: input, shape index: {}]   ;;  %s4248_s9 = inlined_call_operand.vmem [shape: f32[1,128], index: 9, kind: input, shape index: {}]   ;;  %s4249_s10 = inlined_call_operand.vmem [shape: bf16[2,256,128], index: 10, kind: output, shape index: {}]  }
   0x1   :  { %v15_v0 = vstv %s4244_s5  ;;  %s3537_s17 = smov 0  }
   0x2   :  { %16 = vst [vmem:[#allocation2] sm:$0x1] %v15_v0 }
   0x3 LB: > { %s34_s5 = sadd.s32 1, %s3467_s16  ;;  %p2437_p0 = scmp.ge.s32.totalorder %s3471_s17, 1  ;;  %s3471_s17 = sphi %s3537_s17, %s22_s17   ;;  %s3467_s16 = sphi %s3535_s16, %s4251_s16   ;;  %s3463_s15 = sphi %s3533_s15, %s4250_s15  }
   0x4   : > { %p36_p1 = scmp.ge.s32.totalorder %s34_s5, 2  ;;  %p353_p2 = scmp.lt.s32.totalorder %s3471_s17, 3 }
   0x6   : > { %s4253_s5 = smov (%p36_p1, %s34_s5), 0  ;;  %p354_p3 = pnand %p2437_p0, %p353_p2 }
   0x7   : > { %v3121_v1 = vld [vmem:[%s4240_s1 + $0x40] sm:$0xff] (!%p354_p3)   ;;  %v3123_v3 = vld [vmem:[%s4240_s1 + $0x48] sm:$0xff] (!%p354_p3)   ;;  %p410_p4 = scmp.lt.s32.totalorder (!%p354_p3), %s3463_s15, 1  ;;  %v3125_v5 = vld [vmem:[%s4240_s1 + $0x50] sm:$0xff] (!%p354_p3)  }
   0x8   : > { %357 = sbr.rel (%p354_p3) target bundleno = 936 (0x3a8), region = 60  ;;  %v3122_v2 = vld [vmem:[%s4240_s1] sm:$0xff] (!%p354_p3)   ;;  %2813 = vmatprep.subr.bf16.mxu0 (!%p354_p3), %v3121_v1  ;;  %2997 = vmatprep.subr.bf16.mxu1 (!%p354_p3), %v3121_v1  ;;  %v3124_v4 = vld [vmem:[%s4240_s1 + $0x8] sm:$0xff] (!%p354_p3)   ;;  %v3126_v6 = vld [vmem:[%s4240_s1 + $0x10] sm:$0xff] (!%p354_p3)  }
   0x9   : > { %2814 = vmatpush3.bf16.msra.mxu0 (!%p354_p3), %v3122_v2  ;;  %3005 = vmatpush3.bf16.msra.mxu1 (!%p354_p3), %v3122_v2  ;;  %v3127_v7 = vld [vmem:[%s4240_s1 + $0x58] sm:$0xff] (!%p354_p3)   ;;  %v3129_v9 = vld [vmem:[%s4240_s1 + $0x60] sm:$0xff] (!%p354_p3)   ;;  %v3131_v11 = vld [vmem:[%s4240_s1 + $0x68] sm:$0xff] (!%p354_p3)  }
   0xa   : > { %2815 = vmatprep.subr.bf16.mxu0 (!%p354_p3), %v3123_v3  ;;  %2998 = vmatprep.subr.bf16.mxu1 (!%p354_p3), %v3123_v3  ;;  %v3128_v8 = vld [vmem:[%s4240_s1 + $0x18] sm:$0xff] (!%p354_p3)   ;;  %v3130_v10 = vld [vmem:[%s4240_s1 + $0x20] sm:$0xff] (!%p354_p3)   ;;  %v3132_v14 = vld [vmem:[%s4240_s1 + $0x28] sm:$0xff] (!%p354_p3)  }
   0xb   : > { %v3133_v15 = vld [vmem:[%s4240_s1 + $0x70] sm:$0xff] (!%p354_p3)   ;;  %v3135_v17 = vld [vmem:[%s4240_s1 + $0x78] sm:$0xff] (!%p354_p3)   ;;  %v3642_v51 = vld [vmem:[%s4241_s2] ss:$0 sm:$0xff] (!%p354_p3) }
   0xc   : > { %v3134_v16 = vld [vmem:[%s4240_s1 + $0x30] sm:$0xff] (!%p354_p3)   ;;  %v3136_v18 = vld [vmem:[%s4240_s1 + $0x38] sm:$0xff] (!%p354_p3)  }
   0xd   : > { %2816 = vmatpush3.bf16.msra.mxu0 (!%p354_p3), %v3124_v4  ;;  %3006 = vmatpush3.bf16.msra.mxu1 (!%p354_p3), %v3124_v4 }
   0xe   : > { %2817 = vmatprep.subr.bf16.mxu0 (!%p354_p3), %v3125_v5  ;;  %2999 = vmatprep.subr.bf16.mxu1 (!%p354_p3), %v3125_v5 }
   0xf   : > { %s4255_s15 = smov (!%p410_p4, %s3463_s15), 1 }
  0x10   : > { %s2604_s14 = sshll.u32 %s4255_s15, 8 }
  0x11   : > { %2818 = vmatpush3.bf16.msra.mxu0 %v3126_v6  ;;  %3007 = vmatpush3.bf16.msra.mxu1 %v3126_v6  ;;  %s3584_s22 = scalar_lea.vmem %s4239_s0, %s2604_s14 }
  0x12   : > { %2819 = vmatprep.subr.bf16.mxu0 %v3127_v7  ;;  %3000 = vmatprep.subr.bf16.mxu1 %v3127_v7  ;;  %v3139_v12 = vld [vmem:[%s3584_s22 + $0x4] ss:$8 sps:$4 sm:$0xff]   ;;  %v3137_v19 = vld [vmem:[%s3584_s22] ss:$8 sps:$4 sm:$0xff]   ;;  %v3143_v21 = vld [vmem:[%s3584_s22 + $0x14] ss:$8 sps:$4 sm:$0xff]  }
  0x13   : > { %v3142_v13 = vld [vmem:[%s3584_s22 + $0xc4] ss:$8 sps:$4 sm:$0xff]   ;;  %800 = vmatprep.mubr.bf16.mxu0 %v3139_v12  ;;  %v3140_v20 = vld [vmem:[%s3584_s22 + $0xc0] ss:$8 sps:$4 sm:$0xff]   ;;  %v3146_v22 = vld [vmem:[%s3584_s22 + $0xd4] ss:$8 sps:$4 sm:$0xff]  }
  0x14   : > { %896 = vmatprep.mubr.bf16.mxu1 %v3142_v13  ;;  %v3145_v23 = vld [vmem:[%s3584_s22 + $0x10] ss:$8 sps:$4 sm:$0xff]   ;;  %v3149_v25 = vld [vmem:[%s3584_s22 + $0x24] ss:$8 sps:$4 sm:$0xff]   ;;  %v3151_v27 = vld [vmem:[%s3584_s22 + $0x20] ss:$8 sps:$4 sm:$0xff]  }
  0x15   : > { %2820 = vmatpush3.bf16.msra.mxu0 %v3128_v8  ;;  %3008 = vmatpush3.bf16.msra.mxu1 %v3128_v8  ;;  %v3148_v24 = vld [vmem:[%s3584_s22 + $0xd0] ss:$8 sps:$4 sm:$0xff]   ;;  %v3152_v26 = vld [vmem:[%s3584_s22 + $0xe4] ss:$8 sps:$4 sm:$0xff]   ;;  %v3154_v28 = vld [vmem:[%s3584_s22 + $0xe0] ss:$8 sps:$4 sm:$0xff]  }
  0x16   : > { %2821 = vmatprep.subr.bf16.mxu0 %v3129_v9  ;;  %3001 = vmatprep.subr.bf16.mxu1 %v3129_v9  ;;  %v3155_v29 = vld [vmem:[%s3584_s22 + $0x34] ss:$8 sps:$4 sm:$0xff]   ;;  %v3157_v31 = vld [vmem:[%s3584_s22 + $0x30] ss:$8 sps:$4 sm:$0xff]   ;;  %v3158_v33 = vld [vmem:[%s3584_s22 + $0x44] ss:$8 sps:$4 sm:$0xff]  }
  0x17   : > { %v3167_v30 = vld [vmem:[%s3584_s22 + $0xf4] ss:$8 sps:$4 sm:$0xff]   ;;  %v3171_v32 = vld [vmem:[%s3584_s22 + $0xf0] ss:$8 sps:$4 sm:$0xff]   ;;  %v3160_v34 = vld [vmem:[%s3584_s22 + $0x40] ss:$8 sps:$4 sm:$0xff]  }
  0x18   : > { %v3161_v35 = vld [vmem:[%s3584_s22 + $0x54] ss:$8 sps:$4 sm:$0xff]   ;;  %v3163_v36 = vld [vmem:[%s3584_s22 + $0x50] ss:$8 sps:$4 sm:$0xff]   ;;  %v3164_v37 = vld [vmem:[%s3584_s22 + $0x64] ss:$8 sps:$4 sm:$0xff]  }
  0x19   : > { %2822 = vmatpush3.bf16.msra.mxu0 %v3130_v10  ;;  %3009 = vmatpush3.bf16.msra.mxu1 %v3130_v10  ;;  %v3166_v38 = vld [vmem:[%s3584_s22 + $0x60] ss:$8 sps:$4 sm:$0xff]   ;;  %v3169_v39 = vld [vmem:[%s3584_s22 + $0x74] ss:$8 sps:$4 sm:$0xff]   ;;  %v3172_v40 = vld [vmem:[%s3584_s22 + $0x70] ss:$8 sps:$4 sm:$0xff]  }
  0x1a   : > { %2823 = vmatprep.subr.bf16.mxu0 %v3131_v11  ;;  %3002 = vmatprep.subr.bf16.mxu1 %v3131_v11  ;;  %v3173_v41 = vld [vmem:[%s3584_s22 + $0x84] ss:$8 sps:$4 sm:$0xff]   ;;  %v3175_v42 = vld [vmem:[%s3584_s22 + $0x80] ss:$8 sps:$4 sm:$0xff]   ;;  %v3176_v43 = vld [vmem:[%s3584_s22 + $0x94] ss:$8 sps:$4 sm:$0xff]  }
  0x1b   : > { %v3178_v44 = vld [vmem:[%s3584_s22 + $0x90] ss:$8 sps:$4 sm:$0xff]   ;;  %v3179_v45 = vld [vmem:[%s3584_s22 + $0xa4] ss:$8 sps:$4 sm:$0xff]   ;;  %v3181_v46 = vld [vmem:[%s3584_s22 + $0xa0] ss:$8 sps:$4 sm:$0xff]  }
  0x1c   : > { %v3182_v47 = vld [vmem:[%s3584_s22 + $0xb4] ss:$8 sps:$4 sm:$0xff]   ;;  %v3184_v48 = vld [vmem:[%s3584_s22 + $0xb0] ss:$8 sps:$4 sm:$0xff]   ;;  %s2605_s22 = sshll.u32 %s4255_s15, 7 }
  0x1d   : > { %2824 = vmatpush3.bf16.msra.mxu0 %v3132_v14  ;;  %3010 = vmatpush3.bf16.msra.mxu1 %v3132_v14  ;;  %s3696_s25 = scalar_lea.vmem %s4242_s3, %s2605_s22  ;;  %s4098_s19 = scalar_lea.vmem %s4249_s10, %s2605_s22 }
  0x1e   : > { %2825 = vmatprep.subr.bf16.mxu0 %v3133_v15  ;;  %3003 = vmatprep.subr.bf16.mxu1 %v3133_v15 }
  0x21   : > { %2826 = vmatpush3.bf16.msra.mxu0 %v3134_v16  ;;  %3011 = vmatpush3.bf16.msra.mxu1 %v3134_v16 }
  0x22   : > { %2827 = vmatprep.subr.bf16.mxu0 %v3135_v17  ;;  %3004 = vmatprep.subr.bf16.mxu1 %v3135_v17 }
  0x25   : > { %2828 = vmatpush3.bf16.msra.mxu0 %v3136_v18  ;;  %3012 = vmatpush3.bf16.msra.mxu1 %v3136_v18 }
  0x28   : > { %801 = vmatmul.mubr.bf16.vlgmr.msra.gmra.mrb[0].mxu0 %v3137_v19  ;;  %897 = vmatmul.mubr.bf16.vlgmr.msra.gmra.mrb[0].mxu1 %v3140_v20 }
  0x29   : > { %808 = vmatprep.mubr.bf16.mxu0 %v3143_v21  ;;  %904 = vmatprep.mubr.bf16.mxu1 %v3146_v22 }
  0x30   : > { %809 = vmatmul.mubr.bf16.gmra.mrb[4].mxu0 %v3145_v23  ;;  %905 = vmatmul.mubr.bf16.gmra.mrb[4].mxu1 %v3148_v24 }
  0x31   : > { %816 = vmatprep.mubr.bf16.mxu0 %v3149_v25  ;;  %912 = vmatprep.mubr.bf16.mxu1 %v3152_v26 }
  0x38   : > { %817 = vmatmul.mubr.bf16.gmra.mrb[8].mxu0 %v3151_v27  ;;  %913 = vmatmul.mubr.bf16.gmra.mrb[8].mxu1 %v3154_v28 }
  0x39   : > { %824 = vmatprep.mubr.bf16.mxu0 %v3155_v29  ;;  %920 = vmatprep.mubr.bf16.mxu1 %v3167_v30 }
  0x40   : > { %825 = vmatmul.mubr.bf16.gmra.mrb[12].mxu0 %v3157_v31  ;;  %921 = vmatmul.mubr.bf16.gmra.mrb[12].mxu1 %v3171_v32 }
  0x41   : > { %832 = vmatprep.mubr.bf16.mxu0 %v3158_v33 }
  0x48   : > { %833 = vmatmul.mubr.bf16.gmra.mrb[16].mxu0 %v3160_v34 }
  0x49   : > { %840 = vmatprep.mubr.bf16.mxu0 %v3161_v35 }
  0x50   : > { %841 = vmatmul.mubr.bf16.gmra.mrb[20].mxu0 %v3163_v36 }
  0x51   : > { %848 = vmatprep.mubr.bf16.mxu0 %v3164_v37 }
  0x58   : > { %849 = vmatmul.mubr.bf16.gmra.mrb[24].mxu0 %v3166_v38 }
  0x59   : > { %856 = vmatprep.mubr.bf16.mxu0 %v3169_v39 }
  0x60   : > { %857 = vmatmul.mubr.bf16.gmra.mrb[28].mxu0 %v3172_v40 }
  0x61   : > { %864 = vmatprep.mubr.bf16.mxu0 %v3173_v41 }
  0x68   : > { %865 = vmatmul.mubr.bf16.gmra.mrb[32].mxu0 %v3175_v42 }
  0x69   : > { %872 = vmatprep.mubr.bf16.mxu0 %v3176_v43 }
  0x70   : > { %873 = vmatmul.mubr.bf16.gmra.mrb[36].mxu0 %v3178_v44 }
  0x71   : > { %880 = vmatprep.mubr.bf16.mxu0 %v3179_v45 }
  0x78   : > { %881 = vmatmul.mubr.bf16.gmra.mrb[40].mxu0 %v3181_v46 }
  0x79   : > { %888 = vmatprep.mubr.bf16.mxu0 %v3182_v47 }
  0x80   : > { %889 = vmatmul.mubr.bf16.gmra.mrb[44].mxu0 %v3184_v48 }
  0xfb   : > { %v2829_v49 = vpop.f32.mrb[0].mxu0  ;;  %v2901_v50 = vpop.f32.mrb[0].mxu1 }
  0xfc   : > { %v2830_v52 = vpop.f32.mrb[1].mxu0  ;;  %v2902_v53 = vpop.f32.mrb[1].mxu1 }
  0xfd   : > { %v2831_v54 = vadd.f32 %v2830_v52, %v2829_v49  ;;  %v2903_v55 = vadd.f32 %v2902_v53, %v2901_v50  ;;  %v2832_v56 = vpop.f32.mrb[2].mxu0  ;;  %v2904_v57 = vpop.f32.mrb[2].mxu1 }
  0xfe   : > { %v2833_v58 = vpop.f32.mrb[3].mxu0  ;;  %v2905_v59 = vpop.f32.mrb[3].mxu1 }
  0xff   : > { %v3645_v60 = vadd.f32 %v2831_v54, %v3642_v51  ;;  %v3648_v61 = vadd.f32 %v2903_v55, %v3642_v51  ;;  %v2834_v62 = vadd.f32 %v2833_v58, %v2832_v56  ;;  %v2906_v63 = vadd.f32 %v2905_v59, %v2904_v57 }
 0x101   : > { %v2493_v0 = vmul.f32 -1.442695, %v3645_v60  ;;  %v2517_v1 = vmul.f32 -1.442695, %v3648_v61  ;;  %v3653_v2 = vadd.f32 %v2834_v62, %v3642_v51  ;;  %v3656_v3 = vadd.f32 %v2906_v63, %v3642_v51 }
 0x103   : > { %3193 = vpow2.f32 %v2493_v0  ;;  %v2494_v4 = vmul.f32 -1.442695, %v3653_v2  ;;  %v2518_v5 = vmul.f32 -1.442695, %v3656_v3  ;;  %v2835_v6 = vpop.f32.mrb[4].mxu0  ;;  %v2907_v7 = vpop.f32.mrb[4].mxu1 }
 0x104   : > { %3195 = vpow2.f32 %v2517_v1  ;;  %v2836_v8 = vpop.f32.mrb[5].mxu0  ;;  %v2908_v9 = vpop.f32.mrb[5].mxu1  ;;  %v3701_v0 = vld [vmem:[%s3696_s25] sm:$0xff]  }
 0x105   : > { %3197 = vpow2.f32 %v2494_v4  ;;  %v2837_v10 = vadd.f32 %v2836_v8, %v2835_v6  ;;  %v2838_v11 = vpop.f32.mrb[6].mxu0  ;;  %v2909_v12 = vadd.f32 %v2908_v9, %v2907_v7  ;;  %v2910_v13 = vpop.f32.mrb[6].mxu1 }
 0x106   : > { %3199 = vpow2.f32 %v2518_v5  ;;  %v2839_v14 = vpop.f32.mrb[7].mxu0  ;;  %v2911_v15 = vpop.f32.mrb[7].mxu1 }
 0x107   : > { %v3661_v16 = vadd.f32 %v2837_v10, %v3642_v51  ;;  %v2840_v17 = vadd.f32 %v2839_v14, %v2838_v11  ;;  %v3664_v18 = vadd.f32 %v2909_v12, %v3642_v51  ;;  %v2912_v19 = vadd.f32 %v2911_v15, %v2910_v13  ;;  %v2794_v13 = vld [vmem:[%s3696_s25 + $0x60] sm:$0xff]  }
 0x109   : > { %v2495_v20 = vmul.f32 -1.442695, %v3661_v16  ;;  %v3668_v21 = vadd.f32 %v2840_v17, %v3642_v51  ;;  %v2519_v22 = vmul.f32 -1.442695, %v3664_v18  ;;  %v3672_v23 = vadd.f32 %v2912_v19, %v3642_v51 }
 0x10a   : > { %v2641_v17 = vunpack.c.l.bf16 %v3701_v0 }
 0x10b   : > { %3201 = vpow2.f32 %v2495_v20  ;;  %v2496_v24 = vmul.f32 -1.442695, %v3668_v21  ;;  %v2520_v25 = vmul.f32 -1.442695, %v3672_v23  ;;  %v2841_v26 = vpop.f32.mrb[8].mxu0  ;;  %v2913_v27 = vpop.f32.mrb[8].mxu1 }
 0x10c   : > { %3203 = vpow2.f32 %v2519_v22  ;;  %v2842_v28 = vpop.f32.mrb[9].mxu0  ;;  %v2914_v29 = vpop.f32.mrb[9].mxu1 }
 0x10d   : > { %v3194_v30 = vpop.eup %3193  ;;  %3205 = vpow2.f32 %v2496_v24  ;;  %v2843_v31 = vadd.f32 %v2842_v28, %v2841_v26  ;;  %v2844_v32 = vpop.f32.mrb[10].mxu0  ;;  %v2915_v33 = vadd.f32 %v2914_v29, %v2913_v27  ;;  %v2689_v26 = vunpack.c.l.bf16 %v2794_v13 }
 0x10e   : > { %v2916_v34 = vpop.f32.mrb[10].mxu1  ;;  %v3196_v35 = vpop.eup %3195  ;;  %v1025_v36 = vadd.f32 1.0, %v3194_v30  ;;  %3207 = vpow2.f32 %v2520_v25 }
 0x10f   : > { %v2845_v37 = vpop.f32.mrb[11].mxu0  ;;  %v2917_v38 = vpop.f32.mrb[11].mxu1  ;;  %v1049_v40 = vadd.f32 1.0, %v3196_v35  ;;  %v3677_v41 = vadd.f32 %v2843_v31, %v3642_v51  ;;  %v3680_v43 = vadd.f32 %v2915_v33, %v3642_v51  ;;  %v2690_v35 = vunpack.c.h.bf16 %v2794_v13 }
 0x110   : > { %v3198_v39 = vpop.eup %3197  ;;  %v2846_v42 = vadd.f32 %v2845_v37, %v2844_v32  ;;  %3209 = vrcp.f32 %v1025_v36  ;;  %v2918_v46 = vadd.f32 %v2917_v38, %v2916_v34  ;;  %v3722_v34 = vld [vmem:[%s4243_s4] ss:$0 sm:$0xff] }
 0x111   : > { %v3200_v44 = vpop.eup %3199  ;;  %v1026_v45 = vadd.f32 1.0, %v3198_v39  ;;  %3211 = vrcp.f32 %v1049_v40  ;;  %v2497_v48 = vmul.f32 -1.442695, %v3677_v41  ;;  %v2521_v50 = vmul.f32 -1.442695, %v3680_v43  ;;  %v3725_v40 = vld [vmem:[%s3696_s25 + $0x8] sm:$0xff]  }
 0x112   : > { %v1050_v47 = vadd.f32 1.0, %v3200_v44  ;;  %v3685_v49 = vadd.f32 %v2846_v42, %v3642_v51  ;;  %v3689_v52 = vadd.f32 %v2918_v46, %v3642_v51  ;;  %v3728_v42 = vld [vmem:[%s3696_s25 + $0x68] sm:$0xff]  }
 0x113   : > { %3213 = vrcp.f32 %v1026_v45  ;;  %v2847_v54 = vpop.f32.mrb[12].mxu0  ;;  %v2919_v55 = vpop.f32.mrb[12].mxu1 }
 0x114   : > { %3215 = vrcp.f32 %v1050_v47  ;;  %v2498_v53 = vmul.f32 -1.442695, %v3685_v49  ;;  %v2522_v56 = vmul.f32 -1.442695, %v3689_v52  ;;  %v2848_v57 = vpop.f32.mrb[13].mxu0  ;;  %v2920_v58 = vpop.f32.mrb[13].mxu1  ;;  %v2642_v47 = vunpack.c.h.bf16 %v3701_v0 }
 0x115   : > { %3217 = vpow2.f32 %v2497_v48  ;;  %v3202_v59 = vpop.eup %3201  ;;  %v2849_v62 = vadd.f32 %v2848_v57, %v2847_v54  ;;  %v2850_v63 = vpop.f32.mrb[14].mxu0  ;;  %v3703_v1 = vadd.f32 %v2920_v58, %v2919_v55 }
 0x116   : > { %3219 = vpow2.f32 %v2498_v53  ;;  %v2922_v4 = vpop.f32.mrb[14].mxu1  ;;  %v3204_v5 = vpop.eup %3203  ;;  %v1027_v6 = vadd.f32 1.0, %v3202_v59  ;;  %v2645_v59 = vunpack.c.l.bf16 %v3725_v40 }
 0x117   : > { %3221 = vpow2.f32 %v2521_v50  ;;  %v2851_v7 = vpop.f32.mrb[15].mxu0  ;;  %v2923_v8 = vpop.f32.mrb[15].mxu1  ;;  %v1051_v10 = vadd.f32 1.0, %v3204_v5  ;;  %v3706_v11 = vadd.f32 %v2849_v62, %v3642_v51 }
 0x118   : > { %v3206_v9 = vpop.eup %3205  ;;  %3223 = vpow2.f32 %v2522_v56  ;;  %v2852_v12 = vadd.f32 %v2851_v7, %v2850_v63  ;;  %v3710_v19 = vadd.f32 %v2923_v8, %v2922_v4 }
 0x119   : > { %v3208_v14 = vpop.eup %3207  ;;  %3225 = vrcp.f32 %v1027_v6  ;;  %v1028_v15 = vadd.f32 1.0, %v3206_v9  ;;  %v2499_v22 = vmul.f32 -1.442695, %v3706_v11 }
 0x11a   : > { %3227 = vrcp.f32 %v1051_v10  ;;  %v1052_v20 = vadd.f32 1.0, %v3208_v14  ;;  %v3714_v24 = vadd.f32 %v2852_v12, %v3642_v51  ;;  %v3210_v25 = vpop.eup %3209 }
 0x11b   : > { %3229 = vrcp.f32 %v1028_v15  ;;  %v3212_v27 = vpop.eup %3211  ;;  %v2853_v29 = vpop.f32.mrb[16].mxu0  ;;  %v1121_v30 = vmul.f32 %v3210_v25, %v3645_v60 }
 0x11c   : > { %3231 = vrcp.f32 %v1052_v20  ;;  %v2500_v28 = vmul.f32 -1.442695, %v3714_v24  ;;  %v1145_v32 = vmul.f32 %v3212_v27, %v3648_v61  ;;  %v2854_v33 = vpop.f32.mrb[17].mxu0  ;;  %v2646_v20 = vunpack.c.h.bf16 %v3725_v40 }
 0x11d   : > { %v3214_v31 = vpop.eup %3213  ;;  %3233 = vpow2.f32 %v2499_v22  ;;  %v2855_v37 = vadd.f32 %v2854_v33, %v2853_v29  ;;  %v2856_v38 = vpop.f32.mrb[18].mxu0  ;;  %v1217_v39 = vadd.f32 %v2641_v17, %v1121_v30  ;;  %v2694_v22 = vunpack.c.h.bf16 %v3728_v42 }
 0x11e   : > { %v3216_v36 = vpop.eup %3215  ;;  %3235 = vpow2.f32 %v2500_v28  ;;  %v1122_v61 = vmul.f32 %v3214_v31, %v3653_v2  ;;  %v2857_v44 = vpop.f32.mrb[19].mxu0  ;;  %v1241_v46 = vadd.f32 %v2689_v26, %v1145_v32  ;;  %v2693_v2 = vunpack.c.l.bf16 %v3728_v42 }
 0x11f   : > { %v3218_v60 = vpop.eup %3217  ;;  %v1146_v45 = vmul.f32 %v3216_v36, %v3656_v3  ;;  %v3734_v53 = vadd.f32 %v2855_v37, %v3642_v51  ;;  %v2858_v54 = vadd.f32 %v2857_v44, %v2856_v38  ;;  %v1256_v55 = vmul.f32 %v3722_v34, %v1217_v39  ;;  %v2784_v38 = vld [vmem:[%s3696_s25 + $0x10] sm:$0xff]  }
 0x120   : > { %v3220_v48 = vpop.eup %3219  ;;  %v1029_v50 = vadd.f32 1.0, %v3218_v60  ;;  %v1218_v7 = vadd.f32 %v2642_v47, %v1122_v61  ;;  %v1280_v13 = vmul.f32 %v3722_v34, %v1241_v46  ;;  %v2796_v61 = vld [vmem:[%s3696_s25 + $0x70] sm:$0xff]  }
 0x121   : > { %v3222_v56 = vpop.eup %3221  ;;  %v1030_v57 = vadd.f32 1.0, %v3220_v48  ;;  %v1242_v58 = vadd.f32 %v2690_v35, %v1146_v45  ;;  %v2501_v63 = vmul.f32 -1.442695, %v3734_v53  ;;  %v3741_v0 = vadd.f32 %v2858_v54, %v3642_v51  ;;  %1288 = vadd.xlane.f32.xlu0 %v1256_v55 }
 0x122   : > { %v3224_v62 = vpop.eup %3223  ;;  %3237 = vrcp.f32 %v1029_v50  ;;  %v1053_v3 = vadd.f32 1.0, %v3222_v56  ;;  %v1257_v31 = vmul.f32 %v3722_v34, %v1218_v7  ;;  %v2649_v45 = vunpack.c.l.bf16 %v2784_v38 }
 0x123   : > { %v3226_v4 = vpop.eup %3225  ;;  %3239 = vrcp.f32 %v1030_v57  ;;  %v1054_v5 = vadd.f32 1.0, %v3224_v62  ;;  %v1281_v6 = vmul.f32 %v3722_v34, %v1242_v58  ;;  %v2502_v10 = vmul.f32 -1.442695, %v3741_v0  ;;  %v2859_v12 = vpop.f32.mrb[20].mxu0 }
 0x124   : > { %v3228_v8 = vpop.eup %3227  ;;  %v1123_v9 = vmul.f32 %v3226_v4, %v3661_v16  ;;  %3241 = vrcp.f32 %v1053_v3  ;;  %v2860_v17 = vpop.f32.mrb[21].mxu0  ;;  %v2650_v54 = vunpack.c.h.bf16 %v2784_v38  ;;  %v2697_v58 = vunpack.c.l.bf16 %v2796_v61 }
 0x125   : > { %v3230_v14 = vpop.eup %3229  ;;  %v1147_v15 = vmul.f32 %v3228_v8, %v3664_v18  ;;  %3243 = vrcp.f32 %v1054_v5  ;;  %1338 = vadd.xlane.f32.xlu1 %v1281_v6  ;;  %v2861_v16 = vadd.f32 %v2860_v17, %v2859_v12  ;;  %v2862_v27 = vpop.f32.mrb[22].mxu0  ;;  %1336 = vadd.xlane.f32.xlu0 %v1280_v13  ;;  %v2698_v8 = vunpack.c.h.bf16 %v2796_v61  ;;  %v2785_v13 = vld [vmem:[%s3696_s25 + $0x18] sm:$0xff]  }
 0x126   : > { %v3232_v25 = vpop.eup %3231  ;;  %v1124_v26 = vmul.f32 %v3230_v14, %v3668_v21  ;;  %3245 = vpow2.f32 %v2501_v63  ;;  %v1219_v28 = vadd.f32 %v2645_v59, %v1123_v9  ;;  %v2863_v18 = vpop.f32.mrb[23].mxu0 }
 0x127   : > { %v3234_v29 = vpop.eup %3233  ;;  %v1148_v30 = vmul.f32 %v3232_v25, %v3672_v23  ;;  %3247 = vpow2.f32 %v2502_v10  ;;  %v1243_v32 = vadd.f32 %v2693_v2, %v1147_v15  ;;  %v3754_v36 = vadd.f32 %v2861_v16, %v3642_v51 }
 0x128   : > { %v3236_v33 = vpop.eup %3235  ;;  %v1031_v35 = vadd.f32 1.0, %v3234_v29  ;;  %v2864_v21 = vadd.f32 %v2863_v18, %v2862_v27  ;;  %v1258_v37 = vmul.f32 %v3722_v34, %v1219_v28  ;;  %v1220_v40 = vadd.f32 %v2646_v20, %v1124_v26 }
 0x129   : > { %v1032_v39 = vadd.f32 1.0, %v3236_v33  ;;  %v2503_v23 = vmul.f32 -1.442695, %v3754_v36  ;;  %1290 = vadd.xlane.f32.xlu0 %v1257_v31  ;;  %v1282_v60 = vmul.f32 %v3722_v34, %v1243_v32  ;;  %v1244_v44 = vadd.f32 %v2694_v22, %v1148_v30 }
 0x12a   : > { %3249 = vrcp.f32 %v1031_v35  ;;  %v3760_v42 = vadd.f32 %v2864_v21, %v3642_v51  ;;  %1292 = vadd.xlane.f32.xlu1 %v1258_v37  ;;  %v1259_v50 = vmul.f32 %v3722_v34, %v1220_v40  ;;  %v2653_v26 = vunpack.c.l.bf16 %v2785_v13 }
 0x12b   : > { %3251 = vrcp.f32 %v1032_v39  ;;  %v2865_v48 = vpop.f32.mrb[24].mxu0  ;;  %v1283_v6 = vmul.f32 %v3722_v34, %v1244_v44  ;;  %v2654_v16 = vunpack.c.h.bf16 %v2785_v13 }
 0x12c   : > { %v3238_v46 = vpop.eup %3237  ;;  %3253 = vpow2.f32 %v2503_v23  ;;  %v2504_v47 = vmul.f32 -1.442695, %v3760_v42  ;;  %v2866_v57 = vpop.f32.mrb[25].mxu0 }
 0x12d   : > { %v3240_v55 = vpop.eup %3239  ;;  %v1125_v56 = vmul.f32 %v3238_v46, %v3677_v41  ;;  %v2867_v62 = vadd.f32 %v2866_v57, %v2865_v48  ;;  %v2868_v3 = vpop.f32.mrb[26].mxu0  ;;  %1340 = vadd.xlane.f32.xlu0 %v1282_v60 }
 0x12e   : > { %v3242_v59 = vpop.eup %3241  ;;  %v1126_v2 = vmul.f32 %v3240_v55, %v3685_v49  ;;  %3255 = vpow2.f32 %v2504_v47  ;;  %1294 = vadd.xlane.f32.xlu1 %v1259_v50  ;;  %v2869_v5 = vpop.f32.mrb[27].mxu0  ;;  %v2786_v47 = vld [vmem:[%s3696_s25 + $0x20] sm:$0xff]  }
 0x12f   : > { %v3244_v63 = vpop.eup %3243  ;;  %v1149_v4 = vmul.f32 %v3242_v59, %v3680_v43  ;;  %v1221_v7 = vadd.f32 %v2649_v45, %v1125_v56  ;;  %v3772_v10 = vadd.f32 %v2867_v62, %v3642_v51  ;;  %v2870_v49 = vadd.f32 %v2869_v5, %v2868_v3  ;;  %v2787_v5 = vld [vmem:[%s3696_s25 + $0x28] sm:$0xff]  }
 0x130   : > { %v3246_v41 = vpop.eup %3245  ;;  %v1150_v9 = vmul.f32 %v3244_v63, %v3689_v52  ;;  %v1222_v12 = vadd.f32 %v2650_v54, %v1126_v2  ;;  %v2657_v57 = vunpack.c.l.bf16 %v2786_v47  ;;  %v2658_v2 = vunpack.c.h.bf16 %v2786_v47 }
 0x131   : > { %v3248_v14 = vpop.eup %3247  ;;  %v1033_v15 = vadd.f32 1.0, %v3246_v41  ;;  %v1260_v17 = vmul.f32 %v3722_v34, %v1221_v7  ;;  %v1245_v20 = vadd.f32 %v2697_v58, %v1149_v4  ;;  %v2505_v22 = vmul.f32 -1.442695, %v3772_v10 }
 0x132   : > { %v1034_v43 = vadd.f32 1.0, %v3248_v14  ;;  %v3778_v25 = vadd.f32 %v2870_v49, %v3642_v51  ;;  %1342 = vadd.xlane.f32.xlu1 %v1283_v6  ;;  %v1261_v30 = vmul.f32 %v3722_v34, %v1222_v12  ;;  %v1246_v18 = vadd.f32 %v2698_v8, %v1150_v9 }
 0x133   : > { %3257 = vrcp.f32 %v1033_v15  ;;  %1296 = vadd.xlane.f32.xlu0 %v1260_v17  ;;  %v1284_v52 = vmul.f32 %v3722_v34, %v1245_v20  ;;  %v2871_v29 = vpop.f32.mrb[28].mxu0  ;;  %v3473_v41 = vmov 0   ;;  %v2661_v17 = vunpack.c.l.bf16 %v2787_v5 }
 0x134   : > { %v3250_v27 = vpop.eup %3249  ;;  %3259 = vrcp.f32 %v1034_v43  ;;  %v2506_v28 = vmul.f32 -1.442695, %v3778_v25  ;;  %v2872_v33 = vpop.f32.mrb[29].mxu0  ;;  %3039 = vset.pattern.permute.xlu0 %v3473_v41  ;;  %3045 = vset.pattern.permute.xlu1 %v3473_v41 }
 0x135   : > { %v3252_v31 = vpop.eup %3251  ;;  %v1127_v32 = vmul.f32 %v3250_v27, %v3706_v11  ;;  %3261 = vpow2.f32 %v2505_v22  ;;  %v2873_v37 = vadd.f32 %v2872_v33, %v2871_v29  ;;  %v2874_v38 = vpop.f32.mrb[30].mxu0  ;;  %v1285_v11 = vmul.f32 %v3722_v34, %v1246_v18 }
 0x136   : > { %v3254_v35 = vpop.eup %3253  ;;  %v1128_v21 = vmul.f32 %v3252_v31, %v3714_v24  ;;  %3263 = vpow2.f32 %v2506_v28  ;;  %1298 = vadd.xlane.f32.xlu1 %v1261_v30  ;;  %v2875_v40 = vpop.f32.mrb[31].mxu0  ;;  %v2662_v30 = vunpack.c.h.bf16 %v2787_v5 }
 0x137   : > { %v1035_v39 = vadd.f32 1.0, %v3254_v35  ;;  %1344 = vadd.xlane.f32.xlu0 %v1284_v52  ;;  %v1223_v23 = vadd.f32 %v2653_v26, %v1127_v32  ;;  %v3786_v61 = vadd.f32 %v2873_v37, %v3642_v51  ;;  %v2876_v44 = vadd.f32 %v2875_v40, %v2874_v38 }
 0x138   : > { %v3256_v60 = vpop.eup %3255  ;;  %v1224_v45 = vadd.f32 %v2654_v16, %v1128_v21 }
 0x139   : > { %3265 = vrcp.f32 %v1035_v39  ;;  %v1036_v46 = vadd.f32 1.0, %v3256_v60  ;;  %v1262_v24 = vmul.f32 %v3722_v34, %v1223_v23  ;;  %v2507_v48 = vmul.f32 -1.442695, %v3786_v61  ;;  %v2788_v60 = vld [vmem:[%s3696_s25 + $0x30] sm:$0xff]  }
 0x13a   : > { %v3793_v50 = vadd.f32 %v2876_v44, %v3642_v51  ;;  %1346 = vadd.xlane.f32.xlu1 %v1285_v11  ;;  %v1263_v56 = vmul.f32 %v3722_v34, %v1224_v45 }
 0x13b   : > { %3267 = vrcp.f32 %v1036_v46  ;;  %1300 = vadd.xlane.f32.xlu0 %v1262_v24  ;;  %v2877_v55 = vpop.f32.mrb[32].mxu0  ;;  %v2665_v24 = vunpack.c.l.bf16 %v2788_v60 }
 0x13c   : > { %3269 = vpow2.f32 %v2507_v48  ;;  %v2508_v54 = vmul.f32 -1.442695, %v3793_v50  ;;  %v2878_v59 = vpop.f32.mrb[33].mxu0 }
 0x13d   : > { %v3258_v58 = vpop.eup %3257  ;;  %v2879_v63 = vadd.f32 %v2878_v59, %v2877_v55  ;;  %v2880_v4 = vpop.f32.mrb[34].mxu0  ;;  %v2666_v55 = vunpack.c.h.bf16 %v2788_v60 }
 0x13e   : > { %v3260_v62 = vpop.eup %3259  ;;  %v1129_v3 = vmul.f32 %v3258_v58, %v3734_v53  ;;  %3271 = vpow2.f32 %v2508_v54  ;;  %1302 = vadd.xlane.f32.xlu1 %v1263_v56  ;;  %v2881_v8 = vpop.f32.mrb[35].mxu0  ;;  %v3831_v58 = vadd.f32 %v3703_v1, %v3642_v51 }
 0x13f   : > { %v3262_v6 = vpop.eup %3261  ;;  %v1130_v7 = vmul.f32 %v3260_v62, %v3741_v0  ;;  %v3801_v12 = vadd.f32 %v2879_v63, %v3642_v51  ;;  %v2882_v13 = vadd.f32 %v2881_v8, %v2880_v4 }
 0x140   : > { %v3264_v9 = vpop.eup %3263  ;;  %v1037_v49 = vadd.f32 1.0, %v3262_v6  ;;  %v1225_v14 = vadd.f32 %v2657_v57, %v1129_v3 }
 0x141   : > { %v1038_v53 = vadd.f32 1.0, %v3264_v9  ;;  %v1226_v15 = vadd.f32 %v2658_v2, %v1130_v7  ;;  %v2509_v20 = vmul.f32 -1.442695, %v3801_v12  ;;  %v3805_v43 = vadd.f32 %v2882_v13, %v3642_v51  ;;  %v2789_v7 = vld [vmem:[%s3696_s25 + $0x38] sm:$0xff]  }
 0x142   : > { %3273 = vrcp.f32 %v1037_v49  ;;  %v1264_v0 = vmul.f32 %v3722_v34, %v1225_v14  ;;  %v2523_v9 = vmul.f32 -1.442695, %v3831_v58 }
 0x143   : > { %v3266_v22 = vpop.eup %3265  ;;  %3275 = vrcp.f32 %v1038_v53  ;;  %v1265_v52 = vmul.f32 %v3722_v34, %v1226_v15  ;;  %v2510_v16 = vmul.f32 -1.442695, %v3805_v43  ;;  %v2883_v27 = vpop.f32.mrb[36].mxu0  ;;  %v2669_v15 = vunpack.c.l.bf16 %v2789_v7 }
 0x144   : > { %v1131_v26 = vmul.f32 %v3266_v22, %v3754_v36  ;;  %3277 = vpow2.f32 %v2509_v20  ;;  %1304 = vadd.xlane.f32.xlu0 %v1264_v0  ;;  %v2884_v29 = vpop.f32.mrb[37].mxu0  ;;  %v3814_v36 = vadd.f32 %v3710_v19, %v3642_v51 }
 0x145   : > { %v3268_v28 = vpop.eup %3267  ;;  %1306 = vadd.xlane.f32.xlu1 %v1265_v52  ;;  %3279 = vpow2.f32 %v2510_v16  ;;  %v2885_v32 = vadd.f32 %v2884_v29, %v2883_v27  ;;  %v2886_v33 = vpop.f32.mrb[38].mxu0  ;;  %v2670_v52 = vunpack.c.h.bf16 %v2789_v7 }
 0x146   : > { %v3270_v18 = vpop.eup %3269  ;;  %v1132_v31 = vmul.f32 %v3268_v28, %v3760_v42  ;;  %v1227_v35 = vadd.f32 %v2661_v17, %v1131_v26  ;;  %v2887_v37 = vpop.f32.mrb[39].mxu0  ;;  %v2524_v19 = vmul.f32 -1.442695, %v3814_v36 }
 0x147   : > { %v1039_v21 = vadd.f32 1.0, %v3270_v18  ;;  %v3817_v39 = vadd.f32 %v2885_v32, %v3642_v51  ;;  %v2888_v40 = vadd.f32 %v2887_v37, %v2886_v33 }
 0x148   : > { %v3272_v38 = vpop.eup %3271  ;;  %v1266_v23 = vmul.f32 %v3722_v34, %v1227_v35  ;;  %v1228_v44 = vadd.f32 %v2662_v30, %v1132_v31 }
 0x149   : > { %3281 = vrcp.f32 %v1039_v21  ;;  %v1040_v42 = vadd.f32 1.0, %v3272_v38  ;;  %v2511_v11 = vmul.f32 -1.442695, %v3817_v39  ;;  %v3823_v45 = vadd.f32 %v2888_v40, %v3642_v51 }
 0x14a   : > { %1308 = vadd.xlane.f32.xlu0 %v1266_v23  ;;  %v1267_v46 = vmul.f32 %v3722_v34, %v1228_v44 }
 0x14b   : > { %3283 = vrcp.f32 %v1040_v42  ;;  %v2512_v48 = vmul.f32 -1.442695, %v3823_v45  ;;  %v2889_v54 = vpop.f32.mrb[40].mxu0 }
 0x14c   : > { %v3274_v47 = vpop.eup %3273  ;;  %3285 = vpow2.f32 %v2511_v11  ;;  %1310 = vadd.xlane.f32.xlu1 %v1267_v46  ;;  %v2890_v59 = vpop.f32.mrb[41].mxu0 }
 0x14d   : > { %v3276_v56 = vpop.eup %3275  ;;  %v1133_v57 = vmul.f32 %v3274_v47, %v3772_v10  ;;  %3287 = vpow2.f32 %v2512_v48  ;;  %v2891_v3 = vadd.f32 %v2890_v59, %v2889_v54  ;;  %v2892_v63 = vpop.f32.mrb[42].mxu0  ;;  %v2791_v59 = vld [vmem:[%s3696_s25 + $0x48] sm:$0xff]  }
 0x14e   : > { %v3278_v2 = vpop.eup %3277  ;;  %v1134_v62 = vmul.f32 %v3276_v56, %v3778_v25  ;;  %3289 = vpow2.f32 %v2524_v19  ;;  %v2893_v5 = vpop.f32.mrb[43].mxu0  ;;  %v2678_v7 = vunpack.c.h.bf16 %v2791_v59 }
 0x14f   : > { %v1041_v4 = vadd.f32 1.0, %v3278_v2  ;;  %v1229_v6 = vadd.f32 %v2665_v24, %v1133_v57  ;;  %v3280_v8 = vpop.eup %3279  ;;  %v3836_v10 = vadd.f32 %v2891_v3, %v3642_v51  ;;  %v2894_v41 = vadd.f32 %v2893_v5, %v2892_v63 }
 0x150   : > { %v1230_v1 = vadd.f32 %v2666_v55, %v1134_v62  ;;  %v1042_v49 = vadd.f32 1.0, %v3280_v8 }
 0x151   : > { %3291 = vrcp.f32 %v1041_v4  ;;  %v1268_v25 = vmul.f32 %v3722_v34, %v1229_v6  ;;  %v2513_v13 = vmul.f32 -1.442695, %v3836_v10  ;;  %v3842_v14 = vadd.f32 %v2894_v41, %v3642_v51 }
 0x152   : > { %v1269_v53 = vmul.f32 %v3722_v34, %v1230_v1  ;;  %3293 = vrcp.f32 %v1042_v49  ;;  %v2677_v4 = vunpack.c.l.bf16 %v2791_v59 }
 0x153   : > { %v3282_v17 = vpop.eup %3281  ;;  %1312 = vadd.xlane.f32.xlu0 %v1268_v25  ;;  %3295 = vpow2.f32 %v2513_v13  ;;  %v2514_v0 = vmul.f32 -1.442695, %v3842_v14  ;;  %v2895_v22 = vpop.f32.mrb[44].mxu0  ;;  %v2792_v25 = vld [vmem:[%s3696_s25 + $0x50] sm:$0xff]  }
 0x154   : > { %v1135_v20 = vmul.f32 %v3282_v17, %v3786_v61  ;;  %1314 = vadd.xlane.f32.xlu1 %v1269_v53  ;;  %3297 = vpow2.f32 %v2523_v9  ;;  %v2896_v16 = vpop.f32.mrb[45].mxu0  ;;  %v2790_v61 = vld [vmem:[%s3696_s25 + $0x40] sm:$0xff]  }
 0x155   : > { %v3284_v26 = vpop.eup %3283  ;;  %3299 = vpow2.f32 %v2514_v0  ;;  %v2897_v29 = vadd.f32 %v2896_v16, %v2895_v22  ;;  %v2898_v30 = vpop.f32.mrb[46].mxu0  ;;  %v2673_v44 = vunpack.c.l.bf16 %v2790_v61  ;;  %v2674_v19 = vunpack.c.h.bf16 %v2790_v61 }
 0x156   : > { %v3286_v27 = vpop.eup %3285  ;;  %v1136_v28 = vmul.f32 %v3284_v26, %v3793_v50  ;;  %v1231_v18 = vadd.f32 %v2669_v15, %v1135_v20  ;;  %v2899_v32 = vpop.f32.mrb[47].mxu0  ;;  %v2681_v0 = vunpack.c.l.bf16 %v2792_v25  ;;  %v2682_v26 = vunpack.c.h.bf16 %v2792_v25 }
 0x157   : > { %v1043_v31 = vadd.f32 1.0, %v3286_v27  ;;  %v3288_v33 = vpop.eup %3287  ;;  %v3850_v35 = vadd.f32 %v2897_v29, %v3642_v51  ;;  %v2900_v21 = vadd.f32 %v2899_v32, %v2898_v30 }
 0x158   : > { %v1270_v37 = vmul.f32 %v3722_v34, %v1231_v18  ;;  %v1232_v38 = vadd.f32 %v2670_v52, %v1136_v28  ;;  %v3290_v40 = vpop.eup %3289  ;;  %v1044_v23 = vadd.f32 1.0, %v3288_v33  ;;  %v2793_v18 = vld [vmem:[%s3696_s25 + $0x58] sm:$0xff]  }
 0x159   : > { %3301 = vrcp.f32 %v1043_v31  ;;  %v2515_v50 = vmul.f32 -1.442695, %v3850_v35  ;;  %v3855_v60 = vadd.f32 %v2900_v21, %v3642_v51  ;;  %v1056_v46 = vadd.f32 1.0, %v3290_v40 }
 0x15a   : > { %1316 = vadd.xlane.f32.xlu0 %v1270_v37  ;;  %v1271_v42 = vmul.f32 %v3722_v34, %v1232_v38  ;;  %3303 = vrcp.f32 %v1044_v23  ;;  %v2685_v37 = vunpack.c.l.bf16 %v2793_v18 }
 0x15b   : > { %v3292_v11 = vpop.eup %3291  ;;  %3305 = vpow2.f32 %v2515_v50  ;;  %v2516_v47 = vmul.f32 -1.442695, %v3855_v60 }
 0x15c   : > { %v1137_v24 = vmul.f32 %v3292_v11, %v3801_v12  ;;  %1318 = vadd.xlane.f32.xlu1 %v1271_v42  ;;  %v3294_v48 = vpop.eup %3293 }
 0x15d   : > { %v3296_v54 = vpop.eup %3295  ;;  %v1138_v51 = vmul.f32 %v3294_v48, %v3805_v43  ;;  %3307 = vpow2.f32 %v2516_v47  ;;  %v3187_v47 = vld [vmem:[%s4247_s8 + $0x10] sm:$0xff]   ;;  %v3189_v48 = vld [vmem:[%s4247_s8 + $0x20] sm:$0xff]  }
 0x15e   : > { %v1233_v55 = vadd.f32 %v2673_v44, %v1137_v24  ;;  %v3298_v56 = vpop.eup %3297  ;;  %v1045_v57 = vadd.f32 1.0, %v3296_v54  ;;  %3309 = vrcp.f32 %v1056_v46 }
 0x15f   : > { %v3300_v2 = vpop.eup %3299  ;;  %v1234_v3 = vadd.f32 %v2674_v19, %v1138_v51  ;;  %v1055_v6 = vadd.f32 1.0, %v3298_v56  ;;  %v3898_v51 = vld [vmem:[#allocation2] ss:$0 sm:$0xff] }
 0x160   : > { %v1272_v62 = vmul.f32 %v3722_v34, %v1233_v55  ;;  %3311 = vrcp.f32 %v1045_v57  ;;  %v1046_v12 = vadd.f32 1.0, %v3300_v2 }
 0x161   : > { %v1273_v63 = vmul.f32 %v3722_v34, %v1234_v3 }
 0x162   : > { %1320 = vadd.xlane.f32.xlu0 %v1272_v62  ;;  %3313 = vrcp.f32 %v1046_v12  ;;  %v3474_v62 = vmov -1.0  }
 0x163   : > { %v3302_v5 = vpop.eup %3301  ;;  %1322 = vadd.xlane.f32.xlu1 %v1273_v63  ;;  %3315 = vrcp.f32 %v1055_v6 }
 0x164   : > { %v1139_v43 = vmul.f32 %v3302_v5, %v3817_v39  ;;  %v3304_v8 = vpop.eup %3303 }
 0x165   : > { %v3306_v41 = vpop.eup %3305  ;;  %v1140_v1 = vmul.f32 %v3304_v8, %v3823_v45  ;;  %v2797_v45 = vld [vmem:[%s3696_s25 + $0x78] sm:$0xff]  }
 0x166   : > { %v1235_v9 = vadd.f32 %v2677_v4, %v1139_v43  ;;  %v1047_v49 = vadd.f32 1.0, %v3306_v41  ;;  %v2702_v30 = vunpack.c.h.bf16 %v2797_v45 }
 0x167   : > { %v3308_v13 = vpop.eup %3307  ;;  %v1236_v15 = vadd.f32 %v2678_v7, %v1140_v1 }
 0x168   : > { %v1274_v53 = vmul.f32 %v3722_v34, %v1235_v9  ;;  %3317 = vrcp.f32 %v1047_v49  ;;  %v1048_v17 = vadd.f32 1.0, %v3308_v13  ;;  %v3310_v20 = vpop.eup %3309  ;;  %v3190_v13 = vld [vmem:[%s4247_s8 + $0x28] sm:$0xff]  }
 0x169   : > { %v1275_v39 = vmul.f32 %v3722_v34, %v1236_v15  ;;  %v1152_v27 = vmul.f32 %v3310_v20, %v3814_v36  ;;  %v2686_v36 = vunpack.c.h.bf16 %v2793_v18  ;;  %v3192_v18 = vld [vmem:[%s4247_s8 + $0x38] sm:$0xff]  }
 0x16a   : > { %1324 = vadd.xlane.f32.xlu0 %v1274_v53  ;;  %v3312_v22 = vpop.eup %3311  ;;  %3319 = vrcp.f32 %v1048_v17 }
 0x16b   : > { %v1141_v52 = vmul.f32 %v3312_v22, %v3836_v10  ;;  %1326 = vadd.xlane.f32.xlu1 %v1275_v39  ;;  %v1248_v21 = vadd.f32 %v2702_v30, %v1152_v27 }
 0x16c   : > { %v3314_v16 = vpop.eup %3313 }
 0x16d   : > { %v1142_v28 = vmul.f32 %v3314_v16, %v3842_v14  ;;  %v1237_v29 = vadd.f32 %v2681_v0, %v1141_v52  ;;  %v3316_v61 = vpop.eup %3315  ;;  %v2701_v14 = vunpack.c.l.bf16 %v2797_v45  ;;  %v1287_v42 = vmul.f32 %v3722_v34, %v1248_v21  ;;  %v3191_v45 = vld [vmem:[%s4247_s8 + $0x30] sm:$0xff]  }
 0x16e   : > { %v1151_v38 = vmul.f32 %v3316_v61, %v3831_v58 }
 0x16f   : > { %v1276_v31 = vmul.f32 %v3722_v34, %v1237_v29  ;;  %v1238_v32 = vadd.f32 %v2682_v26, %v1142_v28 }
 0x170   : > { %v1247_v46 = vadd.f32 %v2701_v14, %v1151_v38 }
 0x171   : > { %1328 = vadd.xlane.f32.xlu0 %v1276_v31  ;;  %v1277_v33 = vmul.f32 %v3722_v34, %v1238_v32 }
 0x172   : > { %v3318_v10 = vpop.eup %3317  ;;  %v1286_v58 = vmul.f32 %v3722_v34, %v1247_v46 }
 0x173   : > { %v1143_v40 = vmul.f32 %v3318_v10, %v3850_v35  ;;  %1330 = vadd.xlane.f32.xlu1 %v1277_v33  ;;  %v3185_v35 = vld [vmem:[%s4247_s8] sm:$0xff]  }
 0x174   : > { %v3320_v23 = vpop.eup %3319  ;;  %2949 = vmatprep.subr.bf16.mxu1 %v3185_v35 }
 0x175   : > { %v1144_v50 = vmul.f32 %v3320_v23, %v3855_v60  ;;  %v1239_v44 = vadd.f32 %v2685_v37, %v1143_v40  ;;  %v3186_v60 = vld [vmem:[%s4247_s8 + $0x8] sm:$0xff]   ;;  %2950 = vmatpush3.bf16.msra.mxu1 %v3185_v35 }
 0x176   : > { %2951 = vmatprep.subr.bf16.mxu1 %v3186_v60 }
 0x177   : > { %1350 = vadd.xlane.f32.xlu1 %v1287_v42  ;;  %v1278_v11 = vmul.f32 %v3722_v34, %v1239_v44  ;;  %v1240_v19 = vadd.f32 %v2686_v36, %v1144_v50 }
 0x179   : > { %1332 = vadd.xlane.f32.xlu0 %v1278_v11  ;;  %v1279_v24 = vmul.f32 %v3722_v34, %v1240_v19  ;;  %2952 = vmatpush3.bf16.msra.mxu1 %v3186_v60  ;;  %v3188_v34 = vld [vmem:[%s4247_s8 + $0x18] sm:$0xff]  }
 0x17a   : > { %2953 = vmatprep.subr.bf16.mxu1 %v3187_v47 }
 0x17b   : > { %1334 = vadd.xlane.f32.xlu1 %v1279_v24 }
 0x17d   : > { %1348 = vadd.xlane.f32.xlu0 %v1286_v58  ;;  %2954 = vmatpush3.bf16.msra.mxu1 %v3187_v47 }
 0x17e   : > { %2955 = vmatprep.subr.bf16.mxu1 %v3188_v34 }
 0x181   : > { %2956 = vmatpush3.bf16.msra.mxu1 %v3188_v34 }
 0x182   : > { %2957 = vmatprep.subr.bf16.mxu1 %v3189_v48 }
 0x185   : > { %2958 = vmatpush3.bf16.msra.mxu1 %v3189_v48 }
 0x186   : > { %2959 = vmatprep.subr.bf16.mxu1 %v3190_v13 }
 0x189   : > { %2960 = vmatpush3.bf16.msra.mxu1 %v3190_v13 }
 0x18a   : > { %2961 = vmatprep.subr.bf16.mxu1 %v3191_v45 }
 0x18d   : > { %2962 = vmatpush3.bf16.msra.mxu1 %v3191_v45 }
 0x18e   : > { %2963 = vmatprep.subr.bf16.mxu1 %v3192_v18 }
 0x191   : > { %2964 = vmatpush3.bf16.msra.mxu1 %v3192_v18 }
 0x1ae   : > { %v1289_v54 = vpop.xlane.xlu0 %1288 }
 0x1af   : > { %v1359_v59 = vadd.f32 %v3898_v51, %v1289_v54 }
 0x1b1   : > { %vm1391_vm2 = vcmp.gt.f32.partialorder %v1359_v59, 0.0 }
 0x1b2   : > { %v1339_v55 = vpop.xlane.xlu1 %1338  ;;  %v1337_v57 = vpop.xlane.xlu0 %1336  ;;  %v1423_v7 = vsel %vm1391_vm2, 1.0, %v3474_v62 }
 0x1b3   : > { %v1384_v56 = vadd.f32 %v3898_v51, %v1339_v55  ;;  %v1383_v2 = vadd.f32 %v3898_v51, %v1337_v57 }
 0x1b5   : > { %vm1416_vm0 = vcmp.gt.f32.partialorder %v1384_v56, 0.0  ;;  %vm1415_vm1 = vcmp.gt.f32.partialorder %v1383_v2, 0.0 }
 0x1b6   : > { %v3904_v3 = vsel %vm1416_vm0, 1.0, %v3474_v62  ;;  %v3907_v12 = vsel %vm1415_vm1, 1.0, %v3474_v62  ;;  %v1291_v4 = vpop.xlane.xlu0 %1290 }
 0x1b7   : > { %v1293_v63 = vpop.xlane.xlu1 %1292  ;;  %v3101_v5 = vpack.i.bf16 %v3904_v3, %v3907_v12  ;;  %v1360_v43 = vadd.f32 %v3898_v51, %v1291_v4 }
 0x1b8   : > { %v1361_v6 = vadd.f32 %v3898_v51, %v1293_v63 }
 0x1b9   : > { %vm1392_vm3 = vcmp.gt.f32.partialorder %v1360_v43, 0.0 }
 0x1ba   : > { %v1424_v8 = vsel %vm1392_vm3, 1.0, %v3474_v62  ;;  %v1341_v1 = vpop.xlane.xlu0 %1340  ;;  %vm1393_vm4 = vcmp.gt.f32.partialorder %v1361_v6, 0.0 }
 0x1bb   : > { %v1295_v41 = vpop.xlane.xlu1 %1294  ;;  %v3040_v9 = vpack.i.bf16 %v1424_v8, %v1423_v7  ;;  %v1385_v25 = vadd.f32 %v3898_v51, %v1341_v1  ;;  %v1425_v53 = vsel %vm1393_vm4, 1.0, %v3474_v62 }
 0x1bc   : > { %v1362_v49 = vadd.f32 %v3898_v51, %v1295_v41 }
 0x1bd   : > { %3041 = vperm.xlu0 %3039, %v3040_v9   ;;  %vm1417_vm6 = vcmp.gt.f32.partialorder %v1385_v25, 0.0 }
 0x1be   : > { %vm1394_vm5 = vcmp.gt.f32.partialorder %v1362_v49, 0.0  ;;  %v3928_v52 = vsel %vm1417_vm6, 1.0, %v3474_v62 }
 0x1bf   : > { %v1426_v15 = vsel %vm1394_vm5, 1.0, %v3474_v62  ;;  %v1343_v17 = vpop.xlane.xlu1 %1342 }
 0x1c0   : > { %v3046_v20 = vpack.i.bf16 %v1426_v15, %v1425_v53  ;;  %v1386_v39 = vadd.f32 %v3898_v51, %v1343_v17  ;;  %v1297_v0 = vpop.xlane.xlu0 %1296 }
 0x1c1   : > { %v1363_v22 = vadd.f32 %v3898_v51, %v1297_v0 }
 0x1c2   : > { %vm1418_vm7 = vcmp.gt.f32.partialorder %v1386_v39, 0.0  ;;  %3047 = vperm.xlu1 %3045, %v3046_v20  }
 0x1c3   : > { %v3931_v26 = vsel %vm1418_vm7, 1.0, %v3474_v62  ;;  %v1299_v16 = vpop.xlane.xlu1 %1298  ;;  %vm1395_vm8 = vcmp.gt.f32.partialorder %v1363_v22, 0.0 }
 0x1c4   : > { %v3106_v27 = vpack.i.bf16 %v3931_v26, %v3928_v52  ;;  %v1364_v28 = vadd.f32 %v3898_v51, %v1299_v16  ;;  %v1345_v29 = vpop.xlane.xlu0 %1344  ;;  %v1427_v31 = vsel %vm1395_vm8, 1.0, %v3474_v62 }
 0x1c5   : > { %v1387_v30 = vadd.f32 %v3898_v51, %v1345_v29 }
 0x1c6   : > { %vm1396_vm9 = vcmp.gt.f32.partialorder %v1364_v28, 0.0 }
 0x1c7   : > { %v1428_v32 = vsel %vm1396_vm9, 1.0, %v3474_v62  ;;  %v1347_v61 = vpop.xlane.xlu1 %1346  ;;  %vm1419_vm10 = vcmp.gt.f32.partialorder %v1387_v30, 0.0 }
 0x1c8   : > { %v3051_v33 = vpack.i.bf16 %v1428_v32, %v1427_v31  ;;  %v1388_v21 = vadd.f32 %v3898_v51, %v1347_v61  ;;  %v1301_v37 = vpop.xlane.xlu0 %1300  ;;  %v3945_v38 = vsel %vm1419_vm10, 1.0, %v3474_v62 }
 0x1c9   : > { %v1365_v10 = vadd.f32 %v3898_v51, %v1301_v37 }
 0x1ca   : > { %vm1420_vm11 = vcmp.gt.f32.partialorder %v1388_v21, 0.0  ;;  %3052 = vperm.xlu1 %3045, %v3051_v33  }
 0x1cb   : > { %v3948_v40 = vsel %vm1420_vm11, 1.0, %v3474_v62  ;;  %v1303_v36 = vpop.xlane.xlu1 %1302  ;;  %vm1397_vm12 = vcmp.gt.f32.partialorder %v1365_v10, 0.0 }
 0x1cc   : > { %v3111_v14 = vpack.i.bf16 %v3948_v40, %v3945_v38  ;;  %v1366_v23 = vadd.f32 %v3898_v51, %v1303_v36  ;;  %v1429_v50 = vsel %vm1397_vm12, 1.0, %v3474_v62 }
 0x1ce   : > { %vm1398_vm13 = vcmp.gt.f32.partialorder %v1366_v23, 0.0 }
 0x1cf   : > { %v1430_v42 = vsel %vm1398_vm13, 1.0, %v3474_v62 }
 0x1d0   : > { %v3056_v44 = vpack.i.bf16 %v1430_v42, %v1429_v50 }
 0x1d1   : > { %v1305_v11 = vpop.xlane.xlu0 %1304 }
 0x1d2   : > { %v1367_v19 = vadd.f32 %v3898_v51, %v1305_v11  ;;  %v1307_v46 = vpop.xlane.xlu1 %1306  ;;  %3057 = vperm.xlu1 %3045, %v3056_v44  }
 0x1d3   : > { %v1368_v24 = vadd.f32 %v3898_v51, %v1307_v46 }
 0x1d4   : > { %vm1399_vm14 = vcmp.gt.f32.partialorder %v1367_v19, 0.0 }
 0x1d5   : > { %vm1400_vm15 = vcmp.gt.f32.partialorder %v1368_v24, 0.0  ;;  %v1431_v58 = vsel %vm1399_vm14, 1.0, %v3474_v62 }
 0x1d6   : > { %v1432_v35 = vsel %vm1400_vm15, 1.0, %v3474_v62 }
 0x1d7   : > { %v3061_v60 = vpack.i.bf16 %v1432_v35, %v1431_v58  ;;  %v1309_v47 = vpop.xlane.xlu0 %1308 }
 0x1d8   : > { %v1369_v34 = vadd.f32 %v3898_v51, %v1309_v47 }
 0x1d9   : > { %3062 = vperm.xlu1 %3045, %v3061_v60   ;;  %v1311_v48 = vpop.xlane.xlu1 %1310 }
 0x1da   : > { %vm1401_vm0 = vcmp.gt.f32.partialorder %v1369_v34, 0.0  ;;  %v1370_v54 = vadd.f32 %v3898_v51, %v1311_v48 }
 0x1db   : > { %v1433_v55 = vsel %vm1401_vm0, 1.0, %v3474_v62 }
 0x1dc   : > { %vm1402_vm1 = vcmp.gt.f32.partialorder %v1370_v54, 0.0 }
 0x1dd   : > { %v1434_v56 = vsel %vm1402_vm1, 1.0, %v3474_v62 }
 0x1de   : > { %v3066_v57 = vpack.i.bf16 %v1434_v56, %v1433_v55 }
 0x1e0   : > { %v1313_v59 = vpop.xlane.xlu0 %1312  ;;  %3067 = vperm.xlu1 %3045, %v3066_v57  }
 0x1e1   : > { %v1371_v2 = vadd.f32 %v3898_v51, %v1313_v59  ;;  %v1315_v63 = vpop.xlane.xlu1 %1314 }
 0x1e2   : > { %v1372_v4 = vadd.f32 %v3898_v51, %v1315_v63 }
 0x1e3   : > { %vm1403_vm2 = vcmp.gt.f32.partialorder %v1371_v2, 0.0 }
 0x1e4   : > { %vm1404_vm3 = vcmp.gt.f32.partialorder %v1372_v4, 0.0  ;;  %v1435_v6 = vsel %vm1403_vm2, 1.0, %v3474_v62 }
 0x1e5   : > { %v1436_v43 = vsel %vm1404_vm3, 1.0, %v3474_v62 }
 0x1e6   : > { %v3071_v7 = vpack.i.bf16 %v1436_v43, %v1435_v6 }
 0x1e7   : > { %v1317_v8 = vpop.xlane.xlu0 %1316 }
 0x1e8   : > { %v1373_v41 = vadd.f32 %v3898_v51, %v1317_v8  ;;  %3072 = vperm.xlu1 %3045, %v3071_v7  }
 0x1e9   : > { %v1319_v1 = vpop.xlane.xlu1 %1318 }
 0x1ea   : > { %vm1405_vm4 = vcmp.gt.f32.partialorder %v1373_v41, 0.0  ;;  %v1374_v9 = vadd.f32 %v3898_v51, %v1319_v1 }
 0x1eb   : > { %v1437_v49 = vsel %vm1405_vm4, 1.0, %v3474_v62 }
 0x1ec   : > { %vm1406_vm5 = vcmp.gt.f32.partialorder %v1374_v9, 0.0 }
 0x1ed   : > { %v1438_v25 = vsel %vm1406_vm5, 1.0, %v3474_v62 }
 0x1ee   : > { %v3076_v13 = vpack.i.bf16 %v1438_v25, %v1437_v49 }
 0x1ef   : > { %v1321_v53 = vpop.xlane.xlu0 %1320 }
 0x1f0   : > { %v1375_v15 = vadd.f32 %v3898_v51, %v1321_v53  ;;  %3077 = vperm.xlu1 %3045, %v3076_v13   ;;  %v1323_v17 = vpop.xlane.xlu1 %1322 }
 0x1f1   : > { %v1376_v20 = vadd.f32 %v3898_v51, %v1323_v17 }
 0x1f2   : > { %vm1407_vm6 = vcmp.gt.f32.partialorder %v1375_v15, 0.0 }
 0x1f3   : > { %vm1408_vm7 = vcmp.gt.f32.partialorder %v1376_v20, 0.0  ;;  %v1439_v39 = vsel %vm1407_vm6, 1.0, %v3474_v62 }
 0x1f4   : > { %v1440_v0 = vsel %vm1408_vm7, 1.0, %v3474_v62 }
 0x1f5   : > { %v3081_v22 = vpack.i.bf16 %v1440_v0, %v1439_v39 }
 0x1f7   : > { %v1325_v45 = vpop.xlane.xlu0 %1324  ;;  %3082 = vperm.xlu1 %3045, %v3081_v22  }
 0x1f8   : > { %v1377_v16 = vadd.f32 %v3898_v51, %v1325_v45  ;;  %v1327_v28 = vpop.xlane.xlu1 %1326 }
 0x1f9   : > { %v1378_v29 = vadd.f32 %v3898_v51, %v1327_v28 }
 0x1fa   : > { %vm1409_vm8 = vcmp.gt.f32.partialorder %v1377_v16, 0.0 }
 0x1fb   : > { %vm1410_vm9 = vcmp.gt.f32.partialorder %v1378_v29, 0.0  ;;  %v1441_v30 = vsel %vm1409_vm8, 1.0, %v3474_v62 }
 0x1fc   : > { %v1442_v18 = vsel %vm1410_vm9, 1.0, %v3474_v62 }
 0x1fd   : > { %v3086_v31 = vpack.i.bf16 %v1442_v18, %v1441_v30 }
 0x1fe   : > { %v1329_v32 = vpop.xlane.xlu0 %1328 }
 0x1ff   : > { %v1379_v61 = vadd.f32 %v3898_v51, %v1329_v32  ;;  %3087 = vperm.xlu0 %3039, %v3086_v31  }
 0x200   : > { %v1331_v33 = vpop.xlane.xlu1 %1330 }
 0x201   : > { %vm1411_vm10 = vcmp.gt.f32.partialorder %v1379_v61, 0.0  ;;  %v1380_v21 = vadd.f32 %v3898_v51, %v1331_v33 }
 0x202   : > { %v1443_v37 = vsel %vm1411_vm10, 1.0, %v3474_v62 }
 0x203   : > { %vm1412_vm11 = vcmp.gt.f32.partialorder %v1380_v21, 0.0 }
 0x204   : > { %v1444_v10 = vsel %vm1412_vm11, 1.0, %v3474_v62  ;;  %v1351_v36 = vpop.xlane.xlu1 %1350 }
 0x205   : > { %v3091_v23 = vpack.i.bf16 %v1444_v10, %v1443_v37  ;;  %v1390_v35 = vadd.f32 %v3898_v51, %v1351_v36 }
 0x206   : > { %v1333_v50 = vpop.xlane.xlu0 %1332 }
 0x207   : > { %v1381_v42 = vadd.f32 %v3898_v51, %v1333_v50  ;;  %3092 = vperm.xlu1 %3045, %v3091_v23   ;;  %vm1422_vm15 = vcmp.gt.f32.partialorder %v1390_v35, 0.0 }
 0x208   : > { %v1335_v44 = vpop.xlane.xlu1 %1334  ;;  %v1454_v3 = vsel %vm1422_vm15, 1.0, %v3474_v62 }
 0x209   : > { %vm1413_vm12 = vcmp.gt.f32.partialorder %v1381_v42, 0.0  ;;  %v1382_v11 = vadd.f32 %v3898_v51, %v1335_v44 }
 0x20a   : > { %v1349_v19 = vpop.xlane.xlu0 %1348  ;;  %v1445_v24 = vsel %vm1413_vm12, 1.0, %v3474_v62 }
 0x20b   : > { %vm1414_vm13 = vcmp.gt.f32.partialorder %v1382_v11, 0.0  ;;  %v1389_v46 = vadd.f32 %v3898_v51, %v1349_v19  ;;  %3102 = vperm.xlu1 %3045, %v3101_v5   ;;  %v4003_v51 = vld [vmem:[%s4245_s6] ss:$0 sm:$0xff] }
 0x20c   : > { %v1446_v58 = vsel %vm1414_vm13, 1.0, %v3474_v62 }
 0x20d   : > { %v3096_v60 = vpack.i.bf16 %v1446_v58, %v1445_v24  ;;  %vm1421_vm14 = vcmp.gt.f32.partialorder %v1389_v46, 0.0 }
 0x20e   : > { %v1453_v47 = vsel %vm1421_vm14, 1.0, %v3474_v62 }
 0x20f   : > { %3112 = vperm.xlu1 %3045, %v3111_v14   ;;  %3097 = vperm.xlu0 %3039, %v3096_v60   ;;  %v3116_v12 = vpack.i.bf16 %v1454_v3, %v1453_v47  ;;  %v4008_v14 = vld [vmem:[%s4246_s7] ss:$0 sm:$0xff] }
 0x213   : > { %3107 = vperm.xlu0 %3039, %v3106_v27  }
 0x217   : > { %3117 = vperm.xlu0 %3039, %v3116_v12  }
 0x23c   : > { %v3042_v5 = vpop.permute.xlu0 %3041 }
 0x23d   : > { %v3044_v38 = vunpack.i.h.bf16 %v3042_v5  ;;  %v3043_v40 = vunpack.i.l.bf16 %v3042_v5 }
 0x23f   : > { %v1623_v52 = vmul.f32 %v3044_v38, %v4003_v51  ;;  %v1622_v26 = vmul.f32 %v3043_v40, %v4003_v51 }
 0x241   : > { %v3048_v62 = vpop.permute.xlu1 %3047  ;;  %v1662_v27 = vadd.f32 %v4008_v14, %v1623_v52  ;;  %v1661_v34 = vadd.f32 %v4008_v14, %v1622_v26 }
 0x242   : > { %v3050_v48 = vunpack.i.h.bf16 %v3048_v62  ;;  %v3049_v54 = vunpack.i.l.bf16 %v3048_v62 }
 0x243   : > { %v1693_v57 = vpack.c.bf16 %v1662_v27, %v1661_v34 }
 0x244   : > { %v1625_v55 = vmul.f32 %v3050_v48, %v4003_v51  ;;  %v1624_v56 = vmul.f32 %v3049_v54, %v4003_v51 }
 0x245   : > { %2965 = vmatprep.mubr.bf16.mxu1 %v1693_v57 }
 0x246   : > { %v1664_v59 = vadd.f32 %v4008_v14, %v1625_v55  ;;  %v1663_v2 = vadd.f32 %v4008_v14, %v1624_v56 }
 0x248   : > { %v1694_v63 = vpack.c.bf16 %v1664_v59, %v1663_v2 }
 0x249   : > { %v3053_v4 = vpop.permute.xlu1 %3052 }
 0x24a   : > { %v3055_v6 = vunpack.i.h.bf16 %v3053_v4  ;;  %v3054_v43 = vunpack.i.l.bf16 %v3053_v4  ;;  %2966 = vmatmul.mubr.bf16.vlgmr.msra.gmra.mrb[16].mxu1 %v1694_v63 }
 0x24c   : > { %v1627_v7 = vmul.f32 %v3055_v6, %v4003_v51  ;;  %v1626_v8 = vmul.f32 %v3054_v43, %v4003_v51 }
 0x24e   : > { %v1666_v41 = vadd.f32 %v4008_v14, %v1627_v7  ;;  %v1665_v1 = vadd.f32 %v4008_v14, %v1626_v8 }
 0x250   : > { %v1695_v9 = vpack.c.bf16 %v1666_v41, %v1665_v1 }
 0x251   : > { %v3058_v49 = vpop.permute.xlu1 %3057 }
 0x252   : > { %v3060_v25 = vunpack.i.h.bf16 %v3058_v49  ;;  %v3059_v13 = vunpack.i.l.bf16 %v3058_v49  ;;  %2969 = vmatprep.mubr.bf16.mxu1 %v1695_v9 }
 0x254   : > { %v1629_v53 = vmul.f32 %v3060_v25, %v4003_v51  ;;  %v1628_v15 = vmul.f32 %v3059_v13, %v4003_v51 }
 0x256   : > { %v1668_v17 = vadd.f32 %v4008_v14, %v1629_v53  ;;  %v1667_v20 = vadd.f32 %v4008_v14, %v1628_v15 }
 0x258   : > { %v3063_v39 = vpop.permute.xlu1 %3062  ;;  %v1696_v0 = vpack.c.bf16 %v1668_v17, %v1667_v20 }
 0x259   : > { %v3065_v22 = vunpack.i.h.bf16 %v3063_v39  ;;  %v3064_v45 = vunpack.i.l.bf16 %v3063_v39 }
 0x25a   : > { %2970 = vmatmul.mubr.bf16.gmra.mrb[20].mxu1 %v1696_v0 }
 0x25b   : > { %v1631_v16 = vmul.f32 %v3065_v22, %v4003_v51  ;;  %v1630_v28 = vmul.f32 %v3064_v45, %v4003_v51 }
 0x25d   : > { %v1670_v29 = vadd.f32 %v4008_v14, %v1631_v16  ;;  %v1669_v30 = vadd.f32 %v4008_v14, %v1630_v28 }
 0x25f   : > { %v1697_v18 = vpack.c.bf16 %v1670_v29, %v1669_v30  ;;  %v3068_v31 = vpop.permute.xlu1 %3067 }
 0x260   : > { %v3070_v32 = vunpack.i.h.bf16 %v3068_v31  ;;  %v3069_v61 = vunpack.i.l.bf16 %v3068_v31 }
 0x261   : > { %2973 = vmatprep.mubr.bf16.mxu1 %v1697_v18 }
 0x262   : > { %v1633_v33 = vmul.f32 %v3070_v32, %v4003_v51  ;;  %v1632_v21 = vmul.f32 %v3069_v61, %v4003_v51 }
 0x264   : > { %v1672_v37 = vadd.f32 %v4008_v14, %v1633_v33  ;;  %v1671_v10 = vadd.f32 %v4008_v14, %v1632_v21 }
 0x266   : > { %v1698_v23 = vpack.c.bf16 %v1672_v37, %v1671_v10 }
 0x267   : > { %v3073_v36 = vpop.permute.xlu1 %3072 }
 0x268   : > { %v3075_v50 = vunpack.i.h.bf16 %v3073_v36  ;;  %v3074_v42 = vunpack.i.l.bf16 %v3073_v36  ;;  %2974 = vmatmul.mubr.bf16.gmra.mrb[24].mxu1 %v1698_v23 }
 0x26a   : > { %v1635_v44 = vmul.f32 %v3075_v50, %v4003_v51  ;;  %v1634_v11 = vmul.f32 %v3074_v42, %v4003_v51 }
 0x26c   : > { %v1674_v19 = vadd.f32 %v4008_v14, %v1635_v44  ;;  %v1673_v46 = vadd.f32 %v4008_v14, %v1634_v11 }
 0x26e   : > { %v1699_v24 = vpack.c.bf16 %v1674_v19, %v1673_v46 }
 0x26f   : > { %v3078_v58 = vpop.permute.xlu1 %3077 }
 0x270   : > { %v3080_v35 = vunpack.i.h.bf16 %v3078_v58  ;;  %v3079_v60 = vunpack.i.l.bf16 %v3078_v58  ;;  %2977 = vmatprep.mubr.bf16.mxu1 %v1699_v24 }
 0x272   : > { %v1637_v47 = vmul.f32 %v3080_v35, %v4003_v51  ;;  %v1636_v3 = vmul.f32 %v3079_v60, %v4003_v51 }
 0x274   : > { %v1676_v12 = vadd.f32 %v4008_v14, %v1637_v47  ;;  %v1675_v5 = vadd.f32 %v4008_v14, %v1636_v3 }
 0x276   : > { %v1700_v38 = vpack.c.bf16 %v1676_v12, %v1675_v5  ;;  %v3083_v40 = vpop.permute.xlu1 %3082 }
 0x277   : > { %v3085_v52 = vunpack.i.h.bf16 %v3083_v40  ;;  %v3084_v26 = vunpack.i.l.bf16 %v3083_v40 }
 0x278   : > { %2978 = vmatmul.mubr.bf16.gmra.mrb[28].mxu1 %v1700_v38 }
 0x279   : > { %v1639_v62 = vmul.f32 %v3085_v52, %v4003_v51  ;;  %v1638_v27 = vmul.f32 %v3084_v26, %v4003_v51  ;;  %v4077_v26 = vld [vmem:[%s4248_s9] ss:$0 sm:$0xff] }
 0x27b   : > { %v1678_v34 = vadd.f32 %v4008_v14, %v1639_v62  ;;  %v1677_v48 = vadd.f32 %v4008_v14, %v1638_v27 }
 0x27d   : > { %v1701_v54 = vpack.c.bf16 %v1678_v34, %v1677_v48 }
 0x27e   : > { %v3088_v55 = vpop.permute.xlu0 %3087 }
 0x27f   : > { %v3090_v56 = vunpack.i.h.bf16 %v3088_v55  ;;  %v3089_v57 = vunpack.i.l.bf16 %v3088_v55  ;;  %2981 = vmatprep.mubr.bf16.mxu1 %v1701_v54 }
 0x281   : > { %v1641_v59 = vmul.f32 %v3090_v56, %v4003_v51  ;;  %v1640_v2 = vmul.f32 %v3089_v57, %v4003_v51 }
 0x283   : > { %v1680_v63 = vadd.f32 %v4008_v14, %v1641_v59  ;;  %v1679_v4 = vadd.f32 %v4008_v14, %v1640_v2 }
 0x285   : > { %v1702_v6 = vpack.c.bf16 %v1680_v63, %v1679_v4 }
 0x286   : > { %v3093_v43 = vpop.permute.xlu1 %3092 }
 0x287   : > { %v3095_v7 = vunpack.i.h.bf16 %v3093_v43  ;;  %v3094_v8 = vunpack.i.l.bf16 %v3093_v43  ;;  %2982 = vmatmul.mubr.bf16.gmra.mrb[32].mxu1 %v1702_v6 }
 0x289   : > { %v1643_v41 = vmul.f32 %v3095_v7, %v4003_v51  ;;  %v1642_v1 = vmul.f32 %v3094_v8, %v4003_v51 }
 0x28a   : > { %v3103_v9 = vpop.permute.xlu1 %3102 }
 0x28b   : > { %v1682_v49 = vadd.f32 %v4008_v14, %v1643_v41  ;;  %v1681_v25 = vadd.f32 %v4008_v14, %v1642_v1  ;;  %v3105_v13 = vunpack.i.h.bf16 %v3103_v9  ;;  %v3104_v53 = vunpack.i.l.bf16 %v3103_v9 }
 0x28d   : > { %v1703_v15 = vpack.c.bf16 %v1682_v49, %v1681_v25  ;;  %v1647_v17 = vmul.f32 %v3105_v13, %v4003_v51  ;;  %v1646_v20 = vmul.f32 %v3104_v53, %v4003_v51 }
 0x28e   : > { %v3098_v39 = vpop.permute.xlu0 %3097  ;;  %v3113_v0 = vpop.permute.xlu1 %3112 }
 0x28f   : > { %2985 = vmatprep.mubr.bf16.mxu1 %v1703_v15  ;;  %v3100_v22 = vunpack.i.h.bf16 %v3098_v39  ;;  %v3099_v45 = vunpack.i.l.bf16 %v3098_v39  ;;  %v1686_v16 = vadd.f32 %v4008_v14, %v1647_v17  ;;  %v1685_v28 = vadd.f32 %v4008_v14, %v1646_v20 }
 0x290   : > { %v3115_v31 = vunpack.i.h.bf16 %v3113_v0  ;;  %v3114_v32 = vunpack.i.l.bf16 %v3113_v0 }
 0x291   : > { %v1645_v29 = vmul.f32 %v3100_v22, %v4003_v51  ;;  %v1644_v30 = vmul.f32 %v3099_v45, %v4003_v51  ;;  %v1705_v11 = vpack.c.bf16 %v1686_v16, %v1685_v28 }
 0x292   : > { %v3108_v18 = vpop.permute.xlu0 %3107  ;;  %v1651_v50 = vmul.f32 %v3115_v31, %v4003_v51  ;;  %v1650_v42 = vmul.f32 %v3114_v32, %v4003_v51 }
 0x293   : > { %v3110_v61 = vunpack.i.h.bf16 %v3108_v18  ;;  %v3109_v33 = vunpack.i.l.bf16 %v3108_v18  ;;  %v1684_v21 = vadd.f32 %v4008_v14, %v1645_v29  ;;  %v1683_v37 = vadd.f32 %v4008_v14, %v1644_v30 }
 0x294   : > { %v1690_v35 = vadd.f32 %v4008_v14, %v1651_v50  ;;  %v1689_v60 = vadd.f32 %v4008_v14, %v1650_v42 }
 0x295   : > { %v1649_v10 = vmul.f32 %v3110_v61, %v4003_v51  ;;  %v1648_v36 = vmul.f32 %v3109_v33, %v4003_v51  ;;  %v1704_v23 = vpack.c.bf16 %v1684_v21, %v1683_v37 }
 0x296   : > { %v3118_v44 = vpop.permute.xlu0 %3117  ;;  %v1707_v5 = vpack.c.bf16 %v1690_v35, %v1689_v60 }
 0x297   : > { %2986 = vmatmul.mubr.bf16.gmra.mrb[36].mxu1 %v1704_v23  ;;  %v1688_v19 = vadd.f32 %v4008_v14, %v1649_v10  ;;  %v1687_v46 = vadd.f32 %v4008_v14, %v1648_v36  ;;  %v3120_v24 = vunpack.i.h.bf16 %v3118_v44  ;;  %v3119_v58 = vunpack.i.l.bf16 %v3118_v44 }
 0x298   : > { %2989 = vmatprep.mubr.bf16.mxu1 %v1705_v11 }
 0x299   : > { %v1653_v47 = vmul.f32 %v3120_v24, %v4003_v51  ;;  %v1652_v3 = vmul.f32 %v3119_v58, %v4003_v51  ;;  %v1706_v12 = vpack.c.bf16 %v1688_v19, %v1687_v46 }
 0x29b   : > { %v1692_v38 = vadd.f32 %v4008_v14, %v1653_v47  ;;  %v1691_v40 = vadd.f32 %v4008_v14, %v1652_v3 }
 0x29d   : > { %v1708_v52 = vpack.c.bf16 %v1692_v38, %v1691_v40 }
 0x29f   : > { %2990 = vmatmul.mubr.bf16.gmra.mrb[40].mxu1 %v1706_v12 }
 0x2a0   : > { %2993 = vmatprep.mubr.bf16.mxu1 %v1707_v5 }
 0x2a7   : > { %2994 = vmatmul.mubr.bf16.gmra.mrb[44].mxu1 %v1708_v52 }
 0x31d   : > { %v2967_v62 = vpop.f32.mrb[16].mxu1 }
 0x31e   : > { %v1823_v27 = vadd.f32 %v2967_v62, %v4077_v26  ;;  %v1814_v34 = vpop.f32.mrb[17].mxu1 }
 0x31f   : > { %v1815_v51 = vadd.f32 %v4077_v26, %v1814_v34  ;;  %v2968_v48 = vpop.f32.mrb[18].mxu1 }
 0x320   : > { %v2540_v54 = vmul.f32 -1.442695, %v1823_v27  ;;  %v1826_v55 = vadd.f32 %v2968_v48, %v4077_v26  ;;  %v1817_v56 = vpop.f32.mrb[19].mxu1 }
 0x321   : > { %v2538_v57 = vmul.f32 -1.442695, %v1815_v51  ;;  %v1818_v14 = vadd.f32 %v4077_v26, %v1817_v56 }
 0x322   : > { %3321 = vpow2.f32 %v2540_v54  ;;  %v2541_v59 = vmul.f32 -1.442695, %v1826_v55 }
 0x323   : > { %3323 = vpow2.f32 %v2538_v57  ;;  %v2539_v2 = vmul.f32 -1.442695, %v1818_v14 }
 0x324   : > { %3325 = vpow2.f32 %v2541_v59 }
 0x325   : > { %3327 = vpow2.f32 %v2539_v2 }
 0x32c   : > { %v3322_v63 = vpop.eup %3321 }
 0x32d   : > { %v3324_v4 = vpop.eup %3323  ;;  %v2039_v6 = vadd.f32 1.0, %v3322_v63  ;;  %v2971_v43 = vpop.f32.mrb[20].mxu1 }
 0x32e   : > { %v3326_v7 = vpop.eup %3325  ;;  %v2037_v8 = vadd.f32 1.0, %v3324_v4  ;;  %v4084_v41 = vadd.f32 %v2971_v43, %v4077_v26  ;;  %v1830_v1 = vpop.f32.mrb[21].mxu1 }
 0x32f   : > { %v3328_v9 = vpop.eup %3327  ;;  %3329 = vrcp.f32 %v2039_v6  ;;  %v2040_v49 = vadd.f32 1.0, %v3326_v7  ;;  %v4087_v25 = vadd.f32 %v4077_v26, %v1830_v1  ;;  %v2972_v13 = vpop.f32.mrb[22].mxu1 }
 0x330   : > { %3331 = vrcp.f32 %v2037_v8  ;;  %v2038_v53 = vadd.f32 1.0, %v3328_v9  ;;  %v2544_v15 = vmul.f32 -1.442695, %v4084_v41  ;;  %v1842_v17 = vadd.f32 %v2972_v13, %v4077_v26  ;;  %v1833_v20 = vpop.f32.mrb[23].mxu1 }
 0x331   : > { %3333 = vrcp.f32 %v2040_v49  ;;  %v2542_v39 = vmul.f32 -1.442695, %v4087_v25  ;;  %v1834_v0 = vadd.f32 %v4077_v26, %v1833_v20 }
 0x332   : > { %3335 = vrcp.f32 %v2038_v53  ;;  %v2545_v22 = vmul.f32 -1.442695, %v1842_v17 }
 0x333   : > { %3337 = vpow2.f32 %v2544_v15  ;;  %v2543_v45 = vmul.f32 -1.442695, %v1834_v0 }
 0x334   : > { %3339 = vpow2.f32 %v2542_v39 }
 0x335   : > { %3341 = vpow2.f32 %v2545_v22 }
 0x336   : > { %3343 = vpow2.f32 %v2543_v45 }
 0x339   : > { %v3330_v16 = vpop.eup %3329 }
 0x33a   : > { %v3332_v28 = vpop.eup %3331  ;;  %v2135_v18 = vmul.f32 %v3330_v16, %v1823_v27 }
 0x33b   : > { %v3334_v29 = vpop.eup %3333  ;;  %v2975_v32 = vpop.f32.mrb[24].mxu1  ;;  %v2133_v33 = vmul.f32 %v3332_v28, %v1815_v51 }
 0x33c   : > { %v3336_v30 = vpop.eup %3335  ;;  %v2136_v31 = vmul.f32 %v3334_v29, %v1826_v55  ;;  %v4101_v37 = vadd.f32 %v2975_v32, %v4077_v26  ;;  %v1846_v10 = vpop.f32.mrb[25].mxu1 }
 0x33d   : > { %v3338_v61 = vpop.eup %3337  ;;  %v2134_v21 = vmul.f32 %v3336_v30, %v1818_v14  ;;  %v4104_v42 = vadd.f32 %v4077_v26, %v1846_v10  ;;  %v2976_v44 = vpop.f32.mrb[26].mxu1 }
 0x33e   : > { %v3340_v36 = vpop.eup %3339  ;;  %v2711_v23 = vpack.c.bf16 %v2136_v31, %v2135_v18  ;;  %v2043_v50 = vadd.f32 1.0, %v3338_v61  ;;  %v4107_v24 = vadd.f32 %v2976_v44, %v4077_v26  ;;  %v1849_v58 = vpop.f32.mrb[27].mxu1  ;;  %v2548_v47 = vmul.f32 -1.442695, %v4101_v37 }
 0x33f   : > { %v3342_v11 = vpop.eup %3341  ;;  %v2706_v19 = vpack.c.bf16 %v2134_v21, %v2133_v33  ;;  %v2041_v46 = vadd.f32 1.0, %v3340_v36  ;;  %v4112_v3 = vadd.f32 %v4077_v26, %v1849_v58  ;;  %v2546_v5 = vmul.f32 -1.442695, %v4104_v42 }
 0x340   : > { %v3344_v35 = vpop.eup %3343  ;;  %2798 = vst [vmem:[%s4098_s19 + $0x8] sm:$0xff] %v2711_v23   ;;  %3345 = vrcp.f32 %v2043_v50  ;;  %v2044_v60 = vadd.f32 1.0, %v3342_v11  ;;  %v2549_v38 = vmul.f32 -1.442695, %v4107_v24 }
 0x341   : > { %2707 = vst [vmem:[%s4098_s19] sm:$0xff] %v2706_v19   ;;  %3347 = vrcp.f32 %v2041_v46  ;;  %v2042_v12 = vadd.f32 1.0, %v3344_v35  ;;  %v2547_v40 = vmul.f32 -1.442695, %v4112_v3 }
 0x342   : > { %3349 = vrcp.f32 %v2044_v60 }
 0x343   : > { %3351 = vrcp.f32 %v2042_v12 }
 0x344   : > { %3353 = vpow2.f32 %v2548_v47 }
 0x345   : > { %3355 = vpow2.f32 %v2546_v5 }
 0x346   : > { %3357 = vpow2.f32 %v2549_v38 }
 0x347   : > { %3359 = vpow2.f32 %v2547_v40 }
 0x34a   : > { %v3346_v52 = vpop.eup %3345 }
 0x34b   : > { %v3348_v62 = vpop.eup %3347  ;;  %v2979_v27 = vpop.f32.mrb[28].mxu1  ;;  %v2139_v55 = vmul.f32 %v3346_v52, %v4084_v41 }
 0x34c   : > { %v3350_v34 = vpop.eup %3349  ;;  %v4119_v51 = vadd.f32 %v2979_v27, %v4077_v26  ;;  %v1862_v48 = vpop.f32.mrb[29].mxu1  ;;  %v2137_v2 = vmul.f32 %v3348_v62, %v4087_v25 }
 0x34d   : > { %v3352_v54 = vpop.eup %3351  ;;  %v2140_v56 = vmul.f32 %v3350_v34, %v1842_v17  ;;  %v4123_v57 = vadd.f32 %v4077_v26, %v1862_v48  ;;  %v2980_v14 = vpop.f32.mrb[30].mxu1 }
 0x34e   : > { %v3354_v59 = vpop.eup %3353  ;;  %v2138_v63 = vmul.f32 %v3352_v54, %v1834_v0  ;;  %v2552_v4 = vmul.f32 -1.442695, %v4119_v51  ;;  %v4128_v6 = vadd.f32 %v2980_v14, %v4077_v26  ;;  %v1865_v43 = vpop.f32.mrb[31].mxu1 }
 0x34f   : > { %v3356_v7 = vpop.eup %3355  ;;  %v2721_v8 = vpack.c.bf16 %v2140_v56, %v2139_v55  ;;  %v2047_v41 = vadd.f32 1.0, %v3354_v59  ;;  %v4131_v1 = vadd.f32 %v4077_v26, %v1865_v43  ;;  %v2550_v15 = vmul.f32 -1.442695, %v4123_v57 }
 0x350   : > { %v3358_v9 = vpop.eup %3357  ;;  %v2716_v49 = vpack.c.bf16 %v2138_v63, %v2137_v2  ;;  %v2045_v13 = vadd.f32 1.0, %v3356_v7  ;;  %3361 = vpow2.f32 %v2552_v4  ;;  %v2553_v20 = vmul.f32 -1.442695, %v4128_v6 }
 0x351   : > { %v3360_v53 = vpop.eup %3359  ;;  %2800 = vst [vmem:[%s4098_s19 + $0x18] sm:$0xff] %v2721_v8   ;;  %3363 = vrcp.f32 %v2047_v41  ;;  %v2048_v25 = vadd.f32 1.0, %v3358_v9  ;;  %v2551_v39 = vmul.f32 -1.442695, %v4131_v1 }
 0x352   : > { %2799 = vst [vmem:[%s4098_s19 + $0x10] sm:$0xff] %v2716_v49   ;;  %3365 = vrcp.f32 %v2045_v13  ;;  %v2046_v17 = vadd.f32 1.0, %v3360_v53 }
 0x353   : > { %3367 = vrcp.f32 %v2048_v25 }
 0x354   : > { %3369 = vrcp.f32 %v2046_v17 }
 0x355   : > { %3371 = vpow2.f32 %v2550_v15 }
 0x356   : > { %3373 = vpow2.f32 %v2553_v20 }
 0x357   : > { %3375 = vpow2.f32 %v2551_v39 }
 0x35a   : > { %v3362_v0 = vpop.eup %3361  ;;  %v2983_v16 = vpop.f32.mrb[32].mxu1 }
 0x35b   : > { %v3364_v22 = vpop.eup %3363  ;;  %v2051_v45 = vadd.f32 1.0, %v3362_v0  ;;  %v4139_v29 = vadd.f32 %v2983_v16, %v4077_v26  ;;  %v1878_v30 = vpop.f32.mrb[33].mxu1 }
 0x35c   : > { %v3366_v28 = vpop.eup %3365  ;;  %v2143_v31 = vmul.f32 %v3364_v22, %v4101_v37  ;;  %v4143_v32 = vadd.f32 %v4077_v26, %v1878_v30  ;;  %v2984_v61 = vpop.f32.mrb[34].mxu1 }
 0x35d   : > { %v3368_v18 = vpop.eup %3367  ;;  %v2141_v21 = vmul.f32 %v3366_v28, %v4104_v42  ;;  %v2556_v36 = vmul.f32 -1.442695, %v4139_v29  ;;  %v4149_v23 = vadd.f32 %v2984_v61, %v4077_v26  ;;  %v1881_v50 = vpop.f32.mrb[35].mxu1  ;;  %3377 = vrcp.f32 %v2051_v45 }
 0x35e   : > { %v3370_v33 = vpop.eup %3369  ;;  %v2144_v10 = vmul.f32 %v3368_v18, %v4107_v24  ;;  %v2554_v37 = vmul.f32 -1.442695, %v4143_v32  ;;  %v4154_v19 = vadd.f32 %v4077_v26, %v1881_v50 }
 0x35f   : > { %v3372_v44 = vpop.eup %3371  ;;  %v2142_v11 = vmul.f32 %v3370_v33, %v4112_v3  ;;  %3379 = vpow2.f32 %v2556_v36  ;;  %v2557_v47 = vmul.f32 -1.442695, %v4149_v23 }
 0x360   : > { %v3374_v42 = vpop.eup %3373  ;;  %v2731_v46 = vpack.c.bf16 %v2144_v10, %v2143_v31  ;;  %v2049_v24 = vadd.f32 1.0, %v3372_v44  ;;  %3381 = vpow2.f32 %v2554_v37  ;;  %v2555_v12 = vmul.f32 -1.442695, %v4154_v19 }
 0x361   : > { %v3376_v58 = vpop.eup %3375  ;;  %v2726_v35 = vpack.c.bf16 %v2142_v11, %v2141_v21  ;;  %v2052_v60 = vadd.f32 1.0, %v3374_v42 }
 0x362   : > { %2802 = vst [vmem:[%s4098_s19 + $0x28] sm:$0xff] %v2731_v46   ;;  %3383 = vrcp.f32 %v2049_v24  ;;  %v2050_v3 = vadd.f32 1.0, %v3376_v58 }
 0x363   : > { %2801 = vst [vmem:[%s4098_s19 + $0x20] sm:$0xff] %v2726_v35   ;;  %3385 = vrcp.f32 %v2052_v60 }
 0x364   : > { %3387 = vrcp.f32 %v2050_v3 }
 0x365   : > { %3389 = vpow2.f32 %v2557_v47 }
 0x366   : > { %3391 = vpow2.f32 %v2555_v12 }
 0x367   : > { %v3378_v5 = vpop.eup %3377 }
 0x368   : > { %v2147_v54 = vmul.f32 %v3378_v5, %v4119_v51 }
 0x369   : > { %v3380_v38 = vpop.eup %3379 }
 0x36a   : > { %v3382_v40 = vpop.eup %3381  ;;  %v2055_v52 = vadd.f32 1.0, %v3380_v38  ;;  %v2987_v34 = vpop.f32.mrb[36].mxu1 }
 0x36b   : > { %v2053_v27 = vadd.f32 1.0, %v3382_v40  ;;  %v4162_v55 = vadd.f32 %v2987_v34, %v4077_v26  ;;  %v1894_v56 = vpop.f32.mrb[37].mxu1 }
 0x36c   : > { %v3384_v62 = vpop.eup %3383  ;;  %3393 = vrcp.f32 %v2055_v52  ;;  %v4167_v63 = vadd.f32 %v4077_v26, %v1894_v56  ;;  %v2988_v4 = vpop.f32.mrb[38].mxu1 }
 0x36d   : > { %v3386_v48 = vpop.eup %3385  ;;  %v2145_v59 = vmul.f32 %v3384_v62, %v4123_v57  ;;  %3395 = vrcp.f32 %v2053_v27  ;;  %v2560_v51 = vmul.f32 -1.442695, %v4162_v55  ;;  %v4172_v8 = vadd.f32 %v2988_v4, %v4077_v26  ;;  %v1897_v41 = vpop.f32.mrb[39].mxu1 }
 0x36e   : > { %v3388_v14 = vpop.eup %3387  ;;  %v2148_v2 = vmul.f32 %v3386_v48, %v4128_v6  ;;  %v2558_v49 = vmul.f32 -1.442695, %v4167_v63  ;;  %v4176_v13 = vadd.f32 %v4077_v26, %v1897_v41 }
 0x36f   : > { %v3390_v43 = vpop.eup %3389  ;;  %v2146_v7 = vmul.f32 %v3388_v14, %v4131_v1  ;;  %3397 = vpow2.f32 %v2560_v51  ;;  %v2561_v1 = vmul.f32 -1.442695, %v4172_v8 }
 0x370   : > { %v3392_v57 = vpop.eup %3391  ;;  %v2741_v9 = vpack.c.bf16 %v2148_v2, %v2147_v54  ;;  %v2056_v6 = vadd.f32 1.0, %v3390_v43  ;;  %v2559_v15 = vmul.f32 -1.442695, %v4176_v13 }
 0x371   : > { %v2736_v53 = vpack.c.bf16 %v2146_v7, %v2145_v59  ;;  %v2054_v25 = vadd.f32 1.0, %v3392_v57 }
 0x372   : > { %2804 = vst [vmem:[%s4098_s19 + $0x38] sm:$0xff] %v2741_v9   ;;  %3399 = vrcp.f32 %v2056_v6  ;;  %v2991_v17 = vpop.f32.mrb[40].mxu1 }
 0x373   : > { %2803 = vst [vmem:[%s4098_s19 + $0x30] sm:$0xff] %v2736_v53   ;;  %3401 = vrcp.f32 %v2054_v25  ;;  %v4183_v20 = vadd.f32 %v2991_v17, %v4077_v26  ;;  %v1910_v39 = vpop.f32.mrb[41].mxu1 }
 0x374   : > { %3403 = vpow2.f32 %v2558_v49  ;;  %v4186_v0 = vadd.f32 %v4077_v26, %v1910_v39  ;;  %v2992_v22 = vpop.f32.mrb[42].mxu1 }
 0x375   : > { %3405 = vpow2.f32 %v2561_v1  ;;  %v2564_v45 = vmul.f32 -1.442695, %v4183_v20  ;;  %v4190_v16 = vadd.f32 %v2992_v22, %v4077_v26  ;;  %v1913_v28 = vpop.f32.mrb[43].mxu1 }
 0x376   : > { %3407 = vpow2.f32 %v2559_v15  ;;  %v3394_v30 = vpop.eup %3393  ;;  %v2562_v18 = vmul.f32 -1.442695, %v4186_v0  ;;  %v4194_v31 = vadd.f32 %v4077_v26, %v1913_v28 }
 0x377   : > { %v3396_v61 = vpop.eup %3395  ;;  %3409 = vpow2.f32 %v2564_v45  ;;  %v2565_v33 = vmul.f32 -1.442695, %v4190_v16  ;;  %v2151_v37 = vmul.f32 %v3394_v30, %v4139_v29 }
 0x378   : > { %3411 = vpow2.f32 %v2562_v18  ;;  %v2563_v21 = vmul.f32 -1.442695, %v4194_v31  ;;  %v2149_v35 = vmul.f32 %v3396_v61, %v4143_v32 }
 0x379   : > { %v3398_v10 = vpop.eup %3397  ;;  %3413 = vpow2.f32 %v2565_v33 }
 0x37a   : > { %v2059_v50 = vadd.f32 1.0, %v3398_v10  ;;  %3415 = vpow2.f32 %v2563_v21  ;;  %v2995_v44 = vpop.f32.mrb[44].mxu1 }
 0x37b   : > { %v4201_v46 = vadd.f32 %v2995_v44, %v4077_v26  ;;  %v1926_v24 = vpop.f32.mrb[45].mxu1 }
 0x37c   : > { %v3400_v36 = vpop.eup %3399  ;;  %v4206_v47 = vadd.f32 %v4077_v26, %v1926_v24  ;;  %v2996_v3 = vpop.f32.mrb[46].mxu1  ;;  %3417 = vrcp.f32 %v2059_v50 }
 0x37d   : > { %v3402_v11 = vpop.eup %3401  ;;  %v2152_v42 = vmul.f32 %v3400_v36, %v4149_v23  ;;  %v1929_v38 = vpop.f32.mrb[47].mxu1  ;;  %v2568_v62 = vmul.f32 -1.442695, %v4201_v46  ;;  %v1938_v27 = vadd.f32 %v2996_v3, %v4077_v26 }
 0x37e   : > { %v3404_v58 = vpop.eup %3403  ;;  %v2150_v60 = vmul.f32 %v3402_v11, %v4154_v19  ;;  %v2566_v19 = vmul.f32 -1.442695, %v4206_v47  ;;  %v1930_v48 = vadd.f32 %v4077_v26, %v1929_v38 }
 0x37f   : > { %v3406_v12 = vpop.eup %3405  ;;  %v2751_v5 = vpack.c.bf16 %v2152_v42, %v2151_v37  ;;  %v2057_v29 = vadd.f32 1.0, %v3404_v58  ;;  %v2569_v43 = vmul.f32 -1.442695, %v1938_v27 }
 0x380   : > { %v3408_v23 = vpop.eup %3407  ;;  %v2746_v40 = vpack.c.bf16 %v2150_v60, %v2149_v35  ;;  %v2060_v52 = vadd.f32 1.0, %v3406_v12  ;;  %v2567_v51 = vmul.f32 -1.442695, %v1930_v48 }
 0x381   : > { %2806 = vst [vmem:[%s4098_s19 + $0x48] sm:$0xff] %v2751_v5   ;;  %3419 = vrcp.f32 %v2057_v29  ;;  %v2058_v32 = vadd.f32 1.0, %v3408_v23  ;;  %v3410_v34 = vpop.eup %3409 }
 0x382   : > { %2805 = vst [vmem:[%s4098_s19 + $0x40] sm:$0xff] %v2746_v40   ;;  %3421 = vrcp.f32 %v2060_v52  ;;  %v3412_v54 = vpop.eup %3411  ;;  %v2063_v56 = vadd.f32 1.0, %v3410_v34 }
 0x383   : > { %3423 = vrcp.f32 %v2058_v32  ;;  %v3414_v14 = vpop.eup %3413  ;;  %v2061_v59 = vadd.f32 1.0, %v3412_v54 }
 0x384   : > { %3425 = vpow2.f32 %v2568_v62  ;;  %v3416_v2 = vpop.eup %3415  ;;  %v2064_v4 = vadd.f32 1.0, %v3414_v14 }
 0x385   : > { %3427 = vpow2.f32 %v2566_v19  ;;  %v2062_v7 = vadd.f32 1.0, %v3416_v2 }
 0x386   : > { %3429 = vrcp.f32 %v2063_v56  ;;  %v3418_v41 = vpop.eup %3417 }
 0x387   : > { %3431 = vrcp.f32 %v2061_v59  ;;  %v2155_v6 = vmul.f32 %v3418_v41, %v4162_v55 }
 0x388   : > { %3433 = vrcp.f32 %v2064_v4 }
 0x389   : > { %3435 = vrcp.f32 %v2062_v7 }
 0x38a   : > { %3437 = vpow2.f32 %v2569_v43 }
 0x38b   : > { %v3420_v57 = vpop.eup %3419  ;;  %3439 = vpow2.f32 %v2567_v51 }
 0x38c   : > { %v3422_v26 = vpop.eup %3421  ;;  %v2153_v25 = vmul.f32 %v3420_v57, %v4167_v63 }
 0x38d   : > { %v3424_v9 = vpop.eup %3423  ;;  %v2156_v49 = vmul.f32 %v3422_v26, %v4172_v8 }
 0x38e   : > { %v3426_v53 = vpop.eup %3425  ;;  %v2154_v1 = vmul.f32 %v3424_v9, %v4176_v13 }
 0x38f   : > { %v3428_v15 = vpop.eup %3427  ;;  %v2761_v17 = vpack.c.bf16 %v2156_v49, %v2155_v6  ;;  %v2067_v28 = vadd.f32 1.0, %v3426_v53 }
 0x390   : > { %v3430_v39 = vpop.eup %3429  ;;  %v2756_v22 = vpack.c.bf16 %v2154_v1, %v2153_v25  ;;  %v2065_v18 = vadd.f32 1.0, %v3428_v15 }
 0x391   : > { %v3432_v45 = vpop.eup %3431  ;;  %2808 = vst [vmem:[%s4098_s19 + $0x58] sm:$0xff] %v2761_v17   ;;  %v2159_v8 = vmul.f32 %v3430_v39, %v4183_v20  ;;  %3441 = vrcp.f32 %v2067_v28 }
 0x392   : > { %v3434_v30 = vpop.eup %3433  ;;  %2807 = vst [vmem:[%s4098_s19 + $0x50] sm:$0xff] %v2756_v22   ;;  %v2157_v13 = vmul.f32 %v3432_v45, %v4186_v0  ;;  %3443 = vrcp.f32 %v2065_v18 }
 0x393   : > { %v3436_v55 = vpop.eup %3435  ;;  %v2160_v61 = vmul.f32 %v3434_v30, %v4190_v16 }
 0x394   : > { %v3438_v63 = vpop.eup %3437  ;;  %v2158_v33 = vmul.f32 %v3436_v55, %v4194_v31 }
 0x395   : > { %v3440_v21 = vpop.eup %3439  ;;  %v2771_v10 = vpack.c.bf16 %v2160_v61, %v2159_v8  ;;  %v2068_v36 = vadd.f32 1.0, %v3438_v63 }
 0x396   : > { %v2766_v50 = vpack.c.bf16 %v2158_v33, %v2157_v13  ;;  %v2066_v44 = vadd.f32 1.0, %v3440_v21 }
 0x397   : > { %2810 = vst [vmem:[%s4098_s19 + $0x68] sm:$0xff] %v2771_v10   ;;  %3445 = vrcp.f32 %v2068_v36 }
 0x398   : > { %2809 = vst [vmem:[%s4098_s19 + $0x60] sm:$0xff] %v2766_v50   ;;  %3447 = vrcp.f32 %v2066_v44 }
 0x39b   : > { %v3442_v20 = vpop.eup %3441 }
 0x39c   : > { %v3444_v16 = vpop.eup %3443  ;;  %v2163_v0 = vmul.f32 %v3442_v20, %v4201_v46 }
 0x39d   : > { %v2161_v42 = vmul.f32 %v3444_v16, %v4206_v47 }
 0x3a1   : > { %v3446_v11 = vpop.eup %3445 }
 0x3a2   : > { %v3448_v37 = vpop.eup %3447  ;;  %v2164_v31 = vmul.f32 %v3446_v11, %v1938_v27 }
 0x3a3   : > { %v2162_v24 = vmul.f32 %v3448_v37, %v1930_v48 }
 0x3a4   : > { %v2781_v58 = vpack.c.bf16 %v2164_v31, %v2163_v0 }
 0x3a5   : > { %v2776_v35 = vpack.c.bf16 %v2162_v24, %v2161_v42 }
 0x3a6   : > { %2812 = vst [vmem:[%s4098_s19 + $0x78] sm:$0xff] %v2781_v58  }
 0x3a7   : > { %2811 = vst [vmem:[%s4098_s19 + $0x70] sm:$0xff] %v2776_v35  }
 0x3a8 PF: > { %s22_s17 = sadd.s32 1, %s3471_s17   ;;  %s4250_s15 = smov %s3467_s16 }
 0x3a9   : > { %p19_p5 = scmp.ge.s32.totalorder %s22_s17, 4   ;;  %s4251_s16 = smov %s4253_s5 }
 0x3ab   :  { %21 = sbr.rel (!%p19_p5) target bundleno = 3 (0x3), region = 93 }

// kernel: forward.20
= control target key start
LH: loop header
LB: loop body
LE: loop exit
PB: predicated region body
PF: predicated region fallthrough
CT: control target
= control target key end

     0   :  { %s1230_s12 = smov 0   ;;  %s1232_s13 = smov 0   ;;  %s1388_s0 = inlined_call_operand.vmem [shape: bf16[2,1024,128], index: 0, kind: input, shape index: {}]   ;;  %s1389_s1 = inlined_call_operand.vmem [shape: bf16[128,128], index: 1, kind: input, shape index: {}]   ;;  %s1390_s2 = inlined_call_operand.vmem [shape: f32[1,128], index: 2, kind: input, shape index: {}]   ;;  %s1391_s3 = inlined_call_operand.vmem [shape: bf16[2,1024,128], index: 3, kind: output, shape index: {}]  }
   0x1   :  { %s1234_s14 = smov 0   ;;  %s1236_s15 = smov 0  }
   0x2   :  { %s1238_s16 = smov 0  }
   0x3 LB: > { %s22_s17 = sadd.s32 1, %s1200_s14  ;;  %s25_s18 = sadd.s32 1, %s1204_s15  ;;  %s1208_s16 = sphi %s1238_s16, %s13_s16   ;;  %s1204_s15 = sphi %s1236_s15, %s1395_s15   ;;  %s1200_s14 = sphi %s1234_s14, %s1394_s14   ;;  %s1196_s13 = sphi %s1232_s13, %s1393_s13   ;;  %s1192_s12 = sphi %s1230_s12, %s1392_s12  }
   0x4   : > { %p23_p0 = scmp.ge.s32.totalorder %s22_s17, 4  ;;  %p825_p1 = scmp.ge.s32.totalorder %s1208_s16, 1 }
   0x5   : > { %p158_p2 = scmp.lt.s32.totalorder %s1208_s16, 9 }
   0x6   : > { %s1397_s17 = smov (%p23_p0, %s22_s17), 0  ;;  %s1399_s18 = smov (!%p23_p0, %s25_s18), %s1204_s15 }
   0x7   : > { %p159_p3 = pnand %p825_p1, %p158_p2  ;;  %p27_p4 = scmp.ge.s32.totalorder %s1399_s18, 2 }
   0x8   : > { %v1146_v0 = vld [vmem:[%s1389_s1] sm:$0xff] (!%p159_p3)   ;;  %s826_s21 = sshll.u32 (!%p159_p3), %s1192_s12, 5  ;;  %v1147_v1 = vld [vmem:[%s1389_s1 + $0x8] sm:$0xff] (!%p159_p3)   ;;  %p191_p5 = scmp.lt.s32.totalorder (!%p159_p3), %s1196_s13, 1  ;;  %v1148_v2 = vld [vmem:[%s1389_s1 + $0x10] sm:$0xff] (!%p159_p3)  }
   0x9   : > { %s1401_s18 = smov (%p27_p4, %s1399_s18), 0  ;;  %162 = sbr.rel (%p159_p3) target bundleno = 287 (0x11f), region = 32 }
   0xa   : > { %1042 = vmatprep.subr.bf16.mxu0 (!%p159_p3), %v1146_v0  ;;  %1090 = vmatprep.subr.bf16.mxu1 (!%p159_p3), %v1146_v0  ;;  %p193_p6 = scmp.lt.s32.totalorder (!%p159_p3), %s826_s21, 127  ;;  %v1149_v3 = vld [vmem:[%s1389_s1 + $0x18] sm:$0xff] (!%p159_p3)   ;;  %v1150_v6 = vld [vmem:[%s1389_s1 + $0x20] sm:$0xff] (!%p159_p3)   ;;  %v1151_v7 = vld [vmem:[%s1389_s1 + $0x28] sm:$0xff] (!%p159_p3)  }
   0xb   : > { %1043 = vmatpush3.bf16.msra.mxu0 (!%p159_p3), %v1146_v0  ;;  %1098 = vmatpush3.bf16.msra.mxu1 (!%p159_p3), %v1146_v0  ;;  %v1152_v8 = vld [vmem:[%s1389_s1 + $0x30] sm:$0xff] (!%p159_p3)   ;;  %v1153_v9 = vld [vmem:[%s1389_s1 + $0x38] sm:$0xff] (!%p159_p3)   ;;  %v1316_v25 = vld [vmem:[%s1390_s2] ss:$0 sm:$0xff] (!%p159_p3) }
   0xc   : > { %1044 = vmatprep.subr.bf16.mxu0 (!%p159_p3), %v1147_v1  ;;  %1091 = vmatprep.subr.bf16.mxu1 (!%p159_p3), %v1147_v1 }
   0xf   : > { %1045 = vmatpush3.bf16.msra.mxu0 (!%p159_p3), %v1147_v1  ;;  %1099 = vmatpush3.bf16.msra.mxu1 (!%p159_p3), %v1147_v1 }
  0x10   : > { %s1403_s13 = smov (!%p191_p5, %s1196_s13), 1  ;;  %s1405_s21 = smov (!%p193_p6, %s826_s21), 127  ;;  %1046 = vmatprep.subr.bf16.mxu0 %v1148_v2  ;;  %1092 = vmatprep.subr.bf16.mxu1 %v1148_v2 }
  0x11   : > { %s827_s26 = sshll.u32 %s1403_s13, 7 }
  0x12   : > { %s1272_s27 = sadd.s32 %s827_s26, %s1405_s21 }
  0x13   : > { %s828_s28 = sshll.u32 %s1272_s27, 2  ;;  %1047 = vmatpush3.bf16.msra.mxu0 %v1148_v2  ;;  %1100 = vmatpush3.bf16.msra.mxu1 %v1148_v2 }
  0x14   : > { %s1283_s6 = scalar_lea.vmem %s1388_s0, %s828_s28  ;;  %1048 = vmatprep.subr.bf16.mxu0 %v1149_v3  ;;  %1093 = vmatprep.subr.bf16.mxu1 %v1149_v3  ;;  %s1329_s24 = scalar_lea.vmem %s1391_s3, %s828_s28 }
  0x15   : > { %v1154_v4 = vld [vmem:[%s1283_s6] sm:$0xff]   ;;  %v1156_v10 = vld [vmem:[%s1283_s6 + $0x8] sm:$0xff]   ;;  %v1158_v12 = vld [vmem:[%s1283_s6 + $0x10] sm:$0xff]  }
  0x16   : > { %v1155_v5 = vld [vmem:[%s1283_s6 + $0x40] sm:$0xff]   ;;  %1058 = vmatprep.mubr.bf16.mxu0 %v1154_v4  ;;  %v1157_v11 = vld [vmem:[%s1283_s6 + $0x48] sm:$0xff]   ;;  %v1159_v13 = vld [vmem:[%s1283_s6 + $0x50] sm:$0xff]  }
  0x17   : > { %1074 = vmatprep.mubr.bf16.mxu1 %v1155_v5  ;;  %1049 = vmatpush3.bf16.msra.mxu0 %v1149_v3  ;;  %v1160_v14 = vld [vmem:[%s1283_s6 + $0x18] sm:$0xff]   ;;  %v1162_v16 = vld [vmem:[%s1283_s6 + $0x20] sm:$0xff]   ;;  %v1164_v18 = vld [vmem:[%s1283_s6 + $0x28] sm:$0xff]  }
  0x18   : > { %1101 = vmatpush3.bf16.msra.mxu1 %v1149_v3  ;;  %1050 = vmatprep.subr.bf16.mxu0 %v1150_v6  ;;  %v1161_v15 = vld [vmem:[%s1283_s6 + $0x58] sm:$0xff]   ;;  %v1163_v17 = vld [vmem:[%s1283_s6 + $0x60] sm:$0xff]   ;;  %v1165_v19 = vld [vmem:[%s1283_s6 + $0x68] sm:$0xff]  }
  0x19   : > { %1094 = vmatprep.subr.bf16.mxu1 %v1150_v6  ;;  %v1166_v20 = vld [vmem:[%s1283_s6 + $0x30] sm:$0xff]   ;;  %v1168_v22 = vld [vmem:[%s1283_s6 + $0x38] sm:$0xff]  }
  0x1a   : > { %v1167_v21 = vld [vmem:[%s1283_s6 + $0x70] sm:$0xff]   ;;  %v1169_v23 = vld [vmem:[%s1283_s6 + $0x78] sm:$0xff]  }
  0x1b   : > { %1051 = vmatpush3.bf16.msra.mxu0 %v1150_v6 }
  0x1c   : > { %1102 = vmatpush3.bf16.msra.mxu1 %v1150_v6  ;;  %1052 = vmatprep.subr.bf16.mxu0 %v1151_v7 }
  0x1d   : > { %1095 = vmatprep.subr.bf16.mxu1 %v1151_v7 }
  0x1f   : > { %1053 = vmatpush3.bf16.msra.mxu0 %v1151_v7 }
  0x20   : > { %1103 = vmatpush3.bf16.msra.mxu1 %v1151_v7  ;;  %1054 = vmatprep.subr.bf16.mxu0 %v1152_v8 }
  0x21   : > { %1096 = vmatprep.subr.bf16.mxu1 %v1152_v8 }
  0x23   : > { %1055 = vmatpush3.bf16.msra.mxu0 %v1152_v8 }
  0x24   : > { %1104 = vmatpush3.bf16.msra.mxu1 %v1152_v8  ;;  %1056 = vmatprep.subr.bf16.mxu0 %v1153_v9 }
  0x25   : > { %1097 = vmatprep.subr.bf16.mxu1 %v1153_v9 }
  0x27   : > { %1057 = vmatpush3.bf16.msra.mxu0 %v1153_v9 }
  0x28   : > { %1105 = vmatpush3.bf16.msra.mxu1 %v1153_v9 }
  0x2a   : > { %1059 = vmatmul.mubr.bf16.vlgmr.msra.gmra.mrb[0].mxu0 %v1156_v10 }
  0x2b   : > { %1075 = vmatmul.mubr.bf16.vlgmr.msra.gmra.mrb[0].mxu1 %v1157_v11  ;;  %1062 = vmatprep.mubr.bf16.mxu0 %v1158_v12 }
  0x2c   : > { %1078 = vmatprep.mubr.bf16.mxu1 %v1159_v13 }
  0x32   : > { %1063 = vmatmul.mubr.bf16.gmra.mrb[4].mxu0 %v1160_v14 }
  0x33   : > { %1079 = vmatmul.mubr.bf16.gmra.mrb[4].mxu1 %v1161_v15  ;;  %1066 = vmatprep.mubr.bf16.mxu0 %v1162_v16 }
  0x34   : > { %1082 = vmatprep.mubr.bf16.mxu1 %v1163_v17 }
  0x3a   : > { %1067 = vmatmul.mubr.bf16.gmra.mrb[8].mxu0 %v1164_v18 }
  0x3b   : > { %1083 = vmatmul.mubr.bf16.gmra.mrb[8].mxu1 %v1165_v19  ;;  %1070 = vmatprep.mubr.bf16.mxu0 %v1166_v20 }
  0x3c   : > { %1086 = vmatprep.mubr.bf16.mxu1 %v1167_v21 }
  0x42   : > { %1071 = vmatmul.mubr.bf16.gmra.mrb[12].mxu0 %v1168_v22 }
  0x43   : > { %1087 = vmatmul.mubr.bf16.gmra.mrb[12].mxu1 %v1169_v23 }
  0xfd   : > { %v1060_v24 = vpop.f32.mrb[0].mxu0 }
  0xfe   : > { %v1076_v26 = vpop.f32.mrb[0].mxu1  ;;  %v444_v27 = vpop.f32.mrb[1].mxu0  ;;  %v453_v31 = vadd.f32 %v1060_v24, %v1316_v25 }
  0xff   : > { %v508_v28 = vpop.f32.mrb[1].mxu1  ;;  %v1061_v29 = vpop.f32.mrb[2].mxu0  ;;  %v517_v32 = vadd.f32 %v1076_v26, %v1316_v25  ;;  %v445_v37 = vadd.f32 %v1316_v25, %v444_v27 }
 0x100   : > { %v1077_v30 = vpop.f32.mrb[2].mxu1  ;;  %v456_v33 = vadd.f32 %v1061_v29, %v1316_v25  ;;  %v447_v35 = vpop.f32.mrb[3].mxu0  ;;  %v509_v38 = vadd.f32 %v1316_v25, %v508_v28 }
 0x101   : > { %v520_v34 = vadd.f32 %v1077_v30, %v1316_v25  ;;  %v511_v36 = vpop.f32.mrb[3].mxu1  ;;  %v448_v39 = vadd.f32 %v1316_v25, %v447_v35 }
 0x102   : > { %v512_v40 = vadd.f32 %v1316_v25, %v511_v36  ;;  %v931_v41 = vpack.c.bf16 %v456_v33, %v453_v31 }
 0x103   : > { %v971_v42 = vpack.c.bf16 %v520_v34, %v517_v32  ;;  %v926_v43 = vpack.c.bf16 %v448_v39, %v445_v37 }
 0x104   : > { %v966_v44 = vpack.c.bf16 %v512_v40, %v509_v38  ;;  %1003 = vst [vmem:[%s1329_s24 + $0x8] sm:$0xff] %v931_v41  }
 0x105   : > { %1011 = vst [vmem:[%s1329_s24 + $0x48] sm:$0xff] %v971_v42   ;;  %927 = vst [vmem:[%s1329_s24] sm:$0xff] %v926_v43   ;;  %v1064_v45 = vpop.f32.mrb[4].mxu0 }
 0x106   : > { %1010 = vst [vmem:[%s1329_s24 + $0x40] sm:$0xff] %v966_v44   ;;  %v1080_v46 = vpop.f32.mrb[4].mxu1  ;;  %v460_v47 = vpop.f32.mrb[5].mxu0  ;;  %v469_v51 = vadd.f32 %v1064_v45, %v1316_v25 }
 0x107   : > { %v524_v48 = vpop.f32.mrb[5].mxu1  ;;  %v1065_v49 = vpop.f32.mrb[6].mxu0  ;;  %v533_v52 = vadd.f32 %v1080_v46, %v1316_v25  ;;  %v461_v57 = vadd.f32 %v1316_v25, %v460_v47 }
 0x108   : > { %v1081_v50 = vpop.f32.mrb[6].mxu1  ;;  %v472_v53 = vadd.f32 %v1065_v49, %v1316_v25  ;;  %v463_v55 = vpop.f32.mrb[7].mxu0  ;;  %v525_v58 = vadd.f32 %v1316_v25, %v524_v48 }
 0x109   : > { %v536_v54 = vadd.f32 %v1081_v50, %v1316_v25  ;;  %v527_v56 = vpop.f32.mrb[7].mxu1  ;;  %v464_v59 = vadd.f32 %v1316_v25, %v463_v55 }
 0x10a   : > { %v528_v60 = vadd.f32 %v1316_v25, %v527_v56  ;;  %v941_v61 = vpack.c.bf16 %v472_v53, %v469_v51 }
 0x10b   : > { %v981_v62 = vpack.c.bf16 %v536_v54, %v533_v52  ;;  %v936_v63 = vpack.c.bf16 %v464_v59, %v461_v57 }
 0x10c   : > { %v976_v0 = vpack.c.bf16 %v528_v60, %v525_v58  ;;  %1005 = vst [vmem:[%s1329_s24 + $0x18] sm:$0xff] %v941_v61  }
 0x10d   : > { %1013 = vst [vmem:[%s1329_s24 + $0x58] sm:$0xff] %v981_v62   ;;  %1004 = vst [vmem:[%s1329_s24 + $0x10] sm:$0xff] %v936_v63   ;;  %v1068_v1 = vpop.f32.mrb[8].mxu0 }
 0x10e   : > { %1012 = vst [vmem:[%s1329_s24 + $0x50] sm:$0xff] %v976_v0   ;;  %v1084_v2 = vpop.f32.mrb[8].mxu1  ;;  %v476_v3 = vpop.f32.mrb[9].mxu0  ;;  %v485_v7 = vadd.f32 %v1068_v1, %v1316_v25 }
 0x10f   : > { %v540_v4 = vpop.f32.mrb[9].mxu1  ;;  %v1069_v5 = vpop.f32.mrb[10].mxu0  ;;  %v549_v8 = vadd.f32 %v1084_v2, %v1316_v25  ;;  %v477_v13 = vadd.f32 %v1316_v25, %v476_v3 }
 0x110   : > { %v1085_v6 = vpop.f32.mrb[10].mxu1  ;;  %v488_v9 = vadd.f32 %v1069_v5, %v1316_v25  ;;  %v479_v11 = vpop.f32.mrb[11].mxu0  ;;  %v541_v14 = vadd.f32 %v1316_v25, %v540_v4 }
 0x111   : > { %v552_v10 = vadd.f32 %v1085_v6, %v1316_v25  ;;  %v543_v12 = vpop.f32.mrb[11].mxu1  ;;  %v480_v15 = vadd.f32 %v1316_v25, %v479_v11 }
 0x112   : > { %v544_v16 = vadd.f32 %v1316_v25, %v543_v12  ;;  %v951_v17 = vpack.c.bf16 %v488_v9, %v485_v7 }
 0x113   : > { %v991_v18 = vpack.c.bf16 %v552_v10, %v549_v8  ;;  %v946_v19 = vpack.c.bf16 %v480_v15, %v477_v13 }
 0x114   : > { %v986_v20 = vpack.c.bf16 %v544_v16, %v541_v14  ;;  %1007 = vst [vmem:[%s1329_s24 + $0x28] sm:$0xff] %v951_v17  }
 0x115   : > { %1015 = vst [vmem:[%s1329_s24 + $0x68] sm:$0xff] %v991_v18   ;;  %1006 = vst [vmem:[%s1329_s24 + $0x20] sm:$0xff] %v946_v19   ;;  %v1072_v21 = vpop.f32.mrb[12].mxu0 }
 0x116   : > { %1014 = vst [vmem:[%s1329_s24 + $0x60] sm:$0xff] %v986_v20   ;;  %v1088_v22 = vpop.f32.mrb[12].mxu1  ;;  %v492_v23 = vpop.f32.mrb[13].mxu0  ;;  %v501_v28 = vadd.f32 %v1072_v21, %v1316_v25 }
 0x117   : > { %v556_v24 = vpop.f32.mrb[13].mxu1  ;;  %v1073_v26 = vpop.f32.mrb[14].mxu0  ;;  %v565_v29 = vadd.f32 %v1088_v22, %v1316_v25  ;;  %v493_v34 = vadd.f32 %v1316_v25, %v492_v23 }
 0x118   : > { %v1089_v27 = vpop.f32.mrb[14].mxu1  ;;  %v504_v30 = vadd.f32 %v1073_v26, %v1316_v25  ;;  %v495_v32 = vpop.f32.mrb[15].mxu0  ;;  %v557_v35 = vadd.f32 %v1316_v25, %v556_v24 }
 0x119   : > { %v568_v31 = vadd.f32 %v1089_v27, %v1316_v25  ;;  %v559_v33 = vpop.f32.mrb[15].mxu1  ;;  %v496_v36 = vadd.f32 %v1316_v25, %v495_v32 }
 0x11a   : > { %v560_v37 = vadd.f32 %v1316_v25, %v559_v33  ;;  %v961_v38 = vpack.c.bf16 %v504_v30, %v501_v28 }
 0x11b   : > { %v1001_v39 = vpack.c.bf16 %v568_v31, %v565_v29  ;;  %v956_v40 = vpack.c.bf16 %v496_v36, %v493_v34 }
 0x11c   : > { %v996_v41 = vpack.c.bf16 %v560_v37, %v557_v35  ;;  %1009 = vst [vmem:[%s1329_s24 + $0x38] sm:$0xff] %v961_v38  }
 0x11d   : > { %1017 = vst [vmem:[%s1329_s24 + $0x78] sm:$0xff] %v1001_v39   ;;  %1008 = vst [vmem:[%s1329_s24 + $0x30] sm:$0xff] %v956_v40  }
 0x11e   : > { %1016 = vst [vmem:[%s1329_s24 + $0x70] sm:$0xff] %v996_v41  }
 0x11f PF: > { %s13_s16 = sadd.s32 1, %s1208_s16   ;;  %s1392_s12 = smov %s1200_s14 }
 0x120   : > { %p10_p7 = scmp.ge.s32.totalorder %s13_s16, 10   ;;  %s1393_s13 = smov %s1204_s15 }
 0x121   : > { %s1394_s14 = smov %s1397_s17  ;;  %s1395_s15 = smov %s1401_s18 }
 0x122   :  { %12 = sbr.rel (!%p10_p7) target bundleno = 3 (0x3), region = 62 }

// kernel: forward.22
= control target key start
LH: loop header
LB: loop body
LE: loop exit
PB: predicated region body
PF: predicated region fallthrough
CT: control target
= control target key end

     0   :  { %s2677_s21 = smov 0   ;;  %s2679_s22 = smov 0   ;;  %s3345_s0 = inlined_call_operand.vmem [shape: bf16[2,256,128], index: 0, kind: input, shape index: {}]   ;;  %s3346_s1 = inlined_call_operand.vmem [shape: bf16[128,128], index: 1, kind: input, shape index: {}]   ;;  %s3347_s2 = inlined_call_operand.vmem [shape: f32[1,128], index: 2, kind: input, shape index: {}]   ;;  %s3348_s3 = inlined_call_operand.vmem [shape: f32[1,128], index: 3, kind: input, shape index: {}]   ;;  %s3349_s4 = inlined_call_operand.vmem [shape: bf16[128,128], index: 4, kind: input, shape index: {}]   ;;  %s3350_s5 = inlined_call_operand.vmem [shape: f32[1,128], index: 5, kind: input, shape index: {}]   ;;  %s3351_s6 = inlined_call_operand.vmem [shape: bf16[2,256,128], index: 6, kind: output, shape index: {}]  }
   0x1   :  { %s2681_s23 = smov 0  }
   0x2 LB: > { %s28_s24 = sadd.s32 1, %s2636_s22  ;;  %p1832_p0 = scmp.ge.s32.totalorder %s2640_s23, 1  ;;  %s2640_s23 = sphi %s2681_s23, %s16_s23   ;;  %s2636_s22 = sphi %s2679_s22, %s3353_s22   ;;  %s2632_s21 = sphi %s2677_s21, %s3352_s21  }
   0x3   : > { %p30_p1 = scmp.ge.s32.totalorder %s28_s24, 2  ;;  %p233_p2 = scmp.lt.s32.totalorder %s2640_s23, 3 }
   0x5   : > { %s3355_s24 = smov (%p30_p1, %s28_s24), 0  ;;  %p234_p3 = pnand %p1832_p0, %p233_p2 }
   0x6   : > { %v2266_v0 = vld [vmem:[%s3346_s1] sm:$0xff] (!%p234_p3)   ;;  %p272_p4 = scmp.lt.s32.totalorder (!%p234_p3), %s2632_s21, 1  ;;  %v2267_v1 = vld [vmem:[%s3346_s1 + $0x8] sm:$0xff] (!%p234_p3)   ;;  %v2268_v2 = vld [vmem:[%s3346_s1 + $0x10] sm:$0xff] (!%p234_p3)  }
   0x7   : > { %237 = sbr.rel (%p234_p3) target bundleno = 776 (0x308), region = 44  ;;  %2146 = vmatprep.subr.bf16.mxu0 (!%p234_p3), %v2266_v0  ;;  %v2269_v3 = vld [vmem:[%s3346_s1 + $0x18] sm:$0xff] (!%p234_p3)   ;;  %v2270_v5 = vld [vmem:[%s3346_s1 + $0x20] sm:$0xff] (!%p234_p3)   ;;  %v2271_v6 = vld [vmem:[%s3346_s1 + $0x28] sm:$0xff] (!%p234_p3)  }
   0x8   : > { %2147 = vmatpush3.bf16.msra.mxu0 (!%p234_p3), %v2266_v0  ;;  %v2272_v7 = vld [vmem:[%s3346_s1 + $0x30] sm:$0xff] (!%p234_p3)   ;;  %v2273_v8 = vld [vmem:[%s3346_s1 + $0x38] sm:$0xff] (!%p234_p3)   ;;  %v2748_v24 = vld [vmem:[%s3347_s2] ss:$0 sm:$0xff] (!%p234_p3) }
   0x9   : > { %2148 = vmatprep.subr.bf16.mxu0 (!%p234_p3), %v2267_v1 }
   0xc   : > { %2149 = vmatpush3.bf16.msra.mxu0 (!%p234_p3), %v2267_v1 }
   0xd   : > { %2150 = vmatprep.subr.bf16.mxu0 (!%p234_p3), %v2268_v2 }
   0xe   : > { %s3357_s21 = smov (!%p272_p4, %s2632_s21), 1 }
   0xf   : > { %s1969_s7 = sshll.u32 %s3357_s21, 7 }
  0x10   : > { %s2712_s10 = scalar_lea.vmem %s3345_s0, %s1969_s7  ;;  %2151 = vmatpush3.bf16.msra.mxu0 %v2268_v2  ;;  %s3200_s30 = scalar_lea.vmem %s3351_s6, %s1969_s7 }
  0x11   : > { %v2274_v4 = vld [vmem:[%s2712_s10] sm:$0xff]   ;;  %2152 = vmatprep.subr.bf16.mxu0 %v2269_v3  ;;  %v2275_v9 = vld [vmem:[%s2712_s10 + $0x8] sm:$0xff]   ;;  %v2276_v10 = vld [vmem:[%s2712_s10 + $0x10] sm:$0xff]  }
  0x12   : > { %2162 = vmatprep.mubr.bf16.mxu0 %v2274_v4  ;;  %v2277_v11 = vld [vmem:[%s2712_s10 + $0x18] sm:$0xff]   ;;  %v2278_v12 = vld [vmem:[%s2712_s10 + $0x20] sm:$0xff]   ;;  %v2279_v13 = vld [vmem:[%s2712_s10 + $0x28] sm:$0xff]  }
  0x13   : > { %v2280_v14 = vld [vmem:[%s2712_s10 + $0x30] sm:$0xff]   ;;  %v2281_v15 = vld [vmem:[%s2712_s10 + $0x38] sm:$0xff]   ;;  %v2282_v16 = vld [vmem:[%s2712_s10 + $0x40] sm:$0xff]  }
  0x14   : > { %2153 = vmatpush3.bf16.msra.mxu0 %v2269_v3  ;;  %v2283_v17 = vld [vmem:[%s2712_s10 + $0x48] sm:$0xff]   ;;  %v2284_v18 = vld [vmem:[%s2712_s10 + $0x50] sm:$0xff]   ;;  %v2285_v19 = vld [vmem:[%s2712_s10 + $0x58] sm:$0xff]  }
  0x15   : > { %2154 = vmatprep.subr.bf16.mxu0 %v2270_v5  ;;  %v2286_v20 = vld [vmem:[%s2712_s10 + $0x60] sm:$0xff]   ;;  %v2287_v21 = vld [vmem:[%s2712_s10 + $0x68] sm:$0xff]   ;;  %v2288_v22 = vld [vmem:[%s2712_s10 + $0x70] sm:$0xff]  }
  0x16   : > { %v2289_v23 = vld [vmem:[%s2712_s10 + $0x78] sm:$0xff]  }
  0x18   : > { %2155 = vmatpush3.bf16.msra.mxu0 %v2270_v5 }
  0x19   : > { %2156 = vmatprep.subr.bf16.mxu0 %v2271_v6 }
  0x1c   : > { %2157 = vmatpush3.bf16.msra.mxu0 %v2271_v6 }
  0x1d   : > { %2158 = vmatprep.subr.bf16.mxu0 %v2272_v7 }
  0x20   : > { %2159 = vmatpush3.bf16.msra.mxu0 %v2272_v7 }
  0x21   : > { %2160 = vmatprep.subr.bf16.mxu0 %v2273_v8 }
  0x24   : > { %2161 = vmatpush3.bf16.msra.mxu0 %v2273_v8 }
  0x27   : > { %2163 = vmatmul.mubr.bf16.vlgmr.msra.gmra.mrb[0].mxu0 %v2275_v9 }
  0x28   : > { %2166 = vmatprep.mubr.bf16.mxu0 %v2276_v10 }
  0x2f   : > { %2167 = vmatmul.mubr.bf16.gmra.mrb[4].mxu0 %v2277_v11 }
  0x30   : > { %2170 = vmatprep.mubr.bf16.mxu0 %v2278_v12 }
  0x37   : > { %2171 = vmatmul.mubr.bf16.gmra.mrb[8].mxu0 %v2279_v13 }
  0x38   : > { %2174 = vmatprep.mubr.bf16.mxu0 %v2280_v14 }
  0x3f   : > { %2175 = vmatmul.mubr.bf16.gmra.mrb[12].mxu0 %v2281_v15 }
  0x40   : > { %2178 = vmatprep.mubr.bf16.mxu0 %v2282_v16 }
  0x47   : > { %2179 = vmatmul.mubr.bf16.gmra.mrb[16].mxu0 %v2283_v17 }
  0x48   : > { %2182 = vmatprep.mubr.bf16.mxu0 %v2284_v18 }
  0x4f   : > { %2183 = vmatmul.mubr.bf16.gmra.mrb[20].mxu0 %v2285_v19  ;;  %v2290_v19 = vld [vmem:[%s3349_s4] sm:$0xff]  }
  0x50   : > { %2186 = vmatprep.mubr.bf16.mxu0 %v2286_v20  ;;  %2194 = vmatprep.subr.bf16.mxu1 %v2290_v19 }
  0x51   : > { %2195 = vmatpush3.bf16.msra.mxu1 %v2290_v19 }
  0x57   : > { %2187 = vmatmul.mubr.bf16.gmra.mrb[24].mxu0 %v2287_v21 }
  0x58   : > { %2190 = vmatprep.mubr.bf16.mxu0 %v2288_v22 }
  0x5f   : > { %2191 = vmatmul.mubr.bf16.gmra.mrb[28].mxu0 %v2289_v23 }
  0xfa   : > { %v2164_v25 = vpop.f32.mrb[0].mxu0 }
  0xfb   : > { %v2751_v26 = vadd.f32 %v2164_v25, %v2748_v24  ;;  %v525_v27 = vpop.f32.mrb[1].mxu0 }
  0xfc   : > { %v2754_v28 = vadd.f32 %v2748_v24, %v525_v27  ;;  %v2165_v29 = vpop.f32.mrb[2].mxu0 }
  0xfd   : > { %v2757_v30 = vadd.f32 %v2165_v29, %v2748_v24  ;;  %v528_v31 = vpop.f32.mrb[3].mxu0  ;;  %v654_v32 = vmul.f32 %v2751_v26, %v2751_v26  ;;  %v2291_v29 = vld [vmem:[%s3349_s4 + $0x8] sm:$0xff]  }
  0xfe   : > { %v2762_v33 = vadd.f32 %v2748_v24, %v528_v31  ;;  %v652_v34 = vmul.f32 %v2754_v28, %v2754_v28  ;;  %2196 = vmatprep.subr.bf16.mxu1 %v2291_v29 }
  0xff   : > { %688 = vadd.xlane.f32.xlu1 %v654_v32  ;;  %v655_v35 = vmul.f32 %v2757_v30, %v2757_v30  ;;  %2197 = vmatpush3.bf16.msra.mxu1 %v2291_v29  ;;  %v844_v29 = vld [vmem:[%s3348_s3] sm:$0x1] }
 0x100   : > { %684 = vadd.xlane.f32.xlu0 %v652_v34  ;;  %v653_v37 = vmul.f32 %v2762_v33, %v2762_v33 }
 0x102   : > { %v2168_v36 = vpop.f32.mrb[4].mxu0 }
 0x103   : > { %690 = vadd.xlane.f32.xlu1 %v655_v35  ;;  %v541_v38 = vpop.f32.mrb[5].mxu0  ;;  %v2774_v42 = vadd.f32 %v2168_v36, %v2748_v24 }
 0x104   : > { %v2771_v39 = vadd.f32 %v2748_v24, %v541_v38  ;;  %v2169_v40 = vpop.f32.mrb[6].mxu0  ;;  %686 = vadd.xlane.f32.xlu0 %v653_v37  ;;  %v2292_v38 = vld [vmem:[%s3349_s4 + $0x10] sm:$0xff]  }
 0x105   : > { %v544_v41 = vpop.f32.mrb[7].mxu0  ;;  %v2782_v45 = vadd.f32 %v2169_v40, %v2748_v24  ;;  %v658_v48 = vmul.f32 %v2774_v42, %v2774_v42  ;;  %2198 = vmatprep.subr.bf16.mxu1 %v2292_v38 }
 0x106   : > { %v2777_v43 = vadd.f32 %v2748_v24, %v544_v41  ;;  %v656_v44 = vmul.f32 %v2771_v39, %v2771_v39  ;;  %2199 = vmatpush3.bf16.msra.mxu1 %v2292_v38 }
 0x107   : > { %v659_v52 = vmul.f32 %v2782_v45, %v2782_v45 }
 0x108   : > { %692 = vadd.xlane.f32.xlu0 %v656_v44  ;;  %v657_v46 = vmul.f32 %v2777_v43, %v2777_v43 }
 0x10a   : > { %v2172_v47 = vpop.f32.mrb[8].mxu0  ;;  %694 = vadd.xlane.f32.xlu1 %v657_v46 }
 0x10b   : > { %v557_v49 = vpop.f32.mrb[9].mxu0  ;;  %v2794_v54 = vadd.f32 %v2172_v47, %v2748_v24 }
 0x10c   : > { %v2789_v50 = vadd.f32 %v2748_v24, %v557_v49  ;;  %v2173_v51 = vpop.f32.mrb[10].mxu0  ;;  %696 = vadd.xlane.f32.xlu0 %v658_v48  ;;  %v2293_v49 = vld [vmem:[%s3349_s4 + $0x18] sm:$0xff]  }
 0x10d   : > { %v560_v53 = vpop.f32.mrb[11].mxu0  ;;  %v2802_v57 = vadd.f32 %v2173_v51, %v2748_v24  ;;  %v662_v60 = vmul.f32 %v2794_v54, %v2794_v54  ;;  %2200 = vmatprep.subr.bf16.mxu1 %v2293_v49 }
 0x10e   : > { %v2797_v55 = vadd.f32 %v2748_v24, %v560_v53  ;;  %698 = vadd.xlane.f32.xlu1 %v659_v52  ;;  %v660_v56 = vmul.f32 %v2789_v50, %v2789_v50  ;;  %2201 = vmatpush3.bf16.msra.mxu1 %v2293_v49 }
 0x10f   : > { %v663_v0 = vmul.f32 %v2802_v57, %v2802_v57 }
 0x110   : > { %700 = vadd.xlane.f32.xlu0 %v660_v56  ;;  %v661_v58 = vmul.f32 %v2797_v55, %v2797_v55 }
 0x112   : > { %v2176_v59 = vpop.f32.mrb[12].mxu0  ;;  %702 = vadd.xlane.f32.xlu1 %v661_v58 }
 0x113   : > { %v573_v61 = vpop.f32.mrb[13].mxu0  ;;  %v2814_v2 = vadd.f32 %v2176_v59, %v2748_v24 }
 0x114   : > { %v2809_v62 = vadd.f32 %v2748_v24, %v573_v61  ;;  %v2177_v63 = vpop.f32.mrb[14].mxu0  ;;  %704 = vadd.xlane.f32.xlu0 %v662_v60  ;;  %v2294_v60 = vld [vmem:[%s3349_s4 + $0x20] sm:$0xff]  }
 0x115   : > { %v576_v1 = vpop.f32.mrb[15].mxu0  ;;  %v2822_v5 = vadd.f32 %v2177_v63, %v2748_v24  ;;  %v666_v8 = vmul.f32 %v2814_v2, %v2814_v2  ;;  %2202 = vmatprep.subr.bf16.mxu1 %v2294_v60 }
 0x116   : > { %v2817_v3 = vadd.f32 %v2748_v24, %v576_v1  ;;  %706 = vadd.xlane.f32.xlu1 %v663_v0  ;;  %v664_v4 = vmul.f32 %v2809_v62, %v2809_v62  ;;  %2203 = vmatpush3.bf16.msra.mxu1 %v2294_v60 }
 0x117   : > { %v667_v12 = vmul.f32 %v2822_v5, %v2822_v5 }
 0x118   : > { %708 = vadd.xlane.f32.xlu0 %v664_v4  ;;  %v665_v6 = vmul.f32 %v2817_v3, %v2817_v3 }
 0x11a   : > { %v2180_v7 = vpop.f32.mrb[16].mxu0  ;;  %710 = vadd.xlane.f32.xlu1 %v665_v6 }
 0x11b   : > { %v589_v9 = vpop.f32.mrb[17].mxu0  ;;  %v2834_v14 = vadd.f32 %v2180_v7, %v2748_v24  ;;  %v2295_v7 = vld [vmem:[%s3349_s4 + $0x28] sm:$0xff]  }
 0x11c   : > { %v2829_v10 = vadd.f32 %v2748_v24, %v589_v9  ;;  %v2181_v11 = vpop.f32.mrb[18].mxu0  ;;  %712 = vadd.xlane.f32.xlu0 %v666_v8  ;;  %2204 = vmatprep.subr.bf16.mxu1 %v2295_v7 }
 0x11d   : > { %v592_v13 = vpop.f32.mrb[19].mxu0  ;;  %v2842_v17 = vadd.f32 %v2181_v11, %v2748_v24  ;;  %v670_v21 = vmul.f32 %v2834_v14, %v2834_v14  ;;  %2205 = vmatpush3.bf16.msra.mxu1 %v2295_v7 }
 0x11e   : > { %v2837_v15 = vadd.f32 %v2748_v24, %v592_v13  ;;  %714 = vadd.xlane.f32.xlu1 %v667_v12  ;;  %v668_v16 = vmul.f32 %v2829_v10, %v2829_v10 }
 0x11f   : > { %v671_v27 = vmul.f32 %v2842_v17, %v2842_v17 }
 0x120   : > { %716 = vadd.xlane.f32.xlu0 %v668_v16  ;;  %v669_v18 = vmul.f32 %v2837_v15, %v2837_v15 }
 0x122   : > { %v2184_v20 = vpop.f32.mrb[20].mxu0  ;;  %718 = vadd.xlane.f32.xlu1 %v669_v18  ;;  %v2296_v18 = vld [vmem:[%s3349_s4 + $0x30] sm:$0xff]  }
 0x123   : > { %v605_v22 = vpop.f32.mrb[21].mxu0  ;;  %v2860_v32 = vadd.f32 %v2184_v20, %v2748_v24  ;;  %2206 = vmatprep.subr.bf16.mxu1 %v2296_v18 }
 0x124   : > { %v2852_v23 = vadd.f32 %v2748_v24, %v605_v22  ;;  %v2185_v25 = vpop.f32.mrb[22].mxu0  ;;  %720 = vadd.xlane.f32.xlu0 %v670_v21  ;;  %2207 = vmatpush3.bf16.msra.mxu1 %v2296_v18  ;;  %v848_v22 = vlaneseq }
 0x125   : > { %v608_v31 = vpop.f32.mrb[23].mxu0  ;;  %v2868_v36 = vadd.f32 %v2185_v25, %v2748_v24  ;;  %v674_v41 = vmul.f32 %v2860_v32, %v2860_v32 }
 0x126   : > { %v2863_v34 = vadd.f32 %v2748_v24, %v608_v31  ;;  %722 = vadd.xlane.f32.xlu1 %v671_v27  ;;  %v672_v35 = vmul.f32 %v2852_v23, %v2852_v23  ;;  %v849_v38 = vshrl.u32 %v848_v22, 7 }
 0x127   : > { %v675_v48 = vmul.f32 %v2868_v36, %v2868_v36 }
 0x128   : > { %724 = vadd.xlane.f32.xlu0 %v672_v35  ;;  %v673_v37 = vmul.f32 %v2863_v34, %v2863_v34 }
 0x12a   : > { %v2188_v40 = vpop.f32.mrb[24].mxu0  ;;  %726 = vadd.xlane.f32.xlu1 %v673_v37  ;;  %v845_v37 = vadd.f32 1.0, %v844_v29 }
 0x12b   : > { %v621_v44 = vpop.f32.mrb[25].mxu0  ;;  %v2886_v52 = vadd.f32 %v2188_v40, %v2748_v24 }
 0x12c   : > { %v2878_v46 = vadd.f32 %v2748_v24, %v621_v44  ;;  %v2189_v47 = vpop.f32.mrb[26].mxu0  ;;  %728 = vadd.xlane.f32.xlu0 %v674_v41 }
 0x12d   : > { %v624_v51 = vpop.f32.mrb[27].mxu0  ;;  %v2894_v58 = vadd.f32 %v2189_v47, %v2748_v24  ;;  %v678_v63 = vmul.f32 %v2886_v52, %v2886_v52  ;;  %v846_v47 = vmul.f32 2.828427, %v845_v37 }
 0x12e   : > { %v2889_v53 = vadd.f32 %v2748_v24, %v624_v51  ;;  %730 = vadd.xlane.f32.xlu1 %v675_v48  ;;  %v676_v56 = vmul.f32 %v2878_v46, %v2878_v46  ;;  %v850_v48 = vsub.s32 0, %v849_v38 }
 0x12f   : > { %v679_v6 = vmul.f32 %v2894_v58, %v2894_v58 }
 0x130   : > { %732 = vadd.xlane.f32.xlu0 %v676_v56  ;;  %v677_v59 = vmul.f32 %v2889_v53, %v2889_v53  ;;  %v2937_v60 = vrot.slane %v846_v47, %v850_v48 }
 0x132   : > { %v2192_v61 = vpop.f32.mrb[28].mxu0  ;;  %734 = vadd.xlane.f32.xlu1 %v677_v59 }
 0x133   : > { %v637_v0 = vpop.f32.mrb[29].mxu0  ;;  %v2912_v9 = vadd.f32 %v2192_v61, %v2748_v24 }
 0x134   : > { %v2904_v1 = vadd.f32 %v2748_v24, %v637_v0  ;;  %v2193_v4 = vpop.f32.mrb[30].mxu0  ;;  %736 = vadd.xlane.f32.xlu0 %v678_v63 }
 0x135   : > { %v640_v8 = vpop.f32.mrb[31].mxu0  ;;  %v2920_v13 = vadd.f32 %v2193_v4, %v2748_v24  ;;  %v682_v19 = vmul.f32 %v2912_v9, %v2912_v9 }
 0x136   : > { %v2915_v11 = vadd.f32 %v2748_v24, %v640_v8  ;;  %738 = vadd.xlane.f32.xlu1 %v679_v6  ;;  %v680_v12 = vmul.f32 %v2904_v1, %v2904_v1  ;;  %v2297_v24 = vld [vmem:[%s3349_s4 + $0x38] sm:$0xff]  }
 0x137   : > { %v683_v20 = vmul.f32 %v2920_v13, %v2920_v13  ;;  %2208 = vmatprep.subr.bf16.mxu1 %v2297_v24 }
 0x138   : > { %740 = vadd.xlane.f32.xlu0 %v680_v12  ;;  %v681_v16 = vmul.f32 %v2915_v11, %v2915_v11  ;;  %2209 = vmatpush3.bf16.msra.mxu1 %v2297_v24 }
 0x13a   : > { %742 = vadd.xlane.f32.xlu1 %v681_v16 }
 0x13c   : > { %744 = vadd.xlane.f32.xlu0 %v682_v19 }
 0x13e   : > { %746 = vadd.xlane.f32.xlu1 %v683_v20 }
 0x18c   : > { %v689_v21 = vpop.xlane.xlu1 %688 }
 0x18d   : > { %v750_v25 = vadd.f32 1e-24, %v689_v21  ;;  %v685_v27 = vpop.xlane.xlu0 %684 }
 0x18e   : > { %v748_v31 = vadd.f32 1e-24, %v685_v27 }
 0x18f   : > { %2298 = vrsqrt.f32 %v750_v25 }
 0x190   : > { %2300 = vrsqrt.f32 %v748_v31  ;;  %v691_v35 = vpop.xlane.xlu1 %690 }
 0x191   : > { %v751_v40 = vadd.f32 1e-24, %v691_v35  ;;  %v687_v41 = vpop.xlane.xlu0 %686 }
 0x192   : > { %v749_v44 = vadd.f32 1e-24, %v687_v41 }
 0x193   : > { %2302 = vrsqrt.f32 %v751_v40 }
 0x194   : > { %2304 = vrsqrt.f32 %v749_v44 }
 0x195   : > { %v693_v49 = vpop.xlane.xlu0 %692 }
 0x196   : > { %v752_v51 = vadd.f32 1e-24, %v693_v49 }
 0x197   : > { %v695_v56 = vpop.xlane.xlu1 %694 }
 0x198   : > { %2306 = vrsqrt.f32 %v752_v51  ;;  %v753_v59 = vadd.f32 1e-24, %v695_v56 }
 0x199   : > { %v2299_v61 = vpop.eup %2298  ;;  %v697_v63 = vpop.xlane.xlu0 %696 }
 0x19a   : > { %v2301_v0 = vpop.eup %2300  ;;  %2308 = vrsqrt.f32 %v753_v59  ;;  %v754_v4 = vadd.f32 1e-24, %v697_v63  ;;  %v814_v6 = vmul.f32 %v2299_v61, %v2751_v26 }
 0x19b   : > { %v699_v7 = vpop.xlane.xlu1 %698  ;;  %v812_v8 = vmul.f32 %v2301_v0, %v2754_v28 }
 0x19c   : > { %2310 = vrsqrt.f32 %v754_v4  ;;  %v755_v12 = vadd.f32 1e-24, %v699_v7  ;;  %v2942_v16 = vmul.f32 %v2937_v60, %v814_v6 }
 0x19d   : > { %v2303_v18 = vpop.eup %2302  ;;  %v701_v19 = vpop.xlane.xlu0 %700  ;;  %v2945_v20 = vmul.f32 %v2937_v60, %v812_v8 }
 0x19e   : > { %v2305_v24 = vpop.eup %2304  ;;  %v756_v21 = vadd.f32 1e-24, %v701_v19  ;;  %v815_v22 = vmul.f32 %v2303_v18, %v2757_v30  ;;  %2312 = vrsqrt.f32 %v755_v12  ;;  %v1864_v27 = vmul.f32 -1.442695, %v2942_v16 }
 0x19f   : > { %v703_v25 = vpop.xlane.xlu1 %702  ;;  %v813_v26 = vmul.f32 %v2305_v24, %v2762_v33  ;;  %v1862_v28 = vmul.f32 -1.442695, %v2945_v20 }
 0x1a0   : > { %2314 = vrsqrt.f32 %v756_v21  ;;  %v757_v29 = vadd.f32 1e-24, %v703_v25  ;;  %v2952_v31 = vmul.f32 %v2937_v60, %v815_v22 }
 0x1a1   : > { %v705_v35 = vpop.xlane.xlu0 %704  ;;  %v2955_v37 = vmul.f32 %v2937_v60, %v813_v26  ;;  %2316 = vpow2.f32 %v1862_v28 }
 0x1a2   : > { %v2307_v38 = vpop.eup %2306  ;;  %2318 = vrsqrt.f32 %v757_v29  ;;  %v758_v30 = vadd.f32 1e-24, %v705_v35  ;;  %v1865_v41 = vmul.f32 -1.442695, %v2952_v31 }
 0x1a3   : > { %v707_v40 = vpop.xlane.xlu1 %706  ;;  %v1863_v33 = vmul.f32 -1.442695, %v2955_v37  ;;  %2320 = vpow2.f32 %v1864_v27  ;;  %v816_v44 = vmul.f32 %v2307_v38, %v2771_v39 }
 0x1a4   : > { %v2309_v47 = vpop.eup %2308  ;;  %2322 = vrsqrt.f32 %v758_v30  ;;  %v759_v48 = vadd.f32 1e-24, %v707_v40 }
 0x1a5   : > { %v709_v49 = vpop.xlane.xlu0 %708  ;;  %2324 = vpow2.f32 %v1863_v33  ;;  %v817_v51 = vmul.f32 %v2309_v47, %v2777_v43  ;;  %v2962_v56 = vmul.f32 %v2937_v60, %v816_v44 }
 0x1a6   : > { %v2311_v59 = vpop.eup %2310  ;;  %2326 = vrsqrt.f32 %v759_v48  ;;  %v760_v61 = vadd.f32 1e-24, %v709_v49 }
 0x1a7   : > { %v711_v63 = vpop.xlane.xlu1 %710  ;;  %2328 = vpow2.f32 %v1865_v41  ;;  %v2965_v0 = vmul.f32 %v2937_v60, %v817_v51  ;;  %v1866_v39 = vmul.f32 -1.442695, %v2962_v56  ;;  %v818_v4 = vmul.f32 %v2311_v59, %v2774_v42 }
 0x1a8   : > { %2330 = vrsqrt.f32 %v760_v61  ;;  %v761_v6 = vadd.f32 1e-24, %v711_v63  ;;  %v2313_v7 = vpop.eup %2312 }
 0x1a9   : > { %v713_v8 = vpop.xlane.xlu0 %712  ;;  %2332 = vpow2.f32 %v1866_v39  ;;  %v1867_v43 = vmul.f32 -1.442695, %v2965_v0  ;;  %v2971_v12 = vmul.f32 %v2937_v60, %v818_v4  ;;  %v819_v33 = vmul.f32 %v2313_v7, %v2782_v45 }
 0x1aa   : > { %v2315_v18 = vpop.eup %2314  ;;  %2334 = vrsqrt.f32 %v761_v6  ;;  %v762_v19 = vadd.f32 1e-24, %v713_v8 }
 0x1ab   : > { %v2317_v24 = vpop.eup %2316  ;;  %v715_v21 = vpop.xlane.xlu1 %714  ;;  %2336 = vpow2.f32 %v1867_v43  ;;  %v1868_v22 = vmul.f32 -1.442695, %v2971_v12  ;;  %v2976_v4 = vmul.f32 %v2937_v60, %v819_v33  ;;  %v820_v6 = vmul.f32 %v2315_v18, %v2789_v50 }
 0x1ac   : > { %v2319_v25 = vpop.eup %2318  ;;  %2338 = vrsqrt.f32 %v762_v19  ;;  %v763_v42 = vadd.f32 1e-24, %v715_v21  ;;  %v981_v26 = vadd.f32 1.0, %v2317_v24 }
 0x1ad   : > { %v2321_v28 = vpop.eup %2320  ;;  %v717_v27 = vpop.xlane.xlu0 %716  ;;  %2340 = vpow2.f32 %v1868_v22  ;;  %v821_v43 = vmul.f32 %v2319_v25, %v2797_v55  ;;  %v1869_v50 = vmul.f32 -1.442695, %v2976_v4  ;;  %v2985_v18 = vmul.f32 %v2937_v60, %v820_v6 }
 0x1ae   : > { %v2323_v29 = vpop.eup %2322  ;;  %2342 = vrsqrt.f32 %v763_v42  ;;  %v764_v35 = vadd.f32 1e-24, %v717_v27  ;;  %v983_v38 = vadd.f32 1.0, %v2321_v28 }
 0x1af   : > { %v2325_v30 = vpop.eup %2324  ;;  %v719_v40 = vpop.xlane.xlu1 %718  ;;  %2344 = vrcp.f32 %v981_v26  ;;  %v822_v21 = vmul.f32 %v2323_v29, %v2794_v54  ;;  %v2990_v25 = vmul.f32 %v2937_v60, %v821_v43 }
 0x1b0   : > { %v2327_v41 = vpop.eup %2326  ;;  %2346 = vrsqrt.f32 %v764_v35  ;;  %v765_v44 = vadd.f32 1e-24, %v719_v40  ;;  %v982_v47 = vadd.f32 1.0, %v2325_v30 }
 0x1b1   : > { %v2329_v48 = vpop.eup %2328  ;;  %v721_v49 = vpop.xlane.xlu0 %720  ;;  %2348 = vrcp.f32 %v983_v38  ;;  %v823_v30 = vmul.f32 %v2327_v41, %v2802_v57  ;;  %v2994_v40 = vmul.f32 %v2937_v60, %v822_v21  ;;  %v1871_v41 = vmul.f32 -1.442695, %v2990_v25 }
 0x1b2   : > { %v2331_v51 = vpop.eup %2330  ;;  %2350 = vrsqrt.f32 %v765_v44  ;;  %v766_v59 = vadd.f32 1e-24, %v721_v49  ;;  %v984_v61 = vadd.f32 1.0, %v2329_v48  ;;  %v1870_v49 = vmul.f32 -1.442695, %v2985_v18 }
 0x1b3   : > { %v2333_v63 = vpop.eup %2332  ;;  %v723_v39 = vpop.xlane.xlu1 %722  ;;  %2352 = vrcp.f32 %v982_v47  ;;  %v3004_v6 = vmul.f32 %v2937_v60, %v823_v30 }
 0x1b4   : > { %v2335_v45 = vpop.eup %2334  ;;  %2354 = vrsqrt.f32 %v766_v59  ;;  %v767_v7 = vadd.f32 1e-24, %v723_v39  ;;  %v985_v8 = vadd.f32 1.0, %v2333_v63  ;;  %v824_v59 = vmul.f32 %v2331_v51, %v2809_v62 }
 0x1b5   : > { %v2337_v19 = vpop.eup %2336  ;;  %v725_v24 = vpop.xlane.xlu0 %724  ;;  %2356 = vrcp.f32 %v984_v61 }
 0x1b6   : > { %v2981_v22 = vpop.eup %2338  ;;  %2358 = vrsqrt.f32 %v767_v7  ;;  %v768_v42 = vadd.f32 1e-24, %v725_v24  ;;  %v986_v26 = vadd.f32 1.0, %v2337_v19  ;;  %v1872_v7 = vmul.f32 -1.442695, %v2994_v40 }
 0x1b7   : > { %v2341_v28 = vpop.eup %2340  ;;  %v727_v27 = vpop.xlane.xlu1 %726  ;;  %2360 = vrcp.f32 %v985_v8 }
 0x1b8   : > { %v2987_v35 = vpop.eup %2342  ;;  %2362 = vrsqrt.f32 %v768_v42  ;;  %v769_v55 = vadd.f32 1e-24, %v727_v27  ;;  %v987_v38 = vadd.f32 1.0, %v2341_v28  ;;  %v825_v42 = vmul.f32 %v2335_v45, %v2817_v3 }
 0x1b9   : > { %v2345_v54 = vpop.eup %2344  ;;  %v729_v29 = vpop.xlane.xlu0 %728  ;;  %2364 = vrcp.f32 %v986_v26  ;;  %v3014_v26 = vmul.f32 %v2937_v60, %v824_v59 }
 0x1ba   : > { %v2996_v33 = vpop.eup %2346  ;;  %2366 = vrsqrt.f32 %v769_v55  ;;  %v770_v44 = vadd.f32 1e-24, %v729_v29  ;;  %v1077_v62 = vmul.f32 %v2345_v54, %v2945_v20  ;;  %v3023_v30 = vmul.f32 %v2937_v60, %v825_v42 }
 0x1bb   : > { %v2349_v47 = vpop.eup %2348  ;;  %v731_v48 = vpop.xlane.xlu1 %730  ;;  %2368 = vpow2.f32 %v1869_v50 }
 0x1bc   : > { %v3000_v61 = vpop.eup %2350  ;;  %2370 = vrsqrt.f32 %v770_v44  ;;  %v771_v63 = vadd.f32 1e-24, %v731_v48  ;;  %v1079_v21 = vmul.f32 %v2349_v47, %v2942_v16  ;;  %v1874_v44 = vmul.f32 -1.442695, %v3014_v26 }
 0x1bd   : > { %v2353_v39 = vpop.eup %2352  ;;  %v733_v57 = vpop.xlane.xlu0 %732  ;;  %2372 = vrcp.f32 %v987_v38 }
 0x1be   : > { %v3007_v8 = vpop.eup %2354  ;;  %2374 = vrsqrt.f32 %v771_v63  ;;  %v772_v43 = vadd.f32 1e-24, %v733_v57  ;;  %v1078_v51 = vmul.f32 %v2353_v39, %v2955_v37  ;;  %v1873_v37 = vmul.f32 -1.442695, %v3004_v6 }
 0x1bf   : > { %v2357_v19 = vpop.eup %2356  ;;  %v735_v24 = vpop.xlane.xlu1 %734  ;;  %2376 = vpow2.f32 %v1870_v49  ;;  %v826_v39 = vmul.f32 %v2981_v22, %v2814_v2  ;;  %v828_v2 = vmul.f32 %v2996_v33, %v2829_v10 }
 0x1c0   : > { %v3016_v28 = vpop.eup %2358  ;;  %2378 = vrsqrt.f32 %v772_v43  ;;  %v773_v27 = vadd.f32 1e-24, %v735_v24  ;;  %v1109_v50 = vpack.c.bf16 %v1078_v51, %v1077_v62  ;;  %v1080_v55 = vmul.f32 %v2357_v19, %v2952_v31 }
 0x1c1   : > { %v2361_v20 = vpop.eup %2360  ;;  %v737_v54 = vpop.xlane.xlu0 %736  ;;  %2380 = vpow2.f32 %v1871_v41  ;;  %v1875_v19 = vmul.f32 -1.442695, %v3023_v30  ;;  %v3036_v42 = vmul.f32 %v2937_v60, %v826_v39 }
 0x1c2   : > { %v3020_v29 = vpop.eup %2362  ;;  %2382 = vrsqrt.f32 %v773_v27  ;;  %2210 = vmatprep.mubr.bf16.mxu1 %v1109_v50  ;;  %v774_v3 = vadd.f32 1e-24, %v737_v54  ;;  %v1110_v16 = vpack.c.bf16 %v1080_v55, %v1079_v21  ;;  %v1081_v48 = vmul.f32 %v2361_v20, %v2962_v56 }
 0x1c3   : > { %v2365_v45 = vpop.eup %2364  ;;  %v739_v38 = vpop.xlane.xlu1 %738  ;;  %2384 = vpow2.f32 %v1872_v7  ;;  %v827_v56 = vmul.f32 %v2987_v35, %v2822_v5  ;;  %v829_v27 = vmul.f32 %v3000_v61, %v2837_v15  ;;  %v830_v35 = vmul.f32 %v3007_v8, %v2834_v14 }
 0x1c4   : > { %v2367_v31 = vpop.eup %2366  ;;  %2386 = vrsqrt.f32 %v774_v3  ;;  %2211 = vmatmul.mubr.bf16.vlgmr.msra.gmra.mrb[0].mxu1 %v1110_v16  ;;  %v775_v47 = vadd.f32 1e-24, %v739_v38  ;;  %v1082_v49 = vmul.f32 %v2365_v45, %v2965_v0  ;;  %v3046_v16 = vmul.f32 %v2937_v60, %v828_v2 }
 0x1c5   : > { %v2369_v59 = vpop.eup %2368  ;;  %v741_v63 = vpop.xlane.xlu0 %740  ;;  %2388 = vpow2.f32 %v1873_v37  ;;  %v3043_v10 = vmul.f32 %v2937_v60, %v827_v56  ;;  %v1876_v61 = vmul.f32 -1.442695, %v3036_v42  ;;  %v3050_v45 = vmul.f32 %v2937_v60, %v829_v27 }
 0x1c6   : > { %v2371_v57 = vpop.eup %2370  ;;  %2390 = vrsqrt.f32 %v775_v47  ;;  %v776_v41 = vadd.f32 1e-24, %v741_v63  ;;  %v1111_v7 = vpack.c.bf16 %v1082_v49, %v1081_v48  ;;  %v988_v43 = vadd.f32 1.0, %v2369_v59 }
 0x1c7   : > { %v2373_v62 = vpop.eup %2372  ;;  %v743_v51 = vpop.xlane.xlu1 %742  ;;  %2392 = vpow2.f32 %v1874_v44  ;;  %v831_v14 = vmul.f32 %v3016_v28, %v2842_v17  ;;  %v3055_v44 = vmul.f32 %v2937_v60, %v830_v35  ;;  %v832_v47 = vmul.f32 %v3020_v29, %v2852_v23 }
 0x1c8   : > { %v2375_v0 = vpop.eup %2374  ;;  %2394 = vrsqrt.f32 %v776_v41  ;;  %v777_v24 = vadd.f32 1e-24, %v743_v51  ;;  %2214 = vmatprep.mubr.bf16.mxu1 %v1111_v7  ;;  %v1877_v49 = vmul.f32 -1.442695, %v3043_v10  ;;  %v833_v59 = vmul.f32 %v2367_v31, %v2863_v34 }
 0x1c9   : > { %v2377_v22 = vpop.eup %2376  ;;  %v745_v21 = vpop.xlane.xlu0 %744  ;;  %2396 = vrcp.f32 %v988_v43  ;;  %v1878_v17 = vmul.f32 -1.442695, %v3046_v16  ;;  %v834_v28 = vmul.f32 %v2371_v57, %v2860_v32  ;;  %v1879_v7 = vmul.f32 -1.442695, %v3050_v45 }
 0x1ca   : > { %v2379_v50 = vpop.eup %2378  ;;  %2398 = vrsqrt.f32 %v777_v24  ;;  %v778_v55 = vadd.f32 1e-24, %v745_v21  ;;  %v989_v5 = vadd.f32 1.0, %v2377_v22  ;;  %v3067_v23 = vmul.f32 %v2937_v60, %v831_v14 }
 0x1cb   : > { %v2381_v20 = vpop.eup %2380  ;;  %v747_v54 = vpop.xlane.xlu1 %746  ;;  %2400 = vpow2.f32 %v1875_v19  ;;  %v835_v29 = vmul.f32 %v2375_v0, %v2868_v36  ;;  %v1880_v31 = vmul.f32 -1.442695, %v3055_v44  ;;  %v3074_v51 = vmul.f32 %v2937_v60, %v832_v47 }
 0x1cc   : > { %v2383_v33 = vpop.eup %2382  ;;  %2402 = vrsqrt.f32 %v778_v55  ;;  %v779_v37 = vadd.f32 1e-24, %v747_v54  ;;  %v990_v3 = vadd.f32 1.0, %v2381_v20  ;;  %v1083_v32 = vmul.f32 %v2373_v62, %v2971_v12 }
 0x1cd   : > { %v2385_v15 = vpop.eup %2384  ;;  %2404 = vrcp.f32 %v989_v5  ;;  %v3078_v57 = vmul.f32 %v2937_v60, %v833_v59  ;;  %v836_v56 = vmul.f32 %v2379_v50, %v2878_v46  ;;  %v3085_v0 = vmul.f32 %v2937_v60, %v834_v28 }
 0x1ce   : > { %v2387_v8 = vpop.eup %2386  ;;  %2406 = vrsqrt.f32 %v779_v37  ;;  %v991_v38 = vadd.f32 1.0, %v2385_v15  ;;  %v837_v2 = vmul.f32 %v2383_v33, %v2889_v53  ;;  %v1881_v12 = vmul.f32 -1.442695, %v3067_v23 }
 0x1cf   : > { %v2389_v48 = vpop.eup %2388  ;;  %2408 = vrcp.f32 %v990_v3  ;;  %v3090_v62 = vmul.f32 %v2937_v60, %v835_v29  ;;  %v1883_v55 = vmul.f32 -1.442695, %v3078_v57  ;;  %v3097_v53 = vmul.f32 %v2937_v60, %v836_v56 }
 0x1d0   : > { %v3061_v63 = vpop.eup %2390  ;;  %v992_v39 = vadd.f32 1.0, %v2389_v48  ;;  %2410 = vrcp.f32 %v991_v38  ;;  %v1884_v35 = vmul.f32 -1.442695, %v3085_v0  ;;  %v3101_v20 = vmul.f32 %v2937_v60, %v837_v2 }
 0x1d1   : > { %v2393_v41 = vpop.eup %2392  ;;  %2412 = vpow2.f32 %v1876_v61  ;;  %v1885_v33 = vmul.f32 -1.442695, %v3090_v62  ;;  %v838_v37 = vmul.f32 %v2387_v8, %v2886_v52  ;;  %v1886_v38 = vmul.f32 -1.442695, %v3097_v53 }
 0x1d2   : > { %v3070_v43 = vpop.eup %2394  ;;  %2414 = vrcp.f32 %v992_v39  ;;  %v993_v34 = vadd.f32 1.0, %v2393_v41  ;;  %v1887_v59 = vmul.f32 -1.442695, %v3101_v20  ;;  %v839_v28 = vmul.f32 %v3061_v63, %v2894_v58 }
 0x1d3   : > { %v2397_v19 = vpop.eup %2396  ;;  %2416 = vpow2.f32 %v1877_v49 }
 0x1d4   : > { %v3081_v24 = vpop.eup %2398  ;;  %v1084_v36 = vmul.f32 %v2397_v19, %v2976_v4  ;;  %2418 = vrcp.f32 %v993_v34  ;;  %v1882_v4 = vmul.f32 -1.442695, %v3074_v51  ;;  %v3120_v58 = vmul.f32 %v2937_v60, %v839_v28 }
 0x1d5   : > { %v2401_v22 = vpop.eup %2400  ;;  %2420 = vpow2.f32 %v1878_v17 }
 0x1d6   : > { %v3092_v21 = vpop.eup %2402  ;;  %v1112_v46 = vpack.c.bf16 %v1084_v36, %v1083_v32  ;;  %v994_v27 = vadd.f32 1.0, %v2401_v22  ;;  %2422 = vpow2.f32 %v1879_v7 }
 0x1d7   : > { %v2405_v50 = vpop.eup %2404  ;;  %2424 = vpow2.f32 %v1880_v31 }
 0x1d8   : > { %v2407_v5 = vpop.eup %2406  ;;  %2215 = vmatmul.mubr.bf16.gmra.mrb[4].mxu1 %v1112_v46  ;;  %2426 = vrcp.f32 %v994_v27  ;;  %v1085_v15 = vmul.f32 %v2405_v50, %v2985_v18  ;;  %v3112_v18 = vmul.f32 %v2937_v60, %v838_v37  ;;  %v842_v46 = vmul.f32 %v3092_v21, %v2912_v9 }
 0x1d9   : > { %v2409_v54 = vpop.eup %2408  ;;  %2428 = vpow2.f32 %v1881_v12 }
 0x1da   : > { %v2411_v3 = vpop.eup %2410  ;;  %v1086_v61 = vmul.f32 %v2409_v54, %v2990_v25  ;;  %2430 = vpow2.f32 %v1882_v4  ;;  %v1888_v19 = vmul.f32 -1.442695, %v3112_v18  ;;  %v3137_v21 = vmul.f32 %v2937_v60, %v842_v46 }
 0x1db   : > { %v2413_v14 = vpop.eup %2412  ;;  %2432 = vpow2.f32 %v1883_v55  ;;  %v1087_v17 = vmul.f32 %v2411_v3, %v2994_v40  ;;  %v840_v40 = vmul.f32 %v3070_v43, %v2904_v1  ;;  %v841_v1 = vmul.f32 %v3081_v24, %v2915_v11 }
 0x1dc   : > { %v2415_v47 = vpop.eup %2414  ;;  %v1113_v48 = vpack.c.bf16 %v1086_v61, %v1085_v15  ;;  %v995_v49 = vadd.f32 1.0, %v2413_v14  ;;  %2434 = vpow2.f32 %v1884_v35  ;;  %v1889_v24 = vmul.f32 -1.442695, %v3120_v58 }
 0x1dd   : > { %v2417_v39 = vpop.eup %2416  ;;  %v1088_v52 = vmul.f32 %v2415_v47, %v3004_v6  ;;  %2436 = vpow2.f32 %v1885_v33  ;;  %v3127_v12 = vmul.f32 %v2937_v60, %v840_v40  ;;  %v3134_v54 = vmul.f32 %v2937_v60, %v841_v1 }
 0x1de   : > { %v2419_v25 = vpop.eup %2418  ;;  %2218 = vmatprep.mubr.bf16.mxu1 %v1113_v48  ;;  %v996_v8 = vadd.f32 1.0, %v2417_v39  ;;  %2438 = vrcp.f32 %v995_v49 }
 0x1df   : > { %v2421_v41 = vpop.eup %2420  ;;  %v1114_v7 = vpack.c.bf16 %v1088_v52, %v1087_v17  ;;  %2440 = vpow2.f32 %v1886_v38  ;;  %v1089_v36 = vmul.f32 %v2419_v25, %v3014_v26  ;;  %v843_v26 = vmul.f32 %v2407_v5, %v2920_v13 }
 0x1e0   : > { %v2423_v29 = vpop.eup %2422  ;;  %2442 = vrcp.f32 %v996_v8  ;;  %v997_v34 = vadd.f32 1.0, %v2421_v41  ;;  %v1890_v13 = vmul.f32 -1.442695, %v3127_v12  ;;  %v1891_v47 = vmul.f32 -1.442695, %v3134_v54 }
 0x1e1   : > { %v2425_v6 = vpop.eup %2424  ;;  %2219 = vmatmul.mubr.bf16.gmra.mrb[8].mxu1 %v1114_v7  ;;  %v998_v31 = vadd.f32 1.0, %v2423_v29  ;;  %2444 = vpow2.f32 %v1887_v59  ;;  %v3141_v5 = vmul.f32 %v2937_v60, %v843_v26  ;;  %v1892_v59 = vmul.f32 -1.442695, %v3137_v21 }
 0x1e2   : > { %v2427_v32 = vpop.eup %2426  ;;  %2446 = vrcp.f32 %v997_v34  ;;  %v999_v56 = vadd.f32 1.0, %v2425_v6 }
 0x1e3   : > { %v2429_v63 = vpop.eup %2428  ;;  %v1090_v2 = vmul.f32 %v2427_v32, %v3023_v30  ;;  %2448 = vrcp.f32 %v998_v31  ;;  %v1893_v60 = vmul.f32 -1.442695, %v3141_v5 }
 0x1e4   : > { %v2431_v43 = vpop.eup %2430  ;;  %v1000_v22 = vadd.f32 1.0, %v2429_v63  ;;  %2450 = vrcp.f32 %v999_v56 }
 0x1e5   : > { %v2433_v27 = vpop.eup %2432  ;;  %v1115_v4 = vpack.c.bf16 %v1090_v2, %v1089_v36  ;;  %v1001_v50 = vadd.f32 1.0, %v2431_v43  ;;  %2452 = vpow2.f32 %v1888_v19 }
 0x1e6   : > { %v2435_v30 = vpop.eup %2434  ;;  %2454 = vrcp.f32 %v1000_v22  ;;  %v1002_v55 = vadd.f32 1.0, %v2433_v27 }
 0x1e7   : > { %v2437_v35 = vpop.eup %2436  ;;  %2222 = vmatprep.mubr.bf16.mxu1 %v1115_v4  ;;  %2456 = vrcp.f32 %v1001_v50  ;;  %v1003_v11 = vadd.f32 1.0, %v2435_v30 }
 0x1e8   : > { %v2439_v33 = vpop.eup %2438  ;;  %2458 = vrcp.f32 %v1002_v55  ;;  %v1004_v9 = vadd.f32 1.0, %v2437_v35 }
 0x1e9   : > { %v2441_v37 = vpop.eup %2440  ;;  %2460 = vrcp.f32 %v1003_v11  ;;  %v1091_v14 = vmul.f32 %v2439_v33, %v3036_v42 }
 0x1ea   : > { %v2443_v3 = vpop.eup %2442  ;;  %2462 = vrcp.f32 %v1004_v9  ;;  %v1005_v15 = vadd.f32 1.0, %v2441_v37 }
 0x1eb   : > { %v2445_v61 = vpop.eup %2444  ;;  %v1092_v38 = vmul.f32 %v2443_v3, %v3043_v10  ;;  %2464 = vpow2.f32 %v1889_v24 }
 0x1ec   : > { %v2447_v48 = vpop.eup %2446  ;;  %v1006_v49 = vadd.f32 1.0, %v2445_v61  ;;  %2466 = vrcp.f32 %v1005_v15 }
 0x1ed   : > { %v2449_v39 = vpop.eup %2448  ;;  %v1116_v17 = vpack.c.bf16 %v1092_v38, %v1091_v14  ;;  %2468 = vpow2.f32 %v1890_v13  ;;  %v1093_v25 = vmul.f32 %v2447_v48, %v3046_v16 }
 0x1ee   : > { %v2451_v52 = vpop.eup %2450  ;;  %v1094_v42 = vmul.f32 %v2449_v39, %v3050_v45  ;;  %2470 = vrcp.f32 %v1006_v49 }
 0x1ef   : > { %v2453_v10 = vpop.eup %2452  ;;  %2223 = vmatmul.mubr.bf16.gmra.mrb[12].mxu1 %v1116_v17  ;;  %2472 = vpow2.f32 %v1891_v47  ;;  %v1095_v7 = vmul.f32 %v2451_v52, %v3055_v44 }
 0x1f0   : > { %v2455_v8 = vpop.eup %2454  ;;  %v1117_v28 = vpack.c.bf16 %v1094_v42, %v1093_v25  ;;  %2474 = vpow2.f32 %v1892_v59  ;;  %v1007_v40 = vadd.f32 1.0, %v2453_v10 }
 0x1f1   : > { %v2457_v41 = vpop.eup %2456  ;;  %v1096_v29 = vmul.f32 %v2455_v8, %v3067_v23  ;;  %2476 = vpow2.f32 %v1893_v60 }
 0x1f2   : > { %v2459_v34 = vpop.eup %2458  ;;  %2226 = vmatprep.mubr.bf16.mxu1 %v1117_v28  ;;  %v1097_v45 = vmul.f32 %v2457_v41, %v3074_v51  ;;  %2478 = vrcp.f32 %v1007_v40 }
 0x1f3   : > { %v2461_v6 = vpop.eup %2460  ;;  %v1118_v16 = vpack.c.bf16 %v1096_v29, %v1095_v7  ;;  %v1098_v31 = vmul.f32 %v2459_v34, %v3078_v57 }
 0x1f4   : > { %v2463_v19 = vpop.eup %2462  ;;  %v1099_v22 = vmul.f32 %v2461_v6, %v3085_v0 }
 0x1f5   : > { %v2465_v32 = vpop.eup %2464  ;;  %v1119_v56 = vpack.c.bf16 %v1098_v31, %v1097_v45  ;;  %v1100_v44 = vmul.f32 %v2463_v19, %v3090_v62 }
 0x1f6   : > { %v2467_v63 = vpop.eup %2466  ;;  %v1008_v36 = vadd.f32 1.0, %v2465_v32 }
 0x1f7   : > { %v2469_v2 = vpop.eup %2468  ;;  %2227 = vmatmul.mubr.bf16.gmra.mrb[16].mxu1 %v1118_v16  ;;  %v1101_v46 = vmul.f32 %v2467_v63, %v3097_v53  ;;  %v1120_v50 = vpack.c.bf16 %v1100_v44, %v1099_v22 }
 0x1f8   : > { %v2471_v23 = vpop.eup %2470  ;;  %2230 = vmatprep.mubr.bf16.mxu1 %v1119_v56  ;;  %2480 = vrcp.f32 %v1008_v36  ;;  %v1009_v1 = vadd.f32 1.0, %v2469_v2 }
 0x1f9   : > { %v2473_v43 = vpop.eup %2472  ;;  %v1102_v51 = vmul.f32 %v2471_v23, %v3101_v20 }
 0x1fa   : > { %v2475_v57 = vpop.eup %2474  ;;  %v1010_v27 = vadd.f32 1.0, %v2473_v43  ;;  %2482 = vrcp.f32 %v1009_v1 }
 0x1fb   : > { %v2477_v4 = vpop.eup %2476  ;;  %v1011_v26 = vadd.f32 1.0, %v2475_v57  ;;  %v1121_v30 = vpack.c.bf16 %v1102_v51, %v1101_v46 }
 0x1fc   : > { %2484 = vrcp.f32 %v1010_v27  ;;  %v1012_v62 = vadd.f32 1.0, %v2477_v4  ;;  %v2479_v55 = vpop.eup %2478 }
 0x1fd   : > { %2486 = vrcp.f32 %v1011_v26  ;;  %v1103_v0 = vmul.f32 %v2479_v55, %v3112_v18  ;;  %v3167_v18 = vld [vmem:[%s3350_s5] ss:$0 sm:$0xff] }
 0x1fe   : > { %2488 = vrcp.f32 %v1012_v62 }
 0x1ff   : > { %2231 = vmatmul.mubr.bf16.gmra.mrb[20].mxu1 %v1120_v50 }
 0x200   : > { %2234 = vmatprep.mubr.bf16.mxu1 %v1121_v30 }
 0x202   : > { %v2481_v35 = vpop.eup %2480 }
 0x203   : > { %v1104_v20 = vmul.f32 %v2481_v35, %v3120_v58 }
 0x204   : > { %v2483_v11 = vpop.eup %2482 }
 0x205   : > { %v1122_v53 = vpack.c.bf16 %v1104_v20, %v1103_v0  ;;  %v1105_v9 = vmul.f32 %v2483_v11, %v3127_v12 }
 0x206   : > { %v2485_v24 = vpop.eup %2484 }
 0x207   : > { %v2487_v33 = vpop.eup %2486  ;;  %2235 = vmatmul.mubr.bf16.gmra.mrb[24].mxu1 %v1122_v53  ;;  %v1106_v37 = vmul.f32 %v2485_v24, %v3134_v54 }
 0x208   : > { %v2489_v13 = vpop.eup %2488  ;;  %v1107_v15 = vmul.f32 %v2487_v33, %v3137_v21 }
 0x209   : > { %v1123_v3 = vpack.c.bf16 %v1106_v37, %v1105_v9  ;;  %v1108_v61 = vmul.f32 %v2489_v13, %v3141_v5 }
 0x20b   : > { %2238 = vmatprep.mubr.bf16.mxu1 %v1123_v3  ;;  %v1124_v14 = vpack.c.bf16 %v1108_v61, %v1107_v15 }
 0x20f   : > { %2239 = vmatmul.mubr.bf16.gmra.mrb[28].mxu1 %v1124_v14 }
 0x297   : > { %v2212_v58 = vpop.f32.mrb[0].mxu1 }
 0x298   : > { %v1239_v38 = vadd.f32 %v2212_v58, %v3167_v18  ;;  %v1230_v12 = vpop.f32.mrb[1].mxu1 }
 0x299   : > { %v1231_v54 = vadd.f32 %v3167_v18, %v1230_v12  ;;  %v2213_v47 = vpop.f32.mrb[2].mxu1 }
 0x29a   : > { %v1905_v48 = vmul.f32 -1.442695, %v1239_v38  ;;  %v1242_v21 = vadd.f32 %v2213_v47, %v3167_v18  ;;  %v1233_v49 = vpop.f32.mrb[3].mxu1 }
 0x29b   : > { %v1903_v5 = vmul.f32 -1.442695, %v1231_v54  ;;  %v1234_v59 = vadd.f32 %v3167_v18, %v1233_v49 }
 0x29c   : > { %2490 = vpow2.f32 %v1905_v48  ;;  %v1906_v39 = vmul.f32 -1.442695, %v1242_v21 }
 0x29d   : > { %2492 = vpow2.f32 %v1903_v5  ;;  %v1904_v17 = vmul.f32 -1.442695, %v1234_v59 }
 0x29e   : > { %2494 = vpow2.f32 %v1906_v39 }
 0x29f   : > { %2496 = vpow2.f32 %v1904_v17 }
 0x2a6   : > { %v2491_v60 = vpop.eup %2490 }
 0x2a7   : > { %v2493_v52 = vpop.eup %2492  ;;  %v1455_v25 = vadd.f32 1.0, %v2491_v60 }
 0x2a8   : > { %v2495_v42 = vpop.eup %2494  ;;  %v1453_v10 = vadd.f32 1.0, %v2493_v52 }
 0x2a9   : > { %v2497_v8 = vpop.eup %2496  ;;  %2498 = vrcp.f32 %v1455_v25  ;;  %v1456_v28 = vadd.f32 1.0, %v2495_v42 }
 0x2aa   : > { %2500 = vrcp.f32 %v1453_v10  ;;  %v1454_v41 = vadd.f32 1.0, %v2497_v8 }
 0x2ab   : > { %2502 = vrcp.f32 %v1456_v28  ;;  %v2216_v7 = vpop.f32.mrb[4].mxu1 }
 0x2ac   : > { %2504 = vrcp.f32 %v1454_v41  ;;  %v3174_v29 = vadd.f32 %v2216_v7, %v3167_v18  ;;  %v1246_v34 = vpop.f32.mrb[5].mxu1 }
 0x2ad   : > { %v3177_v40 = vadd.f32 %v3167_v18, %v1246_v34  ;;  %v2217_v6 = vpop.f32.mrb[6].mxu1 }
 0x2ae   : > { %v1909_v16 = vmul.f32 -1.442695, %v3174_v29  ;;  %v3181_v45 = vadd.f32 %v2217_v6, %v3167_v18  ;;  %v1249_v31 = vpop.f32.mrb[7].mxu1 }
 0x2af   : > { %v1907_v19 = vmul.f32 -1.442695, %v3177_v40  ;;  %v3185_v32 = vadd.f32 %v3167_v18, %v1249_v31 }
 0x2b0   : > { %2506 = vpow2.f32 %v1909_v16  ;;  %v1910_v56 = vmul.f32 -1.442695, %v3181_v45 }
 0x2b1   : > { %2508 = vpow2.f32 %v1907_v19  ;;  %v1908_v63 = vmul.f32 -1.442695, %v3185_v32 }
 0x2b2   : > { %2510 = vpow2.f32 %v1910_v56 }
 0x2b3   : > { %v2499_v36 = vpop.eup %2498  ;;  %2512 = vpow2.f32 %v1908_v63 }
 0x2b4   : > { %v2501_v2 = vpop.eup %2500  ;;  %v2220_v44 = vpop.f32.mrb[8].mxu1  ;;  %v1551_v51 = vmul.f32 %v2499_v36, %v1239_v38 }
 0x2b5   : > { %v2503_v23 = vpop.eup %2502  ;;  %v3190_v1 = vadd.f32 %v2220_v44, %v3167_v18  ;;  %v1262_v43 = vpop.f32.mrb[9].mxu1  ;;  %v1549_v4 = vmul.f32 %v2501_v2, %v1231_v54 }
 0x2b6   : > { %v2505_v22 = vpop.eup %2504  ;;  %v1552_v57 = vmul.f32 %v2503_v23, %v1242_v21  ;;  %v3193_v46 = vadd.f32 %v3167_v18, %v1262_v43  ;;  %v2221_v27 = vpop.f32.mrb[10].mxu1 }
 0x2b7   : > { %v1550_v50 = vmul.f32 %v2505_v22, %v1234_v59  ;;  %v1913_v26 = vmul.f32 -1.442695, %v3190_v1  ;;  %v3204_v30 = vadd.f32 %v2221_v27, %v3167_v18  ;;  %v1265_v62 = vpop.f32.mrb[11].mxu1 }
 0x2b8   : > { %v2011_v55 = vpack.c.bf16 %v1552_v57, %v1551_v51  ;;  %v1911_v35 = vmul.f32 -1.442695, %v3193_v46  ;;  %v3208_v0 = vadd.f32 %v3167_v18, %v1265_v62 }
 0x2b9   : > { %v2006_v20 = vpack.c.bf16 %v1550_v50, %v1549_v4  ;;  %2514 = vpow2.f32 %v1913_v26  ;;  %v1914_v11 = vmul.f32 -1.442695, %v3204_v30 }
 0x2ba   : > { %v2507_v53 = vpop.eup %2506  ;;  %2083 = vst [vmem:[%s3200_s30 + $0x8] sm:$0xff] %v2011_v55   ;;  %2516 = vpow2.f32 %v1911_v35  ;;  %v1912_v24 = vmul.f32 -1.442695, %v3208_v0 }
 0x2bb   : > { %v2509_v33 = vpop.eup %2508  ;;  %2007 = vst [vmem:[%s3200_s30] sm:$0xff] %v2006_v20   ;;  %v1459_v9 = vadd.f32 1.0, %v2507_v53  ;;  %2518 = vpow2.f32 %v1914_v11 }
 0x2bc   : > { %v2511_v37 = vpop.eup %2510  ;;  %v1457_v13 = vadd.f32 1.0, %v2509_v33  ;;  %2520 = vpow2.f32 %v1912_v24 }
 0x2bd   : > { %v2513_v3 = vpop.eup %2512  ;;  %2522 = vrcp.f32 %v1459_v9  ;;  %v1460_v15 = vadd.f32 1.0, %v2511_v37 }
 0x2be   : > { %2524 = vrcp.f32 %v1457_v13  ;;  %v1458_v61 = vadd.f32 1.0, %v2513_v3 }
 0x2bf   : > { %2526 = vrcp.f32 %v1460_v15 }
 0x2c0   : > { %2528 = vrcp.f32 %v1458_v61 }
 0x2c2   : > { %v2224_v14 = vpop.f32.mrb[12].mxu1 }
 0x2c3   : > { %v2515_v58 = vpop.eup %2514  ;;  %v3215_v38 = vadd.f32 %v2224_v14, %v3167_v18  ;;  %v1278_v12 = vpop.f32.mrb[13].mxu1 }
 0x2c4   : > { %v2517_v54 = vpop.eup %2516  ;;  %v1463_v47 = vadd.f32 1.0, %v2515_v58  ;;  %v3218_v48 = vadd.f32 %v3167_v18, %v1278_v12  ;;  %v2225_v21 = vpop.f32.mrb[14].mxu1 }
 0x2c5   : > { %v2519_v49 = vpop.eup %2518  ;;  %v1461_v5 = vadd.f32 1.0, %v2517_v54  ;;  %v3221_v59 = vadd.f32 %v2225_v21, %v3167_v18  ;;  %v1281_v39 = vpop.f32.mrb[15].mxu1  ;;  %v1917_v52 = vmul.f32 -1.442695, %v3215_v38 }
 0x2c6   : > { %v2521_v17 = vpop.eup %2520  ;;  %2530 = vrcp.f32 %v1463_v47  ;;  %v1464_v60 = vadd.f32 1.0, %v2519_v49  ;;  %v3225_v25 = vadd.f32 %v3167_v18, %v1281_v39  ;;  %v1915_v8 = vmul.f32 -1.442695, %v3218_v48 }
 0x2c7   : > { %v2523_v42 = vpop.eup %2522  ;;  %2532 = vrcp.f32 %v1461_v5  ;;  %v1462_v10 = vadd.f32 1.0, %v2521_v17  ;;  %v1918_v41 = vmul.f32 -1.442695, %v3221_v59 }
 0x2c8   : > { %v2525_v28 = vpop.eup %2524  ;;  %2534 = vrcp.f32 %v1464_v60  ;;  %v1916_v34 = vmul.f32 -1.442695, %v3225_v25  ;;  %v1555_v16 = vmul.f32 %v2523_v42, %v3174_v29 }
 0x2c9   : > { %v2527_v7 = vpop.eup %2526  ;;  %2536 = vrcp.f32 %v1462_v10  ;;  %v1553_v56 = vmul.f32 %v2525_v28, %v3177_v40 }
 0x2ca   : > { %v2529_v6 = vpop.eup %2528  ;;  %v1556_v31 = vmul.f32 %v2527_v7, %v3181_v45  ;;  %2538 = vpow2.f32 %v1917_v52  ;;  %v2228_v19 = vpop.f32.mrb[16].mxu1 }
 0x2cb   : > { %v1554_v63 = vmul.f32 %v2529_v6, %v3185_v32  ;;  %2540 = vpow2.f32 %v1915_v8  ;;  %v3235_v36 = vadd.f32 %v2228_v19, %v3167_v18  ;;  %v1294_v2 = vpop.f32.mrb[17].mxu1 }
 0x2cc   : > { %v2021_v44 = vpack.c.bf16 %v1556_v31, %v1555_v16  ;;  %2542 = vpow2.f32 %v1918_v41  ;;  %v3238_v23 = vadd.f32 %v3167_v18, %v1294_v2  ;;  %v2229_v29 = vpop.f32.mrb[18].mxu1 }
 0x2cd   : > { %v2016_v45 = vpack.c.bf16 %v1554_v63, %v1553_v56  ;;  %2544 = vpow2.f32 %v1916_v34  ;;  %v1921_v43 = vmul.f32 -1.442695, %v3235_v36  ;;  %v3242_v40 = vadd.f32 %v2229_v29, %v3167_v18  ;;  %v1297_v32 = vpop.f32.mrb[19].mxu1 }
 0x2ce   : > { %2085 = vst [vmem:[%s3200_s30 + $0x18] sm:$0xff] %v2021_v44   ;;  %v1919_v22 = vmul.f32 -1.442695, %v3238_v23  ;;  %v3247_v51 = vadd.f32 %v3167_v18, %v1297_v32 }
 0x2cf   : > { %2084 = vst [vmem:[%s3200_s30 + $0x10] sm:$0xff] %v2016_v45   ;;  %2546 = vpow2.f32 %v1921_v43  ;;  %v1922_v57 = vmul.f32 -1.442695, %v3242_v40 }
 0x2d0   : > { %v2531_v27 = vpop.eup %2530  ;;  %2548 = vpow2.f32 %v1919_v22  ;;  %v1920_v4 = vmul.f32 -1.442695, %v3247_v51 }
 0x2d1   : > { %v2533_v50 = vpop.eup %2532  ;;  %2550 = vpow2.f32 %v1922_v57  ;;  %v1559_v35 = vmul.f32 %v2531_v27, %v3190_v1 }
 0x2d2   : > { %v2535_v26 = vpop.eup %2534  ;;  %2552 = vpow2.f32 %v1920_v4  ;;  %v2232_v62 = vpop.f32.mrb[20].mxu1  ;;  %v1557_v33 = vmul.f32 %v2533_v50, %v3193_v46 }
 0x2d3   : > { %v2537_v55 = vpop.eup %2536  ;;  %v1560_v20 = vmul.f32 %v2535_v26, %v3204_v30  ;;  %v3255_v11 = vadd.f32 %v2232_v62, %v3167_v18  ;;  %v1310_v53 = vpop.f32.mrb[21].mxu1 }
 0x2d4   : > { %v2539_v24 = vpop.eup %2538  ;;  %v1558_v9 = vmul.f32 %v2537_v55, %v3208_v0  ;;  %v2233_v37 = vpop.f32.mrb[22].mxu1  ;;  %v3263_v46 = vadd.f32 %v3167_v18, %v1310_v53 }
 0x2d5   : > { %v2541_v13 = vpop.eup %2540  ;;  %v2031_v3 = vpack.c.bf16 %v1560_v20, %v1559_v35  ;;  %v1467_v15 = vadd.f32 1.0, %v2539_v24  ;;  %v1313_v61 = vpop.f32.mrb[23].mxu1  ;;  %v1925_v54 = vmul.f32 -1.442695, %v3255_v11  ;;  %v3266_v21 = vadd.f32 %v2233_v37, %v3167_v18 }
 0x2d6   : > { %v2543_v14 = vpop.eup %2542  ;;  %v2026_v1 = vpack.c.bf16 %v1558_v9, %v1557_v33  ;;  %v1465_v58 = vadd.f32 1.0, %v2541_v13  ;;  %v3269_v39 = vadd.f32 %v3167_v18, %v1313_v61  ;;  %v1923_v41 = vmul.f32 -1.442695, %v3263_v46 }
 0x2d7   : > { %v2545_v12 = vpop.eup %2544  ;;  %2087 = vst [vmem:[%s3200_s30 + $0x28] sm:$0xff] %v2031_v3   ;;  %2554 = vrcp.f32 %v1467_v15  ;;  %v1468_v30 = vadd.f32 1.0, %v2543_v14  ;;  %v1926_v16 = vmul.f32 -1.442695, %v3266_v21 }
 0x2d8   : > { %2086 = vst [vmem:[%s3200_s30 + $0x20] sm:$0xff] %v2026_v1   ;;  %2556 = vrcp.f32 %v1465_v58  ;;  %v1466_v47 = vadd.f32 1.0, %v2545_v12  ;;  %v1924_v56 = vmul.f32 -1.442695, %v3269_v39 }
 0x2d9   : > { %v2547_v0 = vpop.eup %2546  ;;  %2558 = vrcp.f32 %v1468_v30 }
 0x2da   : > { %v2549_v49 = vpop.eup %2548  ;;  %2560 = vrcp.f32 %v1466_v47  ;;  %v1471_v5 = vadd.f32 1.0, %v2547_v0  ;;  %v2236_v17 = vpop.f32.mrb[24].mxu1 }
 0x2db   : > { %v2551_v60 = vpop.eup %2550  ;;  %v1469_v52 = vadd.f32 1.0, %v2549_v49  ;;  %2562 = vpow2.f32 %v1925_v54  ;;  %v3272_v42 = vadd.f32 %v2236_v17, %v3167_v18  ;;  %v1326_v10 = vpop.f32.mrb[25].mxu1 }
 0x2dc   : > { %v2553_v8 = vpop.eup %2552  ;;  %2564 = vrcp.f32 %v1471_v5  ;;  %v1472_v28 = vadd.f32 1.0, %v2551_v60  ;;  %v3276_v7 = vadd.f32 %v3167_v18, %v1326_v10  ;;  %v2237_v34 = vpop.f32.mrb[26].mxu1 }
 0x2dd   : > { %2566 = vrcp.f32 %v1469_v52  ;;  %v1470_v6 = vadd.f32 1.0, %v2553_v8  ;;  %v3280_v31 = vadd.f32 %v2237_v34, %v3167_v18  ;;  %v1329_v19 = vpop.f32.mrb[27].mxu1  ;;  %v1929_v2 = vmul.f32 -1.442695, %v3272_v42 }
 0x2de   : > { %2568 = vrcp.f32 %v1472_v28  ;;  %v3284_v63 = vadd.f32 %v3167_v18, %v1329_v19  ;;  %v1927_v44 = vmul.f32 -1.442695, %v3276_v7 }
 0x2df   : > { %2570 = vrcp.f32 %v1470_v6  ;;  %v1930_v45 = vmul.f32 -1.442695, %v3280_v31 }
 0x2e0   : > { %2572 = vpow2.f32 %v1923_v41  ;;  %v1928_v32 = vmul.f32 -1.442695, %v3284_v63 }
 0x2e1   : > { %v2555_v29 = vpop.eup %2554  ;;  %2574 = vpow2.f32 %v1926_v16 }
 0x2e2   : > { %v2557_v43 = vpop.eup %2556  ;;  %2576 = vpow2.f32 %v1924_v56  ;;  %v2240_v22 = vpop.f32.mrb[28].mxu1  ;;  %v1563_v27 = vmul.f32 %v2555_v29, %v3215_v38 }
 0x2e3   : > { %v2559_v57 = vpop.eup %2558  ;;  %2578 = vpow2.f32 %v1929_v2  ;;  %v3292_v4 = vadd.f32 %v2240_v22, %v3167_v18  ;;  %v1342_v50 = vpop.f32.mrb[29].mxu1  ;;  %v1561_v62 = vmul.f32 %v2557_v43, %v3218_v48 }
 0x2e4   : > { %v2561_v26 = vpop.eup %2560  ;;  %v1564_v55 = vmul.f32 %v2559_v57, %v3221_v59  ;;  %2580 = vpow2.f32 %v1927_v44  ;;  %v3297_v35 = vadd.f32 %v3167_v18, %v1342_v50  ;;  %v2241_v20 = vpop.f32.mrb[30].mxu1 }
 0x2e5   : > { %v2563_v53 = vpop.eup %2562  ;;  %v1562_v24 = vmul.f32 %v2561_v26, %v3225_v25  ;;  %2582 = vpow2.f32 %v1930_v45  ;;  %v1933_v38 = vmul.f32 -1.442695, %v3292_v4  ;;  %v3302_v33 = vadd.f32 %v2241_v20, %v3167_v18  ;;  %v1345_v9 = vpop.f32.mrb[31].mxu1 }
 0x2e6   : > { %v2565_v48 = vpop.eup %2564  ;;  %v2041_v37 = vpack.c.bf16 %v1564_v55, %v1563_v27  ;;  %2584 = vpow2.f32 %v1928_v32  ;;  %v1931_v59 = vmul.f32 -1.442695, %v3297_v35  ;;  %v1475_v15 = vadd.f32 1.0, %v2563_v53 }
 0x2e7   : > { %v2567_v13 = vpop.eup %2566  ;;  %v2036_v3 = vpack.c.bf16 %v1562_v24, %v1561_v62  ;;  %2586 = vpow2.f32 %v1933_v38  ;;  %v1934_v61 = vmul.f32 -1.442695, %v3302_v33  ;;  %v3308_v14 = vadd.f32 %v3167_v18, %v1345_v9 }
 0x2e8   : > { %v2569_v25 = vpop.eup %2568  ;;  %2089 = vst [vmem:[%s3200_s30 + $0x38] sm:$0xff] %v2041_v37   ;;  %v1567_v58 = vmul.f32 %v2565_v48, %v3235_v36  ;;  %2588 = vpow2.f32 %v1931_v59  ;;  %v1565_v54 = vmul.f32 %v2567_v13, %v3238_v23 }
 0x2e9   : > { %v2571_v1 = vpop.eup %2570  ;;  %2088 = vst [vmem:[%s3200_s30 + $0x30] sm:$0xff] %v2036_v3   ;;  %v1568_v12 = vmul.f32 %v2569_v25, %v3242_v40  ;;  %2590 = vpow2.f32 %v1934_v61  ;;  %v1932_v0 = vmul.f32 -1.442695, %v3308_v14 }
 0x2ea   : > { %v2573_v30 = vpop.eup %2572  ;;  %v1566_v47 = vmul.f32 %v2571_v1, %v3247_v51  ;;  %2592 = vrcp.f32 %v1475_v15 }
 0x2eb   : > { %v2575_v49 = vpop.eup %2574  ;;  %v2051_v18 = vpack.c.bf16 %v1568_v12, %v1567_v58  ;;  %v1473_v5 = vadd.f32 1.0, %v2573_v30  ;;  %2594 = vpow2.f32 %v1932_v0 }
 0x2ec   : > { %v2577_v17 = vpop.eup %2576  ;;  %v2046_v60 = vpack.c.bf16 %v1566_v47, %v1565_v54  ;;  %v1476_v36 = vadd.f32 1.0, %v2575_v49 }
 0x2ed   : > { %v2579_v40 = vpop.eup %2578  ;;  %2091 = vst [vmem:[%s3200_s30 + $0x48] sm:$0xff] %v2051_v18   ;;  %2596 = vrcp.f32 %v1473_v5  ;;  %v1474_v52 = vadd.f32 1.0, %v2577_v17 }
 0x2ee   : > { %v2581_v10 = vpop.eup %2580  ;;  %2090 = vst [vmem:[%s3200_s30 + $0x40] sm:$0xff] %v2046_v60   ;;  %2598 = vrcp.f32 %v1476_v36  ;;  %v1479_v23 = vadd.f32 1.0, %v2579_v40 }
 0x2ef   : > { %v2583_v51 = vpop.eup %2582  ;;  %2600 = vrcp.f32 %v1474_v52  ;;  %v1477_v8 = vadd.f32 1.0, %v2581_v10 }
 0x2f0   : > { %v2585_v28 = vpop.eup %2584  ;;  %2602 = vrcp.f32 %v1479_v23  ;;  %v1480_v41 = vadd.f32 1.0, %v2583_v51 }
 0x2f1   : > { %v2587_v34 = vpop.eup %2586  ;;  %2604 = vrcp.f32 %v1477_v8  ;;  %v1478_v6 = vadd.f32 1.0, %v2585_v28 }
 0x2f2   : > { %2606 = vrcp.f32 %v1480_v41  ;;  %v1483_v16 = vadd.f32 1.0, %v2587_v34  ;;  %v2589_v19 = vpop.eup %2588 }
 0x2f3   : > { %2608 = vrcp.f32 %v1478_v6  ;;  %v2591_v56 = vpop.eup %2590  ;;  %v1481_v2 = vadd.f32 1.0, %v2589_v19 }
 0x2f4   : > { %v2593_v44 = vpop.eup %2592  ;;  %2610 = vrcp.f32 %v1483_v16  ;;  %v1484_v29 = vadd.f32 1.0, %v2591_v56 }
 0x2f5   : > { %v2595_v45 = vpop.eup %2594  ;;  %2612 = vrcp.f32 %v1481_v2  ;;  %v1571_v27 = vmul.f32 %v2593_v44, %v3255_v11 }
 0x2f6   : > { %2614 = vrcp.f32 %v1484_v29  ;;  %v1482_v32 = vadd.f32 1.0, %v2595_v45 }
 0x2f7   : > { %v2597_v43 = vpop.eup %2596 }
 0x2f8   : > { %v2599_v22 = vpop.eup %2598  ;;  %2616 = vrcp.f32 %v1482_v32  ;;  %v1569_v62 = vmul.f32 %v2597_v43, %v3263_v46 }
 0x2f9   : > { %v2601_v57 = vpop.eup %2600  ;;  %v1572_v50 = vmul.f32 %v2599_v22, %v3266_v21 }
 0x2fa   : > { %v2603_v26 = vpop.eup %2602  ;;  %v1570_v55 = vmul.f32 %v2601_v57, %v3269_v39 }
 0x2fb   : > { %v2605_v20 = vpop.eup %2604  ;;  %v2061_v53 = vpack.c.bf16 %v1572_v50, %v1571_v27  ;;  %v1575_v48 = vmul.f32 %v2603_v26, %v3272_v42 }
 0x2fc   : > { %v2607_v24 = vpop.eup %2606  ;;  %v2056_v38 = vpack.c.bf16 %v1570_v55, %v1569_v62  ;;  %v1573_v21 = vmul.f32 %v2605_v20, %v3276_v7 }
 0x2fd   : > { %v2609_v9 = vpop.eup %2608  ;;  %2093 = vst [vmem:[%s3200_s30 + $0x58] sm:$0xff] %v2061_v53   ;;  %v1576_v11 = vmul.f32 %v2607_v24, %v3280_v31 }
 0x2fe   : > { %2092 = vst [vmem:[%s3200_s30 + $0x50] sm:$0xff] %v2056_v38   ;;  %v1574_v46 = vmul.f32 %v2609_v9, %v3284_v63  ;;  %v2611_v39 = vpop.eup %2610 }
 0x2ff   : > { %v2071_v37 = vpack.c.bf16 %v1576_v11, %v1575_v48  ;;  %v2613_v59 = vpop.eup %2612  ;;  %v1579_v15 = vmul.f32 %v2611_v39, %v3292_v4 }
 0x300   : > { %v2066_v13 = vpack.c.bf16 %v1574_v46, %v1573_v21  ;;  %v2615_v3 = vpop.eup %2614  ;;  %v1577_v31 = vmul.f32 %v2613_v59, %v3297_v35 }
 0x301   : > { %2095 = vst [vmem:[%s3200_s30 + $0x68] sm:$0xff] %v2071_v37   ;;  %v1580_v42 = vmul.f32 %v2615_v3, %v3302_v33 }
 0x302   : > { %2094 = vst [vmem:[%s3200_s30 + $0x60] sm:$0xff] %v2066_v13   ;;  %v2617_v61 = vpop.eup %2616 }
 0x303   : > { %v2081_v25 = vpack.c.bf16 %v1580_v42, %v1579_v15  ;;  %v1578_v7 = vmul.f32 %v2617_v61, %v3308_v14 }
 0x305   : > { %2097 = vst [vmem:[%s3200_s30 + $0x78] sm:$0xff] %v2081_v25   ;;  %v2076_v63 = vpack.c.bf16 %v1578_v7, %v1577_v31 }
 0x307   : > { %2096 = vst [vmem:[%s3200_s30 + $0x70] sm:$0xff] %v2076_v63  }
 0x308 PF: > { %s16_s23 = sadd.s32 1, %s2640_s23   ;;  %s3352_s21 = smov %s2636_s22 }
 0x309   : > { %p13_p5 = scmp.ge.s32.totalorder %s16_s23, 4   ;;  %s3353_s22 = smov %s3355_s24 }
 0x30b   :  { %15 = sbr.rel (!%p13_p5) target bundleno = 2 (0x2), region = 74 }

// kernel: forward.23
= control target key start
LH: loop header
LB: loop body
LE: loop exit
PB: predicated region body
PF: predicated region fallthrough
CT: control target
= control target key end

     0   :  { %s1013_s12 = smov 0   ;;  %s1015_s13 = smov 0   ;;  %s1168_s0 = inlined_call_operand.vmem [shape: bf16[2,176,128], index: 0, kind: input, shape index: {}]   ;;  %s1169_s1 = inlined_call_operand.vmem [shape: bf16[128,128], index: 1, kind: input, shape index: {}]   ;;  %s1170_s2 = inlined_call_operand.vmem [shape: f32[1,128], index: 2, kind: input, shape index: {}]   ;;  %s1171_s3 = inlined_call_operand.vmem [shape: bf16[2,176,128], index: 3, kind: output, shape index: {}]  }
   0x1   :  { %s1017_s14 = smov 0  }
   0x2 LB: > { %s25_s15 = sadd.s32 1, %s985_s13  ;;  %p692_p0 = scmp.ge.s32.totalorder %s989_s14, 1  ;;  %s989_s14 = sphi %s1017_s14, %s13_s14   ;;  %s985_s13 = sphi %s1015_s13, %s1173_s13   ;;  %s981_s12 = sphi %s1013_s12, %s1172_s12  }
   0x3   : > { %p27_p1 = scmp.ge.s32.totalorder %s25_s15, 2  ;;  %p158_p2 = scmp.lt.s32.totalorder %s989_s14, 3 }
   0x5   : > { %s1175_s15 = smov (%p27_p1, %s25_s15), 0  ;;  %p159_p3 = pnand %p692_p0, %p158_p2 }
   0x6   : > { %v948_v0 = vld [vmem:[%s1169_s1] sm:$0xff] (!%p159_p3)   ;;  %v991_v1 = vmov (!%p159_p3), 0.0   ;;  %v949_v2 = vld [vmem:[%s1169_s1 + $0x8] sm:$0xff] (!%p159_p3)   ;;  %p191_p4 = scmp.lt.s32.totalorder (!%p159_p3), %s981_s12, 1  ;;  %vm992_vm0 = vmmov (!%p159_p3), 0   ;;  %v950_v3 = vld [vmem:[%s1169_s1 + $0x10] sm:$0xff] (!%p159_p3)  }
   0x7   : > { %162 = sbr.rel (%p159_p3) target bundleno = 298 (0x12a), region = 32  ;;  %845 = vmatprep.subr.bf16.mxu0 (!%p159_p3), %v991_v1  ;;  %905 = vmatprep.subr.bf16.mxu1 (!%p159_p3), %v991_v1  ;;  %v951_v4 = vld [vmem:[%s1169_s1 + $0x18] sm:$0xff] (!%p159_p3)   ;;  %v952_v5 = vld [vmem:[%s1169_s1 + $0x20] sm:$0xff] (!%p159_p3)   ;;  %v953_v6 = vld [vmem:[%s1169_s1 + $0x28] sm:$0xff] (!%p159_p3)  }
   0x8   : > { %846 = vmatpush3.bf16.msra.mxu0 (!%p159_p3), %v948_v0  ;;  %913 = vmatpush3.bf16.msra.mxu1 (!%p159_p3), %v948_v0  ;;  %v954_v7 = vld [vmem:[%s1169_s1 + $0x30] sm:$0xff] (!%p159_p3)   ;;  %v955_v8 = vld [vmem:[%s1169_s1 + $0x38] sm:$0xff] (!%p159_p3)   ;;  %v1117_v20 = vld [vmem:[%s1170_s2] ss:$0 sm:$0xff] (!%p159_p3) }
   0x9   : > { %847 = vmatprep.subr.bf16.mxu0 (!%p159_p3), %v991_v1  ;;  %906 = vmatprep.subr.bf16.mxu1 (!%p159_p3), %v991_v1 }
   0xa   : > { %861 = vmatprep.mubr.msk.bf16.mxu0 (!%p159_p3), %vm992_vm0, %v991_v1  ;;  %885 = vmatprep.mubr.msk.bf16.mxu1 (!%p159_p3), %vm992_vm0, %v991_v1 }
   0xc   : > { %848 = vmatpush3.bf16.msra.mxu0 (!%p159_p3), %v949_v2  ;;  %914 = vmatpush3.bf16.msra.mxu1 (!%p159_p3), %v949_v2 }
   0xd   : > { %849 = vmatprep.subr.bf16.mxu0 (!%p159_p3), %v991_v1  ;;  %907 = vmatprep.subr.bf16.mxu1 (!%p159_p3), %v991_v1 }
   0xe   : > { %s1177_s12 = smov (!%p191_p4, %s981_s12), 1 }
   0xf   : > { %s921_s22 = smul.u32 88, %s1177_s12 }
  0x10   : > { %850 = vmatpush3.bf16.msra.mxu0 %v950_v3  ;;  %915 = vmatpush3.bf16.msra.mxu1 %v950_v3 }
  0x11   : > { %s1058_s25 = scalar_lea.vmem %s1168_s0, %s921_s22  ;;  %851 = vmatprep.subr.bf16.mxu0 %v991_v1  ;;  %908 = vmatprep.subr.bf16.mxu1 %v991_v1  ;;  %s1128_s17 = scalar_lea.vmem %s1171_s3, %s921_s22 }
  0x12   : > { %v956_v9 = vld [vmem:[%s1058_s25] sm:$0xff]   ;;  %v957_v10 = vld [vmem:[%s1058_s25 + $0x30] sm:$0xff]   ;;  %v958_v11 = vld [vmem:[%s1058_s25 + $0x8] sm:$0xff]  }
  0x13   : > { %v959_v12 = vld [vmem:[%s1058_s25 + $0x38] sm:$0xff]   ;;  %v960_v13 = vld [vmem:[%s1058_s25 + $0x10] sm:$0xff]   ;;  %v961_v14 = vld [vmem:[%s1058_s25 + $0x40] sm:$0xff]  }
  0x14   : > { %852 = vmatpush3.bf16.msra.mxu0 %v951_v4  ;;  %916 = vmatpush3.bf16.msra.mxu1 %v951_v4  ;;  %v962_v15 = vld [vmem:[%s1058_s25 + $0x18] sm:$0xff]   ;;  %v963_v16 = vld [vmem:[%s1058_s25 + $0x48] sm:$0xff]   ;;  %v964_v17 = vld [vmem:[%s1058_s25 + $0x20] sm:$0xff]  }
  0x15   : > { %853 = vmatprep.subr.bf16.mxu0 %v991_v1  ;;  %909 = vmatprep.subr.bf16.mxu1 %v991_v1  ;;  %v965_v18 = vld [vmem:[%s1058_s25 + $0x50] sm:$0xff]   ;;  %v966_v19 = vld [vmem:[%s1058_s25 + $0x28] sm:$0xff]  }
  0x18   : > { %854 = vmatpush3.bf16.msra.mxu0 %v952_v5  ;;  %917 = vmatpush3.bf16.msra.mxu1 %v952_v5 }
  0x19   : > { %855 = vmatprep.subr.bf16.mxu0 %v991_v1  ;;  %910 = vmatprep.subr.bf16.mxu1 %v991_v1 }
  0x1c   : > { %856 = vmatpush3.bf16.msra.mxu0 %v953_v6  ;;  %918 = vmatpush3.bf16.msra.mxu1 %v953_v6 }
  0x1d   : > { %857 = vmatprep.subr.bf16.mxu0 %v991_v1  ;;  %911 = vmatprep.subr.bf16.mxu1 %v991_v1 }
  0x20   : > { %858 = vmatpush3.bf16.msra.mxu0 %v954_v7  ;;  %919 = vmatpush3.bf16.msra.mxu1 %v954_v7 }
  0x21   : > { %859 = vmatprep.subr.bf16.mxu0 %v991_v1  ;;  %912 = vmatprep.subr.bf16.mxu1 %v991_v1 }
  0x24   : > { %860 = vmatpush3.bf16.msra.mxu0 %v955_v8  ;;  %920 = vmatpush3.bf16.msra.mxu1 %v955_v8 }
  0x27   : > { %862 = vmatmul.mubr.bf16.vlgmr.msra.gmra.mrb[0].mxu0 %v956_v9  ;;  %886 = vmatmul.mubr.bf16.vlgmr.msra.gmra.mrb[0].mxu1 %v957_v10 }
  0x28   : > { %865 = vmatprep.mubr.msk.bf16.mxu0 %vm992_vm0, %v991_v1  ;;  %889 = vmatprep.mubr.msk.bf16.mxu1 %vm992_vm0, %v991_v1 }
  0x2f   : > { %866 = vmatmul.mubr.bf16.gmra.mrb[4].mxu0 %v958_v11  ;;  %890 = vmatmul.mubr.bf16.gmra.mrb[4].mxu1 %v959_v12 }
  0x30   : > { %869 = vmatprep.mubr.msk.bf16.mxu0 %vm992_vm0, %v991_v1  ;;  %893 = vmatprep.mubr.msk.bf16.mxu1 %vm992_vm0, %v991_v1 }
  0x37   : > { %870 = vmatmul.mubr.bf16.gmra.mrb[8].mxu0 %v960_v13  ;;  %894 = vmatmul.mubr.bf16.gmra.mrb[8].mxu1 %v961_v14 }
  0x38   : > { %873 = vmatprep.mubr.msk.bf16.mxu0 %vm992_vm0, %v991_v1  ;;  %897 = vmatprep.mubr.msk.bf16.mxu1 %vm992_vm0, %v991_v1 }
  0x3f   : > { %874 = vmatmul.mubr.bf16.gmra.mrb[12].mxu0 %v962_v15  ;;  %898 = vmatmul.mubr.bf16.gmra.mrb[12].mxu1 %v963_v16 }
  0x40   : > { %877 = vmatprep.mubr.msk.bf16.mxu0 %vm992_vm0, %v991_v1  ;;  %901 = vmatprep.mubr.msk.bf16.mxu1 %vm992_vm0, %v991_v1 }
  0x47   : > { %878 = vmatmul.mubr.bf16.gmra.mrb[16].mxu0 %v964_v17  ;;  %902 = vmatmul.mubr.bf16.gmra.mrb[16].mxu1 %v965_v18 }
  0x48   : > { %881 = vmatprep.mubr.msk.bf16.mxu0 %vm992_vm0, %v991_v1 }
  0x4f   : > { %882 = vmatmul.mubr.bf16.gmra.mrb[20].mxu0 %v966_v19 }
  0xfa   : > { %v404_v21 = vpop.f32.mrb[0].mxu0  ;;  %v452_v22 = vpop.f32.mrb[0].mxu1 }
  0xfb   : > { %v863_v23 = vpop.f32.mrb[1].mxu0  ;;  %v453_v24 = vadd.f32 %v1117_v20, %v452_v22  ;;  %v887_v25 = vpop.f32.mrb[1].mxu1  ;;  %v405_v28 = vadd.f32 %v1117_v20, %v404_v21 }
  0xfc   : > { %v407_v26 = vpop.f32.mrb[2].mxu0  ;;  %v455_v27 = vpop.f32.mrb[2].mxu1 }
  0xfd   : > { %v408_v29 = vadd.f32 %v1117_v20, %v407_v26  ;;  %v864_v30 = vpop.f32.mrb[3].mxu0  ;;  %v456_v31 = vadd.f32 %v1117_v20, %v455_v27  ;;  %v888_v32 = vpop.f32.mrb[3].mxu1 }
  0xff   : > { %v764_v33 = vpack.c.bf16 %v408_v29, %v405_v28  ;;  %v794_v34 = vpack.c.bf16 %v456_v31, %v453_v24 }
 0x101   : > { %765 = vst [vmem:[%s1128_s17] sm:$0xff] %v764_v33   ;;  %821 = vst [vmem:[%s1128_s17 + $0x30] sm:$0xff] %v794_v34  }
 0x102   : > { %v412_v35 = vpop.f32.mrb[4].mxu0  ;;  %v460_v36 = vpop.f32.mrb[4].mxu1 }
 0x103   : > { %v867_v37 = vpop.f32.mrb[5].mxu0  ;;  %v461_v38 = vadd.f32 %v1117_v20, %v460_v36  ;;  %v891_v39 = vpop.f32.mrb[5].mxu1  ;;  %v413_v42 = vadd.f32 %v1117_v20, %v412_v35 }
 0x104   : > { %v415_v40 = vpop.f32.mrb[6].mxu0  ;;  %v463_v41 = vpop.f32.mrb[6].mxu1 }
 0x105   : > { %v416_v43 = vadd.f32 %v1117_v20, %v415_v40  ;;  %v868_v44 = vpop.f32.mrb[7].mxu0  ;;  %v464_v45 = vadd.f32 %v1117_v20, %v463_v41  ;;  %v892_v46 = vpop.f32.mrb[7].mxu1 }
 0x107   : > { %v769_v47 = vpack.c.bf16 %v416_v43, %v413_v42  ;;  %v799_v48 = vpack.c.bf16 %v464_v45, %v461_v38 }
 0x109   : > { %816 = vst [vmem:[%s1128_s17 + $0x8] sm:$0xff] %v769_v47   ;;  %822 = vst [vmem:[%s1128_s17 + $0x38] sm:$0xff] %v799_v48  }
 0x10a   : > { %v420_v49 = vpop.f32.mrb[8].mxu0  ;;  %v468_v50 = vpop.f32.mrb[8].mxu1 }
 0x10b   : > { %v871_v51 = vpop.f32.mrb[9].mxu0  ;;  %v469_v52 = vadd.f32 %v1117_v20, %v468_v50  ;;  %v895_v53 = vpop.f32.mrb[9].mxu1  ;;  %v421_v56 = vadd.f32 %v1117_v20, %v420_v49 }
 0x10c   : > { %v423_v54 = vpop.f32.mrb[10].mxu0  ;;  %v471_v55 = vpop.f32.mrb[10].mxu1 }
 0x10d   : > { %v424_v57 = vadd.f32 %v1117_v20, %v423_v54  ;;  %v872_v58 = vpop.f32.mrb[11].mxu0  ;;  %v472_v59 = vadd.f32 %v1117_v20, %v471_v55  ;;  %v896_v60 = vpop.f32.mrb[11].mxu1 }
 0x10f   : > { %v774_v61 = vpack.c.bf16 %v424_v57, %v421_v56  ;;  %v804_v62 = vpack.c.bf16 %v472_v59, %v469_v52 }
 0x111   : > { %817 = vst [vmem:[%s1128_s17 + $0x10] sm:$0xff] %v774_v61   ;;  %823 = vst [vmem:[%s1128_s17 + $0x40] sm:$0xff] %v804_v62  }
 0x112   : > { %v428_v63 = vpop.f32.mrb[12].mxu0  ;;  %v476_v0 = vpop.f32.mrb[12].mxu1 }
 0x113   : > { %v875_v1 = vpop.f32.mrb[13].mxu0  ;;  %v477_v2 = vadd.f32 %v1117_v20, %v476_v0  ;;  %v899_v3 = vpop.f32.mrb[13].mxu1  ;;  %v429_v6 = vadd.f32 %v1117_v20, %v428_v63 }
 0x114   : > { %v431_v4 = vpop.f32.mrb[14].mxu0  ;;  %v479_v5 = vpop.f32.mrb[14].mxu1 }
 0x115   : > { %v432_v7 = vadd.f32 %v1117_v20, %v431_v4  ;;  %v876_v8 = vpop.f32.mrb[15].mxu0  ;;  %v480_v9 = vadd.f32 %v1117_v20, %v479_v5  ;;  %v900_v10 = vpop.f32.mrb[15].mxu1 }
 0x117   : > { %v779_v11 = vpack.c.bf16 %v432_v7, %v429_v6  ;;  %v809_v12 = vpack.c.bf16 %v480_v9, %v477_v2 }
 0x119   : > { %818 = vst [vmem:[%s1128_s17 + $0x18] sm:$0xff] %v779_v11   ;;  %824 = vst [vmem:[%s1128_s17 + $0x48] sm:$0xff] %v809_v12  }
 0x11a   : > { %v436_v13 = vpop.f32.mrb[16].mxu0  ;;  %v484_v14 = vpop.f32.mrb[16].mxu1 }
 0x11b   : > { %v879_v15 = vpop.f32.mrb[17].mxu0  ;;  %v485_v16 = vadd.f32 %v1117_v20, %v484_v14  ;;  %v903_v17 = vpop.f32.mrb[17].mxu1  ;;  %v437_v21 = vadd.f32 %v1117_v20, %v436_v13 }
 0x11c   : > { %v439_v18 = vpop.f32.mrb[18].mxu0  ;;  %v487_v19 = vpop.f32.mrb[18].mxu1 }
 0x11d   : > { %v440_v22 = vadd.f32 %v1117_v20, %v439_v18  ;;  %v880_v23 = vpop.f32.mrb[19].mxu0  ;;  %v488_v24 = vadd.f32 %v1117_v20, %v487_v19  ;;  %v904_v25 = vpop.f32.mrb[19].mxu1 }
 0x11f   : > { %v784_v26 = vpack.c.bf16 %v440_v22, %v437_v21  ;;  %v814_v27 = vpack.c.bf16 %v488_v24, %v485_v16 }
 0x121   : > { %819 = vst [vmem:[%s1128_s17 + $0x20] sm:$0xff] %v784_v26   ;;  %825 = vst [vmem:[%s1128_s17 + $0x50] sm:$0xff] %v814_v27  }
 0x122   : > { %v444_v28 = vpop.f32.mrb[20].mxu0 }
 0x123   : > { %v883_v29 = vpop.f32.mrb[21].mxu0  ;;  %v445_v31 = vadd.f32 %v1117_v20, %v444_v28 }
 0x124   : > { %v447_v30 = vpop.f32.mrb[22].mxu0 }
 0x125   : > { %v448_v32 = vadd.f32 %v1117_v20, %v447_v30  ;;  %v884_v33 = vpop.f32.mrb[23].mxu0 }
 0x127   : > { %v789_v34 = vpack.c.bf16 %v448_v32, %v445_v31 }
 0x129   : > { %820 = vst [vmem:[%s1128_s17 + $0x28] sm:$0xff] %v789_v34  }
 0x12a PF: > { %s13_s14 = sadd.s32 1, %s989_s14   ;;  %s1172_s12 = smov %s985_s13 }
 0x12b   : > { %p10_p5 = scmp.ge.s32.totalorder %s13_s14, 4   ;;  %s1173_s13 = smov %s1175_s15 }
 0x12d   :  { %12 = sbr.rel (!%p10_p5) target bundleno = 2 (0x2), region = 62 }

</bundles_post_ra>
